<compile_context>
chip_gen: v7x
topology: tpu7x:2x2x1
jax: 0.10.0
libtpu: 0.0.40
codegen_flags: <defaults>
</compile_context>

<pallas_src>
import functools

import jax
import jax.numpy as jnp
from jax.experimental import pallas as pl
from jax.experimental.pallas import tpu as pltpu


_VMEM_LIMIT_BYTES = 32 * 1024 * 1024   # explicit; fits v5e/v6e/v7x comfortably


def _round_up(x, m):
    return ((x + m - 1) // m) * m


# ----------------------------- Pallas kernels ------------------------------

def _matmul_bias_act_kernel(a_ref, w_ref, b_ref, o_ref, *, negative_slope):
    """out_tile = a_tile @ w + b, optionally followed by LeakyReLU."""
    out = jnp.dot(a_ref[...], w_ref[...], preferred_element_type=jnp.float32)
    out = out + b_ref[...]
    if negative_slope is not None:
        out = jnp.where(out >= 0.0, out, negative_slope * out)
    o_ref[...] = out.astype(o_ref.dtype)


def _inorm_lrelu_kernel(x_ref, o_ref, *, eps, negative_slope):
    """Per-(sample, channel) instance norm over H*W, then LeakyReLU.

    Block layout is (1, H*W, C): channels lane-dense, H*W reduce on sublanes.
    """
    x = x_ref[...].astype(jnp.float32)
    mean = jnp.mean(x, axis=1, keepdims=True)
    var = jnp.mean(jnp.square(x - mean), axis=1, keepdims=True)  # biased, like PyTorch
    y = (x - mean) * jax.lax.rsqrt(var + eps)
    y = jnp.where(y >= 0.0, y, negative_slope * y)
    o_ref[...] = y.astype(o_ref.dtype)


# ------------------------------ layer wrappers ------------------------------

def _matmul_bias_act(a_bf16, w_bf16, bias_f32, negative_slope, tm=256):
    """(M, K) @ (K, N) + bias [+ LeakyReLU], gridded over M."""
    m, k = a_bf16.shape
    k2, n = w_bf16.shape
    assert k == k2 and k % 128 == 0

    tm = min(tm, _round_up(m, 8))
    m_pad = _round_up(m, tm)
    if m_pad != m:
        a_bf16 = jnp.pad(a_bf16, ((0, m_pad - m), (0, 0)))

    kern = functools.partial(_matmul_bias_act_kernel, negative_slope=negative_slope)
    cost = pl.CostEstimate(
        flops=2 * m_pad * k * n,
        transcendentals=0,
        bytes_accessed=m_pad * k * 2 + k * n * 2 + (m_pad * n + n) * 4,
    )
    out = pl.pallas_call(
        kern,
        out_shape=jax.ShapeDtypeStruct((m_pad, n), jnp.float32),
        grid=(m_pad // tm,),
        in_specs=[
            pl.BlockSpec((tm, k), lambda i: (i, 0)),   # activation tile (pipelined)
            pl.BlockSpec((k, n), lambda i: (0, 0)),    # weight stays resident
            pl.BlockSpec((1, n), lambda i: (0, 0)),    # bias stays resident
        ],
        out_specs=pl.BlockSpec((tm, n), lambda i: (i, 0)),
        compiler_params=pltpu.CompilerParams(
            dimension_semantics=("parallel",),
            vmem_limit_bytes=_VMEM_LIMIT_BYTES,
        ),
        cost_estimate=cost,
    )(a_bf16, w_bf16, bias_f32.reshape(1, n))
    return out[:m] if m_pad != m else out


def _instance_norm_lrelu_nhwc(x, eps=1e-5, negative_slope=0.2):
    n, h, w, c = x.shape
    hw = h * w
    rows = x.reshape(n, hw, c)
    kern = functools.partial(_inorm_lrelu_kernel, eps=eps, negative_slope=negative_slope)
    out = pl.pallas_call(
        kern,
        out_shape=jax.ShapeDtypeStruct((n, hw, c), jnp.float32),
        grid=(n,),
        in_specs=[pl.BlockSpec((1, hw, c), lambda i: (i, 0, 0))],
        out_specs=pl.BlockSpec((1, hw, c), lambda i: (i, 0, 0)),
        compiler_params=pltpu.CompilerParams(
            dimension_semantics=("parallel",),
            vmem_limit_bytes=_VMEM_LIMIT_BYTES,
        ),
    )(rows)
    return out.reshape(n, h, w, c)


def _im2col_nhwc(x, k, stride, pad):
    """NHWC im2col; feature order along last axis is (ki, kj, c)."""
    n, h, w, c = x.shape
    xp = jnp.pad(x, ((0, 0), (pad, pad), (pad, pad), (0, 0)))
    ho = (h + 2 * pad - k) // stride + 1
    wo = (w + 2 * pad - k) // stride + 1
    cols = []
    for i in range(k):
        for j in range(k):
            cols.append(xp[:, i:i + stride * ho:stride, j:j + stride * wo:stride, :])
    col = jnp.concatenate(cols, axis=-1)               # (N, Ho, Wo, K*K*C)
    return col.reshape(n * ho * wo, k * k * c), ho, wo


def conv2d_nhwc(x, weight, bias, stride, pad, negative_slope=None):
    """PyTorch-style Conv2d (cross-correlation) on an NHWC input.

    weight: (Cout, Cin, K, K) (torch layout); bias: (Cout,).
    """
    cout, cin, k, _ = weight.shape
    col, ho, wo = _im2col_nhwc(x, k, stride, pad)
    col = col.astype(jnp.bfloat16)                     # bf16 MXU feed, f32 accumulate
    wmat = jnp.transpose(weight, (2, 3, 1, 0)).reshape(k * k * cin, cout)

    # Pad K to a multiple of 128 lanes (layer 1: 6*16 = 96 -> 128).
    kk = k * k * cin
    kk_pad = _round_up(kk, 128)
    if kk_pad != kk:
        col = jnp.pad(col, ((0, 0), (0, kk_pad - kk)))
        wmat = jnp.pad(wmat, ((0, kk_pad - kk), (0, 0)))

    # Pad a tiny Cout (the final 512->1 conv) to 128 lanes; slice afterwards.
    cout_pad = cout if cout >= 64 else 128
    bias_p = bias
    if cout_pad != cout:
        wmat = jnp.pad(wmat, ((0, 0), (0, cout_pad - cout)))
        bias_p = jnp.pad(bias, (0, cout_pad - cout))

    out = _matmul_bias_act(col, wmat.astype(jnp.bfloat16), bias_p, negative_slope)
    if cout_pad != cout:
        out = out[:, :cout]
    nbatch = x.shape[0]
    return out.reshape(nbatch, ho, wo, cout)


# ------------------------------- discriminator ------------------------------

def init_params(key, in_channels=3):
    """Deterministic Conv2d params (uniform +/- 1/sqrt(fan_in), like PyTorch default)."""
    specs = [
        (in_channels * 2, 64),
        (64, 128),
        (128, 256),
        (256, 512),
        (512, 1),
    ]
    params = []
    for idx, (cin, cout) in enumerate(specs):
        kw, kb = jax.random.split(jax.random.fold_in(key, idx))
        fan_in = float(cin * 4 * 4)
        bound = 1.0 / (fan_in ** 0.5)
        w = jax.random.uniform(kw, (cout, cin, 4, 4), jnp.float32, -bound, bound)
        b = jax.random.uniform(kb, (cout,), jnp.float32, -bound, bound)
        params.append((w, b))
    return params


def discriminator_forward(params, img_a, img_b):
    """img_a, img_b: NCHW (PyTorch layout).  Returns the NCHW patch map."""
    x = jnp.concatenate([img_a, img_b], axis=1)        # (N, 2*Cin, H, W)
    x = jnp.transpose(x, (0, 2, 3, 1))                 # single boundary NCHW -> NHWC
    (w1, b1), (w2, b2), (w3, b3), (w4, b4), (w5, b5) = params
    # block 1: conv(s=2) + LeakyReLU(0.2)              (no normalization)
    x = conv2d_nhwc(x, w1, b1, stride=2, pad=1, negative_slope=0.2)
    # blocks 2-4: conv(s=2) + InstanceNorm2d + LeakyReLU(0.2)
    x = conv2d_nhwc(x, w2, b2, stride=2, pad=1)
    x = _instance_norm_lrelu_nhwc(x)
    x = conv2d_nhwc(x, w3, b3, stride=2, pad=1)
    x = _instance_norm_lrelu_nhwc(x)
    x = conv2d_nhwc(x, w4, b4, stride=2, pad=1)
    x = _instance_norm_lrelu_nhwc(x)
    # final conv: 512 -> 1, k=4, stride=1, pad=1, no activation
    x = conv2d_nhwc(x, w5, b5, stride=1, pad=1)
    return jnp.transpose(x, (0, 3, 1, 2))              # back to NCHW


if __name__ == "__main__":
    key = jax.random.PRNGKey(0)
    k_params, k_a, k_b = jax.random.split(key, 3)

    params = init_params(k_params, in_channels=3)

    # Small-but-valid shapes: 32x32 -> 16 -> 8 -> 4 -> 2 -> final 1x1 patch map.
    img_a = jax.random.normal(k_a, (2, 3, 32, 32), jnp.float32)
    img_b = jax.random.normal(k_b, (2, 3, 32, 32), jnp.float32)

    fwd = jax.jit(discriminator_forward)
    out = fwd(params, img_a, img_b)
    jax.block_until_ready(out)

    assert out.shape == (2, 1, 1, 1), out.shape
    assert out.dtype == jnp.float32
    print("KERNEL_OK")
</pallas_src>

<mosaic_0001>
module attributes {stable_mosaic.version = 11 : i64} {
  func.func @_matmul_bias_act_kernel(%arg0: i32, %arg1: memref<256x128xbf16, #tpu.memory_space<vmem>>, %arg2: memref<128x64xbf16, #tpu.memory_space<vmem>>, %arg3: memref<1x64xf32, #tpu.memory_space<vmem>>, %arg4: memref<256x64xf32, #tpu.memory_space<vmem>>) attributes {dimension_semantics = [#tpu.dimension_semantics<parallel>], iteration_bounds = array<i64: 2>, scalar_prefetch = 0 : i64, scratch_operands = 0 : i64, tpu.core_type = #tpu.core_type<tc>, window_params = [{transform_indices = @transform_0, window_bounds = array<i64: 256, 128>}, {pipeline_mode = #tpu.pipeline_mode<synchronous>, transform_indices = @transform_1, window_bounds = array<i64: 128, 64>}, {pipeline_mode = #tpu.pipeline_mode<synchronous>, transform_indices = @transform_2, window_bounds = array<i64: 1, 64>}, {transform_indices = @transform_3, window_bounds = array<i64: 256, 64>}]} {
    %c0 = arith.constant 0 : index
    %c0_0 = arith.constant 0 : index
    %0 = vector.load %arg1[%c0, %c0_0] : memref<256x128xbf16, #tpu.memory_space<vmem>>, vector<256x128xbf16>
    %c0_1 = arith.constant 0 : index
    %c0_2 = arith.constant 0 : index
    %1 = vector.load %arg2[%c0_1, %c0_2] : memref<128x64xbf16, #tpu.memory_space<vmem>>, vector<128x64xbf16>
    %cst = arith.constant dense<0.000000e+00> : vector<256x64xf32>
    %2 = tpu.matmul %0, %1, %cst {dimension_numbers = #tpu.dot_dimension_numbers<[1], [0], [0], [1], [0, 0, 1, 1], [], []>} : vector<256x128xbf16>, vector<128x64xbf16>, vector<256x64xf32> -> vector<256x64xf32>
    %c0_3 = arith.constant 0 : index
    %c0_4 = arith.constant 0 : index
    %3 = vector.load %arg3[%c0_3, %c0_4] : memref<1x64xf32, #tpu.memory_space<vmem>>, vector<1x64xf32>
    %4 = vector.broadcast %3 : vector<1x64xf32> to vector<256x64xf32>
    %5 = arith.addf %2, %4 : vector<256x64xf32>
    %cst_5 = arith.constant 0.000000e+00 : f32
    %6 = vector.broadcast %cst_5 : f32 to vector<256x64xf32>
    %7 = arith.cmpf oge, %5, %6 : vector<256x64xf32>
    %cst_6 = arith.constant 2.000000e-01 : f32
    %8 = vector.broadcast %cst_6 : f32 to vector<256x64xf32>
    %9 = arith.mulf %8, %5 : vector<256x64xf32>
    %10 = arith.select %7, %5, %9 : vector<256x64xi1>, vector<256x64xf32>
    %c0_7 = arith.constant 0 : index
    %c0_8 = arith.constant 0 : index
    %11 = vector.load %arg4[%c0_7, %c0_8] : memref<256x64xf32, #tpu.memory_space<vmem>>, vector<256x64xf32>
    tpu.vector_store %arg4[%c0_7, %c0_8], %10 {strides = array<i32>} : memref<256x64xf32, #tpu.memory_space<vmem>>, vector<256x64xf32>,
    return
  }
  func.func @transform_0(%arg0: i32) -> (i32, i32) {
    %c0_i32 = arith.constant 0 : i32
    %c0_i32_0 = arith.constant 0 : i32
    return %arg0, %c0_i32 : i32, i32
  }
  func.func @transform_1(%arg0: i32) -> (i32, i32) {
    %c0_i32 = arith.constant 0 : i32
    %c0_i32_0 = arith.constant 0 : i32
    %c0_i32_1 = arith.constant 0 : i32
    return %c0_i32, %c0_i32_0 : i32, i32
  }
  func.func @transform_2(%arg0: i32) -> (i32, i32) {
    %c0_i32 = arith.constant 0 : i32
    %c0_i32_0 = arith.constant 0 : i32
    %c0_i32_1 = arith.constant 0 : i32
    return %c0_i32, %c0_i32_0 : i32, i32
  }
  func.func @transform_3(%arg0: i32) -> (i32, i32) {
    %c0_i32 = arith.constant 0 : i32
    %c0_i32_0 = arith.constant 0 : i32
    return %arg0, %c0_i32 : i32, i32
  }
}

module attributes {stable_mosaic.version = 11 : i64} {
  func.func @_matmul_bias_act_kernel(%arg0: i32, %arg1: memref<128x1024xbf16, #tpu.memory_space<vmem>>, %arg2: memref<1024x128xbf16, #tpu.memory_space<vmem>>, %arg3: memref<1x128xf32, #tpu.memory_space<vmem>>, %arg4: memref<128x128xf32, #tpu.memory_space<vmem>>) attributes {dimension_semantics = [#tpu.dimension_semantics<parallel>], iteration_bounds = array<i64: 1>, scalar_prefetch = 0 : i64, scratch_operands = 0 : i64, tpu.core_type = #tpu.core_type<tc>, window_params = [{transform_indices = @transform_0, window_bounds = array<i64: 128, 1024>}, {pipeline_mode = #tpu.pipeline_mode<synchronous>, transform_indices = @transform_1, window_bounds = array<i64: 1024, 128>}, {pipeline_mode = #tpu.pipeline_mode<synchronous>, transform_indices = @transform_2, window_bounds = array<i64: 1, 128>}, {transform_indices = @transform_3, window_bounds = array<i64: 128, 128>}]} {
    %c0 = arith.constant 0 : index
    %c0_0 = arith.constant 0 : index
    %0 = vector.load %arg1[%c0, %c0_0] : memref<128x1024xbf16, #tpu.memory_space<vmem>>, vector<128x1024xbf16>
    %c0_1 = arith.constant 0 : index
    %c0_2 = arith.constant 0 : index
    %1 = vector.load %arg2[%c0_1, %c0_2] : memref<1024x128xbf16, #tpu.memory_space<vmem>>, vector<1024x128xbf16>
    %cst = arith.constant dense<0.000000e+00> : vector<128x128xf32>
    %2 = tpu.matmul %0, %1, %cst {dimension_numbers = #tpu.dot_dimension_numbers<[1], [0], [0], [1], [0, 0, 1, 1], [], []>} : vector<128x1024xbf16>, vector<1024x128xbf16>, vector<128x128xf32> -> vector<128x128xf32>
    %c0_3 = arith.constant 0 : index
    %c0_4 = arith.constant 0 : index
    %3 = vector.load %arg3[%c0_3, %c0_4] : memref<1x128xf32, #tpu.memory_space<vmem>>, vector<1x128xf32>
    %4 = vector.broadcast %3 : vector<1x128xf32> to vector<128x128xf32>
    %5 = arith.addf %2, %4 : vector<128x128xf32>
    %c0_5 = arith.constant 0 : index
    %c0_6 = arith.constant 0 : index
    %6 = vector.load %arg4[%c0_5, %c0_6] : memref<128x128xf32, #tpu.memory_space<vmem>>, vector<128x128xf32>
    tpu.vector_store %arg4[%c0_5, %c0_6], %5 {strides = array<i32>} : memref<128x128xf32, #tpu.memory_space<vmem>>, vector<128x128xf32>,
    return
  }
  func.func @transform_0(%arg0: i32) -> (i32, i32) {
    %c0_i32 = arith.constant 0 : i32
    %c0_i32_0 = arith.constant 0 : i32
    return %arg0, %c0_i32 : i32, i32
  }
  func.func @transform_1(%arg0: i32) -> (i32, i32) {
    %c0_i32 = arith.constant 0 : i32
    %c0_i32_0 = arith.constant 0 : i32
    %c0_i32_1 = arith.constant 0 : i32
    return %c0_i32, %c0_i32_0 : i32, i32
  }
  func.func @transform_2(%arg0: i32) -> (i32, i32) {
    %c0_i32 = arith.constant 0 : i32
    %c0_i32_0 = arith.constant 0 : i32
    %c0_i32_1 = arith.constant 0 : i32
    return %c0_i32, %c0_i32_0 : i32, i32
  }
  func.func @transform_3(%arg0: i32) -> (i32, i32) {
    %c0_i32 = arith.constant 0 : i32
    %c0_i32_0 = arith.constant 0 : i32
    return %arg0, %c0_i32 : i32, i32
  }
}

module attributes {stable_mosaic.version = 11 : i64} {
  func.func @_inorm_lrelu_kernel(%arg0: i32, %arg1: memref<1x64x128xf32, #tpu.memory_space<vmem>>, %arg2: memref<1x64x128xf32, #tpu.memory_space<vmem>>) attributes {dimension_semantics = [#tpu.dimension_semantics<parallel>], iteration_bounds = array<i64: 2>, scalar_prefetch = 0 : i64, scratch_operands = 0 : i64, tpu.core_type = #tpu.core_type<tc>, window_params = [{transform_indices = @transform_0, window_bounds = array<i64: 1, 64, 128>}, {transform_indices = @transform_1, window_bounds = array<i64: 1, 64, 128>}]} {
    %c0 = arith.constant 0 : index
    %c0_0 = arith.constant 0 : index
    %c0_1 = arith.constant 0 : index
    %0 = vector.load %arg1[%c0, %c0_0, %c0_1] : memref<1x64x128xf32, #tpu.memory_space<vmem>>, vector<1x64x128xf32>
    %cst = arith.constant dense<0.000000e+00> : vector<1x128xf32>
    %1 = vector.multi_reduction <add>, %0, %cst [1] : vector<1x64x128xf32> to vector<1x128xf32>
    %2 = vector.shape_cast %1 : vector<1x128xf32> to vector<1x1x128xf32>
    %cst_2 = arith.constant 6.400000e+01 : f32
    %3 = vector.broadcast %cst_2 : f32 to vector<1x1x128xf32>
    %4 = arith.divf %2, %3 : vector<1x1x128xf32>
    %5 = vector.broadcast %4 : vector<1x1x128xf32> to vector<1x64x128xf32>
    %6 = arith.subf %0, %5 : vector<1x64x128xf32>
    %7 = arith.mulf %6, %6 : vector<1x64x128xf32>
    %cst_3 = arith.constant dense<0.000000e+00> : vector<1x128xf32>
    %8 = vector.multi_reduction <add>, %7, %cst_3 [1] : vector<1x64x128xf32> to vector<1x128xf32>
    %9 = vector.shape_cast %8 : vector<1x128xf32> to vector<1x1x128xf32>
    %cst_4 = arith.constant 6.400000e+01 : f32
    %10 = vector.broadcast %cst_4 : f32 to vector<1x1x128xf32>
    %11 = arith.divf %9, %10 : vector<1x1x128xf32>
    %12 = vector.broadcast %4 : vector<1x1x128xf32> to vector<1x64x128xf32>
    %13 = arith.subf %0, %12 : vector<1x64x128xf32>
    %cst_5 = arith.constant 9.99999974E-6 : f32
    %14 = vector.broadcast %cst_5 : f32 to vector<1x1x128xf32>
    %15 = arith.addf %11, %14 : vector<1x1x128xf32>
    %16 = math.rsqrt %15 : vector<1x1x128xf32>
    %17 = vector.broadcast %16 : vector<1x1x128xf32> to vector<1x64x128xf32>
    %18 = arith.mulf %13, %17 : vector<1x64x128xf32>
    %cst_6 = arith.constant 0.000000e+00 : f32
    %19 = vector.broadcast %cst_6 : f32 to vector<1x64x128xf32>
    %20 = arith.cmpf oge, %18, %19 : vector<1x64x128xf32>
    %cst_7 = arith.constant 2.000000e-01 : f32
    %21 = vector.broadcast %cst_7 : f32 to vector<1x64x128xf32>
    %22 = arith.mulf %21, %18 : vector<1x64x128xf32>
    %23 = arith.select %20, %18, %22 : vector<1x64x128xi1>, vector<1x64x128xf32>
    %c0_8 = arith.constant 0 : index
    %c0_9 = arith.constant 0 : index
    %c0_10 = arith.constant 0 : index
    %24 = vector.load %arg2[%c0_8, %c0_9, %c0_10] : memref<1x64x128xf32, #tpu.memory_space<vmem>>, vector<1x64x128xf32>
    tpu.vector_store %arg2[%c0_8, %c0_9, %c0_10], %23 {strides = array<i32>} : memref<1x64x128xf32, #tpu.memory_space<vmem>>, vector<1x64x128xf32>,
    return
  }
  func.func @transform_0(%arg0: i32) -> (i32, i32, i32) {
    %c0_i32 = arith.constant 0 : i32
    %c0_i32_0 = arith.constant 0 : i32
    %c0_i32_1 = arith.constant 0 : i32
    return %arg0, %c0_i32, %c0_i32_0 : i32, i32, i32
  }
  func.func @transform_1(%arg0: i32) -> (i32, i32, i32) {
    %c0_i32 = arith.constant 0 : i32
    %c0_i32_0 = arith.constant 0 : i32
    %c0_i32_1 = arith.constant 0 : i32
    return %arg0, %c0_i32, %c0_i32_0 : i32, i32, i32
  }
}

module attributes {stable_mosaic.version = 11 : i64} {
  func.func @_matmul_bias_act_kernel(%arg0: i32, %arg1: memref<32x2048xbf16, #tpu.memory_space<vmem>>, %arg2: memref<2048x256xbf16, #tpu.memory_space<vmem>>, %arg3: memref<1x256xf32, #tpu.memory_space<vmem>>, %arg4: memref<32x256xf32, #tpu.memory_space<vmem>>) attributes {dimension_semantics = [#tpu.dimension_semantics<parallel>], iteration_bounds = array<i64: 1>, scalar_prefetch = 0 : i64, scratch_operands = 0 : i64, tpu.core_type = #tpu.core_type<tc>, window_params = [{transform_indices = @transform_0, window_bounds = array<i64: 32, 2048>}, {pipeline_mode = #tpu.pipeline_mode<synchronous>, transform_indices = @transform_1, window_bounds = array<i64: 2048, 256>}, {pipeline_mode = #tpu.pipeline_mode<synchronous>, transform_indices = @transform_2, window_bounds = array<i64: 1, 256>}, {transform_indices = @transform_3, window_bounds = array<i64: 32, 256>}]} {
    %c0 = arith.constant 0 : index
    %c0_0 = arith.constant 0 : index
    %0 = vector.load %arg1[%c0, %c0_0] : memref<32x2048xbf16, #tpu.memory_space<vmem>>, vector<32x2048xbf16>
    %c0_1 = arith.constant 0 : index
    %c0_2 = arith.constant 0 : index
    %1 = vector.load %arg2[%c0_1, %c0_2] : memref<2048x256xbf16, #tpu.memory_space<vmem>>, vector<2048x256xbf16>
    %cst = arith.constant dense<0.000000e+00> : vector<32x256xf32>
    %2 = tpu.matmul %0, %1, %cst {dimension_numbers = #tpu.dot_dimension_numbers<[1], [0], [0], [1], [0, 0, 1, 1], [], []>} : vector<32x2048xbf16>, vector<2048x256xbf16>, vector<32x256xf32> -> vector<32x256xf32>
    %c0_3 = arith.constant 0 : index
    %c0_4 = arith.constant 0 : index
    %3 = vector.load %arg3[%c0_3, %c0_4] : memref<1x256xf32, #tpu.memory_space<vmem>>, vector<1x256xf32>
    %4 = vector.broadcast %3 : vector<1x256xf32> to vector<32x256xf32>
    %5 = arith.addf %2, %4 : vector<32x256xf32>
    %c0_5 = arith.constant 0 : index
    %c0_6 = arith.constant 0 : index
    %6 = vector.load %arg4[%c0_5, %c0_6] : memref<32x256xf32, #tpu.memory_space<vmem>>, vector<32x256xf32>
    tpu.vector_store %arg4[%c0_5, %c0_6], %5 {strides = array<i32>} : memref<32x256xf32, #tpu.memory_space<vmem>>, vector<32x256xf32>,
    return
  }
  func.func @transform_0(%arg0: i32) -> (i32, i32) {
    %c0_i32 = arith.constant 0 : i32
    %c0_i32_0 = arith.constant 0 : i32
    return %arg0, %c0_i32 : i32, i32
  }
  func.func @transform_1(%arg0: i32) -> (i32, i32) {
    %c0_i32 = arith.constant 0 : i32
    %c0_i32_0 = arith.constant 0 : i32
    %c0_i32_1 = arith.constant 0 : i32
    return %c0_i32, %c0_i32_0 : i32, i32
  }
  func.func @transform_2(%arg0: i32) -> (i32, i32) {
    %c0_i32 = arith.constant 0 : i32
    %c0_i32_0 = arith.constant 0 : i32
    %c0_i32_1 = arith.constant 0 : i32
    return %c0_i32, %c0_i32_0 : i32, i32
  }
  func.func @transform_3(%arg0: i32) -> (i32, i32) {
    %c0_i32 = arith.constant 0 : i32
    %c0_i32_0 = arith.constant 0 : i32
    return %arg0, %c0_i32 : i32, i32
  }
}

module attributes {stable_mosaic.version = 11 : i64} {
  func.func @_inorm_lrelu_kernel(%arg0: i32, %arg1: memref<1x16x256xf32, #tpu.memory_space<vmem>>, %arg2: memref<1x16x256xf32, #tpu.memory_space<vmem>>) attributes {dimension_semantics = [#tpu.dimension_semantics<parallel>], iteration_bounds = array<i64: 2>, scalar_prefetch = 0 : i64, scratch_operands = 0 : i64, tpu.core_type = #tpu.core_type<tc>, window_params = [{transform_indices = @transform_0, window_bounds = array<i64: 1, 16, 256>}, {transform_indices = @transform_1, window_bounds = array<i64: 1, 16, 256>}]} {
    %c0 = arith.constant 0 : index
    %c0_0 = arith.constant 0 : index
    %c0_1 = arith.constant 0 : index
    %0 = vector.load %arg1[%c0, %c0_0, %c0_1] : memref<1x16x256xf32, #tpu.memory_space<vmem>>, vector<1x16x256xf32>
    %cst = arith.constant dense<0.000000e+00> : vector<1x256xf32>
    %1 = vector.multi_reduction <add>, %0, %cst [1] : vector<1x16x256xf32> to vector<1x256xf32>
    %2 = vector.shape_cast %1 : vector<1x256xf32> to vector<1x1x256xf32>
    %cst_2 = arith.constant 1.600000e+01 : f32
    %3 = vector.broadcast %cst_2 : f32 to vector<1x1x256xf32>
    %4 = arith.divf %2, %3 : vector<1x1x256xf32>
    %5 = vector.broadcast %4 : vector<1x1x256xf32> to vector<1x16x256xf32>
    %6 = arith.subf %0, %5 : vector<1x16x256xf32>
    %7 = arith.mulf %6, %6 : vector<1x16x256xf32>
    %cst_3 = arith.constant dense<0.000000e+00> : vector<1x256xf32>
    %8 = vector.multi_reduction <add>, %7, %cst_3 [1] : vector<1x16x256xf32> to vector<1x256xf32>
    %9 = vector.shape_cast %8 : vector<1x256xf32> to vector<1x1x256xf32>
    %cst_4 = arith.constant 1.600000e+01 : f32
    %10 = vector.broadcast %cst_4 : f32 to vector<1x1x256xf32>
    %11 = arith.divf %9, %10 : vector<1x1x256xf32>
    %12 = vector.broadcast %4 : vector<1x1x256xf32> to vector<1x16x256xf32>
    %13 = arith.subf %0, %12 : vector<1x16x256xf32>
    %cst_5 = arith.constant 9.99999974E-6 : f32
    %14 = vector.broadcast %cst_5 : f32 to vector<1x1x256xf32>
    %15 = arith.addf %11, %14 : vector<1x1x256xf32>
    %16 = math.rsqrt %15 : vector<1x1x256xf32>
    %17 = vector.broadcast %16 : vector<1x1x256xf32> to vector<1x16x256xf32>
    %18 = arith.mulf %13, %17 : vector<1x16x256xf32>
    %cst_6 = arith.constant 0.000000e+00 : f32
    %19 = vector.broadcast %cst_6 : f32 to vector<1x16x256xf32>
    %20 = arith.cmpf oge, %18, %19 : vector<1x16x256xf32>
    %cst_7 = arith.constant 2.000000e-01 : f32
    %21 = vector.broadcast %cst_7 : f32 to vector<1x16x256xf32>
    %22 = arith.mulf %21, %18 : vector<1x16x256xf32>
    %23 = arith.select %20, %18, %22 : vector<1x16x256xi1>, vector<1x16x256xf32>
    %c0_8 = arith.constant 0 : index
    %c0_9 = arith.constant 0 : index
    %c0_10 = arith.constant 0 : index
    %24 = vector.load %arg2[%c0_8, %c0_9, %c0_10] : memref<1x16x256xf32, #tpu.memory_space<vmem>>, vector<1x16x256xf32>
    tpu.vector_store %arg2[%c0_8, %c0_9, %c0_10], %23 {strides = array<i32>} : memref<1x16x256xf32, #tpu.memory_space<vmem>>, vector<1x16x256xf32>,
    return
  }
  func.func @transform_0(%arg0: i32) -> (i32, i32, i32) {
    %c0_i32 = arith.constant 0 : i32
    %c0_i32_0 = arith.constant 0 : i32
    %c0_i32_1 = arith.constant 0 : i32
    return %arg0, %c0_i32, %c0_i32_0 : i32, i32, i32
  }
  func.func @transform_1(%arg0: i32) -> (i32, i32, i32) {
    %c0_i32 = arith.constant 0 : i32
    %c0_i32_0 = arith.constant 0 : i32
    %c0_i32_1 = arith.constant 0 : i32
    return %arg0, %c0_i32, %c0_i32_0 : i32, i32, i32
  }
}

module attributes {stable_mosaic.version = 11 : i64} {
  func.func @_matmul_bias_act_kernel(%arg0: i32, %arg1: memref<8x4096xbf16, #tpu.memory_space<vmem>>, %arg2: memref<4096x512xbf16, #tpu.memory_space<vmem>>, %arg3: memref<1x512xf32, #tpu.memory_space<vmem>>, %arg4: memref<8x512xf32, #tpu.memory_space<vmem>>) attributes {dimension_semantics = [#tpu.dimension_semantics<parallel>], iteration_bounds = array<i64: 1>, scalar_prefetch = 0 : i64, scratch_operands = 0 : i64, tpu.core_type = #tpu.core_type<tc>, window_params = [{transform_indices = @transform_0, window_bounds = array<i64: 8, 4096>}, {pipeline_mode = #tpu.pipeline_mode<synchronous>, transform_indices = @transform_1, window_bounds = array<i64: 4096, 512>}, {pipeline_mode = #tpu.pipeline_mode<synchronous>, transform_indices = @transform_2, window_bounds = array<i64: 1, 512>}, {transform_indices = @transform_3, window_bounds = array<i64: 8, 512>}]} {
    %c0 = arith.constant 0 : index
    %c0_0 = arith.constant 0 : index
    %0 = vector.load %arg1[%c0, %c0_0] : memref<8x4096xbf16, #tpu.memory_space<vmem>>, vector<8x4096xbf16>
    %c0_1 = arith.constant 0 : index
    %c0_2 = arith.constant 0 : index
    %1 = vector.load %arg2[%c0_1, %c0_2] : memref<4096x512xbf16, #tpu.memory_space<vmem>>, vector<4096x512xbf16>
    %cst = arith.constant dense<0.000000e+00> : vector<8x512xf32>
    %2 = tpu.matmul %0, %1, %cst {dimension_numbers = #tpu.dot_dimension_numbers<[1], [0], [0], [1], [0, 0, 1, 1], [], []>} : vector<8x4096xbf16>, vector<4096x512xbf16>, vector<8x512xf32> -> vector<8x512xf32>
    %c0_3 = arith.constant 0 : index
    %c0_4 = arith.constant 0 : index
    %3 = vector.load %arg3[%c0_3, %c0_4] : memref<1x512xf32, #tpu.memory_space<vmem>>, vector<1x512xf32>
    %4 = vector.broadcast %3 : vector<1x512xf32> to vector<8x512xf32>
    %5 = arith.addf %2, %4 : vector<8x512xf32>
    %c0_5 = arith.constant 0 : index
    %c0_6 = arith.constant 0 : index
    %6 = vector.load %arg4[%c0_5, %c0_6] : memref<8x512xf32, #tpu.memory_space<vmem>>, vector<8x512xf32>
    tpu.vector_store %arg4[%c0_5, %c0_6], %5 {strides = array<i32>} : memref<8x512xf32, #tpu.memory_space<vmem>>, vector<8x512xf32>,
    return
  }
  func.func @transform_0(%arg0: i32) -> (i32, i32) {
    %c0_i32 = arith.constant 0 : i32
    %c0_i32_0 = arith.constant 0 : i32
    return %arg0, %c0_i32 : i32, i32
  }
  func.func @transform_1(%arg0: i32) -> (i32, i32) {
    %c0_i32 = arith.constant 0 : i32
    %c0_i32_0 = arith.constant 0 : i32
    %c0_i32_1 = arith.constant 0 : i32
    return %c0_i32, %c0_i32_0 : i32, i32
  }
  func.func @transform_2(%arg0: i32) -> (i32, i32) {
    %c0_i32 = arith.constant 0 : i32
    %c0_i32_0 = arith.constant 0 : i32
    %c0_i32_1 = arith.constant 0 : i32
    return %c0_i32, %c0_i32_0 : i32, i32
  }
  func.func @transform_3(%arg0: i32) -> (i32, i32) {
    %c0_i32 = arith.constant 0 : i32
    %c0_i32_0 = arith.constant 0 : i32
    return %arg0, %c0_i32 : i32, i32
  }
}

module attributes {stable_mosaic.version = 11 : i64} {
  func.func @_inorm_lrelu_kernel(%arg0: i32, %arg1: memref<1x4x512xf32, #tpu.memory_space<vmem>>, %arg2: memref<1x4x512xf32, #tpu.memory_space<vmem>>) attributes {dimension_semantics = [#tpu.dimension_semantics<parallel>], iteration_bounds = array<i64: 2>, scalar_prefetch = 0 : i64, scratch_operands = 0 : i64, tpu.core_type = #tpu.core_type<tc>, window_params = [{transform_indices = @transform_0, window_bounds = array<i64: 1, 4, 512>}, {transform_indices = @transform_1, window_bounds = array<i64: 1, 4, 512>}]} {
    %c0 = arith.constant 0 : index
    %c0_0 = arith.constant 0 : index
    %c0_1 = arith.constant 0 : index
    %0 = vector.load %arg1[%c0, %c0_0, %c0_1] : memref<1x4x512xf32, #tpu.memory_space<vmem>>, vector<1x4x512xf32>
    %cst = arith.constant dense<0.000000e+00> : vector<1x512xf32>
    %1 = vector.multi_reduction <add>, %0, %cst [1] : vector<1x4x512xf32> to vector<1x512xf32>
    %2 = vector.shape_cast %1 : vector<1x512xf32> to vector<1x1x512xf32>
    %cst_2 = arith.constant 4.000000e+00 : f32
    %3 = vector.broadcast %cst_2 : f32 to vector<1x1x512xf32>
    %4 = arith.divf %2, %3 : vector<1x1x512xf32>
    %5 = vector.broadcast %4 : vector<1x1x512xf32> to vector<1x4x512xf32>
    %6 = arith.subf %0, %5 : vector<1x4x512xf32>
    %7 = arith.mulf %6, %6 : vector<1x4x512xf32>
    %cst_3 = arith.constant dense<0.000000e+00> : vector<1x512xf32>
    %8 = vector.multi_reduction <add>, %7, %cst_3 [1] : vector<1x4x512xf32> to vector<1x512xf32>
    %9 = vector.shape_cast %8 : vector<1x512xf32> to vector<1x1x512xf32>
    %cst_4 = arith.constant 4.000000e+00 : f32
    %10 = vector.broadcast %cst_4 : f32 to vector<1x1x512xf32>
    %11 = arith.divf %9, %10 : vector<1x1x512xf32>
    %12 = vector.broadcast %4 : vector<1x1x512xf32> to vector<1x4x512xf32>
    %13 = arith.subf %0, %12 : vector<1x4x512xf32>
    %cst_5 = arith.constant 9.99999974E-6 : f32
    %14 = vector.broadcast %cst_5 : f32 to vector<1x1x512xf32>
    %15 = arith.addf %11, %14 : vector<1x1x512xf32>
    %16 = math.rsqrt %15 : vector<1x1x512xf32>
    %17 = vector.broadcast %16 : vector<1x1x512xf32> to vector<1x4x512xf32>
    %18 = arith.mulf %13, %17 : vector<1x4x512xf32>
    %cst_6 = arith.constant 0.000000e+00 : f32
    %19 = vector.broadcast %cst_6 : f32 to vector<1x4x512xf32>
    %20 = arith.cmpf oge, %18, %19 : vector<1x4x512xf32>
    %cst_7 = arith.constant 2.000000e-01 : f32
    %21 = vector.broadcast %cst_7 : f32 to vector<1x4x512xf32>
    %22 = arith.mulf %21, %18 : vector<1x4x512xf32>
    %23 = arith.select %20, %18, %22 : vector<1x4x512xi1>, vector<1x4x512xf32>
    %c0_8 = arith.constant 0 : index
    %c0_9 = arith.constant 0 : index
    %c0_10 = arith.constant 0 : index
    %24 = vector.load %arg2[%c0_8, %c0_9, %c0_10] : memref<1x4x512xf32, #tpu.memory_space<vmem>>, vector<1x4x512xf32>
    tpu.vector_store %arg2[%c0_8, %c0_9, %c0_10], %23 {strides = array<i32>} : memref<1x4x512xf32, #tpu.memory_space<vmem>>, vector<1x4x512xf32>,
    return
  }
  func.func @transform_0(%arg0: i32) -> (i32, i32, i32) {
    %c0_i32 = arith.constant 0 : i32
    %c0_i32_0 = arith.constant 0 : i32
    %c0_i32_1 = arith.constant 0 : i32
    return %arg0, %c0_i32, %c0_i32_0 : i32, i32, i32
  }
  func.func @transform_1(%arg0: i32) -> (i32, i32, i32) {
    %c0_i32 = arith.constant 0 : i32
    %c0_i32_0 = arith.constant 0 : i32
    %c0_i32_1 = arith.constant 0 : i32
    return %arg0, %c0_i32, %c0_i32_0 : i32, i32, i32
  }
}

module attributes {stable_mosaic.version = 11 : i64} {
  func.func @_matmul_bias_act_kernel(%arg0: i32, %arg1: memref<8x8192xbf16, #tpu.memory_space<vmem>>, %arg2: memref<8192x128xbf16, #tpu.memory_space<vmem>>, %arg3: memref<1x128xf32, #tpu.memory_space<vmem>>, %arg4: memref<8x128xf32, #tpu.memory_space<vmem>>) attributes {dimension_semantics = [#tpu.dimension_semantics<parallel>], iteration_bounds = array<i64: 1>, scalar_prefetch = 0 : i64, scratch_operands = 0 : i64, tpu.core_type = #tpu.core_type<tc>, window_params = [{transform_indices = @transform_0, window_bounds = array<i64: 8, 8192>}, {pipeline_mode = #tpu.pipeline_mode<synchronous>, transform_indices = @transform_1, window_bounds = array<i64: 8192, 128>}, {pipeline_mode = #tpu.pipeline_mode<synchronous>, transform_indices = @transform_2, window_bounds = array<i64: 1, 128>}, {transform_indices = @transform_3, window_bounds = array<i64: 8, 128>}]} {
    %c0 = arith.constant 0 : index
    %c0_0 = arith.constant 0 : index
    %0 = vector.load %arg1[%c0, %c0_0] : memref<8x8192xbf16, #tpu.memory_space<vmem>>, vector<8x8192xbf16>
    %c0_1 = arith.constant 0 : index
    %c0_2 = arith.constant 0 : index
    %1 = vector.load %arg2[%c0_1, %c0_2] : memref<8192x128xbf16, #tpu.memory_space<vmem>>, vector<8192x128xbf16>
    %cst = arith.constant dense<0.000000e+00> : vector<8x128xf32>
    %2 = tpu.matmul %0, %1, %cst {dimension_numbers = #tpu.dot_dimension_numbers<[1], [0], [0], [1], [0, 0, 1, 1], [], []>} : vector<8x8192xbf16>, vector<8192x128xbf16>, vector<8x128xf32> -> vector<8x128xf32>
    %c0_3 = arith.constant 0 : index
    %c0_4 = arith.constant 0 : index
    %3 = vector.load %arg3[%c0_3, %c0_4] : memref<1x128xf32, #tpu.memory_space<vmem>>, vector<1x128xf32>
    %4 = vector.broadcast %3 : vector<1x128xf32> to vector<8x128xf32>
    %5 = arith.addf %2, %4 : vector<8x128xf32>
    %c0_5 = arith.constant 0 : index
    %c0_6 = arith.constant 0 : index
    %6 = vector.load %arg4[%c0_5, %c0_6] : memref<8x128xf32, #tpu.memory_space<vmem>>, vector<8x128xf32>
    tpu.vector_store %arg4[%c0_5, %c0_6], %5 {strides = array<i32>} : memref<8x128xf32, #tpu.memory_space<vmem>>, vector<8x128xf32>,
    return
  }
  func.func @transform_0(%arg0: i32) -> (i32, i32) {
    %c0_i32 = arith.constant 0 : i32
    %c0_i32_0 = arith.constant 0 : i32
    return %arg0, %c0_i32 : i32, i32
  }
  func.func @transform_1(%arg0: i32) -> (i32, i32) {
    %c0_i32 = arith.constant 0 : i32
    %c0_i32_0 = arith.constant 0 : i32
    %c0_i32_1 = arith.constant 0 : i32
    return %c0_i32, %c0_i32_0 : i32, i32
  }
  func.func @transform_2(%arg0: i32) -> (i32, i32) {
    %c0_i32 = arith.constant 0 : i32
    %c0_i32_0 = arith.constant 0 : i32
    %c0_i32_1 = arith.constant 0 : i32
    return %c0_i32, %c0_i32_0 : i32, i32
  }
  func.func @transform_3(%arg0: i32) -> (i32, i32) {
    %c0_i32 = arith.constant 0 : i32
    %c0_i32_0 = arith.constant 0 : i32
    return %arg0, %c0_i32 : i32, i32
  }
}

</mosaic_0001>

<bundles_post_ra>
// kernel: discriminator_forward.8
= control target key start
LH: loop header
LB: loop body
LE: loop exit
PB: predicated region body
PF: predicated region fallthrough
CT: control target
= control target key end

     0   :  { %s904_s12 = smov 0   ;;  %s1070_s0 = inlined_call_operand.vmem [shape: bf16[512,128], index: 0, kind: input, shape index: {}]   ;;  %s1071_s1 = inlined_call_operand.vmem [shape: bf16[128,64], index: 1, kind: input, shape index: {}]   ;;  %s1072_s2 = inlined_call_operand.vmem [shape: f32[1,64], index: 2, kind: input, shape index: {}]   ;;  %s1073_s3 = inlined_call_operand.vmem [shape: f32[512,64], index: 3, kind: output, shape index: {}]  }
   0x1 LB: > { %s720_s13 = sadd.s32 4294967295, %s882_s12   ;;  %p724_p0 = scmp.ge.s32.totalorder %s882_s12, 1  ;;  %s882_s12 = sphi %s904_s12, %s13_s12  }
   0x2   : > { %p138_p1 = scmp.lt.s32.totalorder %s882_s12, 3 }
   0x4   : > { %p139_p2 = pnand %p724_p0, %p138_p1 }
   0x5   : > { %v852_v0 = vld [vmem:[%s1071_s1] sm:$0xff] (!%p139_p2)   ;;  %s725_s16 = sshll.u32 (!%p139_p2), %s720_s13, 5  ;;  %v853_v1 = vld [vmem:[%s1071_s1 + $0x8] sm:$0xff] (!%p139_p2)   ;;  %v854_v2 = vld [vmem:[%s1071_s1 + $0x10] sm:$0xff] (!%p139_p2)   ;;  %vm631_vm0 = vcmask (!%p139_p2), 523264  }
   0x6   : > { %142 = sbr.rel (%p139_p2) target bundleno = 287 (0x11f), region = 32  ;;  %p163_p3 = scmp.lt.s32.totalorder (!%p139_p2), %s725_s16, 63  ;;  %780 = vmatprep.subr.bf16.mxu0 (!%p139_p2), %v852_v0  ;;  %828 = vmatprep.subr.bf16.mxu1 (!%p139_p2), %v852_v0  ;;  %v855_v3 = vld [vmem:[%s1071_s1 + $0x18] sm:$0xff] (!%p139_p2)   ;;  %v856_v6 = vld [vmem:[%s1071_s1 + $0x20] sm:$0xff] (!%p139_p2)   ;;  %v857_v7 = vld [vmem:[%s1071_s1 + $0x28] sm:$0xff] (!%p139_p2)  }
   0x7   : > { %781 = vmatpush3.bf16.msra.mxu0 (!%p139_p2), %v852_v0  ;;  %836 = vmatpush3.bf16.msra.mxu1 (!%p139_p2), %v852_v0  ;;  %v858_v8 = vld [vmem:[%s1071_s1 + $0x30] sm:$0xff] (!%p139_p2)   ;;  %v859_v9 = vld [vmem:[%s1071_s1 + $0x38] sm:$0xff] (!%p139_p2)   ;;  %v963_v24 = vld [vmem:[%s1072_s2] ss:$0 sm:$0xff] (!%p139_p2) }
   0x8   : > { %782 = vmatprep.subr.bf16.mxu0 (!%p139_p2), %v853_v1  ;;  %829 = vmatprep.subr.bf16.mxu1 (!%p139_p2), %v853_v1 }
   0xb   : > { %783 = vmatpush3.bf16.msra.mxu0 (!%p139_p2), %v853_v1  ;;  %837 = vmatpush3.bf16.msra.mxu1 (!%p139_p2), %v853_v1 }
   0xc   : > { %784 = vmatprep.subr.bf16.mxu0 (!%p139_p2), %v854_v2  ;;  %830 = vmatprep.subr.bf16.mxu1 (!%p139_p2), %v854_v2 }
   0xd   : > { %s1075_s16 = smov (!%p163_p3, %s725_s16), 63 }
   0xe   : > { %s726_s21 = sshll.u32 %s1075_s16, 2  ;;  %s728_s10 = sshll.u32 %s1075_s16, 3 }
   0xf   : > { %s927_s24 = scalar_lea.vmem %s1070_s0, %s726_s21  ;;  %785 = vmatpush3.bf16.msra.mxu0 %v854_v2  ;;  %838 = vmatpush3.bf16.msra.mxu1 %v854_v2  ;;  %s973_s14 = scalar_lea.vmem %s1073_s3, %s728_s10 }
  0x10   : > { %v860_v4 = vld [vmem:[%s927_s24] sm:$0xff]   ;;  %786 = vmatprep.subr.bf16.mxu0 %v855_v3  ;;  %831 = vmatprep.subr.bf16.mxu1 %v855_v3  ;;  %v862_v10 = vld [vmem:[%s927_s24 + $0x8] sm:$0xff]   ;;  %v864_v12 = vld [vmem:[%s927_s24 + $0x10] sm:$0xff]  }
  0x11   : > { %v861_v5 = vld [vmem:[%s927_s24 + $0x40] sm:$0xff]   ;;  %796 = vmatprep.mubr.bf16.mxu0 %v860_v4  ;;  %v863_v11 = vld [vmem:[%s927_s24 + $0x48] sm:$0xff]   ;;  %v865_v13 = vld [vmem:[%s927_s24 + $0x50] sm:$0xff]  }
  0x12   : > { %812 = vmatprep.mubr.bf16.mxu1 %v861_v5  ;;  %v866_v14 = vld [vmem:[%s927_s24 + $0x18] sm:$0xff]   ;;  %v868_v16 = vld [vmem:[%s927_s24 + $0x20] sm:$0xff]   ;;  %v870_v18 = vld [vmem:[%s927_s24 + $0x28] sm:$0xff]  }
  0x13   : > { %787 = vmatpush3.bf16.msra.mxu0 %v855_v3  ;;  %839 = vmatpush3.bf16.msra.mxu1 %v855_v3  ;;  %v867_v15 = vld [vmem:[%s927_s24 + $0x58] sm:$0xff]   ;;  %v869_v17 = vld [vmem:[%s927_s24 + $0x60] sm:$0xff]   ;;  %v871_v19 = vld [vmem:[%s927_s24 + $0x68] sm:$0xff]  }
  0x14   : > { %788 = vmatprep.subr.bf16.mxu0 %v856_v6  ;;  %832 = vmatprep.subr.bf16.mxu1 %v856_v6  ;;  %v872_v20 = vld [vmem:[%s927_s24 + $0x30] sm:$0xff]   ;;  %v874_v22 = vld [vmem:[%s927_s24 + $0x38] sm:$0xff]  }
  0x15   : > { %v873_v21 = vld [vmem:[%s927_s24 + $0x70] sm:$0xff]   ;;  %v875_v23 = vld [vmem:[%s927_s24 + $0x78] sm:$0xff]  }
  0x17   : > { %789 = vmatpush3.bf16.msra.mxu0 %v856_v6  ;;  %840 = vmatpush3.bf16.msra.mxu1 %v856_v6 }
  0x18   : > { %790 = vmatprep.subr.bf16.mxu0 %v857_v7  ;;  %833 = vmatprep.subr.bf16.mxu1 %v857_v7 }
  0x1b   : > { %791 = vmatpush3.bf16.msra.mxu0 %v857_v7  ;;  %841 = vmatpush3.bf16.msra.mxu1 %v857_v7 }
  0x1c   : > { %792 = vmatprep.subr.bf16.mxu0 %v858_v8  ;;  %834 = vmatprep.subr.bf16.mxu1 %v858_v8 }
  0x1f   : > { %793 = vmatpush3.bf16.msra.mxu0 %v858_v8  ;;  %842 = vmatpush3.bf16.msra.mxu1 %v858_v8 }
  0x20   : > { %794 = vmatprep.subr.bf16.mxu0 %v859_v9  ;;  %835 = vmatprep.subr.bf16.mxu1 %v859_v9 }
  0x23   : > { %795 = vmatpush3.bf16.msra.mxu0 %v859_v9  ;;  %843 = vmatpush3.bf16.msra.mxu1 %v859_v9 }
  0x26   : > { %797 = vmatmul.mubr.bf16.vlgmr.msra.gmra.mrb[0].mxu0 %v862_v10  ;;  %813 = vmatmul.mubr.bf16.vlgmr.msra.gmra.mrb[0].mxu1 %v863_v11 }
  0x27   : > { %800 = vmatprep.mubr.bf16.mxu0 %v864_v12  ;;  %816 = vmatprep.mubr.bf16.mxu1 %v865_v13 }
  0x2e   : > { %801 = vmatmul.mubr.bf16.gmra.mrb[4].mxu0 %v866_v14  ;;  %817 = vmatmul.mubr.bf16.gmra.mrb[4].mxu1 %v867_v15 }
  0x2f   : > { %804 = vmatprep.mubr.bf16.mxu0 %v868_v16  ;;  %820 = vmatprep.mubr.bf16.mxu1 %v869_v17 }
  0x36   : > { %805 = vmatmul.mubr.bf16.gmra.mrb[8].mxu0 %v870_v18  ;;  %821 = vmatmul.mubr.bf16.gmra.mrb[8].mxu1 %v871_v19 }
  0x37   : > { %808 = vmatprep.mubr.bf16.mxu0 %v872_v20  ;;  %824 = vmatprep.mubr.bf16.mxu1 %v873_v21 }
  0x3e   : > { %809 = vmatmul.mubr.bf16.gmra.mrb[12].mxu0 %v874_v22  ;;  %825 = vmatmul.mubr.bf16.gmra.mrb[12].mxu1 %v875_v23 }
  0xf9   : > { %v798_v25 = vpop.f32.mrb[0].mxu0  ;;  %v814_v26 = vpop.f32.mrb[0].mxu1 }
  0xfa   : > { %v417_v27 = vadd.f32 %v798_v25, %v963_v24  ;;  %v481_v28 = vadd.f32 %v814_v26, %v963_v24  ;;  %v408_v29 = vpop.f32.mrb[1].mxu0  ;;  %v472_v30 = vpop.f32.mrb[1].mxu1 }
  0xfb   : > { %v409_v31 = vadd.f32 %v963_v24, %v408_v29  ;;  %v473_v32 = vadd.f32 %v963_v24, %v472_v30  ;;  %v799_v33 = vpop.f32.mrb[2].mxu0  ;;  %v815_v34 = vpop.f32.mrb[2].mxu1 }
  0xfc   : > { %vm537_vm1 = vcmp.ge.f32.partialorder %v417_v27, 0.0  ;;  %v569_v35 = vmul.f32 0.2, %v417_v27  ;;  %vm553_vm2 = vcmp.ge.f32.partialorder %v481_v28, 0.0  ;;  %v585_v36 = vmul.f32 0.2, %v481_v28 }
  0xfd   : > { %vm535_vm3 = vcmp.ge.f32.partialorder %v409_v31, 0.0  ;;  %v567_v37 = vmul.f32 0.2, %v409_v31  ;;  %vm551_vm4 = vcmp.ge.f32.partialorder %v473_v32, 0.0  ;;  %v583_v38 = vmul.f32 0.2, %v473_v32 }
  0xfe   : > { %v601_v39 = vsel %vm537_vm1, %v417_v27, %v569_v35  ;;  %v617_v40 = vsel %vm553_vm2, %v481_v28, %v585_v36  ;;  %v420_v41 = vadd.f32 %v799_v33, %v963_v24  ;;  %v484_v42 = vadd.f32 %v815_v34, %v963_v24  ;;  %v411_v43 = vpop.f32.mrb[3].mxu0  ;;  %v475_v44 = vpop.f32.mrb[3].mxu1 }
  0xff   : > { %634 = vst.msk [vmem:[%s973_s14 + $0x10] sm:$0xff] %vm631_vm0, %v601_v39  ;;  %650 = vst.msk [vmem:[%s973_s14 + $0x90] sm:$0xff] %vm631_vm0, %v617_v40  ;;  %v599_v45 = vsel %vm535_vm3, %v409_v31, %v567_v37  ;;  %v615_v46 = vsel %vm551_vm4, %v473_v32, %v583_v38  ;;  %v412_v47 = vadd.f32 %v963_v24, %v411_v43 }
 0x100   : > { %v476_v48 = vadd.f32 %v963_v24, %v475_v44  ;;  %632 = vst.msk [vmem:[%s973_s14] sm:$0xff] %vm631_vm0, %v599_v45  ;;  %648 = vst.msk [vmem:[%s973_s14 + $0x80] sm:$0xff] %vm631_vm0, %v615_v46  ;;  %vm538_vm5 = vcmp.ge.f32.partialorder %v420_v41, 0.0  ;;  %v570_v49 = vmul.f32 0.2, %v420_v41  ;;  %vm554_vm6 = vcmp.ge.f32.partialorder %v484_v42, 0.0 }
 0x101   : > { %v586_v50 = vmul.f32 0.2, %v484_v42  ;;  %vm536_vm7 = vcmp.ge.f32.partialorder %v412_v47, 0.0  ;;  %v568_v51 = vmul.f32 0.2, %v412_v47  ;;  %v802_v55 = vpop.f32.mrb[4].mxu0 }
 0x102   : > { %vm552_vm8 = vcmp.ge.f32.partialorder %v476_v48, 0.0  ;;  %v584_v52 = vmul.f32 0.2, %v476_v48  ;;  %v602_v53 = vsel %vm538_vm5, %v420_v41, %v570_v49  ;;  %v818_v56 = vpop.f32.mrb[4].mxu1  ;;  %v433_v59 = vadd.f32 %v802_v55, %v963_v24  ;;  %v424_v61 = vpop.f32.mrb[5].mxu0 }
 0x103   : > { %v618_v54 = vsel %vm554_vm6, %v484_v42, %v586_v50  ;;  %635 = vst.msk [vmem:[%s973_s14 + $0x18] sm:$0xff] %vm631_vm0, %v602_v53  ;;  %v600_v57 = vsel %vm536_vm7, %v412_v47, %v568_v51  ;;  %v497_v60 = vadd.f32 %v818_v56, %v963_v24  ;;  %v488_v62 = vpop.f32.mrb[5].mxu1  ;;  %v425_v63 = vadd.f32 %v963_v24, %v424_v61  ;;  %v803_v1 = vpop.f32.mrb[6].mxu0 }
 0x104   : > { %651 = vst.msk [vmem:[%s973_s14 + $0x98] sm:$0xff] %vm631_vm0, %v618_v54  ;;  %v616_v58 = vsel %vm552_vm8, %v476_v48, %v584_v52  ;;  %633 = vst.msk [vmem:[%s973_s14 + $0x8] sm:$0xff] %vm631_vm0, %v600_v57  ;;  %v489_v0 = vadd.f32 %v963_v24, %v488_v62  ;;  %v819_v2 = vpop.f32.mrb[6].mxu1  ;;  %vm541_vm9 = vcmp.ge.f32.partialorder %v433_v59, 0.0  ;;  %v573_v3 = vmul.f32 0.2, %v433_v59 }
 0x105   : > { %649 = vst.msk [vmem:[%s973_s14 + $0x88] sm:$0xff] %vm631_vm0, %v616_v58  ;;  %vm557_vm10 = vcmp.ge.f32.partialorder %v497_v60, 0.0  ;;  %v589_v4 = vmul.f32 0.2, %v497_v60  ;;  %vm539_vm11 = vcmp.ge.f32.partialorder %v425_v63, 0.0  ;;  %v436_v9 = vadd.f32 %v803_v1, %v963_v24  ;;  %v427_v11 = vpop.f32.mrb[7].mxu0 }
 0x106   : > { %v571_v5 = vmul.f32 0.2, %v425_v63  ;;  %vm555_vm12 = vcmp.ge.f32.partialorder %v489_v0, 0.0  ;;  %v587_v6 = vmul.f32 0.2, %v489_v0  ;;  %v605_v7 = vsel %vm541_vm9, %v433_v59, %v573_v3  ;;  %v491_v12 = vpop.f32.mrb[7].mxu1 }
 0x107   : > { %v621_v8 = vsel %vm557_vm10, %v497_v60, %v589_v4  ;;  %v500_v10 = vadd.f32 %v819_v2, %v963_v24  ;;  %638 = vst.msk [vmem:[%s973_s14 + $0x30] sm:$0xff] %vm631_vm0, %v605_v7  ;;  %v428_v15 = vadd.f32 %v963_v24, %v427_v11  ;;  %v492_v16 = vadd.f32 %v963_v24, %v491_v12 }
 0x108   : > { %654 = vst.msk [vmem:[%s973_s14 + $0xb0] sm:$0xff] %vm631_vm0, %v621_v8  ;;  %v603_v13 = vsel %vm539_vm11, %v425_v63, %v571_v5  ;;  %v619_v14 = vsel %vm555_vm12, %v489_v0, %v587_v6  ;;  %vm542_vm13 = vcmp.ge.f32.partialorder %v436_v9, 0.0  ;;  %v574_v17 = vmul.f32 0.2, %v436_v9 }
 0x109   : > { %636 = vst.msk [vmem:[%s973_s14 + $0x20] sm:$0xff] %vm631_vm0, %v603_v13  ;;  %652 = vst.msk [vmem:[%s973_s14 + $0xa0] sm:$0xff] %vm631_vm0, %v619_v14  ;;  %vm558_vm14 = vcmp.ge.f32.partialorder %v500_v10, 0.0  ;;  %v590_v18 = vmul.f32 0.2, %v500_v10  ;;  %vm540_vm15 = vcmp.ge.f32.partialorder %v428_v15, 0.0 }
 0x10a   : > { %v572_v19 = vmul.f32 0.2, %v428_v15  ;;  %vm556_vm1 = vcmp.ge.f32.partialorder %v492_v16, 0.0  ;;  %v588_v20 = vmul.f32 0.2, %v492_v16  ;;  %v606_v21 = vsel %vm542_vm13, %v436_v9, %v574_v17  ;;  %v806_v23 = vpop.f32.mrb[8].mxu0 }
 0x10b   : > { %v622_v22 = vsel %vm558_vm14, %v500_v10, %v590_v18  ;;  %v822_v25 = vpop.f32.mrb[8].mxu1  ;;  %639 = vst.msk [vmem:[%s973_s14 + $0x38] sm:$0xff] %vm631_vm0, %v606_v21  ;;  %v449_v28 = vadd.f32 %v806_v23, %v963_v24  ;;  %v440_v30 = vpop.f32.mrb[9].mxu0 }
 0x10c   : > { %655 = vst.msk [vmem:[%s973_s14 + $0xb8] sm:$0xff] %vm631_vm0, %v622_v22  ;;  %v604_v26 = vsel %vm540_vm15, %v428_v15, %v572_v19  ;;  %v620_v27 = vsel %vm556_vm1, %v492_v16, %v588_v20  ;;  %v513_v29 = vadd.f32 %v822_v25, %v963_v24  ;;  %v504_v31 = vpop.f32.mrb[9].mxu1  ;;  %v441_v32 = vadd.f32 %v963_v24, %v440_v30  ;;  %v807_v34 = vpop.f32.mrb[10].mxu0 }
 0x10d   : > { %637 = vst.msk [vmem:[%s973_s14 + $0x28] sm:$0xff] %vm631_vm0, %v604_v26  ;;  %653 = vst.msk [vmem:[%s973_s14 + $0xa8] sm:$0xff] %vm631_vm0, %v620_v27  ;;  %v505_v33 = vadd.f32 %v963_v24, %v504_v31  ;;  %v823_v35 = vpop.f32.mrb[10].mxu1  ;;  %vm545_vm2 = vcmp.ge.f32.partialorder %v449_v28, 0.0  ;;  %v577_v36 = vmul.f32 0.2, %v449_v28  ;;  %v452_v42 = vadd.f32 %v807_v34, %v963_v24 }
 0x10e   : > { %vm561_vm3 = vcmp.ge.f32.partialorder %v513_v29, 0.0  ;;  %v593_v37 = vmul.f32 0.2, %v513_v29  ;;  %vm543_vm4 = vcmp.ge.f32.partialorder %v441_v32, 0.0  ;;  %v575_v38 = vmul.f32 0.2, %v441_v32 }
 0x10f   : > { %vm559_vm5 = vcmp.ge.f32.partialorder %v505_v33, 0.0  ;;  %v591_v39 = vmul.f32 0.2, %v505_v33  ;;  %v609_v40 = vsel %vm545_vm2, %v449_v28, %v577_v36  ;;  %v516_v43 = vadd.f32 %v823_v35, %v963_v24  ;;  %v443_v44 = vpop.f32.mrb[11].mxu0  ;;  %v507_v45 = vpop.f32.mrb[11].mxu1 }
 0x110   : > { %v625_v41 = vsel %vm561_vm3, %v513_v29, %v593_v37  ;;  %642 = vst.msk [vmem:[%s973_s14 + $0x50] sm:$0xff] %vm631_vm0, %v609_v40  ;;  %v607_v46 = vsel %vm543_vm4, %v441_v32, %v575_v38  ;;  %v444_v48 = vadd.f32 %v963_v24, %v443_v44  ;;  %v508_v49 = vadd.f32 %v963_v24, %v507_v45 }
 0x111   : > { %658 = vst.msk [vmem:[%s973_s14 + $0xd0] sm:$0xff] %vm631_vm0, %v625_v41  ;;  %v623_v47 = vsel %vm559_vm5, %v505_v33, %v591_v39  ;;  %v810_v50 = vpop.f32.mrb[12].mxu0  ;;  %v826_v51 = vpop.f32.mrb[12].mxu1  ;;  %640 = vst.msk [vmem:[%s973_s14 + $0x40] sm:$0xff] %vm631_vm0, %v607_v46  ;;  %vm546_vm6 = vcmp.ge.f32.partialorder %v452_v42, 0.0  ;;  %vm562_vm7 = vcmp.ge.f32.partialorder %v516_v43, 0.0 }
 0x112   : > { %656 = vst.msk [vmem:[%s973_s14 + $0xc0] sm:$0xff] %vm631_vm0, %v623_v47  ;;  %v578_v52 = vmul.f32 0.2, %v452_v42  ;;  %v594_v53 = vmul.f32 0.2, %v516_v43  ;;  %vm544_vm8 = vcmp.ge.f32.partialorder %v444_v48, 0.0  ;;  %v465_v58 = vadd.f32 %v810_v50, %v963_v24 }
 0x113   : > { %v576_v54 = vmul.f32 0.2, %v444_v48  ;;  %vm560_vm9 = vcmp.ge.f32.partialorder %v508_v49, 0.0  ;;  %v592_v55 = vmul.f32 0.2, %v508_v49  ;;  %v529_v59 = vadd.f32 %v826_v51, %v963_v24  ;;  %v456_v60 = vpop.f32.mrb[13].mxu0 }
 0x114   : > { %v610_v56 = vsel %vm546_vm6, %v452_v42, %v578_v52  ;;  %v626_v57 = vsel %vm562_vm7, %v516_v43, %v594_v53  ;;  %v520_v61 = vpop.f32.mrb[13].mxu1  ;;  %v457_v0 = vadd.f32 %v963_v24, %v456_v60  ;;  %v811_v2 = vpop.f32.mrb[14].mxu0  ;;  %vm549_vm10 = vcmp.ge.f32.partialorder %v465_v58, 0.0 }
 0x115   : > { %643 = vst.msk [vmem:[%s973_s14 + $0x58] sm:$0xff] %vm631_vm0, %v610_v56  ;;  %659 = vst.msk [vmem:[%s973_s14 + $0xd8] sm:$0xff] %vm631_vm0, %v626_v57  ;;  %v608_v62 = vsel %vm544_vm8, %v444_v48, %v576_v54  ;;  %v624_v63 = vsel %vm560_vm9, %v508_v49, %v592_v55  ;;  %v521_v1 = vadd.f32 %v963_v24, %v520_v61  ;;  %v827_v3 = vpop.f32.mrb[14].mxu1  ;;  %v581_v4 = vmul.f32 0.2, %v465_v58  ;;  %v459_v12 = vpop.f32.mrb[15].mxu0 }
 0x116   : > { %641 = vst.msk [vmem:[%s973_s14 + $0x48] sm:$0xff] %vm631_vm0, %v608_v62  ;;  %657 = vst.msk [vmem:[%s973_s14 + $0xc8] sm:$0xff] %vm631_vm0, %v624_v63  ;;  %vm565_vm11 = vcmp.ge.f32.partialorder %v529_v59, 0.0  ;;  %v597_v5 = vmul.f32 0.2, %v529_v59  ;;  %vm547_vm12 = vcmp.ge.f32.partialorder %v457_v0, 0.0  ;;  %v468_v10 = vadd.f32 %v811_v2, %v963_v24 }
 0x117   : > { %v579_v6 = vmul.f32 0.2, %v457_v0  ;;  %vm563_vm13 = vcmp.ge.f32.partialorder %v521_v1, 0.0  ;;  %v595_v7 = vmul.f32 0.2, %v521_v1  ;;  %v613_v8 = vsel %vm549_vm10, %v465_v58, %v581_v4  ;;  %v523_v13 = vpop.f32.mrb[15].mxu1 }
 0x118   : > { %v629_v9 = vsel %vm565_vm11, %v529_v59, %v597_v5  ;;  %v532_v11 = vadd.f32 %v827_v3, %v963_v24  ;;  %646 = vst.msk [vmem:[%s973_s14 + $0x70] sm:$0xff] %vm631_vm0, %v613_v8  ;;  %v460_v16 = vadd.f32 %v963_v24, %v459_v12  ;;  %v524_v17 = vadd.f32 %v963_v24, %v523_v13 }
 0x119   : > { %662 = vst.msk [vmem:[%s973_s14 + $0xf0] sm:$0xff] %vm631_vm0, %v629_v9  ;;  %v611_v14 = vsel %vm547_vm12, %v457_v0, %v579_v6  ;;  %v627_v15 = vsel %vm563_vm13, %v521_v1, %v595_v7  ;;  %vm550_vm14 = vcmp.ge.f32.partialorder %v468_v10, 0.0  ;;  %v582_v18 = vmul.f32 0.2, %v468_v10 }
 0x11a   : > { %644 = vst.msk [vmem:[%s973_s14 + $0x60] sm:$0xff] %vm631_vm0, %v611_v14  ;;  %660 = vst.msk [vmem:[%s973_s14 + $0xe0] sm:$0xff] %vm631_vm0, %v627_v15  ;;  %vm566_vm15 = vcmp.ge.f32.partialorder %v532_v11, 0.0  ;;  %v598_v19 = vmul.f32 0.2, %v532_v11  ;;  %vm548_vm1 = vcmp.ge.f32.partialorder %v460_v16, 0.0 }
 0x11b   : > { %v580_v20 = vmul.f32 0.2, %v460_v16  ;;  %vm564_vm2 = vcmp.ge.f32.partialorder %v524_v17, 0.0  ;;  %v596_v21 = vmul.f32 0.2, %v524_v17  ;;  %v614_v22 = vsel %vm550_vm14, %v468_v10, %v582_v18 }
 0x11c   : > { %v630_v23 = vsel %vm566_vm15, %v532_v11, %v598_v19  ;;  %647 = vst.msk [vmem:[%s973_s14 + $0x78] sm:$0xff] %vm631_vm0, %v614_v22 }
 0x11d   : > { %663 = vst.msk [vmem:[%s973_s14 + $0xf8] sm:$0xff] %vm631_vm0, %v630_v23  ;;  %v612_v24 = vsel %vm548_vm1, %v460_v16, %v580_v20  ;;  %v628_v25 = vsel %vm564_vm2, %v524_v17, %v596_v21 }
 0x11e   : > { %645 = vst.msk [vmem:[%s973_s14 + $0x68] sm:$0xff] %vm631_vm0, %v612_v24  ;;  %661 = vst.msk [vmem:[%s973_s14 + $0xe8] sm:$0xff] %vm631_vm0, %v628_v25 }
 0x11f PF: > { %s13_s12 = sadd.s32 1, %s882_s12  }
 0x120   : > { %p10_p4 = scmp.ge.s32.totalorder %s13_s12, 4  }
 0x122   :  { %12 = sbr.rel (!%p10_p4) target bundleno = 1 (0x1), region = 62 }

// kernel: discriminator_forward.10
= control target key start
LH: loop header
LB: loop body
LE: loop exit
PB: predicated region body
PF: predicated region fallthrough
CT: control target
= control target key end

     0   :  { %s308_s6 = smov 0   ;;  %s342_s0 = inlined_call_operand.vmem [shape: f32[2,64,128], index: 0, kind: input, shape index: {}]   ;;  %s343_s1 = inlined_call_operand.vmem [shape: f32[2,64,128], index: 1, kind: output, shape index: {}]  }
   0x1 LB: > { %s267_s7 = sadd.s32 4294967295, %s296_s6   ;;  %p271_p0 = scmp.ge.s32.totalorder %s296_s6, 1  ;;  %s296_s6 = sphi %s308_s6, %s11_s6  }
   0x2   : > { %p87_p1 = scmp.lt.s32.totalorder %s296_s6, 3 }
   0x4   : > { %p88_p2 = pnand %p271_p0, %p87_p1 }
   0x5   : > { %p107_p3 = scmp.lt.s32.totalorder (!%p88_p2), %s267_s7, 1 }
   0x6   : > { %91 = sbr.rel (%p88_p2) target bundleno = 101 (0x65), region = 24 }
   0xd   : > { %s345_s7 = smov (!%p107_p3, %s267_s7), 1 }
   0xe   : > { %s278_s8 = sshll.u32 %s345_s7, 6 }
   0xf   : > { %s111_s11 = scalar_lea.vmem %s342_s0, %s278_s8  ;;  %s329_s14 = scalar_lea.vmem %s343_s1, %s278_s8 }
  0x10   : > { %v117_v0 = vld [vmem:[%s111_s11] sm:$0xff]  ;;  %v118_v1 = vld [vmem:[%s111_s11 + $0x8] sm:$0xff]  ;;  %v119_v2 = vld [vmem:[%s111_s11 + $0x10] sm:$0xff] }
  0x11   : > { %v125_v3 = vadd.f32 %v118_v1, %v117_v0  ;;  %v120_v4 = vld [vmem:[%s111_s11 + $0x18] sm:$0xff]  ;;  %v121_v6 = vld [vmem:[%s111_s11 + $0x20] sm:$0xff]  ;;  %v122_v8 = vld [vmem:[%s111_s11 + $0x28] sm:$0xff] }
  0x12   : > { %v123_v10 = vld [vmem:[%s111_s11 + $0x30] sm:$0xff]  ;;  %v124_v12 = vld [vmem:[%s111_s11 + $0x38] sm:$0xff] }
  0x13   : > { %v126_v5 = vadd.f32 %v125_v3, %v119_v2 }
  0x15   : > { %v127_v7 = vadd.f32 %v126_v5, %v120_v4 }
  0x17   : > { %v128_v9 = vadd.f32 %v127_v7, %v121_v6 }
  0x19   : > { %v129_v11 = vadd.f32 %v128_v9, %v122_v8 }
  0x1b   : > { %v130_v13 = vadd.f32 %v129_v11, %v123_v10 }
  0x1d   : > { %v131_v14 = vadd.f32 %v130_v13, %v124_v12 }
  0x1f   : > { %v132_v15 = vrot.slane %v131_v14, 4 }
  0x21   : > { %v133_v16 = vadd.f32 %v132_v15, %v131_v14 }
  0x23   : > { %v134_v17 = vrot.slane %v133_v16, 2 }
  0x25   : > { %v135_v18 = vadd.f32 %v134_v17, %v133_v16 }
  0x27   : > { %v136_v19 = vrot.slane %v135_v18, 1 }
  0x29   : > { %v137_v20 = vadd.f32 %v136_v19, %v135_v18 }
  0x2b   : > { %v139_v21 = vmul.f32 0.015625, %v137_v20 }
  0x2d   : > { %v140_v22 = vsub.f32 %v117_v0, %v139_v21  ;;  %v141_v23 = vsub.f32 %v118_v1, %v139_v21  ;;  %v142_v24 = vsub.f32 %v119_v2, %v139_v21  ;;  %v143_v25 = vsub.f32 %v120_v4, %v139_v21 }
  0x2e   : > { %v144_v26 = vsub.f32 %v121_v6, %v139_v21  ;;  %v145_v30 = vsub.f32 %v122_v8, %v139_v21  ;;  %v146_v33 = vsub.f32 %v123_v10, %v139_v21  ;;  %v147_v36 = vsub.f32 %v124_v12, %v139_v21 }
  0x2f   : > { %v148_v27 = vmul.f32 %v140_v22, %v140_v22  ;;  %v149_v28 = vmul.f32 %v141_v23, %v141_v23  ;;  %v150_v29 = vmul.f32 %v142_v24, %v142_v24  ;;  %v151_v31 = vmul.f32 %v143_v25, %v143_v25 }
  0x30   : > { %v152_v34 = vmul.f32 %v144_v26, %v144_v26  ;;  %v153_v37 = vmul.f32 %v145_v30, %v145_v30  ;;  %v154_v39 = vmul.f32 %v146_v33, %v146_v33  ;;  %v155_v41 = vmul.f32 %v147_v36, %v147_v36 }
  0x31   : > { %v156_v32 = vadd.f32 %v149_v28, %v148_v27 }
  0x33   : > { %v157_v35 = vadd.f32 %v156_v32, %v150_v29 }
  0x35   : > { %v158_v38 = vadd.f32 %v157_v35, %v151_v31 }
  0x37   : > { %v159_v40 = vadd.f32 %v158_v38, %v152_v34 }
  0x39   : > { %v160_v42 = vadd.f32 %v159_v40, %v153_v37 }
  0x3b   : > { %v161_v43 = vadd.f32 %v160_v42, %v154_v39 }
  0x3d   : > { %v162_v44 = vadd.f32 %v161_v43, %v155_v41 }
  0x3f   : > { %v163_v45 = vrot.slane %v162_v44, 4 }
  0x41   : > { %v164_v46 = vadd.f32 %v163_v45, %v162_v44 }
  0x43   : > { %v165_v47 = vrot.slane %v164_v46, 2 }
  0x45   : > { %v166_v48 = vadd.f32 %v165_v47, %v164_v46 }
  0x47   : > { %v167_v49 = vrot.slane %v166_v48, 1 }
  0x49   : > { %v168_v50 = vadd.f32 %v167_v49, %v166_v48 }
  0x4b   : > { %v169_v51 = vmul.f32 0.015625, %v168_v50 }
  0x4d   : > { %v170_v52 = vadd.f32 1e-05, %v169_v51 }
  0x4f   : > { %288 = vrsqrt.f32 %v170_v52 }
  0x59   : > { %v289_v53 = vpop.eup %288 }
  0x5a   : > { %v172_v54 = vmul.f32 %v289_v53, %v140_v22  ;;  %v173_v55 = vmul.f32 %v289_v53, %v141_v23  ;;  %v174_v56 = vmul.f32 %v289_v53, %v142_v24  ;;  %v175_v57 = vmul.f32 %v289_v53, %v143_v25 }
  0x5b   : > { %v176_v58 = vmul.f32 %v289_v53, %v144_v26  ;;  %v177_v59 = vmul.f32 %v289_v53, %v145_v30  ;;  %v178_v60 = vmul.f32 %v289_v53, %v146_v33  ;;  %v179_v61 = vmul.f32 %v289_v53, %v147_v36 }
  0x5c   : > { %vm180_vm0 = vcmp.ge.f32.partialorder %v172_v54, 0.0  ;;  %v188_v62 = vmul.f32 0.2, %v172_v54  ;;  %vm181_vm1 = vcmp.ge.f32.partialorder %v173_v55, 0.0  ;;  %v189_v63 = vmul.f32 0.2, %v173_v55 }
  0x5d   : > { %vm182_vm2 = vcmp.ge.f32.partialorder %v174_v56, 0.0  ;;  %v190_v0 = vmul.f32 0.2, %v174_v56  ;;  %vm183_vm3 = vcmp.ge.f32.partialorder %v175_v57, 0.0  ;;  %v191_v1 = vmul.f32 0.2, %v175_v57 }
  0x5e   : > { %v196_v2 = vsel %vm180_vm0, %v172_v54, %v188_v62  ;;  %v197_v3 = vsel %vm181_vm1, %v173_v55, %v189_v63  ;;  %vm184_vm4 = vcmp.ge.f32.partialorder %v176_v58, 0.0  ;;  %v192_v4 = vmul.f32 0.2, %v176_v58 }
  0x5f   : > { %204 = vst [vmem:[%s329_s14] sm:$0xff] %v196_v2  ;;  %205 = vst [vmem:[%s329_s14 + $0x8] sm:$0xff] %v197_v3  ;;  %v198_v5 = vsel %vm182_vm2, %v174_v56, %v190_v0  ;;  %v199_v6 = vsel %vm183_vm3, %v175_v57, %v191_v1  ;;  %vm185_vm5 = vcmp.ge.f32.partialorder %v177_v59, 0.0  ;;  %v193_v7 = vmul.f32 0.2, %v177_v59 }
  0x60   : > { %206 = vst [vmem:[%s329_s14 + $0x10] sm:$0xff] %v198_v5  ;;  %207 = vst [vmem:[%s329_s14 + $0x18] sm:$0xff] %v199_v6  ;;  %v200_v8 = vsel %vm184_vm4, %v176_v58, %v192_v4  ;;  %vm186_vm6 = vcmp.ge.f32.partialorder %v178_v60, 0.0  ;;  %v194_v9 = vmul.f32 0.2, %v178_v60  ;;  %vm187_vm7 = vcmp.ge.f32.partialorder %v179_v61, 0.0 }
  0x61   : > { %208 = vst [vmem:[%s329_s14 + $0x20] sm:$0xff] %v200_v8  ;;  %v201_v10 = vsel %vm185_vm5, %v177_v59, %v193_v7  ;;  %v195_v11 = vmul.f32 0.2, %v179_v61 }
  0x62   : > { %209 = vst [vmem:[%s329_s14 + $0x28] sm:$0xff] %v201_v10  ;;  %v202_v12 = vsel %vm186_vm6, %v178_v60, %v194_v9 }
  0x63   : > { %210 = vst [vmem:[%s329_s14 + $0x30] sm:$0xff] %v202_v12  ;;  %v203_v13 = vsel %vm187_vm7, %v179_v61, %v195_v11 }
  0x64   : > { %211 = vst [vmem:[%s329_s14 + $0x38] sm:$0xff] %v203_v13 }
  0x65 PF: > { %s11_s6 = sadd.s32 1, %s296_s6  }
  0x66   : > { %p8_p4 = scmp.ge.s32.totalorder %s11_s6, 4  }
  0x68   :  { %10 = sbr.rel (!%p8_p4) target bundleno = 1 (0x1), region = 54 }

// kernel: discriminator_forward.9
= control target key start
LH: loop header
LB: loop body
LE: loop exit
PB: predicated region body
PF: predicated region fallthrough
CT: control target
= control target key end

     0   :  { %s2296_s1 = inlined_call_operand.vmem [shape: bf16[1024,128], index: 1, kind: input, shape index: {}]   ;;  %s2297_s0 = inlined_call_operand.vmem [shape: bf16[128,1024], index: 0, kind: input, shape index: {}]   ;;  %s2298_s2 = inlined_call_operand.vmem [shape: f32[1,128], index: 2, kind: input, shape index: {}]   ;;  %s2299_s3 = inlined_call_operand.vmem [shape: f32[128,128], index: 3, kind: output, shape index: {}]  }
   0x1   :  { %v1711_v0 = vld [vmem:[%s2296_s1 + $0x40] sm:$0xff]   ;;  %v1715_v4 = vld [vmem:[%s2296_s1 + $0x48] sm:$0xff]   ;;  %v1719_v8 = vld [vmem:[%s2296_s1 + $0x50] sm:$0xff]  }
   0x2   :  { %v1712_v1 = vld [vmem:[%s2296_s1 + $0xc0] sm:$0xff]   ;;  %1455 = vmatprep.subr.bf16.mxu0 %v1711_v0  ;;  %v1716_v5 = vld [vmem:[%s2296_s1 + $0xc8] sm:$0xff]   ;;  %v1720_v9 = vld [vmem:[%s2296_s1 + $0xd0] sm:$0xff]  }
   0x3   :  { %v1713_v2 = vld [vmem:[%s2296_s1] sm:$0xff]   ;;  %1519 = vmatprep.subr.bf16.mxu1 %v1712_v1  ;;  %v1717_v6 = vld [vmem:[%s2296_s1 + $0x8] sm:$0xff]   ;;  %v1721_v10 = vld [vmem:[%s2296_s1 + $0x10] sm:$0xff]  }
   0x4   :  { %v1714_v3 = vld [vmem:[%s2296_s1 + $0x80] sm:$0xff]   ;;  %1456 = vmatpush3.bf16.msra.mxu0 %v1713_v2  ;;  %v1718_v7 = vld [vmem:[%s2296_s1 + $0x88] sm:$0xff]   ;;  %v1722_v11 = vld [vmem:[%s2296_s1 + $0x90] sm:$0xff]  }
   0x5   :  { %1520 = vmatpush3.bf16.msra.mxu1 %v1714_v3  ;;  %1457 = vmatprep.subr.bf16.mxu0 %v1715_v4  ;;  %v1723_v12 = vld [vmem:[%s2296_s1 + $0x58] sm:$0xff]   ;;  %v1727_v16 = vld [vmem:[%s2296_s1 + $0x60] sm:$0xff]   ;;  %v1731_v20 = vld [vmem:[%s2296_s1 + $0x68] sm:$0xff]  }
   0x6   :  { %1521 = vmatprep.subr.bf16.mxu1 %v1716_v5  ;;  %v1724_v13 = vld [vmem:[%s2296_s1 + $0xd8] sm:$0xff]   ;;  %v1728_v17 = vld [vmem:[%s2296_s1 + $0xe0] sm:$0xff]   ;;  %v1732_v21 = vld [vmem:[%s2296_s1 + $0xe8] sm:$0xff]  }
   0x7   :  { %v1725_v14 = vld [vmem:[%s2296_s1 + $0x18] sm:$0xff]   ;;  %v1729_v18 = vld [vmem:[%s2296_s1 + $0x20] sm:$0xff]   ;;  %v1733_v22 = vld [vmem:[%s2296_s1 + $0x28] sm:$0xff]  }
   0x8   :  { %1458 = vmatpush3.bf16.msra.mxu0 %v1717_v6  ;;  %v1726_v15 = vld [vmem:[%s2296_s1 + $0x98] sm:$0xff]   ;;  %v1730_v19 = vld [vmem:[%s2296_s1 + $0xa0] sm:$0xff]   ;;  %v1734_v23 = vld [vmem:[%s2296_s1 + $0xa8] sm:$0xff]  }
   0x9   :  { %1522 = vmatpush3.bf16.msra.mxu1 %v1718_v7  ;;  %1459 = vmatprep.subr.bf16.mxu0 %v1719_v8  ;;  %v1735_v24 = vld [vmem:[%s2296_s1 + $0x70] sm:$0xff]   ;;  %v1739_v28 = vld [vmem:[%s2296_s1 + $0x78] sm:$0xff]   ;;  %v15_v32 = vld [vmem:[%s2297_s0] sm:$0xff] }
   0xa   :  { %1523 = vmatprep.subr.bf16.mxu1 %v1720_v9  ;;  %v1736_v25 = vld [vmem:[%s2296_s1 + $0xf0] sm:$0xff]   ;;  %v1740_v29 = vld [vmem:[%s2296_s1 + $0xf8] sm:$0xff]   ;;  %v19_v33 = vld [vmem:[%s2297_s0 + $0x20] sm:$0xff] }
   0xb   :  { %v1737_v26 = vld [vmem:[%s2296_s1 + $0x30] sm:$0xff]   ;;  %v1741_v30 = vld [vmem:[%s2296_s1 + $0x38] sm:$0xff]   ;;  %v16_v34 = vld [vmem:[%s2297_s0 + $0x8] sm:$0xff]  ;;  %v1327_v35 = vcombine.low %v15_v32, %v19_v33  ;;  %v1328_v36 = vcombine.high %v15_v32, %v19_v33 }
   0xc   :  { %1460 = vmatpush3.bf16.msra.mxu0 %v1721_v10  ;;  %v1738_v27 = vld [vmem:[%s2296_s1 + $0xb0] sm:$0xff]   ;;  %v1742_v31 = vld [vmem:[%s2296_s1 + $0xb8] sm:$0xff]   ;;  %v20_v37 = vld [vmem:[%s2297_s0 + $0x28] sm:$0xff] }
   0xd   :  { %1524 = vmatpush3.bf16.msra.mxu1 %v1722_v11  ;;  %1461 = vmatprep.subr.bf16.mxu0 %v1723_v12  ;;  %v1329_v38 = vcombine.low %v16_v34, %v20_v37  ;;  %v1330_v39 = vcombine.high %v16_v34, %v20_v37  ;;  %v1743_v40 = vld [vmem:[%s2296_s1 + $0x140] sm:$0xff]   ;;  %v24_v47 = vld [vmem:[%s2297_s0 + $0x48] sm:$0xff]  ;;  %v1751_v62 = vld [vmem:[%s2296_s1 + $0x150] sm:$0xff]  }
   0xe   :  { %1525 = vmatprep.subr.bf16.mxu1 %v1724_v13  ;;  %950 = vmatprep.mubr.bf16.mxu0 %v1328_v36  ;;  %v1744_v41 = vld [vmem:[%s2296_s1 + $0x100] sm:$0xff]   ;;  %v28_v48 = vld [vmem:[%s2297_s0 + $0x68] sm:$0xff]  ;;  %v1752_v63 = vld [vmem:[%s2296_s1 + $0x110] sm:$0xff]  }
   0xf   :  { %1047 = vmatprep.mubr.bf16.mxu1 %v1330_v39  ;;  %v1745_v42 = vld [vmem:[%s2296_s1 + $0x1c0] sm:$0xff]   ;;  %v1338_v49 = vcombine.high %v24_v47, %v28_v48  ;;  %v1747_v50 = vld [vmem:[%s2296_s1 + $0x148] sm:$0xff]   ;;  %v1337_v53 = vcombine.low %v24_v47, %v28_v48  ;;  %v1753_v0 = vld [vmem:[%s2296_s1 + $0x1d0] sm:$0xff]  }
  0x10   :  { %1462 = vmatpush3.bf16.msra.mxu0 %v1725_v14  ;;  %v1746_v43 = vld [vmem:[%s2296_s1 + $0x180] sm:$0xff]   ;;  %v1748_v52 = vld [vmem:[%s2296_s1 + $0x108] sm:$0xff]   ;;  %v1754_v1 = vld [vmem:[%s2296_s1 + $0x190] sm:$0xff]  }
  0x11   :  { %1526 = vmatpush3.bf16.msra.mxu1 %v1726_v15  ;;  %1463 = vmatprep.subr.bf16.mxu0 %v1727_v16  ;;  %v23_v44 = vld [vmem:[%s2297_s0 + $0x40] sm:$0xff]  ;;  %v1749_v54 = vld [vmem:[%s2296_s1 + $0x1c8] sm:$0xff]   ;;  %v1755_v10 = vld [vmem:[%s2296_s1 + $0x158] sm:$0xff]  }
  0x12   :  { %1527 = vmatprep.subr.bf16.mxu1 %v1728_v17  ;;  %v27_v45 = vld [vmem:[%s2297_s0 + $0x60] sm:$0xff]  ;;  %v1750_v55 = vld [vmem:[%s2296_s1 + $0x188] sm:$0xff]   ;;  %v1756_v11 = vld [vmem:[%s2296_s1 + $0x118] sm:$0xff]  }
  0x13   :  { %v1336_v46 = vcombine.high %v23_v44, %v27_v45  ;;  %v1335_v51 = vcombine.low %v23_v44, %v27_v45  ;;  %v31_v56 = vld [vmem:[%s2297_s0 + $0x80] sm:$0xff]  ;;  %v32_v58 = vld [vmem:[%s2297_s0 + $0x88] sm:$0xff]  ;;  %v1757_v12 = vld [vmem:[%s2296_s1 + $0x1d8] sm:$0xff]  }
  0x14   :  { %1464 = vmatpush3.bf16.msra.mxu0 %v1729_v18  ;;  %v35_v57 = vld [vmem:[%s2297_s0 + $0xa0] sm:$0xff]  ;;  %v36_v59 = vld [vmem:[%s2297_s0 + $0xa8] sm:$0xff]  ;;  %v1758_v13 = vld [vmem:[%s2296_s1 + $0x198] sm:$0xff]  }
  0x15   :  { %1528 = vmatpush3.bf16.msra.mxu1 %v1730_v19  ;;  %1465 = vmatprep.subr.bf16.mxu0 %v1731_v20  ;;  %v1344_v60 = vcombine.high %v31_v56, %v35_v57  ;;  %v1346_v61 = vcombine.high %v32_v58, %v36_v59  ;;  %v1343_v2 = vcombine.low %v31_v56, %v35_v57  ;;  %v39_v3 = vld [vmem:[%s2297_s0 + $0xc0] sm:$0xff]  ;;  %v40_v5 = vld [vmem:[%s2297_s0 + $0xc8] sm:$0xff]  ;;  %v1768_v39 = vld [vmem:[%s2296_s1 + $0x130] sm:$0xff]  }
  0x16   :  { %1529 = vmatprep.subr.bf16.mxu1 %v1732_v21  ;;  %v43_v4 = vld [vmem:[%s2297_s0 + $0xe0] sm:$0xff]  ;;  %v1345_v6 = vcombine.low %v32_v58, %v36_v59  ;;  %v44_v8 = vld [vmem:[%s2297_s0 + $0xe8] sm:$0xff]  ;;  %v1772_v48 = vld [vmem:[%s2296_s1 + $0x138] sm:$0xff]  }
  0x17   :  { %v1352_v7 = vcombine.high %v39_v3, %v43_v4  ;;  %v1354_v9 = vcombine.high %v40_v5, %v44_v8  ;;  %v47_v14 = vld [vmem:[%s2297_s0 + $0x100] sm:$0xff]  ;;  %v48_v16 = vld [vmem:[%s2297_s0 + $0x108] sm:$0xff]  ;;  %v1351_v19 = vcombine.low %v39_v3, %v43_v4  ;;  %v1353_v21 = vcombine.low %v40_v5, %v44_v8  ;;  %v26_v8 = vld [vmem:[%s2297_s0 + $0x58] sm:$0xff] }
  0x18   :  { %1466 = vmatpush3.bf16.msra.mxu0 %v1733_v22  ;;  %v51_v15 = vld [vmem:[%s2297_s0 + $0x120] sm:$0xff]  ;;  %v52_v17 = vld [vmem:[%s2297_s0 + $0x128] sm:$0xff] }
  0x19   :  { %1530 = vmatpush3.bf16.msra.mxu1 %v1734_v23  ;;  %1467 = vmatprep.subr.bf16.mxu0 %v1735_v24  ;;  %v1759_v18 = vld [vmem:[%s2296_s1 + $0x160] sm:$0xff]   ;;  %v1360_v22 = vcombine.high %v47_v14, %v51_v15  ;;  %v1362_v24 = vcombine.high %v48_v16, %v52_v17  ;;  %v1765_v32 = vld [vmem:[%s2296_s1 + $0x1e8] sm:$0xff]   ;;  %v1359_v34 = vcombine.low %v47_v14, %v51_v15  ;;  %v33_v14 = vld [vmem:[%s2297_s0 + $0x90] sm:$0xff] }
  0x1a   :  { %1531 = vmatprep.subr.bf16.mxu1 %v1736_v25  ;;  %v1760_v20 = vld [vmem:[%s2296_s1 + $0x120] sm:$0xff]   ;;  %v1766_v33 = vld [vmem:[%s2296_s1 + $0x1a8] sm:$0xff]   ;;  %v37_v15 = vld [vmem:[%s2297_s0 + $0xb0] sm:$0xff] }
  0x1b   :  { %v1761_v23 = vld [vmem:[%s2296_s1 + $0x1e0] sm:$0xff]   ;;  %v64_v44 = vld [vmem:[%s2297_s0 + $0x188] sm:$0xff] }
  0x1c   :  { %1468 = vmatpush3.bf16.msra.mxu0 %v1737_v26  ;;  %v1762_v25 = vld [vmem:[%s2296_s1 + $0x1a0] sm:$0xff]   ;;  %v68_v45 = vld [vmem:[%s2297_s0 + $0x1a8] sm:$0xff] }
  0x1d   :  { %1532 = vmatpush3.bf16.msra.mxu1 %v1738_v27  ;;  %1469 = vmatprep.subr.bf16.mxu0 %v1739_v28  ;;  %v55_v26 = vld [vmem:[%s2297_s0 + $0x140] sm:$0xff]  ;;  %v1763_v28 = vld [vmem:[%s2296_s1 + $0x168] sm:$0xff]   ;;  %v1377_v59 = vcombine.low %v64_v44, %v68_v45 }
  0x1e   :  { %1533 = vmatprep.subr.bf16.mxu1 %v1740_v29  ;;  %v59_v27 = vld [vmem:[%s2297_s0 + $0x160] sm:$0xff]  ;;  %v56_v29 = vld [vmem:[%s2297_s0 + $0x148] sm:$0xff] }
  0x1f   :  { %v1368_v36 = vcombine.high %v55_v26, %v59_v27  ;;  %v1367_v47 = vcombine.low %v55_v26, %v59_v27  ;;  %v72_v56 = vld [vmem:[%s2297_s0 + $0x1c8] sm:$0xff]  ;;  %v1347_v26 = vcombine.low %v33_v14, %v37_v15 }
  0x20   :  { %1470 = vmatpush3.bf16.msra.mxu0 %v1741_v30  ;;  %v60_v30 = vld [vmem:[%s2297_s0 + $0x168] sm:$0xff] }
  0x21   :  { %1534 = vmatpush3.bf16.msra.mxu1 %v1742_v31  ;;  %1583 = vmatprep.subr.bf16.mxu0 %v1743_v40  ;;  %v1764_v31 = vld [vmem:[%s2296_s1 + $0x128] sm:$0xff]   ;;  %v1370_v37 = vcombine.high %v56_v29, %v60_v30  ;;  %v1769_v40 = vld [vmem:[%s2296_s1 + $0x1f0] sm:$0xff]  }
  0x22   :  { %1647 = vmatprep.subr.bf16.mxu1 %v1745_v42  ;;  %v67_v42 = vld [vmem:[%s2297_s0 + $0x1a0] sm:$0xff]  ;;  %v76_v57 = vld [vmem:[%s2297_s0 + $0x1e8] sm:$0xff] }
  0x23   :  { %951 = vmatmul.mubr.bf16.vlgmr.msra.gmra.mrb[0].mxu0 %v1327_v35  ;;  %v1361_v35 = vcombine.low %v48_v16, %v52_v17  ;;  %v1385_v3 = vcombine.low %v72_v56, %v76_v57  ;;  %v34_v16 = vld [vmem:[%s2297_s0 + $0x98] sm:$0xff] }
  0x24   :  { %1048 = vmatmul.mubr.bf16.vlgmr.msra.gmra.mrb[0].mxu1 %v1329_v38  ;;  %1584 = vmatpush3.bf16.msra.mxu0 %v1744_v41  ;;  %v1767_v38 = vld [vmem:[%s2296_s1 + $0x170] sm:$0xff]   ;;  %v63_v41 = vld [vmem:[%s2297_s0 + $0x180] sm:$0xff]  ;;  %v38_v17 = vld [vmem:[%s2297_s0 + $0xb8] sm:$0xff] }
  0x25   :  { %1648 = vmatpush3.bf16.msra.mxu1 %v1746_v43  ;;  %958 = vmatprep.mubr.bf16.mxu0 %v1336_v46  ;;  %v1770_v43 = vld [vmem:[%s2296_s1 + $0x1b0] sm:$0xff]   ;;  %v1771_v46 = vld [vmem:[%s2296_s1 + $0x178] sm:$0xff]   ;;  %v1375_v58 = vcombine.low %v63_v41, %v67_v42  ;;  %v1349_v27 = vcombine.low %v34_v16, %v38_v17 }
  0x26   :  { %1055 = vmatprep.mubr.bf16.mxu1 %v1338_v49  ;;  %1585 = vmatprep.subr.bf16.mxu0 %v1747_v50  ;;  %v1369_v49 = vcombine.low %v56_v29, %v60_v30  ;;  %v1376_v50 = vcombine.high %v63_v41, %v67_v42  ;;  %v49_v30 = vld [vmem:[%s2297_s0 + $0x110] sm:$0xff]  ;;  %v62_v41 = vld [vmem:[%s2297_s0 + $0x178] sm:$0xff] }
  0x27   :  { %1649 = vmatprep.subr.bf16.mxu1 %v1749_v54  ;;  %v71_v54 = vld [vmem:[%s2297_s0 + $0x1c0] sm:$0xff] }
  0x28   :  { %1586 = vmatpush3.bf16.msra.mxu0 %v1748_v52  ;;  %v1378_v52 = vcombine.high %v64_v44, %v68_v45 }
  0x29   :  { %1650 = vmatpush3.bf16.msra.mxu1 %v1750_v55  ;;  %1587 = vmatprep.subr.bf16.mxu0 %v1751_v62  ;;  %v75_v55 = vld [vmem:[%s2297_s0 + $0x1e0] sm:$0xff]  ;;  %v17_v62 = vld [vmem:[%s2297_s0 + $0x10] sm:$0xff] }
  0x2a   :  { %1651 = vmatprep.subr.bf16.mxu1 %v1753_v0  ;;  %v18_v0 = vld [vmem:[%s2297_s0 + $0x18] sm:$0xff] }
  0x2b   :  { %959 = vmatmul.mubr.bf16.gmra.mrb[4].mxu0 %v1335_v51  ;;  %v1773_v51 = vld [vmem:[%s2296_s1 + $0x1f8] sm:$0xff]  }
  0x2c   :  { %1056 = vmatmul.mubr.bf16.gmra.mrb[4].mxu1 %v1337_v53  ;;  %966 = vmatprep.mubr.bf16.mxu0 %v1344_v60  ;;  %v1774_v53 = vld [vmem:[%s2296_s1 + $0x1b8] sm:$0xff]   ;;  %v1384_v60 = vcombine.high %v71_v54, %v75_v55 }
  0x2d   :  { %1063 = vmatprep.mubr.bf16.mxu1 %v1346_v61  ;;  %1588 = vmatpush3.bf16.msra.mxu0 %v1752_v63  ;;  %v1386_v61 = vcombine.high %v72_v56, %v76_v57  ;;  %v21_v63 = vld [vmem:[%s2297_s0 + $0x30] sm:$0xff]  ;;  %v74_v56 = vld [vmem:[%s2297_s0 + $0x1d8] sm:$0xff] }
  0x2e   :  { %1652 = vmatpush3.bf16.msra.mxu1 %v1754_v1  ;;  %1589 = vmatprep.subr.bf16.mxu0 %v1755_v10  ;;  %v22_v1 = vld [vmem:[%s2297_s0 + $0x38] sm:$0xff]  ;;  %v1332_v4 = vcombine.high %v17_v62, %v21_v63  ;;  %v1331_v10 = vcombine.low %v17_v62, %v21_v63 }
  0x2f   :  { %1653 = vmatprep.subr.bf16.mxu1 %v1757_v12  ;;  %v1334_v5 = vcombine.high %v18_v0, %v22_v1  ;;  %v78_v57 = vld [vmem:[%s2297_s0 + $0x1f8] sm:$0xff] }
  0x30   :  { %v1389_v63 = vcombine.low %v74_v56, %v78_v57 }
  0x31   :  { %1590 = vmatpush3.bf16.msra.mxu0 %v1756_v11  ;;  %v1333_v11 = vcombine.low %v18_v0, %v22_v1 }
  0x32   :  { %1654 = vmatpush3.bf16.msra.mxu1 %v1758_v13  ;;  %1591 = vmatprep.subr.bf16.mxu0 %v1759_v18 }
  0x33   :  { %967 = vmatmul.mubr.bf16.gmra.mrb[8].mxu0 %v1343_v2  ;;  %1655 = vmatprep.subr.bf16.mxu1 %v1761_v23  ;;  %v1383_v2 = vcombine.low %v71_v54, %v75_v55  ;;  %v45_v23 = vld [vmem:[%s2297_s0 + $0xf0] sm:$0xff] }
  0x34   :  { %1064 = vmatmul.mubr.bf16.gmra.mrb[8].mxu1 %v1345_v6  ;;  %974 = vmatprep.mubr.bf16.mxu0 %v1352_v7  ;;  %v25_v6 = vld [vmem:[%s2297_s0 + $0x50] sm:$0xff] }
  0x35   :  { %1071 = vmatprep.mubr.bf16.mxu1 %v1354_v9  ;;  %1592 = vmatpush3.bf16.msra.mxu0 %v1760_v20  ;;  %v29_v7 = vld [vmem:[%s2297_s0 + $0x70] sm:$0xff]  ;;  %v30_v9 = vld [vmem:[%s2297_s0 + $0x78] sm:$0xff]  ;;  %v1348_v20 = vcombine.high %v33_v14, %v37_v15 }
  0x36   :  { %1656 = vmatpush3.bf16.msra.mxu1 %v1762_v25  ;;  %1593 = vmatprep.subr.bf16.mxu0 %v1763_v28  ;;  %v1340_v12 = vcombine.high %v25_v6, %v29_v7  ;;  %v1342_v13 = vcombine.high %v26_v8, %v30_v9  ;;  %v1339_v18 = vcombine.low %v25_v6, %v29_v7  ;;  %v46_v25 = vld [vmem:[%s2297_s0 + $0xf8] sm:$0xff]  ;;  %v73_v54 = vld [vmem:[%s2297_s0 + $0x1d0] sm:$0xff] }
  0x37   :  { %1657 = vmatprep.subr.bf16.mxu1 %v1765_v32  ;;  %v50_v32 = vld [vmem:[%s2297_s0 + $0x118] sm:$0xff]  ;;  %v77_v55 = vld [vmem:[%s2297_s0 + $0x1f0] sm:$0xff] }
  0x38   :  { %v1387_v62 = vcombine.low %v73_v54, %v77_v55 }
  0x39   :  { %1594 = vmatpush3.bf16.msra.mxu0 %v1764_v31  ;;  %v53_v31 = vld [vmem:[%s2297_s0 + $0x130] sm:$0xff] }
  0x3a   :  { %1658 = vmatpush3.bf16.msra.mxu1 %v1766_v33  ;;  %1595 = vmatprep.subr.bf16.mxu0 %v1767_v38  ;;  %v54_v33 = vld [vmem:[%s2297_s0 + $0x138] sm:$0xff]  ;;  %v57_v38 = vld [vmem:[%s2297_s0 + $0x150] sm:$0xff]  ;;  %v1363_v42 = vcombine.low %v49_v30, %v53_v31 }
  0x3b   :  { %975 = vmatmul.mubr.bf16.gmra.mrb[12].mxu0 %v1351_v19  ;;  %1659 = vmatprep.subr.bf16.mxu1 %v1769_v40  ;;  %v1341_v19 = vcombine.low %v26_v8, %v30_v9  ;;  %v58_v40 = vld [vmem:[%s2297_s0 + $0x158] sm:$0xff] }
  0x3c   :  { %1072 = vmatmul.mubr.bf16.gmra.mrb[12].mxu1 %v1353_v21  ;;  %982 = vmatprep.mubr.bf16.mxu0 %v1360_v22  ;;  %v1350_v21 = vcombine.high %v34_v16, %v38_v17  ;;  %v41_v22 = vld [vmem:[%s2297_s0 + $0xd0] sm:$0xff]  ;;  %v1374_v45 = vcombine.high %v58_v40, %v62_v41 }
  0x3d   :  { %1079 = vmatprep.mubr.bf16.mxu1 %v1362_v24  ;;  %1596 = vmatpush3.bf16.msra.mxu0 %v1768_v39  ;;  %v42_v24 = vld [vmem:[%s2297_s0 + $0xd8] sm:$0xff]  ;;  %v1356_v28 = vcombine.high %v41_v22, %v45_v23  ;;  %v61_v39 = vld [vmem:[%s2297_s0 + $0x170] sm:$0xff] }
  0x3e   :  { %1660 = vmatpush3.bf16.msra.mxu1 %v1770_v43  ;;  %1597 = vmatprep.subr.bf16.mxu0 %v1771_v46  ;;  %v1358_v29 = vcombine.high %v42_v24, %v46_v25  ;;  %v1365_v43 = vcombine.low %v50_v32, %v54_v33  ;;  %v1372_v44 = vcombine.high %v57_v38, %v61_v39  ;;  %v65_v46 = vld [vmem:[%s2297_s0 + $0x190] sm:$0xff] }
  0x3f   :  { %1661 = vmatprep.subr.bf16.mxu1 %v1773_v51  ;;  %v1373_v51 = vcombine.low %v58_v40, %v62_v41 }
  0x41   :  { %1598 = vmatpush3.bf16.msra.mxu0 %v1772_v48  ;;  %v66_v48 = vld [vmem:[%s2297_s0 + $0x198] sm:$0xff] }
  0x42   :  { %1662 = vmatpush3.bf16.msra.mxu1 %v1774_v53 }
  0x43   :  { %983 = vmatmul.mubr.bf16.gmra.mrb[16].mxu0 %v1359_v34  ;;  %v1355_v34 = vcombine.low %v41_v22, %v45_v23 }
  0x44   :  { %1080 = vmatmul.mubr.bf16.gmra.mrb[16].mxu1 %v1361_v35  ;;  %990 = vmatprep.mubr.bf16.mxu0 %v1368_v36  ;;  %v1357_v35 = vcombine.low %v42_v24, %v46_v25  ;;  %v1364_v36 = vcombine.high %v49_v30, %v53_v31 }
  0x45   :  { %1087 = vmatprep.mubr.bf16.mxu1 %v1370_v37  ;;  %v1366_v37 = vcombine.high %v50_v32, %v54_v33 }
  0x4b   :  { %991 = vmatmul.mubr.bf16.gmra.mrb[20].mxu0 %v1367_v47  ;;  %v69_v47 = vld [vmem:[%s2297_s0 + $0x1b0] sm:$0xff] }
  0x4c   :  { %1088 = vmatmul.mubr.bf16.gmra.mrb[20].mxu1 %v1369_v49  ;;  %998 = vmatprep.mubr.bf16.mxu0 %v1376_v50  ;;  %v70_v49 = vld [vmem:[%s2297_s0 + $0x1b8] sm:$0xff]  ;;  %v1371_v50 = vcombine.low %v57_v38, %v61_v39 }
  0x4d   :  { %1095 = vmatprep.mubr.bf16.mxu1 %v1378_v52  ;;  %v1380_v52 = vcombine.high %v65_v46, %v69_v47  ;;  %v1382_v53 = vcombine.high %v66_v48, %v70_v49 }
  0x53   :  { %999 = vmatmul.mubr.bf16.gmra.mrb[24].mxu0 %v1375_v58  ;;  %v1379_v58 = vcombine.low %v65_v46, %v69_v47 }
  0x54   :  { %1096 = vmatmul.mubr.bf16.gmra.mrb[24].mxu1 %v1377_v59  ;;  %1006 = vmatprep.mubr.bf16.mxu0 %v1384_v60  ;;  %v1381_v59 = vcombine.low %v66_v48, %v70_v49  ;;  %v1388_v60 = vcombine.high %v73_v54, %v77_v55 }
  0x55   :  { %1103 = vmatprep.mubr.bf16.mxu1 %v1386_v61  ;;  %v1390_v61 = vcombine.high %v74_v56, %v78_v57 }
  0x5b   :  { %1007 = vmatmul.mubr.bf16.gmra.mrb[28].mxu0 %v1383_v2  ;;  %v2182_v2 = vld [vmem:[%s2298_s2] ss:$0 sm:$0xff] }
  0x5c   :  { %1104 = vmatmul.mubr.bf16.gmra.mrb[28].mxu1 %v1385_v3  ;;  %1144 = vmatprep.mubr.bf16.mxu0 %v1332_v4 }
  0x5d   :  { %1241 = vmatprep.mubr.bf16.mxu1 %v1334_v5 }
  0x63   :  { %1145 = vmatmul.mubr.bf16.vlgmr.msra.gmra.mrb[32].mxu0 %v1331_v10 }
  0x64   :  { %1242 = vmatmul.mubr.bf16.vlgmr.msra.gmra.mrb[32].mxu1 %v1333_v11  ;;  %1152 = vmatprep.mubr.bf16.mxu0 %v1340_v12 }
  0x65   :  { %1249 = vmatprep.mubr.bf16.mxu1 %v1342_v13 }
  0x6b   :  { %1153 = vmatmul.mubr.bf16.gmra.mrb[36].mxu0 %v1339_v18 }
  0x6c   :  { %1250 = vmatmul.mubr.bf16.gmra.mrb[36].mxu1 %v1341_v19  ;;  %1160 = vmatprep.mubr.bf16.mxu0 %v1348_v20 }
  0x6d   :  { %1257 = vmatprep.mubr.bf16.mxu1 %v1350_v21 }
  0x73   :  { %1161 = vmatmul.mubr.bf16.gmra.mrb[40].mxu0 %v1347_v26 }
  0x74   :  { %1258 = vmatmul.mubr.bf16.gmra.mrb[40].mxu1 %v1349_v27  ;;  %1168 = vmatprep.mubr.bf16.mxu0 %v1356_v28 }
  0x75   :  { %1265 = vmatprep.mubr.bf16.mxu1 %v1358_v29 }
  0x7b   :  { %1169 = vmatmul.mubr.bf16.gmra.mrb[44].mxu0 %v1355_v34 }
  0x7c   :  { %1266 = vmatmul.mubr.bf16.gmra.mrb[44].mxu1 %v1357_v35  ;;  %1176 = vmatprep.mubr.bf16.mxu0 %v1364_v36 }
  0x7d   :  { %1273 = vmatprep.mubr.bf16.mxu1 %v1366_v37 }
  0x83   :  { %1177 = vmatmul.mubr.bf16.gmra.mrb[48].mxu0 %v1363_v42 }
  0x84   :  { %1274 = vmatmul.mubr.bf16.gmra.mrb[48].mxu1 %v1365_v43  ;;  %1184 = vmatprep.mubr.bf16.mxu0 %v1372_v44 }
  0x85   :  { %1281 = vmatprep.mubr.bf16.mxu1 %v1374_v45 }
  0x8b   :  { %1185 = vmatmul.mubr.bf16.gmra.mrb[52].mxu0 %v1371_v50 }
  0x8c   :  { %1282 = vmatmul.mubr.bf16.gmra.mrb[52].mxu1 %v1373_v51  ;;  %1192 = vmatprep.mubr.bf16.mxu0 %v1380_v52 }
  0x8d   :  { %1289 = vmatprep.mubr.bf16.mxu1 %v1382_v53 }
  0x93   :  { %1193 = vmatmul.mubr.bf16.gmra.mrb[56].mxu0 %v1379_v58 }
  0x94   :  { %1290 = vmatmul.mubr.bf16.gmra.mrb[56].mxu1 %v1381_v59  ;;  %1200 = vmatprep.mubr.bf16.mxu0 %v1388_v60 }
  0x95   :  { %1297 = vmatprep.mubr.bf16.mxu1 %v1390_v61 }
  0x9b   :  { %1201 = vmatmul.mubr.bf16.gmra.mrb[60].mxu0 %v1387_v62 }
  0x9c   :  { %1298 = vmatmul.mubr.bf16.gmra.mrb[60].mxu1 %v1389_v63 }
  0xf6   :  { %v1471_v0 = vpop.f32.mrb[0].mxu0 }
  0xf7   :  { %v1535_v1 = vpop.f32.mrb[0].mxu1  ;;  %v1472_v3 = vpop.f32.mrb[1].mxu0 }
  0xf8   :  { %v1473_v4 = vadd.f32 %v1472_v3, %v1471_v0  ;;  %v1536_v5 = vpop.f32.mrb[1].mxu1  ;;  %v1474_v6 = vpop.f32.mrb[2].mxu0 }
  0xf9   :  { %v1537_v7 = vadd.f32 %v1536_v5, %v1535_v1  ;;  %v1538_v8 = vpop.f32.mrb[2].mxu1  ;;  %v1475_v9 = vpop.f32.mrb[3].mxu0 }
  0xfa   :  { %v953_v10 = vadd.f32 %v1473_v4, %v2182_v2  ;;  %v1476_v11 = vadd.f32 %v1475_v9, %v1474_v6  ;;  %v1539_v12 = vpop.f32.mrb[3].mxu1 }
  0xfb   :  { %v1540_v13 = vadd.f32 %v1539_v12, %v1538_v8 }
  0xfc   :  { %v2185_v14 = vadd.f32 %v1537_v7, %v953_v10  ;;  %v956_v15 = vadd.f32 %v1476_v11, %v2182_v2 }
  0xfe   :  { %v2188_v16 = vadd.f32 %v1540_v13, %v956_v15  ;;  %v1477_v17 = vpop.f32.mrb[4].mxu0 }
  0xff   :  { %v1541_v18 = vpop.f32.mrb[4].mxu1  ;;  %v1478_v19 = vpop.f32.mrb[5].mxu0 }
 0x100   :  { %v1479_v20 = vadd.f32 %v1478_v19, %v1477_v17  ;;  %v1542_v21 = vpop.f32.mrb[5].mxu1  ;;  %v1480_v22 = vpop.f32.mrb[6].mxu0 }
 0x101   :  { %v1543_v23 = vadd.f32 %v1542_v21, %v1541_v18  ;;  %v1544_v24 = vpop.f32.mrb[6].mxu1  ;;  %v1481_v25 = vpop.f32.mrb[7].mxu0 }
 0x102   :  { %v961_v26 = vadd.f32 %v1479_v20, %v2182_v2  ;;  %v1482_v27 = vadd.f32 %v1481_v25, %v1480_v22  ;;  %v1545_v28 = vpop.f32.mrb[7].mxu1 }
 0x103   :  { %v1546_v29 = vadd.f32 %v1545_v28, %v1544_v24 }
 0x104   :  { %v2191_v30 = vadd.f32 %v1543_v23, %v961_v26  ;;  %v964_v31 = vadd.f32 %v1482_v27, %v2182_v2 }
 0x106   :  { %v2194_v32 = vadd.f32 %v1546_v29, %v964_v31  ;;  %v1483_v33 = vpop.f32.mrb[8].mxu0 }
 0x107   :  { %v1547_v34 = vpop.f32.mrb[8].mxu1  ;;  %v1484_v35 = vpop.f32.mrb[9].mxu0 }
 0x108   :  { %v1485_v36 = vadd.f32 %v1484_v35, %v1483_v33  ;;  %v1548_v37 = vpop.f32.mrb[9].mxu1  ;;  %v1486_v38 = vpop.f32.mrb[10].mxu0 }
 0x109   :  { %v1549_v39 = vadd.f32 %v1548_v37, %v1547_v34  ;;  %v1550_v40 = vpop.f32.mrb[10].mxu1  ;;  %v1487_v41 = vpop.f32.mrb[11].mxu0 }
 0x10a   :  { %v969_v42 = vadd.f32 %v1485_v36, %v2182_v2  ;;  %v1488_v43 = vadd.f32 %v1487_v41, %v1486_v38  ;;  %v1551_v44 = vpop.f32.mrb[11].mxu1 }
 0x10b   :  { %v1552_v45 = vadd.f32 %v1551_v44, %v1550_v40 }
 0x10c   :  { %v2197_v46 = vadd.f32 %v1549_v39, %v969_v42  ;;  %v972_v47 = vadd.f32 %v1488_v43, %v2182_v2 }
 0x10e   :  { %v2200_v48 = vadd.f32 %v1552_v45, %v972_v47  ;;  %v1489_v49 = vpop.f32.mrb[12].mxu0 }
 0x10f   :  { %v1553_v50 = vpop.f32.mrb[12].mxu1  ;;  %v1490_v51 = vpop.f32.mrb[13].mxu0 }
 0x110   :  { %v1491_v52 = vadd.f32 %v1490_v51, %v1489_v49  ;;  %v1554_v53 = vpop.f32.mrb[13].mxu1  ;;  %v1492_v54 = vpop.f32.mrb[14].mxu0 }
 0x111   :  { %v1555_v55 = vadd.f32 %v1554_v53, %v1553_v50  ;;  %v1556_v56 = vpop.f32.mrb[14].mxu1  ;;  %v1493_v57 = vpop.f32.mrb[15].mxu0 }
 0x112   :  { %v977_v58 = vadd.f32 %v1491_v52, %v2182_v2  ;;  %v1494_v59 = vadd.f32 %v1493_v57, %v1492_v54  ;;  %v1557_v60 = vpop.f32.mrb[15].mxu1 }
 0x113   :  { %v1558_v61 = vadd.f32 %v1557_v60, %v1556_v56 }
 0x114   :  { %v2203_v62 = vadd.f32 %v1555_v55, %v977_v58  ;;  %v980_v63 = vadd.f32 %v1494_v59, %v2182_v2 }
 0x116   :  { %v2206_v0 = vadd.f32 %v1558_v61, %v980_v63  ;;  %v1495_v1 = vpop.f32.mrb[16].mxu0 }
 0x117   :  { %v1559_v3 = vpop.f32.mrb[16].mxu1  ;;  %v1496_v4 = vpop.f32.mrb[17].mxu0 }
 0x118   :  { %v1497_v5 = vadd.f32 %v1496_v4, %v1495_v1  ;;  %v1560_v6 = vpop.f32.mrb[17].mxu1  ;;  %v1498_v7 = vpop.f32.mrb[18].mxu0 }
 0x119   :  { %v1561_v8 = vadd.f32 %v1560_v6, %v1559_v3  ;;  %v1562_v9 = vpop.f32.mrb[18].mxu1  ;;  %v1499_v10 = vpop.f32.mrb[19].mxu0 }
 0x11a   :  { %v985_v11 = vadd.f32 %v1497_v5, %v2182_v2  ;;  %v1500_v12 = vadd.f32 %v1499_v10, %v1498_v7  ;;  %v1563_v13 = vpop.f32.mrb[19].mxu1 }
 0x11b   :  { %v1564_v15 = vadd.f32 %v1563_v13, %v1562_v9 }
 0x11c   :  { %v2209_v17 = vadd.f32 %v1561_v8, %v985_v11  ;;  %v988_v18 = vadd.f32 %v1500_v12, %v2182_v2 }
 0x11e   :  { %v2212_v19 = vadd.f32 %v1564_v15, %v988_v18  ;;  %v1501_v20 = vpop.f32.mrb[20].mxu0 }
 0x11f   :  { %v1565_v21 = vpop.f32.mrb[20].mxu1  ;;  %v1502_v22 = vpop.f32.mrb[21].mxu0 }
 0x120   :  { %v1503_v23 = vadd.f32 %v1502_v22, %v1501_v20  ;;  %v1566_v24 = vpop.f32.mrb[21].mxu1  ;;  %v1504_v25 = vpop.f32.mrb[22].mxu0 }
 0x121   :  { %v1567_v26 = vadd.f32 %v1566_v24, %v1565_v21  ;;  %v1568_v27 = vpop.f32.mrb[22].mxu1  ;;  %v1505_v28 = vpop.f32.mrb[23].mxu0 }
 0x122   :  { %v993_v29 = vadd.f32 %v1503_v23, %v2182_v2  ;;  %v1506_v31 = vadd.f32 %v1505_v28, %v1504_v25  ;;  %v1569_v33 = vpop.f32.mrb[23].mxu1 }
 0x123   :  { %v1570_v34 = vadd.f32 %v1569_v33, %v1568_v27 }
 0x124   :  { %v2215_v35 = vadd.f32 %v1567_v26, %v993_v29  ;;  %v996_v36 = vadd.f32 %v1506_v31, %v2182_v2 }
 0x126   :  { %v2218_v37 = vadd.f32 %v1570_v34, %v996_v36  ;;  %v1507_v38 = vpop.f32.mrb[24].mxu0 }
 0x127   :  { %v1571_v39 = vpop.f32.mrb[24].mxu1  ;;  %v1508_v40 = vpop.f32.mrb[25].mxu0 }
 0x128   :  { %v1509_v41 = vadd.f32 %v1508_v40, %v1507_v38  ;;  %v1572_v42 = vpop.f32.mrb[25].mxu1  ;;  %v1510_v43 = vpop.f32.mrb[26].mxu0 }
 0x129   :  { %v1573_v44 = vadd.f32 %v1572_v42, %v1571_v39  ;;  %v1574_v45 = vpop.f32.mrb[26].mxu1  ;;  %v1511_v47 = vpop.f32.mrb[27].mxu0 }
 0x12a   :  { %v1001_v49 = vadd.f32 %v1509_v41, %v2182_v2  ;;  %v1512_v50 = vadd.f32 %v1511_v47, %v1510_v43  ;;  %v1575_v51 = vpop.f32.mrb[27].mxu1 }
 0x12b   :  { %v1576_v52 = vadd.f32 %v1575_v51, %v1574_v45 }
 0x12c   :  { %v2221_v53 = vadd.f32 %v1573_v44, %v1001_v49  ;;  %v1004_v54 = vadd.f32 %v1512_v50, %v2182_v2 }
 0x12e   :  { %v2224_v55 = vadd.f32 %v1576_v52, %v1004_v54  ;;  %v1513_v56 = vpop.f32.mrb[28].mxu0 }
 0x12f   :  { %v1577_v57 = vpop.f32.mrb[28].mxu1  ;;  %v1514_v58 = vpop.f32.mrb[29].mxu0 }
 0x130   :  { %v1515_v59 = vadd.f32 %v1514_v58, %v1513_v56  ;;  %v1578_v60 = vpop.f32.mrb[29].mxu1  ;;  %v1516_v61 = vpop.f32.mrb[30].mxu0 }
 0x131   :  { %v1579_v63 = vadd.f32 %v1578_v60, %v1577_v57  ;;  %v1580_v1 = vpop.f32.mrb[30].mxu1  ;;  %v1517_v3 = vpop.f32.mrb[31].mxu0 }
 0x132   :  { %v1009_v4 = vadd.f32 %v1515_v59, %v2182_v2  ;;  %v1518_v5 = vadd.f32 %v1517_v3, %v1516_v61  ;;  %v1581_v6 = vpop.f32.mrb[31].mxu1 }
 0x133   :  { %v1582_v7 = vadd.f32 %v1581_v6, %v1580_v1 }
 0x134   :  { %v2227_v8 = vadd.f32 %v1579_v63, %v1009_v4  ;;  %v1012_v9 = vadd.f32 %v1518_v5, %v2182_v2 }
 0x136   :  { %v2230_v10 = vadd.f32 %v1582_v7, %v1012_v9  ;;  %v1599_v11 = vpop.f32.mrb[32].mxu0 }
 0x137   :  { %v1663_v12 = vpop.f32.mrb[32].mxu1  ;;  %v1600_v13 = vpop.f32.mrb[33].mxu0 }
 0x138   :  { %v1601_v15 = vadd.f32 %v1600_v13, %v1599_v11  ;;  %v1664_v18 = vpop.f32.mrb[33].mxu1  ;;  %v1602_v20 = vpop.f32.mrb[34].mxu0 }
 0x139   :  { %v1665_v21 = vadd.f32 %v1664_v18, %v1663_v12  ;;  %v1666_v22 = vpop.f32.mrb[34].mxu1  ;;  %v1603_v23 = vpop.f32.mrb[35].mxu0 }
 0x13a   :  { %v1147_v24 = vadd.f32 %v1601_v15, %v2185_v14  ;;  %v1604_v25 = vadd.f32 %v1603_v23, %v1602_v20  ;;  %v1667_v26 = vpop.f32.mrb[35].mxu1 }
 0x13b   :  { %v1668_v27 = vadd.f32 %v1667_v26, %v1666_v22 }
 0x13c   :  { %v1244_v28 = vadd.f32 %v1665_v21, %v1147_v24  ;;  %v1150_v29 = vadd.f32 %v1604_v25, %v2188_v16 }
 0x13e   :  { %1306 = vst [vmem:[%s2299_s3] sm:$0xff] %v1244_v28  ;;  %v1247_v2 = vadd.f32 %v1668_v27, %v1150_v29  ;;  %v1605_v31 = vpop.f32.mrb[36].mxu0 }
 0x13f   :  { %v1669_v33 = vpop.f32.mrb[36].mxu1  ;;  %v1606_v34 = vpop.f32.mrb[37].mxu0 }
 0x140   :  { %1307 = vst [vmem:[%s2299_s3 + $0x8] sm:$0xff] %v1247_v2  ;;  %v1607_v36 = vadd.f32 %v1606_v34, %v1605_v31  ;;  %v1670_v14 = vpop.f32.mrb[37].mxu1  ;;  %v1608_v38 = vpop.f32.mrb[38].mxu0 }
 0x141   :  { %v1671_v39 = vadd.f32 %v1670_v14, %v1669_v33  ;;  %v1672_v40 = vpop.f32.mrb[38].mxu1  ;;  %v1609_v41 = vpop.f32.mrb[39].mxu0 }
 0x142   :  { %v1155_v16 = vadd.f32 %v1607_v36, %v2191_v30  ;;  %v1610_v42 = vadd.f32 %v1609_v41, %v1608_v38  ;;  %v1673_v43 = vpop.f32.mrb[39].mxu1 }
 0x143   :  { %v1674_v44 = vadd.f32 %v1673_v43, %v1672_v40 }
 0x144   :  { %v1252_v45 = vadd.f32 %v1671_v39, %v1155_v16  ;;  %v1158_v47 = vadd.f32 %v1610_v42, %v2194_v32 }
 0x146   :  { %1308 = vst [vmem:[%s2299_s3 + $0x10] sm:$0xff] %v1252_v45  ;;  %v1255_v49 = vadd.f32 %v1674_v44, %v1158_v47  ;;  %v1611_v50 = vpop.f32.mrb[40].mxu0 }
 0x147   :  { %v1675_v51 = vpop.f32.mrb[40].mxu1  ;;  %v1612_v52 = vpop.f32.mrb[41].mxu0 }
 0x148   :  { %1309 = vst [vmem:[%s2299_s3 + $0x18] sm:$0xff] %v1255_v49  ;;  %v1613_v54 = vadd.f32 %v1612_v52, %v1611_v50  ;;  %v1676_v30 = vpop.f32.mrb[41].mxu1  ;;  %v1614_v56 = vpop.f32.mrb[42].mxu0 }
 0x149   :  { %v1677_v57 = vadd.f32 %v1676_v30, %v1675_v51  ;;  %v1678_v58 = vpop.f32.mrb[42].mxu1  ;;  %v1615_v59 = vpop.f32.mrb[43].mxu0 }
 0x14a   :  { %v1163_v32 = vadd.f32 %v1613_v54, %v2197_v46  ;;  %v1616_v60 = vadd.f32 %v1615_v59, %v1614_v56  ;;  %v1679_v61 = vpop.f32.mrb[43].mxu1 }
 0x14b   :  { %v1680_v63 = vadd.f32 %v1679_v61, %v1678_v58 }
 0x14c   :  { %v1260_v1 = vadd.f32 %v1677_v57, %v1163_v32  ;;  %v1166_v3 = vadd.f32 %v1616_v60, %v2200_v48 }
 0x14e   :  { %1310 = vst [vmem:[%s2299_s3 + $0x20] sm:$0xff] %v1260_v1  ;;  %v1263_v4 = vadd.f32 %v1680_v63, %v1166_v3  ;;  %v1617_v5 = vpop.f32.mrb[44].mxu0 }
 0x14f   :  { %v1681_v6 = vpop.f32.mrb[44].mxu1  ;;  %v1618_v7 = vpop.f32.mrb[45].mxu0 }
 0x150   :  { %1311 = vst [vmem:[%s2299_s3 + $0x28] sm:$0xff] %v1263_v4  ;;  %v1619_v9 = vadd.f32 %v1618_v7, %v1617_v5  ;;  %v1682_v46 = vpop.f32.mrb[45].mxu1  ;;  %v1620_v11 = vpop.f32.mrb[46].mxu0 }
 0x151   :  { %v1683_v12 = vadd.f32 %v1682_v46, %v1681_v6  ;;  %v1684_v13 = vpop.f32.mrb[46].mxu1  ;;  %v1621_v15 = vpop.f32.mrb[47].mxu0 }
 0x152   :  { %v1171_v48 = vadd.f32 %v1619_v9, %v2203_v62  ;;  %v1622_v18 = vadd.f32 %v1621_v15, %v1620_v11  ;;  %v1685_v20 = vpop.f32.mrb[47].mxu1 }
 0x153   :  { %v1686_v21 = vadd.f32 %v1685_v20, %v1684_v13 }
 0x154   :  { %v1268_v22 = vadd.f32 %v1683_v12, %v1171_v48  ;;  %v1174_v23 = vadd.f32 %v1622_v18, %v2206_v0 }
 0x156   :  { %1312 = vst [vmem:[%s2299_s3 + $0x30] sm:$0xff] %v1268_v22  ;;  %v1271_v24 = vadd.f32 %v1686_v21, %v1174_v23  ;;  %v1623_v25 = vpop.f32.mrb[48].mxu0 }
 0x157   :  { %v1687_v26 = vpop.f32.mrb[48].mxu1  ;;  %v1624_v27 = vpop.f32.mrb[49].mxu0 }
 0x158   :  { %1313 = vst [vmem:[%s2299_s3 + $0x38] sm:$0xff] %v1271_v24  ;;  %v1625_v28 = vadd.f32 %v1624_v27, %v1623_v25  ;;  %v1688_v62 = vpop.f32.mrb[49].mxu1  ;;  %v1626_v29 = vpop.f32.mrb[50].mxu0 }
 0x159   :  { %v1689_v2 = vadd.f32 %v1688_v62, %v1687_v26  ;;  %v1690_v31 = vpop.f32.mrb[50].mxu1  ;;  %v1627_v33 = vpop.f32.mrb[51].mxu0 }
 0x15a   :  { %v1179_v0 = vadd.f32 %v1625_v28, %v2209_v17  ;;  %v1628_v34 = vadd.f32 %v1627_v33, %v1626_v29  ;;  %v1691_v36 = vpop.f32.mrb[51].mxu1 }
 0x15b   :  { %v1692_v14 = vadd.f32 %v1691_v36, %v1690_v31 }
 0x15c   :  { %v1276_v38 = vadd.f32 %v1689_v2, %v1179_v0  ;;  %v1182_v39 = vadd.f32 %v1628_v34, %v2212_v19 }
 0x15e   :  { %1314 = vst [vmem:[%s2299_s3 + $0x40] sm:$0xff] %v1276_v38  ;;  %v1279_v40 = vadd.f32 %v1692_v14, %v1182_v39  ;;  %v1629_v41 = vpop.f32.mrb[52].mxu0 }
 0x15f   :  { %v1693_v16 = vpop.f32.mrb[52].mxu1  ;;  %v1630_v42 = vpop.f32.mrb[53].mxu0 }
 0x160   :  { %1315 = vst [vmem:[%s2299_s3 + $0x48] sm:$0xff] %v1279_v40  ;;  %v1631_v43 = vadd.f32 %v1630_v42, %v1629_v41  ;;  %v1694_v17 = vpop.f32.mrb[53].mxu1  ;;  %v1632_v44 = vpop.f32.mrb[54].mxu0 }
 0x161   :  { %v1695_v45 = vadd.f32 %v1694_v17, %v1693_v16  ;;  %v1696_v47 = vpop.f32.mrb[54].mxu1  ;;  %v1633_v49 = vpop.f32.mrb[55].mxu0 }
 0x162   :  { %v1187_v19 = vadd.f32 %v1631_v43, %v2215_v35  ;;  %v1634_v50 = vadd.f32 %v1633_v49, %v1632_v44  ;;  %v1697_v51 = vpop.f32.mrb[55].mxu1 }
 0x163   :  { %v1698_v52 = vadd.f32 %v1697_v51, %v1696_v47 }
 0x164   :  { %v1284_v54 = vadd.f32 %v1695_v45, %v1187_v19  ;;  %v1190_v30 = vadd.f32 %v1634_v50, %v2218_v37 }
 0x166   :  { %1316 = vst [vmem:[%s2299_s3 + $0x50] sm:$0xff] %v1284_v54  ;;  %v1287_v56 = vadd.f32 %v1698_v52, %v1190_v30  ;;  %v1635_v57 = vpop.f32.mrb[56].mxu0 }
 0x167   :  { %v1699_v58 = vpop.f32.mrb[56].mxu1  ;;  %v1636_v59 = vpop.f32.mrb[57].mxu0 }
 0x168   :  { %1317 = vst [vmem:[%s2299_s3 + $0x58] sm:$0xff] %v1287_v56  ;;  %v1637_v32 = vadd.f32 %v1636_v59, %v1635_v57  ;;  %v1700_v35 = vpop.f32.mrb[57].mxu1  ;;  %v1638_v60 = vpop.f32.mrb[58].mxu0 }
 0x169   :  { %v1701_v61 = vadd.f32 %v1700_v35, %v1699_v58  ;;  %v1702_v63 = vpop.f32.mrb[58].mxu1  ;;  %v1639_v1 = vpop.f32.mrb[59].mxu0 }
 0x16a   :  { %v1195_v37 = vadd.f32 %v1637_v32, %v2221_v53  ;;  %v1640_v3 = vadd.f32 %v1639_v1, %v1638_v60  ;;  %v1703_v4 = vpop.f32.mrb[59].mxu1 }
 0x16b   :  { %v1704_v5 = vadd.f32 %v1703_v4, %v1702_v63 }
 0x16c   :  { %v1292_v6 = vadd.f32 %v1701_v61, %v1195_v37  ;;  %v1198_v7 = vadd.f32 %v1640_v3, %v2224_v55 }
 0x16e   :  { %1318 = vst [vmem:[%s2299_s3 + $0x60] sm:$0xff] %v1292_v6  ;;  %v1295_v9 = vadd.f32 %v1704_v5, %v1198_v7  ;;  %v1641_v46 = vpop.f32.mrb[60].mxu0 }
 0x16f   :  { %v1705_v11 = vpop.f32.mrb[60].mxu1  ;;  %v1642_v12 = vpop.f32.mrb[61].mxu0 }
 0x170   :  { %1319 = vst [vmem:[%s2299_s3 + $0x68] sm:$0xff] %v1295_v9  ;;  %v1643_v13 = vadd.f32 %v1642_v12, %v1641_v46  ;;  %v1706_v53 = vpop.f32.mrb[61].mxu1  ;;  %v1644_v15 = vpop.f32.mrb[62].mxu0 }
 0x171   :  { %v1707_v48 = vadd.f32 %v1706_v53, %v1705_v11  ;;  %v1708_v18 = vpop.f32.mrb[62].mxu1  ;;  %v1645_v20 = vpop.f32.mrb[63].mxu0 }
 0x172   :  { %v1203_v55 = vadd.f32 %v1643_v13, %v2227_v8  ;;  %v1646_v21 = vadd.f32 %v1645_v20, %v1644_v15  ;;  %v1709_v22 = vpop.f32.mrb[63].mxu1 }
 0x173   :  { %v1710_v23 = vadd.f32 %v1709_v22, %v1708_v18 }
 0x174   :  { %v1300_v24 = vadd.f32 %v1707_v48, %v1203_v55  ;;  %v1206_v25 = vadd.f32 %v1646_v21, %v2230_v10 }
 0x176   :  { %1320 = vst [vmem:[%s2299_s3 + $0x70] sm:$0xff] %v1300_v24  ;;  %v1303_v26 = vadd.f32 %v1710_v23, %v1206_v25 }
 0x178   :  { %1321 = vst [vmem:[%s2299_s3 + $0x78] sm:$0xff] %v1303_v26 }

// kernel: discriminator_forward.12
= control target key start
LH: loop header
LB: loop body
LE: loop exit
PB: predicated region body
PF: predicated region fallthrough
CT: control target
= control target key end

     0   :  { %s284_s6 = smov 0   ;;  %s308_s0 = inlined_call_operand.vmem [shape: f32[2,16,256], index: 0, kind: input, shape index: {}]   ;;  %s309_s1 = inlined_call_operand.vmem [shape: f32[2,16,256], index: 1, kind: output, shape index: {}]  }
   0x1 LB: > { %s241_s7 = sadd.s32 4294967295, %s272_s6   ;;  %p245_p0 = scmp.ge.s32.totalorder %s272_s6, 1  ;;  %s272_s6 = sphi %s284_s6, %s11_s6  }
   0x2   : > { %p87_p1 = scmp.lt.s32.totalorder %s272_s6, 3 }
   0x4   : > { %p88_p2 = pnand %p245_p0, %p87_p1 }
   0x5   : > { %p107_p3 = scmp.lt.s32.totalorder (!%p88_p2), %s241_s7, 1 }
   0x6   : > { %91 = sbr.rel (%p88_p2) target bundleno = 73 (0x49), region = 24 }
   0xd   : > { %s311_s7 = smov (!%p107_p3, %s241_s7), 1 }
   0xe   : > { %s252_s8 = sshll.u32 %s311_s7, 5 }
   0xf   : > { %s111_s11 = scalar_lea.vmem %s308_s0, %s252_s8  ;;  %s116_s14 = scalar_lea.vmem %s309_s1, %s252_s8 }
  0x10   : > { %v117_v0 = vld [vmem:[%s111_s11] sm:$0xff]  ;;  %v119_v1 = vld [vmem:[%s111_s11 + $0x10] sm:$0xff]  ;;  %v120_v2 = vld [vmem:[%s111_s11 + $0x18] sm:$0xff] }
  0x11   : > { %v121_v3 = vadd.f32 %v119_v1, %v117_v0  ;;  %v118_v4 = vld [vmem:[%s111_s11 + $0x8] sm:$0xff] }
  0x12   : > { %v128_v5 = vadd.f32 %v120_v2, %v118_v4 }
  0x13   : > { %v122_v6 = vrot.slane %v121_v3, 4 }
  0x14   : > { %v129_v7 = vrot.slane %v128_v5, 4 }
  0x15   : > { %v123_v8 = vadd.f32 %v122_v6, %v121_v3 }
  0x16   : > { %v130_v9 = vadd.f32 %v129_v7, %v128_v5 }
  0x17   : > { %v124_v10 = vrot.slane %v123_v8, 2 }
  0x18   : > { %v131_v11 = vrot.slane %v130_v9, 2 }
  0x19   : > { %v125_v12 = vadd.f32 %v124_v10, %v123_v8 }
  0x1a   : > { %v132_v13 = vadd.f32 %v131_v11, %v130_v9 }
  0x1b   : > { %v126_v14 = vrot.slane %v125_v12, 1 }
  0x1c   : > { %v133_v15 = vrot.slane %v132_v13, 1 }
  0x1d   : > { %v127_v16 = vadd.f32 %v126_v14, %v125_v12 }
  0x1e   : > { %v134_v17 = vadd.f32 %v133_v15, %v132_v13 }
  0x1f   : > { %v136_v18 = vmul.f32 0.0625, %v127_v16 }
  0x20   : > { %v137_v19 = vmul.f32 0.0625, %v134_v17 }
  0x21   : > { %v138_v20 = vsub.f32 %v117_v0, %v136_v18  ;;  %v140_v21 = vsub.f32 %v119_v1, %v136_v18 }
  0x22   : > { %v139_v22 = vsub.f32 %v118_v4, %v137_v19  ;;  %v141_v23 = vsub.f32 %v120_v2, %v137_v19 }
  0x23   : > { %v142_v24 = vmul.f32 %v138_v20, %v138_v20  ;;  %v144_v25 = vmul.f32 %v140_v21, %v140_v21 }
  0x24   : > { %v143_v26 = vmul.f32 %v139_v22, %v139_v22  ;;  %v145_v27 = vmul.f32 %v141_v23, %v141_v23 }
  0x25   : > { %v146_v28 = vadd.f32 %v144_v25, %v142_v24 }
  0x26   : > { %v153_v29 = vadd.f32 %v145_v27, %v143_v26 }
  0x27   : > { %v147_v30 = vrot.slane %v146_v28, 4 }
  0x28   : > { %v154_v31 = vrot.slane %v153_v29, 4 }
  0x29   : > { %v148_v32 = vadd.f32 %v147_v30, %v146_v28 }
  0x2a   : > { %v155_v33 = vadd.f32 %v154_v31, %v153_v29 }
  0x2b   : > { %v149_v34 = vrot.slane %v148_v32, 2 }
  0x2c   : > { %v156_v35 = vrot.slane %v155_v33, 2 }
  0x2d   : > { %v150_v36 = vadd.f32 %v149_v34, %v148_v32 }
  0x2e   : > { %v157_v37 = vadd.f32 %v156_v35, %v155_v33 }
  0x2f   : > { %v151_v38 = vrot.slane %v150_v36, 1 }
  0x30   : > { %v158_v39 = vrot.slane %v157_v37, 1 }
  0x31   : > { %v152_v40 = vadd.f32 %v151_v38, %v150_v36 }
  0x32   : > { %v159_v41 = vadd.f32 %v158_v39, %v157_v37 }
  0x33   : > { %v160_v42 = vmul.f32 0.0625, %v152_v40 }
  0x34   : > { %v161_v43 = vmul.f32 0.0625, %v159_v41 }
  0x35   : > { %v162_v44 = vadd.f32 1e-05, %v160_v42 }
  0x36   : > { %v163_v45 = vadd.f32 1e-05, %v161_v43 }
  0x37   : > { %262 = vrsqrt.f32 %v162_v44 }
  0x38   : > { %264 = vrsqrt.f32 %v163_v45 }
  0x41   : > { %v263_v46 = vpop.eup %262 }
  0x42   : > { %v265_v47 = vpop.eup %264  ;;  %v166_v48 = vmul.f32 %v263_v46, %v138_v20  ;;  %v168_v49 = vmul.f32 %v263_v46, %v140_v21 }
  0x43   : > { %v167_v50 = vmul.f32 %v265_v47, %v139_v22  ;;  %v169_v51 = vmul.f32 %v265_v47, %v141_v23 }
  0x44   : > { %vm170_vm0 = vcmp.ge.f32.partialorder %v166_v48, 0.0  ;;  %v174_v52 = vmul.f32 0.2, %v166_v48  ;;  %vm172_vm1 = vcmp.ge.f32.partialorder %v168_v49, 0.0  ;;  %v176_v53 = vmul.f32 0.2, %v168_v49 }
  0x45   : > { %vm171_vm2 = vcmp.ge.f32.partialorder %v167_v50, 0.0  ;;  %v175_v54 = vmul.f32 0.2, %v167_v50  ;;  %vm173_vm3 = vcmp.ge.f32.partialorder %v169_v51, 0.0  ;;  %v177_v55 = vmul.f32 0.2, %v169_v51 }
  0x46   : > { %v178_v56 = vsel %vm170_vm0, %v166_v48, %v174_v52  ;;  %v180_v57 = vsel %vm172_vm1, %v168_v49, %v176_v53 }
  0x47   : > { %182 = vst [vmem:[%s116_s14] sm:$0xff] %v178_v56  ;;  %v179_v58 = vsel %vm171_vm2, %v167_v50, %v175_v54  ;;  %184 = vst [vmem:[%s116_s14 + $0x10] sm:$0xff] %v180_v57  ;;  %v181_v59 = vsel %vm173_vm3, %v169_v51, %v177_v55 }
  0x48   : > { %183 = vst [vmem:[%s116_s14 + $0x8] sm:$0xff] %v179_v58  ;;  %185 = vst [vmem:[%s116_s14 + $0x18] sm:$0xff] %v181_v59 }
  0x49 PF: > { %s11_s6 = sadd.s32 1, %s272_s6  }
  0x4a   : > { %p8_p4 = scmp.ge.s32.totalorder %s11_s6, 4  }
  0x4c   :  { %10 = sbr.rel (!%p8_p4) target bundleno = 1 (0x1), region = 54 }

// kernel: discriminator_forward.11
= control target key start
LH: loop header
LB: loop body
LE: loop exit
PB: predicated region body
PF: predicated region fallthrough
CT: control target
= control target key end

     0   :  { %s3885_s1 = inlined_call_operand.vmem [shape: bf16[2048,256], index: 1, kind: input, shape index: {}]   ;;  %s3886_s0 = inlined_call_operand.vmem [shape: bf16[32,2048], index: 0, kind: input, shape index: {}]   ;;  %s3887_s2 = inlined_call_operand.vmem [shape: f32[1,256], index: 2, kind: input, shape index: {}]   ;;  %s3888_s3 = inlined_call_operand.vmem [shape: f32[32,256], index: 3, kind: output, shape index: {}]  }
   0x1   :  { %v2542_v0 = vld [vmem:[%s3885_s1 + $0x4] ss:$8 sps:$4 sm:$0xff]   ;;  %v2546_v2 = vld [vmem:[%s3885_s1] ss:$8 sps:$4 sm:$0xff]   ;;  %v2548_v4 = vld [vmem:[%s3885_s1 + $0x14] ss:$8 sps:$4 sm:$0xff]  }
   0x2   :  { %v2544_v1 = vld [vmem:[%s3885_s1 + $0x404] ss:$8 sps:$4 sm:$0xff]   ;;  %1754 = vmatprep.subr.bf16.mxu1 %v2542_v0  ;;  %v2547_v3 = vld [vmem:[%s3885_s1 + $0x400] ss:$8 sps:$4 sm:$0xff]   ;;  %v2550_v5 = vld [vmem:[%s3885_s1 + $0x414] ss:$8 sps:$4 sm:$0xff]  }
   0x3   :  { %1966 = vmatprep.subr.bf16.mxu0 %v2544_v1  ;;  %1755 = vmatpush1.bf16.msra.mxu1 %v2546_v2  ;;  %v2552_v6 = vld [vmem:[%s3885_s1 + $0x10] ss:$8 sps:$4 sm:$0xff]   ;;  %v2554_v8 = vld [vmem:[%s3885_s1 + $0x24] ss:$8 sps:$4 sm:$0xff]   ;;  %v2558_v10 = vld [vmem:[%s3885_s1 + $0x20] ss:$8 sps:$4 sm:$0xff]  }
   0x4   :  { %1967 = vmatpush1.bf16.msra.mxu0 %v2547_v3  ;;  %1756 = vmatprep.subr.bf16.mxu1 %v2548_v4  ;;  %v2553_v7 = vld [vmem:[%s3885_s1 + $0x410] ss:$8 sps:$4 sm:$0xff]   ;;  %v2556_v9 = vld [vmem:[%s3885_s1 + $0x424] ss:$8 sps:$4 sm:$0xff]   ;;  %v2559_v11 = vld [vmem:[%s3885_s1 + $0x420] ss:$8 sps:$4 sm:$0xff]  }
   0x5   :  { %1968 = vmatprep.subr.bf16.mxu0 %v2550_v5  ;;  %v2560_v12 = vld [vmem:[%s3885_s1 + $0x34] ss:$8 sps:$4 sm:$0xff]   ;;  %v2564_v14 = vld [vmem:[%s3885_s1 + $0x30] ss:$8 sps:$4 sm:$0xff]   ;;  %v2566_v16 = vld [vmem:[%s3885_s1 + $0x44] ss:$8 sps:$4 sm:$0xff]  }
   0x6   :  { %v2562_v13 = vld [vmem:[%s3885_s1 + $0x434] ss:$8 sps:$4 sm:$0xff]   ;;  %v2565_v15 = vld [vmem:[%s3885_s1 + $0x430] ss:$8 sps:$4 sm:$0xff]   ;;  %v2568_v17 = vld [vmem:[%s3885_s1 + $0x444] ss:$8 sps:$4 sm:$0xff]  }
   0x7   :  { %1757 = vmatpush1.bf16.msra.mxu1 %v2552_v6  ;;  %v2570_v18 = vld [vmem:[%s3885_s1 + $0x40] ss:$8 sps:$4 sm:$0xff]   ;;  %v2572_v20 = vld [vmem:[%s3885_s1 + $0x54] ss:$8 sps:$4 sm:$0xff]   ;;  %v2576_v22 = vld [vmem:[%s3885_s1 + $0x50] ss:$8 sps:$4 sm:$0xff]  }
   0x8   :  { %1969 = vmatpush1.bf16.msra.mxu0 %v2553_v7  ;;  %1758 = vmatprep.subr.bf16.mxu1 %v2554_v8  ;;  %v2571_v19 = vld [vmem:[%s3885_s1 + $0x440] ss:$8 sps:$4 sm:$0xff]   ;;  %v2574_v21 = vld [vmem:[%s3885_s1 + $0x454] ss:$8 sps:$4 sm:$0xff]   ;;  %v2577_v23 = vld [vmem:[%s3885_s1 + $0x450] ss:$8 sps:$4 sm:$0xff]  }
   0x9   :  { %1970 = vmatprep.subr.bf16.mxu0 %v2556_v9  ;;  %v2578_v24 = vld [vmem:[%s3885_s1 + $0x64] ss:$8 sps:$4 sm:$0xff]   ;;  %v2582_v26 = vld [vmem:[%s3885_s1 + $0x60] ss:$8 sps:$4 sm:$0xff]   ;;  %v2584_v28 = vld [vmem:[%s3885_s1 + $0x74] ss:$8 sps:$4 sm:$0xff]  }
   0xa   :  { %v2580_v25 = vld [vmem:[%s3885_s1 + $0x464] ss:$8 sps:$4 sm:$0xff]   ;;  %v2583_v27 = vld [vmem:[%s3885_s1 + $0x460] ss:$8 sps:$4 sm:$0xff]   ;;  %v2586_v29 = vld [vmem:[%s3885_s1 + $0x474] ss:$8 sps:$4 sm:$0xff]  }
   0xb   :  { %1759 = vmatpush1.bf16.msra.mxu1 %v2558_v10  ;;  %v2588_v30 = vld [vmem:[%s3885_s1 + $0x70] ss:$8 sps:$4 sm:$0xff]   ;;  %v2590_v32 = vld [vmem:[%s3885_s1 + $0x84] ss:$8 sps:$4 sm:$0xff]   ;;  %v2594_v34 = vld [vmem:[%s3885_s1 + $0x80] ss:$8 sps:$4 sm:$0xff]  }
   0xc   :  { %1971 = vmatpush1.bf16.msra.mxu0 %v2559_v11  ;;  %1760 = vmatprep.subr.bf16.mxu1 %v2560_v12  ;;  %v2589_v31 = vld [vmem:[%s3885_s1 + $0x470] ss:$8 sps:$4 sm:$0xff]   ;;  %v2592_v33 = vld [vmem:[%s3885_s1 + $0x484] ss:$8 sps:$4 sm:$0xff]   ;;  %v2595_v35 = vld [vmem:[%s3885_s1 + $0x480] ss:$8 sps:$4 sm:$0xff]  }
   0xd   :  { %1972 = vmatprep.subr.bf16.mxu0 %v2562_v13  ;;  %v2596_v36 = vld [vmem:[%s3885_s1 + $0x94] ss:$8 sps:$4 sm:$0xff]   ;;  %v2600_v38 = vld [vmem:[%s3885_s1 + $0x90] ss:$8 sps:$4 sm:$0xff]   ;;  %v2602_v40 = vld [vmem:[%s3885_s1 + $0xa4] ss:$8 sps:$4 sm:$0xff]  }
   0xe   :  { %v2598_v37 = vld [vmem:[%s3885_s1 + $0x494] ss:$8 sps:$4 sm:$0xff]   ;;  %v2601_v39 = vld [vmem:[%s3885_s1 + $0x490] ss:$8 sps:$4 sm:$0xff]   ;;  %v2604_v41 = vld [vmem:[%s3885_s1 + $0x4a4] ss:$8 sps:$4 sm:$0xff]  }
   0xf   :  { %1761 = vmatpush1.bf16.msra.mxu1 %v2564_v14  ;;  %v2606_v42 = vld [vmem:[%s3885_s1 + $0xa0] ss:$8 sps:$4 sm:$0xff]   ;;  %v2608_v44 = vld [vmem:[%s3885_s1 + $0xb4] ss:$8 sps:$4 sm:$0xff]   ;;  %v2612_v46 = vld [vmem:[%s3885_s1 + $0xb0] ss:$8 sps:$4 sm:$0xff]  }
  0x10   :  { %1973 = vmatpush1.bf16.msra.mxu0 %v2565_v15  ;;  %1762 = vmatprep.subr.bf16.mxu1 %v2566_v16  ;;  %v2607_v43 = vld [vmem:[%s3885_s1 + $0x4a0] ss:$8 sps:$4 sm:$0xff]   ;;  %v2610_v45 = vld [vmem:[%s3885_s1 + $0x4b4] ss:$8 sps:$4 sm:$0xff]   ;;  %v2613_v47 = vld [vmem:[%s3885_s1 + $0x4b0] ss:$8 sps:$4 sm:$0xff]  }
  0x11   :  { %1974 = vmatprep.subr.bf16.mxu0 %v2568_v17  ;;  %v14_v48 = vld [vmem:[%s3886_s0] sm:$0xff]  ;;  %v2620_v58 = vld [vmem:[%s3885_s1 + $0xd4] ss:$8 sps:$4 sm:$0xff]   ;;  %v2624_v60 = vld [vmem:[%s3885_s1 + $0xd0] ss:$8 sps:$4 sm:$0xff]  }
  0x12   :  { %v22_v49 = vld [vmem:[%s3886_s0 + $0x40] sm:$0xff]  ;;  %v2622_v59 = vld [vmem:[%s3885_s1 + $0x4d4] ss:$8 sps:$4 sm:$0xff]   ;;  %v2625_v61 = vld [vmem:[%s3885_s1 + $0x4d0] ss:$8 sps:$4 sm:$0xff]  }
  0x13   :  { %1763 = vmatpush1.bf16.msra.mxu1 %v2570_v18  ;;  %v2614_v50 = vld [vmem:[%s3885_s1 + $0xc4] ss:$8 sps:$4 sm:$0xff]   ;;  %v2191_v52 = vcombine.high %v14_v48, %v22_v49  ;;  %v2618_v56 = vld [vmem:[%s3885_s1 + $0xc0] ss:$8 sps:$4 sm:$0xff]   ;;  %v2632_v2 = vld [vmem:[%s3885_s1 + $0xf4] ss:$8 sps:$4 sm:$0xff]   ;;  %v2190_v8 = vcombine.low %v14_v48, %v22_v49 }
  0x14   :  { %1975 = vmatpush1.bf16.msra.mxu0 %v2571_v19  ;;  %1764 = vmatprep.subr.bf16.mxu1 %v2572_v20  ;;  %v2616_v51 = vld [vmem:[%s3885_s1 + $0x4c4] ss:$8 sps:$4 sm:$0xff]   ;;  %v2619_v57 = vld [vmem:[%s3885_s1 + $0x4c0] ss:$8 sps:$4 sm:$0xff]   ;;  %v2634_v3 = vld [vmem:[%s3885_s1 + $0x4f4] ss:$8 sps:$4 sm:$0xff]  }
  0x15   :  { %1976 = vmatprep.subr.bf16.mxu0 %v2574_v21  ;;  %v18_v53 = vld [vmem:[%s3886_s0 + $0x20] sm:$0xff]  ;;  %1786 = vmatprep.mubr.bf16.mxu1 %v2191_v52  ;;  %v2636_v4 = vld [vmem:[%s3885_s1 + $0xf0] ss:$8 sps:$4 sm:$0xff]   ;;  %v2646_v12 = vld [vmem:[%s3885_s1 + $0x114] ss:$8 sps:$4 sm:$0xff]  }
  0x16   :  { %v26_v54 = vld [vmem:[%s3886_s0 + $0x60] sm:$0xff]  ;;  %v2637_v5 = vld [vmem:[%s3885_s1 + $0x4f0] ss:$8 sps:$4 sm:$0xff]   ;;  %v2649_v13 = vld [vmem:[%s3885_s1 + $0x514] ss:$8 sps:$4 sm:$0xff]  }
  0x17   :  { %1765 = vmatpush1.bf16.msra.mxu1 %v2576_v22  ;;  %v2199_v55 = vcombine.high %v18_v53, %v26_v54  ;;  %v2626_v62 = vld [vmem:[%s3885_s1 + $0xe4] ss:$8 sps:$4 sm:$0xff]   ;;  %v2630_v0 = vld [vmem:[%s3885_s1 + $0xe0] ss:$8 sps:$4 sm:$0xff]   ;;  %v2198_v10 = vcombine.low %v18_v53, %v26_v54  ;;  %v2644_v14 = vld [vmem:[%s3885_s1 + $0x110] ss:$8 sps:$4 sm:$0xff]  }
  0x18   :  { %1977 = vmatpush1.bf16.msra.mxu0 %v2577_v23  ;;  %1766 = vmatprep.subr.bf16.mxu1 %v2578_v24  ;;  %v2628_v63 = vld [vmem:[%s3885_s1 + $0x4e4] ss:$8 sps:$4 sm:$0xff]   ;;  %v2631_v1 = vld [vmem:[%s3885_s1 + $0x4e0] ss:$8 sps:$4 sm:$0xff]   ;;  %v2647_v15 = vld [vmem:[%s3885_s1 + $0x510] ss:$8 sps:$4 sm:$0xff]  }
  0x19   :  { %1978 = vmatprep.subr.bf16.mxu0 %v2580_v25  ;;  %1998 = vmatprep.mubr.bf16.mxu0 %v2199_v55  ;;  %v2640_v6 = vld [vmem:[%s3885_s1 + $0x104] ss:$8 sps:$4 sm:$0xff]   ;;  %v2638_v9 = vld [vmem:[%s3885_s1 + $0x100] ss:$8 sps:$4 sm:$0xff]   ;;  %v2658_v20 = vld [vmem:[%s3885_s1 + $0x134] ss:$8 sps:$4 sm:$0xff]  }
  0x1a   :  { %v2643_v7 = vld [vmem:[%s3885_s1 + $0x504] ss:$8 sps:$4 sm:$0xff]   ;;  %v2641_v11 = vld [vmem:[%s3885_s1 + $0x500] ss:$8 sps:$4 sm:$0xff]   ;;  %v2661_v21 = vld [vmem:[%s3885_s1 + $0x534] ss:$8 sps:$4 sm:$0xff]  }
  0x1b   :  { %1767 = vmatpush1.bf16.msra.mxu1 %v2582_v26  ;;  %v2652_v16 = vld [vmem:[%s3885_s1 + $0x124] ss:$8 sps:$4 sm:$0xff]   ;;  %v2650_v18 = vld [vmem:[%s3885_s1 + $0x120] ss:$8 sps:$4 sm:$0xff]   ;;  %v2656_v22 = vld [vmem:[%s3885_s1 + $0x130] ss:$8 sps:$4 sm:$0xff]  }
  0x1c   :  { %1979 = vmatpush1.bf16.msra.mxu0 %v2583_v27  ;;  %1768 = vmatprep.subr.bf16.mxu1 %v2584_v28  ;;  %v2655_v17 = vld [vmem:[%s3885_s1 + $0x524] ss:$8 sps:$4 sm:$0xff]   ;;  %v2653_v19 = vld [vmem:[%s3885_s1 + $0x520] ss:$8 sps:$4 sm:$0xff]   ;;  %v2659_v23 = vld [vmem:[%s3885_s1 + $0x530] ss:$8 sps:$4 sm:$0xff]  }
  0x1d   :  { %1980 = vmatprep.subr.bf16.mxu0 %v2586_v29  ;;  %v2664_v24 = vld [vmem:[%s3885_s1 + $0x144] ss:$8 sps:$4 sm:$0xff]   ;;  %v2662_v26 = vld [vmem:[%s3885_s1 + $0x140] ss:$8 sps:$4 sm:$0xff]   ;;  %v2670_v28 = vld [vmem:[%s3885_s1 + $0x154] ss:$8 sps:$4 sm:$0xff]  }
  0x1e   :  { %v2667_v25 = vld [vmem:[%s3885_s1 + $0x544] ss:$8 sps:$4 sm:$0xff]   ;;  %v2665_v27 = vld [vmem:[%s3885_s1 + $0x540] ss:$8 sps:$4 sm:$0xff]   ;;  %v2673_v29 = vld [vmem:[%s3885_s1 + $0x554] ss:$8 sps:$4 sm:$0xff]  }
  0x1f   :  { %1769 = vmatpush1.bf16.msra.mxu1 %v2588_v30  ;;  %v30_v30 = vld [vmem:[%s3886_s0 + $0x80] sm:$0xff]  ;;  %v3267_v49 = vld [vmem:[%s3886_s0 + $0x28] sm:$0xff]  ;;  %v2683_v52 = vld [vmem:[%s3885_s1 + $0x570] ss:$8 sps:$4 sm:$0xff]  }
  0x20   :  { %1981 = vmatpush1.bf16.msra.mxu0 %v2589_v31  ;;  %1770 = vmatprep.subr.bf16.mxu1 %v2590_v32  ;;  %v38_v31 = vld [vmem:[%s3886_s0 + $0xc0] sm:$0xff]  ;;  %v2668_v32 = vld [vmem:[%s3885_s1 + $0x150] ss:$8 sps:$4 sm:$0xff]  }
  0x21   :  { %1982 = vmatprep.subr.bf16.mxu0 %v2592_v33  ;;  %v2207_v33 = vcombine.high %v30_v30, %v38_v31  ;;  %v2688_v54 = vld [vmem:[%s3885_s1 + $0x184] ss:$8 sps:$4 sm:$0xff]  }
  0x22   :  { %v2691_v55 = vld [vmem:[%s3885_s1 + $0x584] ss:$8 sps:$4 sm:$0xff]  }
  0x23   :  { %1771 = vmatpush1.bf16.msra.mxu1 %v2594_v34  ;;  %v2671_v34 = vld [vmem:[%s3885_s1 + $0x550] ss:$8 sps:$4 sm:$0xff]  }
  0x24   :  { %1983 = vmatpush1.bf16.msra.mxu0 %v2595_v35  ;;  %1772 = vmatprep.subr.bf16.mxu1 %v2596_v36  ;;  %v34_v35 = vld [vmem:[%s3886_s0 + $0xa0] sm:$0xff] }
  0x25   :  { %1984 = vmatprep.subr.bf16.mxu0 %v2598_v37  ;;  %v42_v36 = vld [vmem:[%s3886_s0 + $0xe0] sm:$0xff]  ;;  %v2206_v37 = vcombine.low %v30_v30, %v38_v31  ;;  %v2742_v30 = vld [vmem:[%s3885_s1 + $0x214] ss:$8 sps:$4 sm:$0xff]  }
  0x26   :  { %v2745_v31 = vld [vmem:[%s3885_s1 + $0x614] ss:$8 sps:$4 sm:$0xff]  }
  0x27   :  { %1773 = vmatpush1.bf16.msra.mxu1 %v2600_v38  ;;  %v2676_v38 = vld [vmem:[%s3885_s1 + $0x164] ss:$8 sps:$4 sm:$0xff]  }
  0x28   :  { %1985 = vmatpush1.bf16.msra.mxu0 %v2601_v39  ;;  %1774 = vmatprep.subr.bf16.mxu1 %v2602_v40  ;;  %v2215_v39 = vcombine.high %v34_v35, %v42_v36  ;;  %v2214_v40 = vcombine.low %v34_v35, %v42_v36  ;;  %v2740_v36 = vld [vmem:[%s3885_s1 + $0x210] ss:$8 sps:$4 sm:$0xff]  }
  0x29   :  { %1986 = vmatprep.subr.bf16.mxu0 %v2604_v41  ;;  %v2679_v41 = vld [vmem:[%s3885_s1 + $0x564] ss:$8 sps:$4 sm:$0xff]  }
  0x2b   :  { %1775 = vmatpush1.bf16.msra.mxu1 %v2606_v42  ;;  %v2674_v42 = vld [vmem:[%s3885_s1 + $0x160] ss:$8 sps:$4 sm:$0xff]  }
  0x2c   :  { %1987 = vmatpush1.bf16.msra.mxu0 %v2607_v43  ;;  %1776 = vmatprep.subr.bf16.mxu1 %v2608_v44  ;;  %v2677_v43 = vld [vmem:[%s3885_s1 + $0x560] ss:$8 sps:$4 sm:$0xff]  }
  0x2d   :  { %1988 = vmatprep.subr.bf16.mxu0 %v2610_v45  ;;  %v3249_v44 = vld [vmem:[%s3886_s0 + $0x8] sm:$0xff] }
  0x2e   :  { %v3254_v45 = vld [vmem:[%s3886_s0 + $0x48] sm:$0xff] }
  0x2f   :  { %1777 = vmatpush1.bf16.msra.mxu1 %v2612_v46  ;;  %v2682_v46 = vld [vmem:[%s3885_s1 + $0x174] ss:$8 sps:$4 sm:$0xff]   ;;  %v2193_v48 = vcombine.high %v3249_v44, %v3254_v45 }
  0x30   :  { %1989 = vmatpush1.bf16.msra.mxu0 %v2613_v47  ;;  %1778 = vmatprep.subr.bf16.mxu1 %v2614_v50  ;;  %v2685_v47 = vld [vmem:[%s3885_s1 + $0x574] ss:$8 sps:$4 sm:$0xff]   ;;  %v3272_v50 = vld [vmem:[%s3886_s0 + $0x68] sm:$0xff] }
  0x31   :  { %1990 = vmatprep.subr.bf16.mxu0 %v2616_v51  ;;  %v2680_v51 = vld [vmem:[%s3885_s1 + $0x170] ss:$8 sps:$4 sm:$0xff]   ;;  %v2201_v53 = vcombine.high %v3267_v49, %v3272_v50 }
  0x33   :  { %1779 = vmatpush1.bf16.msra.mxu1 %v2618_v56  ;;  %v2686_v56 = vld [vmem:[%s3885_s1 + $0x180] ss:$8 sps:$4 sm:$0xff]  }
  0x34   :  { %1991 = vmatpush1.bf16.msra.mxu0 %v2619_v57  ;;  %1780 = vmatprep.subr.bf16.mxu1 %v2620_v58  ;;  %v2689_v57 = vld [vmem:[%s3885_s1 + $0x580] ss:$8 sps:$4 sm:$0xff]   ;;  %v2694_v58 = vld [vmem:[%s3885_s1 + $0x194] ss:$8 sps:$4 sm:$0xff]  }
  0x35   :  { %1992 = vmatprep.subr.bf16.mxu0 %v2622_v59  ;;  %v2697_v59 = vld [vmem:[%s3885_s1 + $0x594] ss:$8 sps:$4 sm:$0xff]  }
  0x37   :  { %1781 = vmatpush1.bf16.msra.mxu1 %v2624_v60  ;;  %v2692_v60 = vld [vmem:[%s3885_s1 + $0x190] ss:$8 sps:$4 sm:$0xff]  }
  0x38   :  { %1993 = vmatpush1.bf16.msra.mxu0 %v2625_v61  ;;  %1782 = vmatprep.subr.bf16.mxu1 %v2626_v62  ;;  %v2695_v61 = vld [vmem:[%s3885_s1 + $0x590] ss:$8 sps:$4 sm:$0xff]   ;;  %v2700_v62 = vld [vmem:[%s3885_s1 + $0x1a4] ss:$8 sps:$4 sm:$0xff]  }
  0x39   :  { %1994 = vmatprep.subr.bf16.mxu0 %v2628_v63  ;;  %v2703_v63 = vld [vmem:[%s3885_s1 + $0x5a4] ss:$8 sps:$4 sm:$0xff]  }
  0x3b   :  { %1783 = vmatpush1.bf16.msra.mxu1 %v2630_v0  ;;  %v2698_v0 = vld [vmem:[%s3885_s1 + $0x1a0] ss:$8 sps:$4 sm:$0xff]  }
  0x3c   :  { %1995 = vmatpush1.bf16.msra.mxu0 %v2631_v1  ;;  %1784 = vmatprep.subr.bf16.mxu1 %v2632_v2  ;;  %v2701_v1 = vld [vmem:[%s3885_s1 + $0x5a0] ss:$8 sps:$4 sm:$0xff]   ;;  %v2706_v2 = vld [vmem:[%s3885_s1 + $0x1b4] ss:$8 sps:$4 sm:$0xff]  }
  0x3d   :  { %1996 = vmatprep.subr.bf16.mxu0 %v2634_v3  ;;  %v2709_v3 = vld [vmem:[%s3885_s1 + $0x5b4] ss:$8 sps:$4 sm:$0xff]  }
  0x3f   :  { %1785 = vmatpush1.bf16.msra.mxu1 %v2636_v4  ;;  %v2704_v4 = vld [vmem:[%s3885_s1 + $0x1b0] ss:$8 sps:$4 sm:$0xff]  }
  0x40   :  { %1997 = vmatpush1.bf16.msra.mxu0 %v2637_v5  ;;  %1807 = vmatprep.subr.bf16.mxu1 %v2640_v6  ;;  %v2707_v5 = vld [vmem:[%s3885_s1 + $0x5b0] ss:$8 sps:$4 sm:$0xff]   ;;  %v2712_v6 = vld [vmem:[%s3885_s1 + $0x1c4] ss:$8 sps:$4 sm:$0xff]  }
  0x41   :  { %2019 = vmatprep.subr.bf16.mxu0 %v2643_v7  ;;  %v2715_v7 = vld [vmem:[%s3885_s1 + $0x5c4] ss:$8 sps:$4 sm:$0xff]  }
  0x42   :  { %1787 = vmatmul.mubr.bf16.vlgmr.msra.gmra.mrb[0].mxu1 %v2190_v8  ;;  %v2710_v8 = vld [vmem:[%s3885_s1 + $0x1c0] ss:$8 sps:$4 sm:$0xff]  }
  0x43   :  { %1999 = vmatmul.mubr.bf16.vlgmr.msra.gmra.mrb[0].mxu0 %v2198_v10  ;;  %1808 = vmatpush1.bf16.msra.mxu1 %v2638_v9  ;;  %v2713_v9 = vld [vmem:[%s3885_s1 + $0x5c0] ss:$8 sps:$4 sm:$0xff]   ;;  %v2718_v10 = vld [vmem:[%s3885_s1 + $0x1d4] ss:$8 sps:$4 sm:$0xff]  }
  0x44   :  { %2020 = vmatpush1.bf16.msra.mxu0 %v2641_v11  ;;  %1809 = vmatprep.subr.bf16.mxu1 %v2646_v12  ;;  %v2721_v11 = vld [vmem:[%s3885_s1 + $0x5d4] ss:$8 sps:$4 sm:$0xff]   ;;  %v2716_v12 = vld [vmem:[%s3885_s1 + $0x1d0] ss:$8 sps:$4 sm:$0xff]  }
  0x45   :  { %2021 = vmatprep.subr.bf16.mxu0 %v2649_v13  ;;  %1796 = vmatprep.mubr.bf16.mxu1 %v2207_v33  ;;  %v2719_v13 = vld [vmem:[%s3885_s1 + $0x5d0] ss:$8 sps:$4 sm:$0xff]   ;;  %v43_v33 = vld [vmem:[%s3886_s0 + $0xe8] sm:$0xff] }
  0x46   :  { %2008 = vmatprep.mubr.bf16.mxu0 %v2215_v39  ;;  %v2751_v39 = vld [vmem:[%s3885_s1 + $0x624] ss:$8 sps:$4 sm:$0xff]  }
  0x47   :  { %1810 = vmatpush1.bf16.msra.mxu1 %v2644_v14  ;;  %v2724_v14 = vld [vmem:[%s3885_s1 + $0x1e4] ss:$8 sps:$4 sm:$0xff]  }
  0x48   :  { %2022 = vmatpush1.bf16.msra.mxu0 %v2647_v15  ;;  %1811 = vmatprep.subr.bf16.mxu1 %v2652_v16  ;;  %v2727_v15 = vld [vmem:[%s3885_s1 + $0x5e4] ss:$8 sps:$4 sm:$0xff]   ;;  %v2722_v16 = vld [vmem:[%s3885_s1 + $0x1e0] ss:$8 sps:$4 sm:$0xff]  }
  0x49   :  { %2023 = vmatprep.subr.bf16.mxu0 %v2655_v17  ;;  %v2725_v17 = vld [vmem:[%s3885_s1 + $0x5e0] ss:$8 sps:$4 sm:$0xff]  }
  0x4a   :  { %1797 = vmatmul.mubr.bf16.gmra.mrb[4].mxu1 %v2206_v37  ;;  %v2743_v37 = vld [vmem:[%s3885_s1 + $0x610] ss:$8 sps:$4 sm:$0xff]  }
  0x4b   :  { %1812 = vmatpush1.bf16.msra.mxu1 %v2650_v18  ;;  %2009 = vmatmul.mubr.bf16.gmra.mrb[4].mxu0 %v2214_v40  ;;  %v2730_v18 = vld [vmem:[%s3885_s1 + $0x1f4] ss:$8 sps:$4 sm:$0xff]   ;;  %v2746_v40 = vld [vmem:[%s3885_s1 + $0x220] ss:$8 sps:$4 sm:$0xff]  }
  0x4c   :  { %2024 = vmatpush1.bf16.msra.mxu0 %v2653_v19  ;;  %1813 = vmatprep.subr.bf16.mxu1 %v2658_v20  ;;  %v2733_v19 = vld [vmem:[%s3885_s1 + $0x5f4] ss:$8 sps:$4 sm:$0xff]   ;;  %v2728_v20 = vld [vmem:[%s3885_s1 + $0x1f0] ss:$8 sps:$4 sm:$0xff]  }
  0x4d   :  { %2025 = vmatprep.subr.bf16.mxu0 %v2661_v21  ;;  %1839 = vmatprep.mubr.bf16.mxu1 %v2193_v48  ;;  %v2731_v21 = vld [vmem:[%s3885_s1 + $0x5f0] ss:$8 sps:$4 sm:$0xff]   ;;  %v2754_v48 = vld [vmem:[%s3885_s1 + $0x234] ss:$8 sps:$4 sm:$0xff]  }
  0x4e   :  { %2051 = vmatprep.mubr.bf16.mxu0 %v2201_v53  ;;  %v2755_v53 = vld [vmem:[%s3885_s1 + $0x630] ss:$8 sps:$4 sm:$0xff]  }
  0x4f   :  { %1814 = vmatpush1.bf16.msra.mxu1 %v2656_v22  ;;  %v2736_v22 = vld [vmem:[%s3885_s1 + $0x204] ss:$8 sps:$4 sm:$0xff]  }
  0x50   :  { %2026 = vmatpush1.bf16.msra.mxu0 %v2659_v23  ;;  %1815 = vmatprep.subr.bf16.mxu1 %v2664_v24  ;;  %v2739_v23 = vld [vmem:[%s3885_s1 + $0x604] ss:$8 sps:$4 sm:$0xff]   ;;  %v2734_v24 = vld [vmem:[%s3885_s1 + $0x200] ss:$8 sps:$4 sm:$0xff]  }
  0x51   :  { %2027 = vmatprep.subr.bf16.mxu0 %v2667_v25  ;;  %v2737_v25 = vld [vmem:[%s3885_s1 + $0x600] ss:$8 sps:$4 sm:$0xff]  }
  0x53   :  { %1816 = vmatpush1.bf16.msra.mxu1 %v2662_v26  ;;  %v31_v26 = vld [vmem:[%s3886_s0 + $0x88] sm:$0xff] }
  0x54   :  { %2028 = vmatpush1.bf16.msra.mxu0 %v2665_v27  ;;  %1817 = vmatprep.subr.bf16.mxu1 %v2670_v28  ;;  %v2192_v27 = vcombine.low %v3249_v44, %v3254_v45  ;;  %v2200_v28 = vcombine.low %v3267_v49, %v3272_v50  ;;  %v3438_v45 = vld [vmem:[%s3886_s0 + $0x50] sm:$0xff] }
  0x55   :  { %2029 = vmatprep.subr.bf16.mxu0 %v2673_v29  ;;  %v39_v29 = vld [vmem:[%s3886_s0 + $0xc8] sm:$0xff]  ;;  %v2757_v49 = vld [vmem:[%s3885_s1 + $0x634] ss:$8 sps:$4 sm:$0xff]  }
  0x57   :  { %1818 = vmatpush1.bf16.msra.mxu1 %v2668_v32  ;;  %v35_v32 = vld [vmem:[%s3886_s0 + $0xa8] sm:$0xff] }
  0x58   :  { %2030 = vmatpush1.bf16.msra.mxu0 %v2671_v34  ;;  %1819 = vmatprep.subr.bf16.mxu1 %v2676_v38  ;;  %v2209_v34 = vcombine.high %v31_v26, %v39_v29  ;;  %v2217_v35 = vcombine.high %v35_v32, %v43_v33  ;;  %v2748_v38 = vld [vmem:[%s3885_s1 + $0x224] ss:$8 sps:$4 sm:$0xff]   ;;  %v2216_v44 = vcombine.low %v35_v32, %v43_v33  ;;  %v2818_v32 = vld [vmem:[%s3885_s1 + $0x2e0] ss:$8 sps:$4 sm:$0xff]  }
  0x59   :  { %2031 = vmatprep.subr.bf16.mxu0 %v2679_v41  ;;  %v2749_v41 = vld [vmem:[%s3885_s1 + $0x620] ss:$8 sps:$4 sm:$0xff]  }
  0x5a   :  { %v2821_v33 = vld [vmem:[%s3885_s1 + $0x6e0] ss:$8 sps:$4 sm:$0xff]  }
  0x5b   :  { %1820 = vmatpush1.bf16.msra.mxu1 %v2674_v42  ;;  %v3433_v42 = vld [vmem:[%s3886_s0 + $0x10] sm:$0xff] }
  0x5c   :  { %2032 = vmatpush1.bf16.msra.mxu0 %v2677_v43  ;;  %1821 = vmatprep.subr.bf16.mxu1 %v2682_v46  ;;  %v2208_v43 = vcombine.low %v31_v26, %v39_v29  ;;  %v3443_v46 = vld [vmem:[%s3886_s0 + $0x30] sm:$0xff]  ;;  %v2195_v50 = vcombine.high %v3433_v42, %v3438_v45 }
  0x5d   :  { %2033 = vmatprep.subr.bf16.mxu0 %v2685_v47  ;;  %v3448_v47 = vld [vmem:[%s3886_s0 + $0x70] sm:$0xff] }
  0x5e   :  { %v2814_v26 = vld [vmem:[%s3885_s1 + $0x2d4] ss:$8 sps:$4 sm:$0xff]   ;;  %v2815_v29 = vld [vmem:[%s3885_s1 + $0x6d0] ss:$8 sps:$4 sm:$0xff]  }
  0x5f   :  { %1822 = vmatpush1.bf16.msra.mxu1 %v2680_v51  ;;  %v2203_v51 = vcombine.high %v3443_v46, %v3448_v47 }
  0x60   :  { %2034 = vmatpush1.bf16.msra.mxu0 %v2683_v52  ;;  %1823 = vmatprep.subr.bf16.mxu1 %v2688_v54  ;;  %v2752_v52 = vld [vmem:[%s3885_s1 + $0x230] ss:$8 sps:$4 sm:$0xff]   ;;  %v2760_v54 = vld [vmem:[%s3885_s1 + $0x244] ss:$8 sps:$4 sm:$0xff]  }
  0x61   :  { %2035 = vmatprep.subr.bf16.mxu0 %v2691_v55  ;;  %v2763_v55 = vld [vmem:[%s3885_s1 + $0x644] ss:$8 sps:$4 sm:$0xff]  }
  0x63   :  { %1824 = vmatpush1.bf16.msra.mxu1 %v2686_v56  ;;  %v2758_v56 = vld [vmem:[%s3885_s1 + $0x240] ss:$8 sps:$4 sm:$0xff]  }
  0x64   :  { %2036 = vmatpush1.bf16.msra.mxu0 %v2689_v57  ;;  %1825 = vmatprep.subr.bf16.mxu1 %v2694_v58  ;;  %v2761_v57 = vld [vmem:[%s3885_s1 + $0x640] ss:$8 sps:$4 sm:$0xff]   ;;  %v2766_v58 = vld [vmem:[%s3885_s1 + $0x254] ss:$8 sps:$4 sm:$0xff]  }
  0x65   :  { %2037 = vmatprep.subr.bf16.mxu0 %v2697_v59  ;;  %v2769_v59 = vld [vmem:[%s3885_s1 + $0x654] ss:$8 sps:$4 sm:$0xff]  }
  0x67   :  { %1826 = vmatpush1.bf16.msra.mxu1 %v2692_v60  ;;  %v2764_v60 = vld [vmem:[%s3885_s1 + $0x250] ss:$8 sps:$4 sm:$0xff]  }
  0x68   :  { %2038 = vmatpush1.bf16.msra.mxu0 %v2695_v61  ;;  %1827 = vmatprep.subr.bf16.mxu1 %v2700_v62  ;;  %v2767_v61 = vld [vmem:[%s3885_s1 + $0x650] ss:$8 sps:$4 sm:$0xff]   ;;  %v2772_v62 = vld [vmem:[%s3885_s1 + $0x264] ss:$8 sps:$4 sm:$0xff]  }
  0x69   :  { %2039 = vmatprep.subr.bf16.mxu0 %v2703_v63  ;;  %v2775_v63 = vld [vmem:[%s3885_s1 + $0x664] ss:$8 sps:$4 sm:$0xff]  }
  0x6b   :  { %1828 = vmatpush1.bf16.msra.mxu1 %v2698_v0  ;;  %v2770_v0 = vld [vmem:[%s3885_s1 + $0x260] ss:$8 sps:$4 sm:$0xff]  }
  0x6c   :  { %2040 = vmatpush1.bf16.msra.mxu0 %v2701_v1  ;;  %1829 = vmatprep.subr.bf16.mxu1 %v2706_v2  ;;  %v2773_v1 = vld [vmem:[%s3885_s1 + $0x660] ss:$8 sps:$4 sm:$0xff]   ;;  %v2778_v2 = vld [vmem:[%s3885_s1 + $0x274] ss:$8 sps:$4 sm:$0xff]  }
  0x6d   :  { %2041 = vmatprep.subr.bf16.mxu0 %v2709_v3  ;;  %v2781_v3 = vld [vmem:[%s3885_s1 + $0x674] ss:$8 sps:$4 sm:$0xff]  }
  0x6f   :  { %1830 = vmatpush1.bf16.msra.mxu1 %v2704_v4  ;;  %v2776_v4 = vld [vmem:[%s3885_s1 + $0x270] ss:$8 sps:$4 sm:$0xff]  }
  0x70   :  { %2042 = vmatpush1.bf16.msra.mxu0 %v2707_v5  ;;  %1831 = vmatprep.subr.bf16.mxu1 %v2712_v6  ;;  %v2779_v5 = vld [vmem:[%s3885_s1 + $0x670] ss:$8 sps:$4 sm:$0xff]   ;;  %v2784_v6 = vld [vmem:[%s3885_s1 + $0x284] ss:$8 sps:$4 sm:$0xff]  }
  0x71   :  { %2043 = vmatprep.subr.bf16.mxu0 %v2715_v7  ;;  %v2787_v7 = vld [vmem:[%s3885_s1 + $0x684] ss:$8 sps:$4 sm:$0xff]  }
  0x73   :  { %1832 = vmatpush1.bf16.msra.mxu1 %v2710_v8  ;;  %v2782_v8 = vld [vmem:[%s3885_s1 + $0x280] ss:$8 sps:$4 sm:$0xff]  }
  0x74   :  { %2044 = vmatpush1.bf16.msra.mxu0 %v2713_v9  ;;  %1833 = vmatprep.subr.bf16.mxu1 %v2718_v10  ;;  %v2785_v9 = vld [vmem:[%s3885_s1 + $0x680] ss:$8 sps:$4 sm:$0xff]   ;;  %v2790_v10 = vld [vmem:[%s3885_s1 + $0x294] ss:$8 sps:$4 sm:$0xff]  }
  0x75   :  { %2045 = vmatprep.subr.bf16.mxu0 %v2721_v11  ;;  %v2793_v11 = vld [vmem:[%s3885_s1 + $0x694] ss:$8 sps:$4 sm:$0xff]  }
  0x77   :  { %1834 = vmatpush1.bf16.msra.mxu1 %v2716_v12  ;;  %v2788_v12 = vld [vmem:[%s3885_s1 + $0x290] ss:$8 sps:$4 sm:$0xff]  }
  0x78   :  { %2046 = vmatpush1.bf16.msra.mxu0 %v2719_v13  ;;  %1835 = vmatprep.subr.bf16.mxu1 %v2724_v14  ;;  %v2791_v13 = vld [vmem:[%s3885_s1 + $0x690] ss:$8 sps:$4 sm:$0xff]   ;;  %v2796_v14 = vld [vmem:[%s3885_s1 + $0x2a4] ss:$8 sps:$4 sm:$0xff]  }
  0x79   :  { %2047 = vmatprep.subr.bf16.mxu0 %v2727_v15  ;;  %v2799_v15 = vld [vmem:[%s3885_s1 + $0x6a4] ss:$8 sps:$4 sm:$0xff]  }
  0x7b   :  { %1836 = vmatpush1.bf16.msra.mxu1 %v2722_v16  ;;  %v2794_v16 = vld [vmem:[%s3885_s1 + $0x2a0] ss:$8 sps:$4 sm:$0xff]  }
  0x7c   :  { %2048 = vmatpush1.bf16.msra.mxu0 %v2725_v17  ;;  %1837 = vmatprep.subr.bf16.mxu1 %v2730_v18  ;;  %v2797_v17 = vld [vmem:[%s3885_s1 + $0x6a0] ss:$8 sps:$4 sm:$0xff]   ;;  %v2802_v18 = vld [vmem:[%s3885_s1 + $0x2b4] ss:$8 sps:$4 sm:$0xff]  }
  0x7d   :  { %2049 = vmatprep.subr.bf16.mxu0 %v2733_v19  ;;  %v2805_v19 = vld [vmem:[%s3885_s1 + $0x6b4] ss:$8 sps:$4 sm:$0xff]  }
  0x7f   :  { %1838 = vmatpush1.bf16.msra.mxu1 %v2728_v20  ;;  %v2800_v20 = vld [vmem:[%s3885_s1 + $0x2b0] ss:$8 sps:$4 sm:$0xff]  }
  0x80   :  { %2050 = vmatpush1.bf16.msra.mxu0 %v2731_v21  ;;  %1860 = vmatprep.subr.bf16.mxu1 %v2736_v22  ;;  %v2803_v21 = vld [vmem:[%s3885_s1 + $0x6b0] ss:$8 sps:$4 sm:$0xff]   ;;  %v2808_v22 = vld [vmem:[%s3885_s1 + $0x2c4] ss:$8 sps:$4 sm:$0xff]  }
  0x81   :  { %2072 = vmatprep.subr.bf16.mxu0 %v2739_v23  ;;  %v2811_v23 = vld [vmem:[%s3885_s1 + $0x6c4] ss:$8 sps:$4 sm:$0xff]  }
  0x82   :  { %1840 = vmatmul.mubr.bf16.vlgmr.msra.gmra.mrb[0].mxu1 %v2192_v27  ;;  %v2817_v27 = vld [vmem:[%s3885_s1 + $0x6d4] ss:$8 sps:$4 sm:$0xff]  }
  0x83   :  { %2052 = vmatmul.mubr.bf16.vlgmr.msra.gmra.mrb[0].mxu0 %v2200_v28  ;;  %1861 = vmatpush1.bf16.msra.mxu1 %v2734_v24  ;;  %v2806_v24 = vld [vmem:[%s3885_s1 + $0x2c0] ss:$8 sps:$4 sm:$0xff]   ;;  %v2812_v28 = vld [vmem:[%s3885_s1 + $0x2d0] ss:$8 sps:$4 sm:$0xff]  }
  0x84   :  { %2073 = vmatpush1.bf16.msra.mxu0 %v2737_v25  ;;  %1862 = vmatprep.subr.bf16.mxu1 %v2742_v30  ;;  %v2809_v25 = vld [vmem:[%s3885_s1 + $0x6c0] ss:$8 sps:$4 sm:$0xff]   ;;  %v2820_v30 = vld [vmem:[%s3885_s1 + $0x2e4] ss:$8 sps:$4 sm:$0xff]  }
  0x85   :  { %2074 = vmatprep.subr.bf16.mxu0 %v2745_v31  ;;  %1849 = vmatprep.mubr.bf16.mxu1 %v2209_v34  ;;  %v2823_v31 = vld [vmem:[%s3885_s1 + $0x6e4] ss:$8 sps:$4 sm:$0xff]   ;;  %v2826_v34 = vld [vmem:[%s3885_s1 + $0x2f4] ss:$8 sps:$4 sm:$0xff]  }
  0x86   :  { %2061 = vmatprep.mubr.bf16.mxu0 %v2217_v35  ;;  %v2829_v35 = vld [vmem:[%s3885_s1 + $0x6f4] ss:$8 sps:$4 sm:$0xff]  }
  0x87   :  { %1863 = vmatpush1.bf16.msra.mxu1 %v2740_v36  ;;  %v2824_v36 = vld [vmem:[%s3885_s1 + $0x2f0] ss:$8 sps:$4 sm:$0xff]  }
  0x88   :  { %2075 = vmatpush1.bf16.msra.mxu0 %v2743_v37  ;;  %1864 = vmatprep.subr.bf16.mxu1 %v2748_v38  ;;  %v2827_v37 = vld [vmem:[%s3885_s1 + $0x6f0] ss:$8 sps:$4 sm:$0xff]   ;;  %v2832_v38 = vld [vmem:[%s3885_s1 + $0x304] ss:$8 sps:$4 sm:$0xff]  }
  0x89   :  { %2076 = vmatprep.subr.bf16.mxu0 %v2751_v39  ;;  %v2835_v39 = vld [vmem:[%s3885_s1 + $0x704] ss:$8 sps:$4 sm:$0xff]  }
  0x8a   :  { %1850 = vmatmul.mubr.bf16.gmra.mrb[4].mxu1 %v2208_v43  ;;  %v2202_v43 = vcombine.low %v3443_v46, %v3448_v47  ;;  %v2838_v46 = vld [vmem:[%s3885_s1 + $0x314] ss:$8 sps:$4 sm:$0xff]  }
  0x8b   :  { %2062 = vmatmul.mubr.bf16.gmra.mrb[4].mxu0 %v2216_v44  ;;  %1865 = vmatpush1.bf16.msra.mxu1 %v2746_v40  ;;  %v32_v40 = vld [vmem:[%s3886_s0 + $0x90] sm:$0xff] }
  0x8c   :  { %2077 = vmatpush1.bf16.msra.mxu0 %v2749_v41  ;;  %1866 = vmatprep.subr.bf16.mxu1 %v2754_v48  ;;  %v2194_v41 = vcombine.low %v3433_v42, %v3438_v45  ;;  %v40_v44 = vld [vmem:[%s3886_s0 + $0xd0] sm:$0xff]  ;;  %v2830_v42 = vld [vmem:[%s3885_s1 + $0x300] ss:$8 sps:$4 sm:$0xff]  }
  0x8d   :  { %2078 = vmatprep.subr.bf16.mxu0 %v2757_v49  ;;  %1892 = vmatprep.mubr.bf16.mxu1 %v2195_v50  ;;  %v36_v48 = vld [vmem:[%s3886_s0 + $0xb0] sm:$0xff]  ;;  %v2833_v45 = vld [vmem:[%s3885_s1 + $0x700] ss:$8 sps:$4 sm:$0xff]   ;;  %v2211_v50 = vcombine.high %v32_v40, %v40_v44 }
  0x8e   :  { %2104 = vmatprep.mubr.bf16.mxu0 %v2203_v51  ;;  %v44_v49 = vld [vmem:[%s3886_s0 + $0xf0] sm:$0xff] }
  0x8f   :  { %1867 = vmatpush1.bf16.msra.mxu1 %v2752_v52  ;;  %v2841_v47 = vld [vmem:[%s3885_s1 + $0x714] ss:$8 sps:$4 sm:$0xff]   ;;  %v2219_v51 = vcombine.high %v36_v48, %v44_v49  ;;  %v2836_v52 = vld [vmem:[%s3885_s1 + $0x310] ss:$8 sps:$4 sm:$0xff]  }
  0x90   :  { %2079 = vmatpush1.bf16.msra.mxu0 %v2755_v53  ;;  %1868 = vmatprep.subr.bf16.mxu1 %v2760_v54  ;;  %v2839_v53 = vld [vmem:[%s3885_s1 + $0x710] ss:$8 sps:$4 sm:$0xff]   ;;  %v2844_v54 = vld [vmem:[%s3885_s1 + $0x324] ss:$8 sps:$4 sm:$0xff]  }
  0x91   :  { %2080 = vmatprep.subr.bf16.mxu0 %v2763_v55  ;;  %v2847_v55 = vld [vmem:[%s3885_s1 + $0x724] ss:$8 sps:$4 sm:$0xff]  }
  0x93   :  { %1869 = vmatpush1.bf16.msra.mxu1 %v2758_v56  ;;  %v3659_v56 = vld [vmem:[%s3886_s0 + $0x18] sm:$0xff] }
  0x94   :  { %2081 = vmatpush1.bf16.msra.mxu0 %v2761_v57  ;;  %1870 = vmatprep.subr.bf16.mxu1 %v2766_v58  ;;  %v2210_v57 = vcombine.low %v32_v40, %v40_v44  ;;  %v2218_v58 = vcombine.low %v36_v48, %v44_v49  ;;  %v2902_v40 = vld [vmem:[%s3885_s1 + $0x3c0] ss:$8 sps:$4 sm:$0xff]   ;;  %v2913_v44 = vld [vmem:[%s3885_s1 + $0x7d4] ss:$8 sps:$4 sm:$0xff]   ;;  %v2908_v48 = vld [vmem:[%s3885_s1 + $0x3d0] ss:$8 sps:$4 sm:$0xff]  }
  0x95   :  { %2082 = vmatprep.subr.bf16.mxu0 %v2769_v59  ;;  %v3664_v59 = vld [vmem:[%s3886_s0 + $0x58] sm:$0xff] }
  0x96   :  { %v2911_v49 = vld [vmem:[%s3885_s1 + $0x7d0] ss:$8 sps:$4 sm:$0xff]  }
  0x97   :  { %1871 = vmatpush1.bf16.msra.mxu1 %v2764_v60  ;;  %v3669_v60 = vld [vmem:[%s3886_s0 + $0x38] sm:$0xff] }
  0x98   :  { %2083 = vmatpush1.bf16.msra.mxu0 %v2767_v61  ;;  %1872 = vmatprep.subr.bf16.mxu1 %v2772_v62  ;;  %v3674_v61 = vld [vmem:[%s3886_s0 + $0x78] sm:$0xff]  ;;  %v2842_v62 = vld [vmem:[%s3885_s1 + $0x320] ss:$8 sps:$4 sm:$0xff]  }
  0x99   :  { %2084 = vmatprep.subr.bf16.mxu0 %v2775_v63  ;;  %v2845_v63 = vld [vmem:[%s3885_s1 + $0x720] ss:$8 sps:$4 sm:$0xff]  }
  0x9b   :  { %1873 = vmatpush1.bf16.msra.mxu1 %v2770_v0  ;;  %v2850_v0 = vld [vmem:[%s3885_s1 + $0x334] ss:$8 sps:$4 sm:$0xff]  }
  0x9c   :  { %2085 = vmatpush1.bf16.msra.mxu0 %v2773_v1  ;;  %1874 = vmatprep.subr.bf16.mxu1 %v2778_v2  ;;  %v2853_v1 = vld [vmem:[%s3885_s1 + $0x734] ss:$8 sps:$4 sm:$0xff]   ;;  %v2197_v2 = vcombine.high %v3659_v56, %v3664_v59 }
  0x9d   :  { %2086 = vmatprep.subr.bf16.mxu0 %v2781_v3  ;;  %v2205_v3 = vcombine.high %v3669_v60, %v3674_v61 }
  0x9f   :  { %1875 = vmatpush1.bf16.msra.mxu1 %v2776_v4  ;;  %v2848_v4 = vld [vmem:[%s3885_s1 + $0x330] ss:$8 sps:$4 sm:$0xff]  }
  0xa0   :  { %2087 = vmatpush1.bf16.msra.mxu0 %v2779_v5  ;;  %1876 = vmatprep.subr.bf16.mxu1 %v2784_v6  ;;  %v2851_v5 = vld [vmem:[%s3885_s1 + $0x730] ss:$8 sps:$4 sm:$0xff]   ;;  %v2856_v6 = vld [vmem:[%s3885_s1 + $0x344] ss:$8 sps:$4 sm:$0xff]  }
  0xa1   :  { %2088 = vmatprep.subr.bf16.mxu0 %v2787_v7  ;;  %v2859_v7 = vld [vmem:[%s3885_s1 + $0x744] ss:$8 sps:$4 sm:$0xff]  }
  0xa3   :  { %1877 = vmatpush1.bf16.msra.mxu1 %v2782_v8  ;;  %v2854_v8 = vld [vmem:[%s3885_s1 + $0x340] ss:$8 sps:$4 sm:$0xff]  }
  0xa4   :  { %2089 = vmatpush1.bf16.msra.mxu0 %v2785_v9  ;;  %1878 = vmatprep.subr.bf16.mxu1 %v2790_v10  ;;  %v2857_v9 = vld [vmem:[%s3885_s1 + $0x740] ss:$8 sps:$4 sm:$0xff]   ;;  %v2862_v10 = vld [vmem:[%s3885_s1 + $0x354] ss:$8 sps:$4 sm:$0xff]  }
  0xa5   :  { %2090 = vmatprep.subr.bf16.mxu0 %v2793_v11  ;;  %v2865_v11 = vld [vmem:[%s3885_s1 + $0x754] ss:$8 sps:$4 sm:$0xff]  }
  0xa7   :  { %1879 = vmatpush1.bf16.msra.mxu1 %v2788_v12  ;;  %v2860_v12 = vld [vmem:[%s3885_s1 + $0x350] ss:$8 sps:$4 sm:$0xff]  }
  0xa8   :  { %2091 = vmatpush1.bf16.msra.mxu0 %v2791_v13  ;;  %1880 = vmatprep.subr.bf16.mxu1 %v2796_v14  ;;  %v2863_v13 = vld [vmem:[%s3885_s1 + $0x750] ss:$8 sps:$4 sm:$0xff]   ;;  %v2868_v14 = vld [vmem:[%s3885_s1 + $0x364] ss:$8 sps:$4 sm:$0xff]  }
  0xa9   :  { %2092 = vmatprep.subr.bf16.mxu0 %v2799_v15  ;;  %v2871_v15 = vld [vmem:[%s3885_s1 + $0x764] ss:$8 sps:$4 sm:$0xff]  }
  0xab   :  { %1881 = vmatpush1.bf16.msra.mxu1 %v2794_v16  ;;  %v2866_v16 = vld [vmem:[%s3885_s1 + $0x360] ss:$8 sps:$4 sm:$0xff]  }
  0xac   :  { %2093 = vmatpush1.bf16.msra.mxu0 %v2797_v17  ;;  %1882 = vmatprep.subr.bf16.mxu1 %v2802_v18  ;;  %v2869_v17 = vld [vmem:[%s3885_s1 + $0x760] ss:$8 sps:$4 sm:$0xff]   ;;  %v2874_v18 = vld [vmem:[%s3885_s1 + $0x374] ss:$8 sps:$4 sm:$0xff]  }
  0xad   :  { %2094 = vmatprep.subr.bf16.mxu0 %v2805_v19  ;;  %v2877_v19 = vld [vmem:[%s3885_s1 + $0x774] ss:$8 sps:$4 sm:$0xff]  }
  0xaf   :  { %1883 = vmatpush1.bf16.msra.mxu1 %v2800_v20  ;;  %v2872_v20 = vld [vmem:[%s3885_s1 + $0x370] ss:$8 sps:$4 sm:$0xff]  }
  0xb0   :  { %2095 = vmatpush1.bf16.msra.mxu0 %v2803_v21  ;;  %1884 = vmatprep.subr.bf16.mxu1 %v2808_v22  ;;  %v2875_v21 = vld [vmem:[%s3885_s1 + $0x770] ss:$8 sps:$4 sm:$0xff]   ;;  %v2880_v22 = vld [vmem:[%s3885_s1 + $0x384] ss:$8 sps:$4 sm:$0xff]  }
  0xb1   :  { %2096 = vmatprep.subr.bf16.mxu0 %v2811_v23  ;;  %v2883_v23 = vld [vmem:[%s3885_s1 + $0x784] ss:$8 sps:$4 sm:$0xff]  }
  0xb3   :  { %1885 = vmatpush1.bf16.msra.mxu1 %v2806_v24  ;;  %v2878_v24 = vld [vmem:[%s3885_s1 + $0x380] ss:$8 sps:$4 sm:$0xff]  }
  0xb4   :  { %2097 = vmatpush1.bf16.msra.mxu0 %v2809_v25  ;;  %1886 = vmatprep.subr.bf16.mxu1 %v2814_v26  ;;  %v2881_v25 = vld [vmem:[%s3885_s1 + $0x780] ss:$8 sps:$4 sm:$0xff]   ;;  %v2886_v26 = vld [vmem:[%s3885_s1 + $0x394] ss:$8 sps:$4 sm:$0xff]  }
  0xb5   :  { %2098 = vmatprep.subr.bf16.mxu0 %v2817_v27  ;;  %v2889_v27 = vld [vmem:[%s3885_s1 + $0x794] ss:$8 sps:$4 sm:$0xff]  }
  0xb7   :  { %1887 = vmatpush1.bf16.msra.mxu1 %v2812_v28  ;;  %v2884_v28 = vld [vmem:[%s3885_s1 + $0x390] ss:$8 sps:$4 sm:$0xff]  }
  0xb8   :  { %2099 = vmatpush1.bf16.msra.mxu0 %v2815_v29  ;;  %1888 = vmatprep.subr.bf16.mxu1 %v2820_v30  ;;  %v2887_v29 = vld [vmem:[%s3885_s1 + $0x790] ss:$8 sps:$4 sm:$0xff]   ;;  %v2892_v30 = vld [vmem:[%s3885_s1 + $0x3a4] ss:$8 sps:$4 sm:$0xff]  }
  0xb9   :  { %2100 = vmatprep.subr.bf16.mxu0 %v2823_v31  ;;  %v2895_v31 = vld [vmem:[%s3885_s1 + $0x7a4] ss:$8 sps:$4 sm:$0xff]  }
  0xbb   :  { %1889 = vmatpush1.bf16.msra.mxu1 %v2818_v32  ;;  %v2890_v32 = vld [vmem:[%s3885_s1 + $0x3a0] ss:$8 sps:$4 sm:$0xff]  }
  0xbc   :  { %2101 = vmatpush1.bf16.msra.mxu0 %v2821_v33  ;;  %1890 = vmatprep.subr.bf16.mxu1 %v2826_v34  ;;  %v2893_v33 = vld [vmem:[%s3885_s1 + $0x7a0] ss:$8 sps:$4 sm:$0xff]   ;;  %v2898_v34 = vld [vmem:[%s3885_s1 + $0x3b4] ss:$8 sps:$4 sm:$0xff]  }
  0xbd   :  { %2102 = vmatprep.subr.bf16.mxu0 %v2829_v35  ;;  %v2901_v35 = vld [vmem:[%s3885_s1 + $0x7b4] ss:$8 sps:$4 sm:$0xff]  }
  0xbf   :  { %1891 = vmatpush1.bf16.msra.mxu1 %v2824_v36  ;;  %v2896_v36 = vld [vmem:[%s3885_s1 + $0x3b0] ss:$8 sps:$4 sm:$0xff]  }
  0xc0   :  { %2103 = vmatpush1.bf16.msra.mxu0 %v2827_v37  ;;  %1913 = vmatprep.subr.bf16.mxu1 %v2832_v38  ;;  %v2899_v37 = vld [vmem:[%s3885_s1 + $0x7b0] ss:$8 sps:$4 sm:$0xff]   ;;  %v2904_v38 = vld [vmem:[%s3885_s1 + $0x3c4] ss:$8 sps:$4 sm:$0xff]  }
  0xc1   :  { %2125 = vmatprep.subr.bf16.mxu0 %v2835_v39  ;;  %v2907_v39 = vld [vmem:[%s3885_s1 + $0x7c4] ss:$8 sps:$4 sm:$0xff]  }
  0xc2   :  { %1893 = vmatmul.mubr.bf16.vlgmr.msra.gmra.mrb[0].mxu1 %v2194_v41  ;;  %v2905_v41 = vld [vmem:[%s3885_s1 + $0x7c0] ss:$8 sps:$4 sm:$0xff]  }
  0xc3   :  { %2105 = vmatmul.mubr.bf16.vlgmr.msra.gmra.mrb[0].mxu0 %v2202_v43  ;;  %1914 = vmatpush1.bf16.msra.mxu1 %v2830_v42  ;;  %v2910_v43 = vld [vmem:[%s3885_s1 + $0x3d4] ss:$8 sps:$4 sm:$0xff]   ;;  %v2916_v42 = vld [vmem:[%s3885_s1 + $0x3e4] ss:$8 sps:$4 sm:$0xff]  }
  0xc4   :  { %2126 = vmatpush1.bf16.msra.mxu0 %v2833_v45  ;;  %1915 = vmatprep.subr.bf16.mxu1 %v2838_v46  ;;  %v2919_v45 = vld [vmem:[%s3885_s1 + $0x7e4] ss:$8 sps:$4 sm:$0xff]   ;;  %v2914_v46 = vld [vmem:[%s3885_s1 + $0x3e0] ss:$8 sps:$4 sm:$0xff]  }
  0xc5   :  { %2127 = vmatprep.subr.bf16.mxu0 %v2841_v47  ;;  %1902 = vmatprep.mubr.bf16.mxu1 %v2211_v50  ;;  %v2917_v47 = vld [vmem:[%s3885_s1 + $0x7e0] ss:$8 sps:$4 sm:$0xff]   ;;  %v2922_v50 = vld [vmem:[%s3885_s1 + $0x3f4] ss:$8 sps:$4 sm:$0xff]  }
  0xc6   :  { %2114 = vmatprep.mubr.bf16.mxu0 %v2219_v51  ;;  %v2925_v51 = vld [vmem:[%s3885_s1 + $0x7f4] ss:$8 sps:$4 sm:$0xff]  }
  0xc7   :  { %1916 = vmatpush1.bf16.msra.mxu1 %v2836_v52  ;;  %v2920_v52 = vld [vmem:[%s3885_s1 + $0x3f0] ss:$8 sps:$4 sm:$0xff]  }
  0xc8   :  { %2128 = vmatpush1.bf16.msra.mxu0 %v2839_v53  ;;  %1917 = vmatprep.subr.bf16.mxu1 %v2844_v54  ;;  %v2923_v53 = vld [vmem:[%s3885_s1 + $0x7f0] ss:$8 sps:$4 sm:$0xff]  }
  0xc9   :  { %2129 = vmatprep.subr.bf16.mxu0 %v2847_v55  ;;  %v33_v54 = vld [vmem:[%s3886_s0 + $0x98] sm:$0xff] }
  0xca   :  { %1903 = vmatmul.mubr.bf16.gmra.mrb[4].mxu1 %v2210_v57  ;;  %v41_v55 = vld [vmem:[%s3886_s0 + $0xd8] sm:$0xff] }
  0xcb   :  { %2115 = vmatmul.mubr.bf16.gmra.mrb[4].mxu0 %v2218_v58  ;;  %1918 = vmatpush1.bf16.msra.mxu1 %v2842_v62  ;;  %v37_v57 = vld [vmem:[%s3886_s0 + $0xb8] sm:$0xff]  ;;  %v2196_v62 = vcombine.low %v3659_v56, %v3664_v59  ;;  %v302_v56 = vld [vmem:[%s3887_s2] sm:$0x3] }
  0xcc   :  { %2130 = vmatpush1.bf16.msra.mxu0 %v2845_v63  ;;  %1919 = vmatprep.subr.bf16.mxu1 %v2850_v0  ;;  %v45_v58 = vld [vmem:[%s3886_s0 + $0xf8] sm:$0xff]  ;;  %v2204_v63 = vcombine.low %v3669_v60, %v3674_v61  ;;  %v2213_v0 = vcombine.high %v33_v54, %v41_v55 }
  0xcd   :  { %2131 = vmatprep.subr.bf16.mxu0 %v2853_v1  ;;  %1945 = vmatprep.mubr.bf16.mxu1 %v2197_v2  ;;  %v2221_v1 = vcombine.high %v37_v57, %v45_v58  ;;  %v2212_v2 = vcombine.low %v33_v54, %v41_v55 }
  0xce   :  { %2157 = vmatprep.mubr.bf16.mxu0 %v2205_v3  ;;  %v2220_v3 = vcombine.low %v37_v57, %v45_v58 }
  0xcf   :  { %1920 = vmatpush1.bf16.msra.mxu1 %v2848_v4  ;;  %v304_v4 = vlaneseq }
  0xd0   :  { %2132 = vmatpush1.bf16.msra.mxu0 %v2851_v5  ;;  %1921 = vmatprep.subr.bf16.mxu1 %v2856_v6 }
  0xd1   :  { %2133 = vmatprep.subr.bf16.mxu0 %v2859_v7  ;;  %v305_v5 = vshrl.u32 %v304_v4, 7 }
  0xd3   :  { %1922 = vmatpush1.bf16.msra.mxu1 %v2854_v8  ;;  %v306_v6 = vsub.s32 0, %v305_v5  ;;  %v310_v59 = vsub.s32 1, %v305_v5 }
  0xd4   :  { %2134 = vmatpush1.bf16.msra.mxu0 %v2857_v9  ;;  %1923 = vmatprep.subr.bf16.mxu1 %v2862_v10 }
  0xd5   :  { %2135 = vmatprep.subr.bf16.mxu0 %v2865_v11  ;;  %v307_v60 = vrot.slane %v302_v56, %v306_v6  ;;  %v311_v61 = vrot.slane %v302_v56, %v310_v59 }
  0xd7   :  { %1924 = vmatpush1.bf16.msra.mxu1 %v2860_v12 }
  0xd8   :  { %2136 = vmatpush1.bf16.msra.mxu0 %v2863_v13  ;;  %1925 = vmatprep.subr.bf16.mxu1 %v2868_v14 }
  0xd9   :  { %2137 = vmatprep.subr.bf16.mxu0 %v2871_v15 }
  0xdb   :  { %1926 = vmatpush1.bf16.msra.mxu1 %v2866_v16 }
  0xdc   :  { %2138 = vmatpush1.bf16.msra.mxu0 %v2869_v17  ;;  %1927 = vmatprep.subr.bf16.mxu1 %v2874_v18 }
  0xdd   :  { %2139 = vmatprep.subr.bf16.mxu0 %v2877_v19 }
  0xdf   :  { %1928 = vmatpush1.bf16.msra.mxu1 %v2872_v20 }
  0xe0   :  { %2140 = vmatpush1.bf16.msra.mxu0 %v2875_v21  ;;  %1929 = vmatprep.subr.bf16.mxu1 %v2880_v22 }
  0xe1   :  { %2141 = vmatprep.subr.bf16.mxu0 %v2883_v23 }
  0xe3   :  { %1930 = vmatpush1.bf16.msra.mxu1 %v2878_v24 }
  0xe4   :  { %2142 = vmatpush1.bf16.msra.mxu0 %v2881_v25  ;;  %1931 = vmatprep.subr.bf16.mxu1 %v2886_v26 }
  0xe5   :  { %2143 = vmatprep.subr.bf16.mxu0 %v2889_v27 }
  0xe7   :  { %1932 = vmatpush1.bf16.msra.mxu1 %v2884_v28 }
  0xe8   :  { %2144 = vmatpush1.bf16.msra.mxu0 %v2887_v29  ;;  %1933 = vmatprep.subr.bf16.mxu1 %v2892_v30 }
  0xe9   :  { %2145 = vmatprep.subr.bf16.mxu0 %v2895_v31 }
  0xeb   :  { %1934 = vmatpush1.bf16.msra.mxu1 %v2890_v32 }
  0xec   :  { %2146 = vmatpush1.bf16.msra.mxu0 %v2893_v33  ;;  %1935 = vmatprep.subr.bf16.mxu1 %v2898_v34 }
  0xed   :  { %2147 = vmatprep.subr.bf16.mxu0 %v2901_v35 }
  0xef   :  { %1936 = vmatpush1.bf16.msra.mxu1 %v2896_v36 }
  0xf0   :  { %2148 = vmatpush1.bf16.msra.mxu0 %v2899_v37  ;;  %1937 = vmatprep.subr.bf16.mxu1 %v2904_v38 }
  0xf1   :  { %2149 = vmatprep.subr.bf16.mxu0 %v2907_v39 }
  0xf3   :  { %1938 = vmatpush1.bf16.msra.mxu1 %v2902_v40 }
  0xf4   :  { %2150 = vmatpush1.bf16.msra.mxu0 %v2905_v41  ;;  %1939 = vmatprep.subr.bf16.mxu1 %v2910_v43 }
  0xf5   :  { %2151 = vmatprep.subr.bf16.mxu0 %v2913_v44 }
  0xf7   :  { %1940 = vmatpush1.bf16.msra.mxu1 %v2908_v48 }
  0xf8   :  { %2152 = vmatpush1.bf16.msra.mxu0 %v2911_v49  ;;  %1941 = vmatprep.subr.bf16.mxu1 %v2916_v42 }
  0xf9   :  { %2153 = vmatprep.subr.bf16.mxu0 %v2919_v45 }
  0xfb   :  { %1942 = vmatpush1.bf16.msra.mxu1 %v2914_v46 }
  0xfc   :  { %2154 = vmatpush1.bf16.msra.mxu0 %v2917_v47  ;;  %1943 = vmatprep.subr.bf16.mxu1 %v2922_v50 }
  0xfd   :  { %2155 = vmatprep.subr.bf16.mxu0 %v2925_v51 }
  0xff   :  { %1944 = vmatpush1.bf16.msra.mxu1 %v2920_v52 }
 0x100   :  { %2156 = vmatpush1.bf16.msra.mxu0 %v2923_v53 }
 0x102   :  { %1946 = vmatmul.mubr.bf16.vlgmr.msra.gmra.mrb[0].mxu1 %v2196_v62 }
 0x103   :  { %2158 = vmatmul.mubr.bf16.vlgmr.msra.gmra.mrb[0].mxu0 %v2204_v63  ;;  %1955 = vmatprep.mubr.bf16.mxu1 %v2213_v0 }
 0x104   :  { %2167 = vmatprep.mubr.bf16.mxu0 %v2221_v1 }
 0x10a   :  { %1956 = vmatmul.mubr.bf16.gmra.mrb[4].mxu1 %v2212_v2 }
 0x10b   :  { %2168 = vmatmul.mubr.bf16.gmra.mrb[4].mxu0 %v2220_v3 }
 0x1d5   :  { %v1947_v7 = vpop.f32.mrb[0].mxu1 }
 0x1d6   :  { %v2159_v8 = vpop.f32.mrb[0].mxu0  ;;  %v2478_v9 = vadd.f32 %v1947_v7, %v307_v60  ;;  %v1949_v10 = vpop.f32.mrb[1].mxu1 }
 0x1d7   :  { %v2161_v11 = vpop.f32.mrb[1].mxu0  ;;  %v2480_v12 = vadd.f32 %v1949_v10, %v311_v61  ;;  %v1951_v13 = vpop.f32.mrb[2].mxu1 }
 0x1d8   :  { %v2163_v14 = vpop.f32.mrb[2].mxu0  ;;  %v2479_v15 = vadd.f32 %v2478_v9, %v2159_v8  ;;  %v2482_v16 = vadd.f32 %v1951_v13, %v307_v60  ;;  %v1953_v17 = vpop.f32.mrb[3].mxu1 }
 0x1d9   :  { %v2165_v18 = vpop.f32.mrb[3].mxu0  ;;  %v2481_v19 = vadd.f32 %v2480_v12, %v2161_v11  ;;  %v2484_v20 = vadd.f32 %v1953_v17, %v311_v61 }
 0x1da   :  { %2178 = vst [vmem:[%s3888_s3] sm:$0xff] %v2479_v15  ;;  %v2483_v21 = vadd.f32 %v2482_v16, %v2163_v14 }
 0x1db   :  { %2179 = vst [vmem:[%s3888_s3 + $0x8] sm:$0xff] %v2481_v19  ;;  %v2485_v22 = vadd.f32 %v2484_v20, %v2165_v18 }
 0x1dc   :  { %2180 = vst [vmem:[%s3888_s3 + $0x10] sm:$0xff] %v2483_v21 }
 0x1dd   :  { %2181 = vst [vmem:[%s3888_s3 + $0x18] sm:$0xff] %v2485_v22  ;;  %v1957_v23 = vpop.f32.mrb[4].mxu1 }
 0x1de   :  { %v2169_v24 = vpop.f32.mrb[4].mxu0  ;;  %v2486_v25 = vadd.f32 %v1957_v23, %v307_v60  ;;  %v1959_v26 = vpop.f32.mrb[5].mxu1 }
 0x1df   :  { %v2171_v27 = vpop.f32.mrb[5].mxu0  ;;  %v2488_v28 = vadd.f32 %v1959_v26, %v311_v61  ;;  %v1961_v29 = vpop.f32.mrb[6].mxu1 }
 0x1e0   :  { %v2173_v30 = vpop.f32.mrb[6].mxu0  ;;  %v2487_v31 = vadd.f32 %v2486_v25, %v2169_v24  ;;  %v2490_v32 = vadd.f32 %v1961_v29, %v307_v60  ;;  %v1963_v33 = vpop.f32.mrb[7].mxu1 }
 0x1e1   :  { %v2175_v34 = vpop.f32.mrb[7].mxu0  ;;  %v2489_v35 = vadd.f32 %v2488_v28, %v2171_v27  ;;  %v2492_v36 = vadd.f32 %v1963_v33, %v311_v61 }
 0x1e2   :  { %2182 = vst [vmem:[%s3888_s3 + $0x20] sm:$0xff] %v2487_v31  ;;  %v2491_v37 = vadd.f32 %v2490_v32, %v2173_v30 }
 0x1e3   :  { %2183 = vst [vmem:[%s3888_s3 + $0x28] sm:$0xff] %v2489_v35  ;;  %v2493_v38 = vadd.f32 %v2492_v36, %v2175_v34 }
 0x1e4   :  { %2184 = vst [vmem:[%s3888_s3 + $0x30] sm:$0xff] %v2491_v37 }
 0x1e5   :  { %2185 = vst [vmem:[%s3888_s3 + $0x38] sm:$0xff] %v2493_v38 }

// kernel: discriminator_forward.14
= control target key start
LH: loop header
LB: loop body
LE: loop exit
PB: predicated region body
PF: predicated region fallthrough
CT: control target
= control target key end

     0   :  { %s339_s6 = smov 0   ;;  %s371_s0 = inlined_call_operand.vmem [shape: f32[2,4,512], index: 0, kind: input, shape index: {}]   ;;  %s372_s1 = inlined_call_operand.vmem [shape: f32[2,4,512], index: 1, kind: output, shape index: {}]  }
   0x1 LB: > { %s290_s7 = sadd.s32 4294967295, %s327_s6   ;;  %p294_p0 = scmp.ge.s32.totalorder %s327_s6, 1  ;;  %s327_s6 = sphi %s339_s6, %s11_s6  }
   0x2   : > { %p87_p1 = scmp.lt.s32.totalorder %s327_s6, 3 }
   0x4   : > { %p88_p2 = pnand %p294_p0, %p87_p1 }
   0x5   : > { %p107_p3 = scmp.lt.s32.totalorder (!%p88_p2), %s290_s7, 1  ;;  %vm125_vm0 = vcmask (!%p88_p2), 1043456  }
   0x6   : > { %91 = sbr.rel (%p88_p2) target bundleno = 79 (0x4f), region = 24 }
   0xd   : > { %s374_s7 = smov (!%p107_p3, %s290_s7), 1 }
   0xe   : > { %s301_s8 = sshll.u32 %s374_s7, 4 }
   0xf   : > { %s111_s11 = scalar_lea.vmem %s371_s0, %s301_s8  ;;  %s116_s14 = scalar_lea.vmem %s372_s1, %s301_s8 }
  0x10   : > { %v117_v0 = vld [vmem:[%s111_s11] sm:$0xff]  ;;  %v118_v1 = vld [vmem:[%s111_s11 + $0x8] sm:$0xff] }
  0x11   : > { %v121_v2 = vcombine.high %v117_v0, %v117_v0  ;;  %v122_v3 = vcombine.high %v118_v1, %v118_v1  ;;  %v126_v4 = vsel %vm125_vm0, %v117_v0, 0.0  ;;  %v140_v5 = vsel %vm125_vm0, %v118_v1, 0.0 }
  0x12   : > { %v127_v6 = vrot.slane %v126_v4, 4  ;;  %v141_v7 = vrot.slane %v140_v5, 4 }
  0x13   : > { %v133_v8 = vsel %vm125_vm0, %v121_v2, 0.0  ;;  %v147_v9 = vsel %vm125_vm0, %v122_v3, 0.0 }
  0x14   : > { %v128_v10 = vadd.f32 %v127_v6, %v126_v4  ;;  %v134_v11 = vrot.slane %v133_v8, 4  ;;  %v142_v12 = vadd.f32 %v141_v7, %v140_v5  ;;  %v148_v13 = vrot.slane %v147_v9, 4 }
  0x16   : > { %v129_v14 = vrot.slane %v128_v10, 2  ;;  %v135_v15 = vadd.f32 %v134_v11, %v133_v8  ;;  %v143_v16 = vrot.slane %v142_v12, 2  ;;  %v149_v17 = vadd.f32 %v148_v13, %v147_v9 }
  0x18   : > { %v130_v18 = vadd.f32 %v129_v14, %v128_v10  ;;  %v136_v19 = vrot.slane %v135_v15, 2  ;;  %v144_v20 = vadd.f32 %v143_v16, %v142_v12  ;;  %v150_v21 = vrot.slane %v149_v17, 2 }
  0x1a   : > { %v131_v22 = vrot.slane %v130_v18, 1  ;;  %v137_v23 = vadd.f32 %v136_v19, %v135_v15  ;;  %v145_v24 = vrot.slane %v144_v20, 1  ;;  %v151_v25 = vadd.f32 %v150_v21, %v149_v17 }
  0x1c   : > { %v132_v26 = vadd.f32 %v131_v22, %v130_v18  ;;  %v138_v27 = vrot.slane %v137_v23, 1  ;;  %v146_v28 = vadd.f32 %v145_v24, %v144_v20  ;;  %v152_v29 = vrot.slane %v151_v25, 1 }
  0x1e   : > { %v139_v30 = vadd.f32 %v138_v27, %v137_v23  ;;  %v153_v31 = vadd.f32 %v152_v29, %v151_v25  ;;  %v155_v32 = vmul.f32 0.25, %v132_v26  ;;  %v157_v33 = vmul.f32 0.25, %v146_v28 }
  0x20   : > { %v156_v34 = vmul.f32 0.25, %v139_v30  ;;  %v158_v35 = vmul.f32 0.25, %v153_v31 }
  0x22   : > { %v163_v36 = vcombine.low %v155_v32, %v156_v34  ;;  %v164_v37 = vcombine.low %v157_v33, %v158_v35 }
  0x24   : > { %v167_v38 = vsub.f32 %v117_v0, %v163_v36  ;;  %v168_v39 = vsub.f32 %v118_v1, %v164_v37 }
  0x26   : > { %v169_v40 = vmul.f32 %v167_v38, %v167_v38  ;;  %v170_v41 = vmul.f32 %v168_v39, %v168_v39 }
  0x28   : > { %v173_v42 = vcombine.high %v169_v40, %v169_v40  ;;  %v174_v43 = vcombine.high %v170_v41, %v170_v41  ;;  %v177_v44 = vsel %vm125_vm0, %v169_v40, 0.0  ;;  %v191_v45 = vsel %vm125_vm0, %v170_v41, 0.0 }
  0x29   : > { %v178_v46 = vrot.slane %v177_v44, 4  ;;  %v192_v47 = vrot.slane %v191_v45, 4 }
  0x2a   : > { %v184_v48 = vsel %vm125_vm0, %v173_v42, 0.0  ;;  %v198_v49 = vsel %vm125_vm0, %v174_v43, 0.0 }
  0x2b   : > { %v179_v50 = vadd.f32 %v178_v46, %v177_v44  ;;  %v185_v51 = vrot.slane %v184_v48, 4  ;;  %v193_v52 = vadd.f32 %v192_v47, %v191_v45  ;;  %v199_v53 = vrot.slane %v198_v49, 4 }
  0x2d   : > { %v180_v54 = vrot.slane %v179_v50, 2  ;;  %v186_v55 = vadd.f32 %v185_v51, %v184_v48  ;;  %v194_v56 = vrot.slane %v193_v52, 2  ;;  %v200_v57 = vadd.f32 %v199_v53, %v198_v49 }
  0x2f   : > { %v181_v58 = vadd.f32 %v180_v54, %v179_v50  ;;  %v187_v59 = vrot.slane %v186_v55, 2  ;;  %v195_v60 = vadd.f32 %v194_v56, %v193_v52  ;;  %v201_v61 = vrot.slane %v200_v57, 2 }
  0x31   : > { %v182_v62 = vrot.slane %v181_v58, 1  ;;  %v188_v63 = vadd.f32 %v187_v59, %v186_v55  ;;  %v196_v0 = vrot.slane %v195_v60, 1  ;;  %v202_v1 = vadd.f32 %v201_v61, %v200_v57 }
  0x33   : > { %v183_v2 = vadd.f32 %v182_v62, %v181_v58  ;;  %v189_v3 = vrot.slane %v188_v63, 1  ;;  %v197_v4 = vadd.f32 %v196_v0, %v195_v60  ;;  %v203_v5 = vrot.slane %v202_v1, 1 }
  0x35   : > { %v190_v6 = vadd.f32 %v189_v3, %v188_v63  ;;  %v204_v7 = vadd.f32 %v203_v5, %v202_v1  ;;  %v205_v8 = vmul.f32 0.25, %v183_v2  ;;  %v207_v9 = vmul.f32 0.25, %v197_v4 }
  0x37   : > { %v206_v10 = vmul.f32 0.25, %v190_v6  ;;  %v208_v11 = vmul.f32 0.25, %v204_v7  ;;  %v209_v12 = vadd.f32 1e-05, %v205_v8  ;;  %v211_v13 = vadd.f32 1e-05, %v207_v9 }
  0x39   : > { %v210_v14 = vadd.f32 1e-05, %v206_v10  ;;  %v212_v15 = vadd.f32 1e-05, %v208_v11  ;;  %313 = vrsqrt.f32 %v209_v12 }
  0x3a   : > { %315 = vrsqrt.f32 %v211_v13 }
  0x3b   : > { %317 = vrsqrt.f32 %v210_v14 }
  0x3c   : > { %319 = vrsqrt.f32 %v212_v15 }
  0x43   : > { %v314_v16 = vpop.eup %313 }
  0x44   : > { %v316_v17 = vpop.eup %315 }
  0x45   : > { %v318_v18 = vpop.eup %317 }
  0x46   : > { %v320_v19 = vpop.eup %319  ;;  %v221_v20 = vcombine.low %v314_v16, %v318_v18 }
  0x47   : > { %v222_v21 = vcombine.low %v316_v17, %v320_v19 }
  0x48   : > { %v225_v22 = vmul.f32 %v221_v20, %v167_v38 }
  0x49   : > { %v226_v23 = vmul.f32 %v222_v21, %v168_v39 }
  0x4a   : > { %vm227_vm1 = vcmp.ge.f32.partialorder %v225_v22, 0.0  ;;  %v229_v24 = vmul.f32 0.2, %v225_v22 }
  0x4b   : > { %vm228_vm2 = vcmp.ge.f32.partialorder %v226_v23, 0.0  ;;  %v230_v25 = vmul.f32 0.2, %v226_v23 }
  0x4c   : > { %v231_v26 = vsel %vm227_vm1, %v225_v22, %v229_v24 }
  0x4d   : > { %233 = vst [vmem:[%s116_s14] sm:$0xff] %v231_v26  ;;  %v232_v27 = vsel %vm228_vm2, %v226_v23, %v230_v25 }
  0x4e   : > { %234 = vst [vmem:[%s116_s14 + $0x8] sm:$0xff] %v232_v27 }
  0x4f PF: > { %s11_s6 = sadd.s32 1, %s327_s6  }
  0x50   : > { %p8_p4 = scmp.ge.s32.totalorder %s11_s6, 4  }
  0x52   :  { %10 = sbr.rel (!%p8_p4) target bundleno = 1 (0x1), region = 54 }

// kernel: discriminator_forward.13
= control target key start
LH: loop header
LB: loop body
LE: loop exit
PB: predicated region body
PF: predicated region fallthrough
CT: control target
= control target key end

     0   :  { %s13621_s1 = inlined_call_operand.vmem [shape: bf16[4096,512], index: 1, kind: input, shape index: {}]   ;;  %s13622_s0 = inlined_call_operand.vmem [shape: bf16[8,4096], index: 0, kind: input, shape index: {}]   ;;  %s13623_s2 = inlined_call_operand.vmem [shape: f32[1,512], index: 2, kind: input, shape index: {}]   ;;  %s13624_s3 = inlined_call_operand.vmem [shape: f32[8,512], index: 3, kind: output, shape index: {}]  }
   0x1   :  { %v8808_v0 = vld [vmem:[%s13621_s1 + $0x4] ss:$16 sps:$4 sm:$0xff]   ;;  %v8810_v1 = vld [vmem:[%s13621_s1 + $0xc] ss:$16 sps:$4 sm:$0xff]   ;;  %v8812_v2 = vld [vmem:[%s13621_s1] ss:$16 sps:$4 sm:$0xff]  }
   0x2   :  { %6308 = vmatprep.subr.bf16.mxu0 %v8808_v0  ;;  %v8813_v3 = vld [vmem:[%s13621_s1 + $0x8] ss:$16 sps:$4 sm:$0xff]   ;;  %6964 = vmatprep.subr.bf16.mxu1 %v8810_v1  ;;  %v8814_v4 = vld [vmem:[%s13621_s1 + $0x24] ss:$16 sps:$4 sm:$0xff]   ;;  %v8816_v5 = vld [vmem:[%s13621_s1 + $0x2c] ss:$16 sps:$4 sm:$0xff]  }
   0x3   :  { %6309 = vmatpush1.bf16.msra.mxu0 %v8812_v2  ;;  %6965 = vmatpush1.bf16.msra.mxu1 %v8813_v3  ;;  %v8818_v6 = vld [vmem:[%s13621_s1 + $0x20] ss:$16 sps:$4 sm:$0xff]   ;;  %v8819_v7 = vld [vmem:[%s13621_s1 + $0x28] ss:$16 sps:$4 sm:$0xff]   ;;  %v8820_v8 = vld [vmem:[%s13621_s1 + $0x44] ss:$16 sps:$4 sm:$0xff]  }
   0x4   :  { %6310 = vmatprep.subr.bf16.mxu0 %v8814_v4  ;;  %6966 = vmatprep.subr.bf16.mxu1 %v8816_v5  ;;  %v8822_v9 = vld [vmem:[%s13621_s1 + $0x4c] ss:$16 sps:$4 sm:$0xff]   ;;  %v8824_v10 = vld [vmem:[%s13621_s1 + $0x40] ss:$16 sps:$4 sm:$0xff]   ;;  %v8825_v11 = vld [vmem:[%s13621_s1 + $0x48] ss:$16 sps:$4 sm:$0xff]  }
   0x5   :  { %v8826_v12 = vld [vmem:[%s13621_s1 + $0x64] ss:$16 sps:$4 sm:$0xff]   ;;  %v8828_v13 = vld [vmem:[%s13621_s1 + $0x6c] ss:$16 sps:$4 sm:$0xff]   ;;  %v8830_v14 = vld [vmem:[%s13621_s1 + $0x60] ss:$16 sps:$4 sm:$0xff]  }
   0x6   :  { %v8831_v15 = vld [vmem:[%s13621_s1 + $0x68] ss:$16 sps:$4 sm:$0xff]   ;;  %v8832_v16 = vld [vmem:[%s13621_s1 + $0x84] ss:$16 sps:$4 sm:$0xff]   ;;  %v8834_v17 = vld [vmem:[%s13621_s1 + $0x8c] ss:$16 sps:$4 sm:$0xff]  }
   0x7   :  { %6311 = vmatpush1.bf16.msra.mxu0 %v8818_v6  ;;  %6967 = vmatpush1.bf16.msra.mxu1 %v8819_v7  ;;  %v8836_v18 = vld [vmem:[%s13621_s1 + $0x80] ss:$16 sps:$4 sm:$0xff]   ;;  %v8837_v19 = vld [vmem:[%s13621_s1 + $0x88] ss:$16 sps:$4 sm:$0xff]   ;;  %v8838_v20 = vld [vmem:[%s13621_s1 + $0xa4] ss:$16 sps:$4 sm:$0xff]  }
   0x8   :  { %6312 = vmatprep.subr.bf16.mxu0 %v8820_v8  ;;  %6968 = vmatprep.subr.bf16.mxu1 %v8822_v9  ;;  %v8840_v21 = vld [vmem:[%s13621_s1 + $0xac] ss:$16 sps:$4 sm:$0xff]   ;;  %v8842_v22 = vld [vmem:[%s13621_s1 + $0xa0] ss:$16 sps:$4 sm:$0xff]   ;;  %v8843_v23 = vld [vmem:[%s13621_s1 + $0xa8] ss:$16 sps:$4 sm:$0xff]  }
   0x9   :  { %v8844_v24 = vld [vmem:[%s13621_s1 + $0xc4] ss:$16 sps:$4 sm:$0xff]   ;;  %v8846_v25 = vld [vmem:[%s13621_s1 + $0xcc] ss:$16 sps:$4 sm:$0xff]   ;;  %v8848_v26 = vld [vmem:[%s13621_s1 + $0xc0] ss:$16 sps:$4 sm:$0xff]  }
   0xa   :  { %v8849_v27 = vld [vmem:[%s13621_s1 + $0xc8] ss:$16 sps:$4 sm:$0xff]   ;;  %v8850_v28 = vld [vmem:[%s13621_s1 + $0xe4] ss:$16 sps:$4 sm:$0xff]   ;;  %v8852_v29 = vld [vmem:[%s13621_s1 + $0xec] ss:$16 sps:$4 sm:$0xff]  }
   0xb   :  { %6313 = vmatpush1.bf16.msra.mxu0 %v8824_v10  ;;  %6969 = vmatpush1.bf16.msra.mxu1 %v8825_v11  ;;  %v8854_v30 = vld [vmem:[%s13621_s1 + $0xe0] ss:$16 sps:$4 sm:$0xff]   ;;  %v8855_v31 = vld [vmem:[%s13621_s1 + $0xe8] ss:$16 sps:$4 sm:$0xff]   ;;  %v8856_v32 = vld [vmem:[%s13621_s1 + $0x104] ss:$16 sps:$4 sm:$0xff]  }
   0xc   :  { %6314 = vmatprep.subr.bf16.mxu0 %v8826_v12  ;;  %6970 = vmatprep.subr.bf16.mxu1 %v8828_v13  ;;  %v8858_v33 = vld [vmem:[%s13621_s1 + $0x10c] ss:$16 sps:$4 sm:$0xff]   ;;  %v8860_v34 = vld [vmem:[%s13621_s1 + $0x100] ss:$16 sps:$4 sm:$0xff]   ;;  %v8861_v35 = vld [vmem:[%s13621_s1 + $0x108] ss:$16 sps:$4 sm:$0xff]  }
   0xd   :  { %v8862_v36 = vld [vmem:[%s13621_s1 + $0x124] ss:$16 sps:$4 sm:$0xff]   ;;  %v8864_v37 = vld [vmem:[%s13621_s1 + $0x12c] ss:$16 sps:$4 sm:$0xff]   ;;  %v8866_v38 = vld [vmem:[%s13621_s1 + $0x120] ss:$16 sps:$4 sm:$0xff]  }
   0xe   :  { %v8867_v39 = vld [vmem:[%s13621_s1 + $0x128] ss:$16 sps:$4 sm:$0xff]   ;;  %v8868_v40 = vld [vmem:[%s13621_s1 + $0x144] ss:$16 sps:$4 sm:$0xff]   ;;  %v8870_v41 = vld [vmem:[%s13621_s1 + $0x14c] ss:$16 sps:$4 sm:$0xff]  }
   0xf   :  { %6315 = vmatpush1.bf16.msra.mxu0 %v8830_v14  ;;  %6971 = vmatpush1.bf16.msra.mxu1 %v8831_v15  ;;  %v8872_v42 = vld [vmem:[%s13621_s1 + $0x140] ss:$16 sps:$4 sm:$0xff]   ;;  %v8873_v43 = vld [vmem:[%s13621_s1 + $0x148] ss:$16 sps:$4 sm:$0xff]   ;;  %v8874_v44 = vld [vmem:[%s13621_s1 + $0x164] ss:$16 sps:$4 sm:$0xff]  }
  0x10   :  { %6316 = vmatprep.subr.bf16.mxu0 %v8832_v16  ;;  %6972 = vmatprep.subr.bf16.mxu1 %v8834_v17  ;;  %v8876_v45 = vld [vmem:[%s13621_s1 + $0x16c] ss:$16 sps:$4 sm:$0xff]   ;;  %v14_v46 = vld [vmem:[%s13622_s0] sm:$0xff]  ;;  %v8879_v49 = vld [vmem:[%s13621_s1 + $0x168] ss:$16 sps:$4 sm:$0xff]  }
  0x11   :  { %v8878_v47 = vld [vmem:[%s13621_s1 + $0x160] ss:$16 sps:$4 sm:$0xff]   ;;  %v7629_v48 = vcombine.high %v14_v46, %v14_v46  ;;  %v8880_v50 = vld [vmem:[%s13621_s1 + $0x184] ss:$16 sps:$4 sm:$0xff]   ;;  %v8882_v51 = vld [vmem:[%s13621_s1 + $0x18c] ss:$16 sps:$4 sm:$0xff]   ;;  %v7628_v4 = vcombine.low %v14_v46, %v14_v46 }
  0x12   :  { %v8884_v52 = vld [vmem:[%s13621_s1 + $0x180] ss:$16 sps:$4 sm:$0xff]   ;;  %v8885_v53 = vld [vmem:[%s13621_s1 + $0x188] ss:$16 sps:$4 sm:$0xff]   ;;  %v8886_v54 = vld [vmem:[%s13621_s1 + $0x1a4] ss:$16 sps:$4 sm:$0xff]  }
  0x13   :  { %6317 = vmatpush1.bf16.msra.mxu0 %v8836_v18  ;;  %6973 = vmatpush1.bf16.msra.mxu1 %v8837_v19  ;;  %v8888_v55 = vld [vmem:[%s13621_s1 + $0x1ac] ss:$16 sps:$4 sm:$0xff]   ;;  %v8890_v56 = vld [vmem:[%s13621_s1 + $0x1a0] ss:$16 sps:$4 sm:$0xff]   ;;  %v8891_v57 = vld [vmem:[%s13621_s1 + $0x1a8] ss:$16 sps:$4 sm:$0xff]  }
  0x14   :  { %6318 = vmatprep.subr.bf16.mxu0 %v8838_v20  ;;  %6974 = vmatprep.subr.bf16.mxu1 %v8840_v21  ;;  %v8892_v58 = vld [vmem:[%s13621_s1 + $0x1c4] ss:$16 sps:$4 sm:$0xff]   ;;  %v8894_v59 = vld [vmem:[%s13621_s1 + $0x1cc] ss:$16 sps:$4 sm:$0xff]   ;;  %v8896_v60 = vld [vmem:[%s13621_s1 + $0x1c0] ss:$16 sps:$4 sm:$0xff]  }
  0x15   :  { %6340 = vmatprep.mubr.bf16.mxu0 %v7629_v48  ;;  %6996 = vmatprep.mubr.bf16.mxu1 %v7629_v48  ;;  %v8897_v61 = vld [vmem:[%s13621_s1 + $0x1c8] ss:$16 sps:$4 sm:$0xff]   ;;  %v8898_v62 = vld [vmem:[%s13621_s1 + $0x1e4] ss:$16 sps:$4 sm:$0xff]   ;;  %v8900_v63 = vld [vmem:[%s13621_s1 + $0x1ec] ss:$16 sps:$4 sm:$0xff]  }
  0x16   :  { %v8902_v0 = vld [vmem:[%s13621_s1 + $0x1e0] ss:$16 sps:$4 sm:$0xff]   ;;  %v8903_v1 = vld [vmem:[%s13621_s1 + $0x1e8] ss:$16 sps:$4 sm:$0xff]   ;;  %v8908_v2 = vld [vmem:[%s13621_s1 + $0x204] ss:$16 sps:$4 sm:$0xff]  }
  0x17   :  { %6319 = vmatpush1.bf16.msra.mxu0 %v8842_v22  ;;  %6975 = vmatpush1.bf16.msra.mxu1 %v8843_v23  ;;  %v8911_v3 = vld [vmem:[%s13621_s1 + $0x20c] ss:$16 sps:$4 sm:$0xff]   ;;  %v8906_v5 = vld [vmem:[%s13621_s1 + $0x200] ss:$16 sps:$4 sm:$0xff]   ;;  %v8909_v6 = vld [vmem:[%s13621_s1 + $0x208] ss:$16 sps:$4 sm:$0xff]  }
  0x18   :  { %6320 = vmatprep.subr.bf16.mxu0 %v8844_v24  ;;  %6976 = vmatprep.subr.bf16.mxu1 %v8846_v25  ;;  %v8914_v7 = vld [vmem:[%s13621_s1 + $0x224] ss:$16 sps:$4 sm:$0xff]   ;;  %v8917_v8 = vld [vmem:[%s13621_s1 + $0x22c] ss:$16 sps:$4 sm:$0xff]   ;;  %v8912_v9 = vld [vmem:[%s13621_s1 + $0x220] ss:$16 sps:$4 sm:$0xff]  }
  0x19   :  { %v8915_v10 = vld [vmem:[%s13621_s1 + $0x228] ss:$16 sps:$4 sm:$0xff]   ;;  %v8920_v11 = vld [vmem:[%s13621_s1 + $0x244] ss:$16 sps:$4 sm:$0xff]   ;;  %v8923_v12 = vld [vmem:[%s13621_s1 + $0x24c] ss:$16 sps:$4 sm:$0xff]  }
  0x1a   :  { %v8918_v13 = vld [vmem:[%s13621_s1 + $0x240] ss:$16 sps:$4 sm:$0xff]   ;;  %v8921_v14 = vld [vmem:[%s13621_s1 + $0x248] ss:$16 sps:$4 sm:$0xff]   ;;  %v8926_v15 = vld [vmem:[%s13621_s1 + $0x264] ss:$16 sps:$4 sm:$0xff]  }
  0x1b   :  { %6321 = vmatpush1.bf16.msra.mxu0 %v8848_v26  ;;  %6977 = vmatpush1.bf16.msra.mxu1 %v8849_v27  ;;  %v8929_v16 = vld [vmem:[%s13621_s1 + $0x26c] ss:$16 sps:$4 sm:$0xff]   ;;  %v8924_v17 = vld [vmem:[%s13621_s1 + $0x260] ss:$16 sps:$4 sm:$0xff]   ;;  %v8927_v18 = vld [vmem:[%s13621_s1 + $0x268] ss:$16 sps:$4 sm:$0xff]  }
  0x1c   :  { %6322 = vmatprep.subr.bf16.mxu0 %v8850_v28  ;;  %6978 = vmatprep.subr.bf16.mxu1 %v8852_v29  ;;  %v8932_v19 = vld [vmem:[%s13621_s1 + $0x284] ss:$16 sps:$4 sm:$0xff]   ;;  %v8935_v20 = vld [vmem:[%s13621_s1 + $0x28c] ss:$16 sps:$4 sm:$0xff]   ;;  %v8930_v21 = vld [vmem:[%s13621_s1 + $0x280] ss:$16 sps:$4 sm:$0xff]  }
  0x1d   :  { %v8933_v22 = vld [vmem:[%s13621_s1 + $0x288] ss:$16 sps:$4 sm:$0xff]   ;;  %v8938_v23 = vld [vmem:[%s13621_s1 + $0x2a4] ss:$16 sps:$4 sm:$0xff]   ;;  %v8941_v24 = vld [vmem:[%s13621_s1 + $0x2ac] ss:$16 sps:$4 sm:$0xff]  }
  0x1e   :  { %v8936_v25 = vld [vmem:[%s13621_s1 + $0x2a0] ss:$16 sps:$4 sm:$0xff]   ;;  %v8939_v26 = vld [vmem:[%s13621_s1 + $0x2a8] ss:$16 sps:$4 sm:$0xff]   ;;  %v8944_v27 = vld [vmem:[%s13621_s1 + $0x2c4] ss:$16 sps:$4 sm:$0xff]  }
  0x1f   :  { %6323 = vmatpush1.bf16.msra.mxu0 %v8854_v30  ;;  %6979 = vmatpush1.bf16.msra.mxu1 %v8855_v31  ;;  %v8947_v28 = vld [vmem:[%s13621_s1 + $0x2cc] ss:$16 sps:$4 sm:$0xff]   ;;  %v8942_v31 = vld [vmem:[%s13621_s1 + $0x2c0] ss:$16 sps:$4 sm:$0xff]   ;;  %v8969_v48 = vld [vmem:[%s13621_s1 + $0x348] ss:$16 sps:$4 sm:$0xff]  }
  0x20   :  { %6324 = vmatprep.subr.bf16.mxu0 %v8856_v32  ;;  %6980 = vmatprep.subr.bf16.mxu1 %v8858_v33  ;;  %v10672_v29 = vld [vmem:[%s13622_s0 + $0x8] sm:$0xff]  ;;  %v8950_v33 = vld [vmem:[%s13621_s1 + $0x2e4] ss:$16 sps:$4 sm:$0xff]  }
  0x21   :  { %v7631_v30 = vcombine.high %v10672_v29, %v10672_v29  ;;  %v8945_v32 = vld [vmem:[%s13621_s1 + $0x2c8] ss:$16 sps:$4 sm:$0xff]   ;;  %v8971_v46 = vld [vmem:[%s13621_s1 + $0x34c] ss:$16 sps:$4 sm:$0xff]  }
  0x23   :  { %6325 = vmatpush1.bf16.msra.mxu0 %v8860_v34  ;;  %6981 = vmatpush1.bf16.msra.mxu1 %v8861_v35  ;;  %v8953_v34 = vld [vmem:[%s13621_s1 + $0x2ec] ss:$16 sps:$4 sm:$0xff]   ;;  %v8948_v35 = vld [vmem:[%s13621_s1 + $0x2e0] ss:$16 sps:$4 sm:$0xff]  }
  0x24   :  { %6326 = vmatprep.subr.bf16.mxu0 %v8862_v36  ;;  %6982 = vmatprep.subr.bf16.mxu1 %v8864_v37  ;;  %v8951_v36 = vld [vmem:[%s13621_s1 + $0x2e8] ss:$16 sps:$4 sm:$0xff]   ;;  %v8956_v37 = vld [vmem:[%s13621_s1 + $0x304] ss:$16 sps:$4 sm:$0xff]  }
  0x27   :  { %6327 = vmatpush1.bf16.msra.mxu0 %v8866_v38  ;;  %6983 = vmatpush1.bf16.msra.mxu1 %v8867_v39  ;;  %v8959_v38 = vld [vmem:[%s13621_s1 + $0x30c] ss:$16 sps:$4 sm:$0xff]   ;;  %v8954_v39 = vld [vmem:[%s13621_s1 + $0x300] ss:$16 sps:$4 sm:$0xff]  }
  0x28   :  { %6328 = vmatprep.subr.bf16.mxu0 %v8868_v40  ;;  %6984 = vmatprep.subr.bf16.mxu1 %v8870_v41  ;;  %v8957_v40 = vld [vmem:[%s13621_s1 + $0x308] ss:$16 sps:$4 sm:$0xff]   ;;  %v8962_v41 = vld [vmem:[%s13621_s1 + $0x324] ss:$16 sps:$4 sm:$0xff]  }
  0x2b   :  { %6329 = vmatpush1.bf16.msra.mxu0 %v8872_v42  ;;  %6985 = vmatpush1.bf16.msra.mxu1 %v8873_v43  ;;  %v8965_v42 = vld [vmem:[%s13621_s1 + $0x32c] ss:$16 sps:$4 sm:$0xff]   ;;  %v8960_v43 = vld [vmem:[%s13621_s1 + $0x320] ss:$16 sps:$4 sm:$0xff]  }
  0x2c   :  { %6330 = vmatprep.subr.bf16.mxu0 %v8874_v44  ;;  %6986 = vmatprep.subr.bf16.mxu1 %v8876_v45  ;;  %v8963_v44 = vld [vmem:[%s13621_s1 + $0x328] ss:$16 sps:$4 sm:$0xff]   ;;  %v8968_v45 = vld [vmem:[%s13621_s1 + $0x344] ss:$16 sps:$4 sm:$0xff]  }
  0x2f   :  { %6331 = vmatpush1.bf16.msra.mxu0 %v8878_v47  ;;  %6987 = vmatpush1.bf16.msra.mxu1 %v8879_v49  ;;  %v8966_v47 = vld [vmem:[%s13621_s1 + $0x340] ss:$16 sps:$4 sm:$0xff]   ;;  %v8974_v49 = vld [vmem:[%s13621_s1 + $0x364] ss:$16 sps:$4 sm:$0xff]  }
  0x30   :  { %6332 = vmatprep.subr.bf16.mxu0 %v8880_v50  ;;  %6988 = vmatprep.subr.bf16.mxu1 %v8882_v51  ;;  %v8977_v50 = vld [vmem:[%s13621_s1 + $0x36c] ss:$16 sps:$4 sm:$0xff]   ;;  %v8972_v51 = vld [vmem:[%s13621_s1 + $0x360] ss:$16 sps:$4 sm:$0xff]  }
  0x33   :  { %6333 = vmatpush1.bf16.msra.mxu0 %v8884_v52  ;;  %6989 = vmatpush1.bf16.msra.mxu1 %v8885_v53  ;;  %v8975_v52 = vld [vmem:[%s13621_s1 + $0x368] ss:$16 sps:$4 sm:$0xff]   ;;  %v8980_v53 = vld [vmem:[%s13621_s1 + $0x384] ss:$16 sps:$4 sm:$0xff]  }
  0x34   :  { %6334 = vmatprep.subr.bf16.mxu0 %v8886_v54  ;;  %6990 = vmatprep.subr.bf16.mxu1 %v8888_v55  ;;  %v8983_v54 = vld [vmem:[%s13621_s1 + $0x38c] ss:$16 sps:$4 sm:$0xff]   ;;  %v8978_v55 = vld [vmem:[%s13621_s1 + $0x380] ss:$16 sps:$4 sm:$0xff]  }
  0x37   :  { %6335 = vmatpush1.bf16.msra.mxu0 %v8890_v56  ;;  %6991 = vmatpush1.bf16.msra.mxu1 %v8891_v57  ;;  %v8981_v56 = vld [vmem:[%s13621_s1 + $0x388] ss:$16 sps:$4 sm:$0xff]   ;;  %v8986_v57 = vld [vmem:[%s13621_s1 + $0x3a4] ss:$16 sps:$4 sm:$0xff]  }
  0x38   :  { %6336 = vmatprep.subr.bf16.mxu0 %v8892_v58  ;;  %6992 = vmatprep.subr.bf16.mxu1 %v8894_v59  ;;  %v8989_v58 = vld [vmem:[%s13621_s1 + $0x3ac] ss:$16 sps:$4 sm:$0xff]   ;;  %v8984_v59 = vld [vmem:[%s13621_s1 + $0x3a0] ss:$16 sps:$4 sm:$0xff]  }
  0x3b   :  { %6337 = vmatpush1.bf16.msra.mxu0 %v8896_v60  ;;  %6993 = vmatpush1.bf16.msra.mxu1 %v8897_v61  ;;  %v8987_v60 = vld [vmem:[%s13621_s1 + $0x3a8] ss:$16 sps:$4 sm:$0xff]   ;;  %v8992_v61 = vld [vmem:[%s13621_s1 + $0x3c4] ss:$16 sps:$4 sm:$0xff]  }
  0x3c   :  { %6338 = vmatprep.subr.bf16.mxu0 %v8898_v62  ;;  %6994 = vmatprep.subr.bf16.mxu1 %v8900_v63  ;;  %v8995_v62 = vld [vmem:[%s13621_s1 + $0x3cc] ss:$16 sps:$4 sm:$0xff]   ;;  %v8990_v63 = vld [vmem:[%s13621_s1 + $0x3c0] ss:$16 sps:$4 sm:$0xff]  }
  0x3f   :  { %6339 = vmatpush1.bf16.msra.mxu0 %v8902_v0  ;;  %6995 = vmatpush1.bf16.msra.mxu1 %v8903_v1  ;;  %v8993_v0 = vld [vmem:[%s13621_s1 + $0x3c8] ss:$16 sps:$4 sm:$0xff]   ;;  %v8998_v1 = vld [vmem:[%s13621_s1 + $0x3e4] ss:$16 sps:$4 sm:$0xff]  }
  0x40   :  { %6349 = vmatprep.subr.bf16.mxu0 %v8908_v2  ;;  %7005 = vmatprep.subr.bf16.mxu1 %v8911_v3  ;;  %v9001_v2 = vld [vmem:[%s13621_s1 + $0x3ec] ss:$16 sps:$4 sm:$0xff]   ;;  %v8996_v3 = vld [vmem:[%s13621_s1 + $0x3e0] ss:$16 sps:$4 sm:$0xff]  }
  0x42   :  { %6341 = vmatmul.mubr.bf16.vlgmr.msra.gmra.mrb[0].mxu0 %v7628_v4  ;;  %6997 = vmatmul.mubr.bf16.vlgmr.msra.gmra.mrb[0].mxu1 %v7628_v4  ;;  %v8999_v4 = vld [vmem:[%s13621_s1 + $0x3e8] ss:$16 sps:$4 sm:$0xff]  }
  0x43   :  { %6350 = vmatpush1.bf16.msra.mxu0 %v8906_v5  ;;  %7006 = vmatpush1.bf16.msra.mxu1 %v8909_v6  ;;  %v9006_v5 = vld [vmem:[%s13621_s1 + $0x404] ss:$16 sps:$4 sm:$0xff]   ;;  %v9009_v6 = vld [vmem:[%s13621_s1 + $0x40c] ss:$16 sps:$4 sm:$0xff]  }
  0x44   :  { %6351 = vmatprep.subr.bf16.mxu0 %v8914_v7  ;;  %7007 = vmatprep.subr.bf16.mxu1 %v8917_v8  ;;  %v7630_v7 = vcombine.low %v10672_v29, %v10672_v29  ;;  %v9004_v8 = vld [vmem:[%s13621_s1 + $0x400] ss:$16 sps:$4 sm:$0xff]   ;;  %v9039_v29 = vld [vmem:[%s13621_s1 + $0x4ac] ss:$16 sps:$4 sm:$0xff]  }
  0x45   :  { %6381 = vmatprep.mubr.bf16.mxu0 %v7631_v30  ;;  %7037 = vmatprep.mubr.bf16.mxu1 %v7631_v30  ;;  %v9034_v30 = vld [vmem:[%s13621_s1 + $0x4a0] ss:$16 sps:$4 sm:$0xff]  }
  0x47   :  { %6352 = vmatpush1.bf16.msra.mxu0 %v8912_v9  ;;  %7008 = vmatpush1.bf16.msra.mxu1 %v8915_v10  ;;  %v9007_v9 = vld [vmem:[%s13621_s1 + $0x408] ss:$16 sps:$4 sm:$0xff]   ;;  %v9012_v10 = vld [vmem:[%s13621_s1 + $0x424] ss:$16 sps:$4 sm:$0xff]  }
  0x48   :  { %6353 = vmatprep.subr.bf16.mxu0 %v8920_v11  ;;  %7009 = vmatprep.subr.bf16.mxu1 %v8923_v12  ;;  %v10810_v11 = vld [vmem:[%s13622_s0 + $0x10] sm:$0xff]  ;;  %v9015_v12 = vld [vmem:[%s13621_s1 + $0x42c] ss:$16 sps:$4 sm:$0xff]  }
  0x4b   :  { %6354 = vmatpush1.bf16.msra.mxu0 %v8918_v13  ;;  %7010 = vmatpush1.bf16.msra.mxu1 %v8921_v14  ;;  %v7633_v13 = vcombine.high %v10810_v11, %v10810_v11  ;;  %v9010_v14 = vld [vmem:[%s13621_s1 + $0x420] ss:$16 sps:$4 sm:$0xff]  }
  0x4c   :  { %6355 = vmatprep.subr.bf16.mxu0 %v8926_v15  ;;  %7011 = vmatprep.subr.bf16.mxu1 %v8929_v16  ;;  %v9013_v15 = vld [vmem:[%s13621_s1 + $0x428] ss:$16 sps:$4 sm:$0xff]   ;;  %v9018_v16 = vld [vmem:[%s13621_s1 + $0x444] ss:$16 sps:$4 sm:$0xff]  }
  0x4f   :  { %6356 = vmatpush1.bf16.msra.mxu0 %v8924_v17  ;;  %7012 = vmatpush1.bf16.msra.mxu1 %v8927_v18  ;;  %v9021_v17 = vld [vmem:[%s13621_s1 + $0x44c] ss:$16 sps:$4 sm:$0xff]   ;;  %v9016_v18 = vld [vmem:[%s13621_s1 + $0x440] ss:$16 sps:$4 sm:$0xff]  }
  0x50   :  { %6357 = vmatprep.subr.bf16.mxu0 %v8932_v19  ;;  %7013 = vmatprep.subr.bf16.mxu1 %v8935_v20  ;;  %v9019_v19 = vld [vmem:[%s13621_s1 + $0x448] ss:$16 sps:$4 sm:$0xff]   ;;  %v9024_v20 = vld [vmem:[%s13621_s1 + $0x464] ss:$16 sps:$4 sm:$0xff]  }
  0x53   :  { %6358 = vmatpush1.bf16.msra.mxu0 %v8930_v21  ;;  %7014 = vmatpush1.bf16.msra.mxu1 %v8933_v22  ;;  %v9027_v21 = vld [vmem:[%s13621_s1 + $0x46c] ss:$16 sps:$4 sm:$0xff]   ;;  %v9022_v22 = vld [vmem:[%s13621_s1 + $0x460] ss:$16 sps:$4 sm:$0xff]  }
  0x54   :  { %6359 = vmatprep.subr.bf16.mxu0 %v8938_v23  ;;  %7015 = vmatprep.subr.bf16.mxu1 %v8941_v24  ;;  %v9025_v23 = vld [vmem:[%s13621_s1 + $0x468] ss:$16 sps:$4 sm:$0xff]   ;;  %v9030_v24 = vld [vmem:[%s13621_s1 + $0x484] ss:$16 sps:$4 sm:$0xff]  }
  0x57   :  { %6360 = vmatpush1.bf16.msra.mxu0 %v8936_v25  ;;  %7016 = vmatpush1.bf16.msra.mxu1 %v8939_v26  ;;  %v9033_v25 = vld [vmem:[%s13621_s1 + $0x48c] ss:$16 sps:$4 sm:$0xff]   ;;  %v9028_v26 = vld [vmem:[%s13621_s1 + $0x480] ss:$16 sps:$4 sm:$0xff]  }
  0x58   :  { %6361 = vmatprep.subr.bf16.mxu0 %v8944_v27  ;;  %7017 = vmatprep.subr.bf16.mxu1 %v8947_v28  ;;  %v9031_v27 = vld [vmem:[%s13621_s1 + $0x488] ss:$16 sps:$4 sm:$0xff]   ;;  %v9036_v28 = vld [vmem:[%s13621_s1 + $0x4a4] ss:$16 sps:$4 sm:$0xff]  }
  0x5b   :  { %6362 = vmatpush1.bf16.msra.mxu0 %v8942_v31  ;;  %7018 = vmatpush1.bf16.msra.mxu1 %v8945_v32  ;;  %v9037_v31 = vld [vmem:[%s13621_s1 + $0x4a8] ss:$16 sps:$4 sm:$0xff]   ;;  %v9042_v32 = vld [vmem:[%s13621_s1 + $0x4c4] ss:$16 sps:$4 sm:$0xff]  }
  0x5c   :  { %6363 = vmatprep.subr.bf16.mxu0 %v8950_v33  ;;  %7019 = vmatprep.subr.bf16.mxu1 %v8953_v34  ;;  %v9045_v33 = vld [vmem:[%s13621_s1 + $0x4cc] ss:$16 sps:$4 sm:$0xff]   ;;  %v9040_v34 = vld [vmem:[%s13621_s1 + $0x4c0] ss:$16 sps:$4 sm:$0xff]  }
  0x5f   :  { %6364 = vmatpush1.bf16.msra.mxu0 %v8948_v35  ;;  %7020 = vmatpush1.bf16.msra.mxu1 %v8951_v36  ;;  %v9043_v35 = vld [vmem:[%s13621_s1 + $0x4c8] ss:$16 sps:$4 sm:$0xff]   ;;  %v9048_v36 = vld [vmem:[%s13621_s1 + $0x4e4] ss:$16 sps:$4 sm:$0xff]  }
  0x60   :  { %6365 = vmatprep.subr.bf16.mxu0 %v8956_v37  ;;  %7021 = vmatprep.subr.bf16.mxu1 %v8959_v38  ;;  %v9051_v37 = vld [vmem:[%s13621_s1 + $0x4ec] ss:$16 sps:$4 sm:$0xff]   ;;  %v9046_v38 = vld [vmem:[%s13621_s1 + $0x4e0] ss:$16 sps:$4 sm:$0xff]  }
  0x63   :  { %6366 = vmatpush1.bf16.msra.mxu0 %v8954_v39  ;;  %7022 = vmatpush1.bf16.msra.mxu1 %v8957_v40  ;;  %v9049_v39 = vld [vmem:[%s13621_s1 + $0x4e8] ss:$16 sps:$4 sm:$0xff]   ;;  %v9054_v40 = vld [vmem:[%s13621_s1 + $0x504] ss:$16 sps:$4 sm:$0xff]  }
  0x64   :  { %6367 = vmatprep.subr.bf16.mxu0 %v8962_v41  ;;  %7023 = vmatprep.subr.bf16.mxu1 %v8965_v42  ;;  %v9057_v41 = vld [vmem:[%s13621_s1 + $0x50c] ss:$16 sps:$4 sm:$0xff]   ;;  %v9052_v42 = vld [vmem:[%s13621_s1 + $0x500] ss:$16 sps:$4 sm:$0xff]  }
  0x67   :  { %6368 = vmatpush1.bf16.msra.mxu0 %v8960_v43  ;;  %7024 = vmatpush1.bf16.msra.mxu1 %v8963_v44  ;;  %v9055_v43 = vld [vmem:[%s13621_s1 + $0x508] ss:$16 sps:$4 sm:$0xff]   ;;  %v9060_v44 = vld [vmem:[%s13621_s1 + $0x524] ss:$16 sps:$4 sm:$0xff]  }
  0x68   :  { %6369 = vmatprep.subr.bf16.mxu0 %v8968_v45  ;;  %7025 = vmatprep.subr.bf16.mxu1 %v8971_v46  ;;  %v9063_v45 = vld [vmem:[%s13621_s1 + $0x52c] ss:$16 sps:$4 sm:$0xff]   ;;  %v9058_v46 = vld [vmem:[%s13621_s1 + $0x520] ss:$16 sps:$4 sm:$0xff]  }
  0x6b   :  { %6370 = vmatpush1.bf16.msra.mxu0 %v8966_v47  ;;  %7026 = vmatpush1.bf16.msra.mxu1 %v8969_v48  ;;  %v9061_v47 = vld [vmem:[%s13621_s1 + $0x528] ss:$16 sps:$4 sm:$0xff]   ;;  %v9066_v48 = vld [vmem:[%s13621_s1 + $0x544] ss:$16 sps:$4 sm:$0xff]  }
  0x6c   :  { %6371 = vmatprep.subr.bf16.mxu0 %v8974_v49  ;;  %7027 = vmatprep.subr.bf16.mxu1 %v8977_v50  ;;  %v9069_v49 = vld [vmem:[%s13621_s1 + $0x54c] ss:$16 sps:$4 sm:$0xff]   ;;  %v9064_v50 = vld [vmem:[%s13621_s1 + $0x540] ss:$16 sps:$4 sm:$0xff]  }
  0x6f   :  { %6372 = vmatpush1.bf16.msra.mxu0 %v8972_v51  ;;  %7028 = vmatpush1.bf16.msra.mxu1 %v8975_v52  ;;  %v9067_v51 = vld [vmem:[%s13621_s1 + $0x548] ss:$16 sps:$4 sm:$0xff]   ;;  %v9072_v52 = vld [vmem:[%s13621_s1 + $0x564] ss:$16 sps:$4 sm:$0xff]  }
  0x70   :  { %6373 = vmatprep.subr.bf16.mxu0 %v8980_v53  ;;  %7029 = vmatprep.subr.bf16.mxu1 %v8983_v54  ;;  %v9075_v53 = vld [vmem:[%s13621_s1 + $0x56c] ss:$16 sps:$4 sm:$0xff]   ;;  %v9070_v54 = vld [vmem:[%s13621_s1 + $0x560] ss:$16 sps:$4 sm:$0xff]  }
  0x73   :  { %6374 = vmatpush1.bf16.msra.mxu0 %v8978_v55  ;;  %7030 = vmatpush1.bf16.msra.mxu1 %v8981_v56  ;;  %v9073_v55 = vld [vmem:[%s13621_s1 + $0x568] ss:$16 sps:$4 sm:$0xff]   ;;  %v9078_v56 = vld [vmem:[%s13621_s1 + $0x584] ss:$16 sps:$4 sm:$0xff]  }
  0x74   :  { %6375 = vmatprep.subr.bf16.mxu0 %v8986_v57  ;;  %7031 = vmatprep.subr.bf16.mxu1 %v8989_v58  ;;  %v9081_v57 = vld [vmem:[%s13621_s1 + $0x58c] ss:$16 sps:$4 sm:$0xff]   ;;  %v9076_v58 = vld [vmem:[%s13621_s1 + $0x580] ss:$16 sps:$4 sm:$0xff]  }
  0x77   :  { %6376 = vmatpush1.bf16.msra.mxu0 %v8984_v59  ;;  %7032 = vmatpush1.bf16.msra.mxu1 %v8987_v60  ;;  %v9079_v59 = vld [vmem:[%s13621_s1 + $0x588] ss:$16 sps:$4 sm:$0xff]   ;;  %v9084_v60 = vld [vmem:[%s13621_s1 + $0x5a4] ss:$16 sps:$4 sm:$0xff]  }
  0x78   :  { %6377 = vmatprep.subr.bf16.mxu0 %v8992_v61  ;;  %7033 = vmatprep.subr.bf16.mxu1 %v8995_v62  ;;  %v9087_v61 = vld [vmem:[%s13621_s1 + $0x5ac] ss:$16 sps:$4 sm:$0xff]   ;;  %v9082_v62 = vld [vmem:[%s13621_s1 + $0x5a0] ss:$16 sps:$4 sm:$0xff]  }
  0x7b   :  { %6378 = vmatpush1.bf16.msra.mxu0 %v8990_v63  ;;  %7034 = vmatpush1.bf16.msra.mxu1 %v8993_v0  ;;  %v9085_v63 = vld [vmem:[%s13621_s1 + $0x5a8] ss:$16 sps:$4 sm:$0xff]   ;;  %v9090_v0 = vld [vmem:[%s13621_s1 + $0x5c4] ss:$16 sps:$4 sm:$0xff]  }
  0x7c   :  { %6379 = vmatprep.subr.bf16.mxu0 %v8998_v1  ;;  %7035 = vmatprep.subr.bf16.mxu1 %v9001_v2  ;;  %v9093_v1 = vld [vmem:[%s13621_s1 + $0x5cc] ss:$16 sps:$4 sm:$0xff]   ;;  %v9088_v2 = vld [vmem:[%s13621_s1 + $0x5c0] ss:$16 sps:$4 sm:$0xff]  }
  0x7f   :  { %6380 = vmatpush1.bf16.msra.mxu0 %v8996_v3  ;;  %7036 = vmatpush1.bf16.msra.mxu1 %v8999_v4  ;;  %v9091_v3 = vld [vmem:[%s13621_s1 + $0x5c8] ss:$16 sps:$4 sm:$0xff]   ;;  %v9096_v4 = vld [vmem:[%s13621_s1 + $0x5e4] ss:$16 sps:$4 sm:$0xff]  }
  0x80   :  { %6390 = vmatprep.subr.bf16.mxu0 %v9006_v5  ;;  %7046 = vmatprep.subr.bf16.mxu1 %v9009_v6  ;;  %v9099_v5 = vld [vmem:[%s13621_s1 + $0x5ec] ss:$16 sps:$4 sm:$0xff]   ;;  %v9094_v6 = vld [vmem:[%s13621_s1 + $0x5e0] ss:$16 sps:$4 sm:$0xff]  }
  0x82   :  { %6382 = vmatmul.mubr.bf16.vlgmr.msra.gmra.mrb[0].mxu0 %v7630_v7  ;;  %7038 = vmatmul.mubr.bf16.vlgmr.msra.gmra.mrb[0].mxu1 %v7630_v7  ;;  %v9097_v7 = vld [vmem:[%s13621_s1 + $0x5e8] ss:$16 sps:$4 sm:$0xff]  }
  0x83   :  { %6391 = vmatpush1.bf16.msra.mxu0 %v9004_v8  ;;  %7047 = vmatpush1.bf16.msra.mxu1 %v9007_v9  ;;  %v9104_v8 = vld [vmem:[%s13621_s1 + $0x604] ss:$16 sps:$4 sm:$0xff]   ;;  %v9107_v9 = vld [vmem:[%s13621_s1 + $0x60c] ss:$16 sps:$4 sm:$0xff]  }
  0x84   :  { %6392 = vmatprep.subr.bf16.mxu0 %v9012_v10  ;;  %7048 = vmatprep.subr.bf16.mxu1 %v9015_v12  ;;  %v9102_v10 = vld [vmem:[%s13621_s1 + $0x600] ss:$16 sps:$4 sm:$0xff]   ;;  %v7632_v12 = vcombine.low %v10810_v11, %v10810_v11  ;;  %v9113_v11 = vld [vmem:[%s13621_s1 + $0x62c] ss:$16 sps:$4 sm:$0xff]  }
  0x85   :  { %6422 = vmatprep.mubr.bf16.mxu0 %v7633_v13  ;;  %7078 = vmatprep.mubr.bf16.mxu1 %v7633_v13  ;;  %v9105_v13 = vld [vmem:[%s13621_s1 + $0x608] ss:$16 sps:$4 sm:$0xff]  }
  0x87   :  { %6393 = vmatpush1.bf16.msra.mxu0 %v9010_v14  ;;  %7049 = vmatpush1.bf16.msra.mxu1 %v9013_v15  ;;  %v11008_v14 = vld [vmem:[%s13622_s0 + $0x18] sm:$0xff]  ;;  %v9110_v15 = vld [vmem:[%s13621_s1 + $0x624] ss:$16 sps:$4 sm:$0xff]  }
  0x88   :  { %6394 = vmatprep.subr.bf16.mxu0 %v9018_v16  ;;  %7050 = vmatprep.subr.bf16.mxu1 %v9021_v17  ;;  %v7635_v16 = vcombine.high %v11008_v14, %v11008_v14  ;;  %v9108_v17 = vld [vmem:[%s13621_s1 + $0x620] ss:$16 sps:$4 sm:$0xff]  }
  0x8b   :  { %6395 = vmatpush1.bf16.msra.mxu0 %v9016_v18  ;;  %7051 = vmatpush1.bf16.msra.mxu1 %v9019_v19  ;;  %v9111_v18 = vld [vmem:[%s13621_s1 + $0x628] ss:$16 sps:$4 sm:$0xff]   ;;  %v9116_v19 = vld [vmem:[%s13621_s1 + $0x644] ss:$16 sps:$4 sm:$0xff]  }
  0x8c   :  { %6396 = vmatprep.subr.bf16.mxu0 %v9024_v20  ;;  %7052 = vmatprep.subr.bf16.mxu1 %v9027_v21  ;;  %v9119_v20 = vld [vmem:[%s13621_s1 + $0x64c] ss:$16 sps:$4 sm:$0xff]   ;;  %v9114_v21 = vld [vmem:[%s13621_s1 + $0x640] ss:$16 sps:$4 sm:$0xff]  }
  0x8f   :  { %6397 = vmatpush1.bf16.msra.mxu0 %v9022_v22  ;;  %7053 = vmatpush1.bf16.msra.mxu1 %v9025_v23  ;;  %v9117_v22 = vld [vmem:[%s13621_s1 + $0x648] ss:$16 sps:$4 sm:$0xff]   ;;  %v9122_v23 = vld [vmem:[%s13621_s1 + $0x664] ss:$16 sps:$4 sm:$0xff]  }
  0x90   :  { %6398 = vmatprep.subr.bf16.mxu0 %v9030_v24  ;;  %7054 = vmatprep.subr.bf16.mxu1 %v9033_v25  ;;  %v9125_v24 = vld [vmem:[%s13621_s1 + $0x66c] ss:$16 sps:$4 sm:$0xff]   ;;  %v9120_v25 = vld [vmem:[%s13621_s1 + $0x660] ss:$16 sps:$4 sm:$0xff]  }
  0x93   :  { %6399 = vmatpush1.bf16.msra.mxu0 %v9028_v26  ;;  %7055 = vmatpush1.bf16.msra.mxu1 %v9031_v27  ;;  %v9123_v26 = vld [vmem:[%s13621_s1 + $0x668] ss:$16 sps:$4 sm:$0xff]   ;;  %v9128_v27 = vld [vmem:[%s13621_s1 + $0x684] ss:$16 sps:$4 sm:$0xff]  }
  0x94   :  { %6400 = vmatprep.subr.bf16.mxu0 %v9036_v28  ;;  %7056 = vmatprep.subr.bf16.mxu1 %v9039_v29  ;;  %v9131_v28 = vld [vmem:[%s13621_s1 + $0x68c] ss:$16 sps:$4 sm:$0xff]   ;;  %v9126_v29 = vld [vmem:[%s13621_s1 + $0x680] ss:$16 sps:$4 sm:$0xff]  }
  0x97   :  { %6401 = vmatpush1.bf16.msra.mxu0 %v9034_v30  ;;  %7057 = vmatpush1.bf16.msra.mxu1 %v9037_v31  ;;  %v9129_v30 = vld [vmem:[%s13621_s1 + $0x688] ss:$16 sps:$4 sm:$0xff]   ;;  %v9134_v31 = vld [vmem:[%s13621_s1 + $0x6a4] ss:$16 sps:$4 sm:$0xff]  }
  0x98   :  { %6402 = vmatprep.subr.bf16.mxu0 %v9042_v32  ;;  %7058 = vmatprep.subr.bf16.mxu1 %v9045_v33  ;;  %v9137_v32 = vld [vmem:[%s13621_s1 + $0x6ac] ss:$16 sps:$4 sm:$0xff]   ;;  %v9132_v33 = vld [vmem:[%s13621_s1 + $0x6a0] ss:$16 sps:$4 sm:$0xff]  }
  0x9b   :  { %6403 = vmatpush1.bf16.msra.mxu0 %v9040_v34  ;;  %7059 = vmatpush1.bf16.msra.mxu1 %v9043_v35  ;;  %v9135_v34 = vld [vmem:[%s13621_s1 + $0x6a8] ss:$16 sps:$4 sm:$0xff]   ;;  %v9140_v35 = vld [vmem:[%s13621_s1 + $0x6c4] ss:$16 sps:$4 sm:$0xff]  }
  0x9c   :  { %6404 = vmatprep.subr.bf16.mxu0 %v9048_v36  ;;  %7060 = vmatprep.subr.bf16.mxu1 %v9051_v37  ;;  %v9143_v36 = vld [vmem:[%s13621_s1 + $0x6cc] ss:$16 sps:$4 sm:$0xff]   ;;  %v9138_v37 = vld [vmem:[%s13621_s1 + $0x6c0] ss:$16 sps:$4 sm:$0xff]  }
  0x9f   :  { %6405 = vmatpush1.bf16.msra.mxu0 %v9046_v38  ;;  %7061 = vmatpush1.bf16.msra.mxu1 %v9049_v39  ;;  %v9141_v38 = vld [vmem:[%s13621_s1 + $0x6c8] ss:$16 sps:$4 sm:$0xff]   ;;  %v9146_v39 = vld [vmem:[%s13621_s1 + $0x6e4] ss:$16 sps:$4 sm:$0xff]  }
  0xa0   :  { %6406 = vmatprep.subr.bf16.mxu0 %v9054_v40  ;;  %7062 = vmatprep.subr.bf16.mxu1 %v9057_v41  ;;  %v9149_v40 = vld [vmem:[%s13621_s1 + $0x6ec] ss:$16 sps:$4 sm:$0xff]   ;;  %v9144_v41 = vld [vmem:[%s13621_s1 + $0x6e0] ss:$16 sps:$4 sm:$0xff]  }
  0xa3   :  { %6407 = vmatpush1.bf16.msra.mxu0 %v9052_v42  ;;  %7063 = vmatpush1.bf16.msra.mxu1 %v9055_v43  ;;  %v9147_v42 = vld [vmem:[%s13621_s1 + $0x6e8] ss:$16 sps:$4 sm:$0xff]   ;;  %v9152_v43 = vld [vmem:[%s13621_s1 + $0x704] ss:$16 sps:$4 sm:$0xff]  }
  0xa4   :  { %6408 = vmatprep.subr.bf16.mxu0 %v9060_v44  ;;  %7064 = vmatprep.subr.bf16.mxu1 %v9063_v45  ;;  %v9155_v44 = vld [vmem:[%s13621_s1 + $0x70c] ss:$16 sps:$4 sm:$0xff]   ;;  %v9150_v45 = vld [vmem:[%s13621_s1 + $0x700] ss:$16 sps:$4 sm:$0xff]  }
  0xa7   :  { %6409 = vmatpush1.bf16.msra.mxu0 %v9058_v46  ;;  %7065 = vmatpush1.bf16.msra.mxu1 %v9061_v47  ;;  %v9153_v46 = vld [vmem:[%s13621_s1 + $0x708] ss:$16 sps:$4 sm:$0xff]   ;;  %v9158_v47 = vld [vmem:[%s13621_s1 + $0x724] ss:$16 sps:$4 sm:$0xff]  }
  0xa8   :  { %6410 = vmatprep.subr.bf16.mxu0 %v9066_v48  ;;  %7066 = vmatprep.subr.bf16.mxu1 %v9069_v49  ;;  %v9161_v48 = vld [vmem:[%s13621_s1 + $0x72c] ss:$16 sps:$4 sm:$0xff]   ;;  %v9156_v49 = vld [vmem:[%s13621_s1 + $0x720] ss:$16 sps:$4 sm:$0xff]  }
  0xab   :  { %6411 = vmatpush1.bf16.msra.mxu0 %v9064_v50  ;;  %7067 = vmatpush1.bf16.msra.mxu1 %v9067_v51  ;;  %v9159_v50 = vld [vmem:[%s13621_s1 + $0x728] ss:$16 sps:$4 sm:$0xff]   ;;  %v9164_v51 = vld [vmem:[%s13621_s1 + $0x744] ss:$16 sps:$4 sm:$0xff]  }
  0xac   :  { %6412 = vmatprep.subr.bf16.mxu0 %v9072_v52  ;;  %7068 = vmatprep.subr.bf16.mxu1 %v9075_v53  ;;  %v9167_v52 = vld [vmem:[%s13621_s1 + $0x74c] ss:$16 sps:$4 sm:$0xff]   ;;  %v9162_v53 = vld [vmem:[%s13621_s1 + $0x740] ss:$16 sps:$4 sm:$0xff]  }
  0xaf   :  { %6413 = vmatpush1.bf16.msra.mxu0 %v9070_v54  ;;  %7069 = vmatpush1.bf16.msra.mxu1 %v9073_v55  ;;  %v9165_v54 = vld [vmem:[%s13621_s1 + $0x748] ss:$16 sps:$4 sm:$0xff]   ;;  %v9170_v55 = vld [vmem:[%s13621_s1 + $0x764] ss:$16 sps:$4 sm:$0xff]  }
  0xb0   :  { %6414 = vmatprep.subr.bf16.mxu0 %v9078_v56  ;;  %7070 = vmatprep.subr.bf16.mxu1 %v9081_v57  ;;  %v9173_v56 = vld [vmem:[%s13621_s1 + $0x76c] ss:$16 sps:$4 sm:$0xff]   ;;  %v9168_v57 = vld [vmem:[%s13621_s1 + $0x760] ss:$16 sps:$4 sm:$0xff]  }
  0xb3   :  { %6415 = vmatpush1.bf16.msra.mxu0 %v9076_v58  ;;  %7071 = vmatpush1.bf16.msra.mxu1 %v9079_v59  ;;  %v9171_v58 = vld [vmem:[%s13621_s1 + $0x768] ss:$16 sps:$4 sm:$0xff]   ;;  %v9176_v59 = vld [vmem:[%s13621_s1 + $0x784] ss:$16 sps:$4 sm:$0xff]  }
  0xb4   :  { %6416 = vmatprep.subr.bf16.mxu0 %v9084_v60  ;;  %7072 = vmatprep.subr.bf16.mxu1 %v9087_v61  ;;  %v9179_v60 = vld [vmem:[%s13621_s1 + $0x78c] ss:$16 sps:$4 sm:$0xff]   ;;  %v9174_v61 = vld [vmem:[%s13621_s1 + $0x780] ss:$16 sps:$4 sm:$0xff]  }
  0xb7   :  { %6417 = vmatpush1.bf16.msra.mxu0 %v9082_v62  ;;  %7073 = vmatpush1.bf16.msra.mxu1 %v9085_v63  ;;  %v9177_v62 = vld [vmem:[%s13621_s1 + $0x788] ss:$16 sps:$4 sm:$0xff]   ;;  %v9182_v63 = vld [vmem:[%s13621_s1 + $0x7a4] ss:$16 sps:$4 sm:$0xff]  }
  0xb8   :  { %6418 = vmatprep.subr.bf16.mxu0 %v9090_v0  ;;  %7074 = vmatprep.subr.bf16.mxu1 %v9093_v1  ;;  %v9185_v0 = vld [vmem:[%s13621_s1 + $0x7ac] ss:$16 sps:$4 sm:$0xff]   ;;  %v9180_v1 = vld [vmem:[%s13621_s1 + $0x7a0] ss:$16 sps:$4 sm:$0xff]  }
  0xbb   :  { %6419 = vmatpush1.bf16.msra.mxu0 %v9088_v2  ;;  %7075 = vmatpush1.bf16.msra.mxu1 %v9091_v3  ;;  %v9183_v2 = vld [vmem:[%s13621_s1 + $0x7a8] ss:$16 sps:$4 sm:$0xff]   ;;  %v9188_v3 = vld [vmem:[%s13621_s1 + $0x7c4] ss:$16 sps:$4 sm:$0xff]  }
  0xbc   :  { %6420 = vmatprep.subr.bf16.mxu0 %v9096_v4  ;;  %7076 = vmatprep.subr.bf16.mxu1 %v9099_v5  ;;  %v9191_v4 = vld [vmem:[%s13621_s1 + $0x7cc] ss:$16 sps:$4 sm:$0xff]   ;;  %v9186_v5 = vld [vmem:[%s13621_s1 + $0x7c0] ss:$16 sps:$4 sm:$0xff]  }
  0xbf   :  { %6421 = vmatpush1.bf16.msra.mxu0 %v9094_v6  ;;  %7077 = vmatpush1.bf16.msra.mxu1 %v9097_v7  ;;  %v9189_v6 = vld [vmem:[%s13621_s1 + $0x7c8] ss:$16 sps:$4 sm:$0xff]   ;;  %v9194_v7 = vld [vmem:[%s13621_s1 + $0x7e4] ss:$16 sps:$4 sm:$0xff]  }
  0xc0   :  { %6431 = vmatprep.subr.bf16.mxu0 %v9104_v8  ;;  %7087 = vmatprep.subr.bf16.mxu1 %v9107_v9  ;;  %v9197_v8 = vld [vmem:[%s13621_s1 + $0x7ec] ss:$16 sps:$4 sm:$0xff]   ;;  %v9192_v9 = vld [vmem:[%s13621_s1 + $0x7e0] ss:$16 sps:$4 sm:$0xff]  }
  0xc2   :  { %6423 = vmatmul.mubr.bf16.vlgmr.msra.gmra.mrb[0].mxu0 %v7632_v12  ;;  %7079 = vmatmul.mubr.bf16.vlgmr.msra.gmra.mrb[0].mxu1 %v7632_v12  ;;  %v9202_v12 = vld [vmem:[%s13621_s1 + $0x804] ss:$16 sps:$4 sm:$0xff]  }
  0xc3   :  { %6432 = vmatpush1.bf16.msra.mxu0 %v9102_v10  ;;  %7088 = vmatpush1.bf16.msra.mxu1 %v9105_v13  ;;  %v9195_v10 = vld [vmem:[%s13621_s1 + $0x7e8] ss:$16 sps:$4 sm:$0xff]   ;;  %v9205_v13 = vld [vmem:[%s13621_s1 + $0x80c] ss:$16 sps:$4 sm:$0xff]  }
  0xc4   :  { %6433 = vmatprep.subr.bf16.mxu0 %v9110_v15  ;;  %7089 = vmatprep.subr.bf16.mxu1 %v9113_v11  ;;  %v9200_v15 = vld [vmem:[%s13621_s1 + $0x800] ss:$16 sps:$4 sm:$0xff]   ;;  %v7634_v11 = vcombine.low %v11008_v14, %v11008_v14  ;;  %v9211_v14 = vld [vmem:[%s13621_s1 + $0x82c] ss:$16 sps:$4 sm:$0xff]  }
  0xc5   :  { %6463 = vmatprep.mubr.bf16.mxu0 %v7635_v16  ;;  %7119 = vmatprep.mubr.bf16.mxu1 %v7635_v16  ;;  %v11206_v16 = vld [vmem:[%s13622_s0 + $0x20] sm:$0xff] }
  0xc7   :  { %6434 = vmatpush1.bf16.msra.mxu0 %v9108_v17  ;;  %7090 = vmatpush1.bf16.msra.mxu1 %v9111_v18  ;;  %v9203_v17 = vld [vmem:[%s13621_s1 + $0x808] ss:$16 sps:$4 sm:$0xff]   ;;  %v9208_v18 = vld [vmem:[%s13621_s1 + $0x824] ss:$16 sps:$4 sm:$0xff]  }
  0xc8   :  { %6435 = vmatprep.subr.bf16.mxu0 %v9116_v19  ;;  %7091 = vmatprep.subr.bf16.mxu1 %v9119_v20  ;;  %v7637_v19 = vcombine.high %v11206_v16, %v11206_v16  ;;  %v9206_v20 = vld [vmem:[%s13621_s1 + $0x820] ss:$16 sps:$4 sm:$0xff]  }
  0xcb   :  { %6436 = vmatpush1.bf16.msra.mxu0 %v9114_v21  ;;  %7092 = vmatpush1.bf16.msra.mxu1 %v9117_v22  ;;  %v9209_v21 = vld [vmem:[%s13621_s1 + $0x828] ss:$16 sps:$4 sm:$0xff]   ;;  %v9214_v22 = vld [vmem:[%s13621_s1 + $0x844] ss:$16 sps:$4 sm:$0xff]  }
  0xcc   :  { %6437 = vmatprep.subr.bf16.mxu0 %v9122_v23  ;;  %7093 = vmatprep.subr.bf16.mxu1 %v9125_v24  ;;  %v9217_v23 = vld [vmem:[%s13621_s1 + $0x84c] ss:$16 sps:$4 sm:$0xff]   ;;  %v9212_v24 = vld [vmem:[%s13621_s1 + $0x840] ss:$16 sps:$4 sm:$0xff]  }
  0xcf   :  { %6438 = vmatpush1.bf16.msra.mxu0 %v9120_v25  ;;  %7094 = vmatpush1.bf16.msra.mxu1 %v9123_v26  ;;  %v9215_v25 = vld [vmem:[%s13621_s1 + $0x848] ss:$16 sps:$4 sm:$0xff]   ;;  %v9220_v26 = vld [vmem:[%s13621_s1 + $0x864] ss:$16 sps:$4 sm:$0xff]  }
  0xd0   :  { %6439 = vmatprep.subr.bf16.mxu0 %v9128_v27  ;;  %7095 = vmatprep.subr.bf16.mxu1 %v9131_v28  ;;  %v9223_v27 = vld [vmem:[%s13621_s1 + $0x86c] ss:$16 sps:$4 sm:$0xff]   ;;  %v9218_v28 = vld [vmem:[%s13621_s1 + $0x860] ss:$16 sps:$4 sm:$0xff]  }
  0xd3   :  { %6440 = vmatpush1.bf16.msra.mxu0 %v9126_v29  ;;  %7096 = vmatpush1.bf16.msra.mxu1 %v9129_v30  ;;  %v9221_v29 = vld [vmem:[%s13621_s1 + $0x868] ss:$16 sps:$4 sm:$0xff]   ;;  %v9226_v30 = vld [vmem:[%s13621_s1 + $0x884] ss:$16 sps:$4 sm:$0xff]  }
  0xd4   :  { %6441 = vmatprep.subr.bf16.mxu0 %v9134_v31  ;;  %7097 = vmatprep.subr.bf16.mxu1 %v9137_v32  ;;  %v9229_v31 = vld [vmem:[%s13621_s1 + $0x88c] ss:$16 sps:$4 sm:$0xff]   ;;  %v9224_v32 = vld [vmem:[%s13621_s1 + $0x880] ss:$16 sps:$4 sm:$0xff]  }
  0xd7   :  { %6442 = vmatpush1.bf16.msra.mxu0 %v9132_v33  ;;  %7098 = vmatpush1.bf16.msra.mxu1 %v9135_v34  ;;  %v9227_v33 = vld [vmem:[%s13621_s1 + $0x888] ss:$16 sps:$4 sm:$0xff]   ;;  %v9232_v34 = vld [vmem:[%s13621_s1 + $0x8a4] ss:$16 sps:$4 sm:$0xff]  }
  0xd8   :  { %6443 = vmatprep.subr.bf16.mxu0 %v9140_v35  ;;  %7099 = vmatprep.subr.bf16.mxu1 %v9143_v36  ;;  %v9235_v35 = vld [vmem:[%s13621_s1 + $0x8ac] ss:$16 sps:$4 sm:$0xff]   ;;  %v9230_v36 = vld [vmem:[%s13621_s1 + $0x8a0] ss:$16 sps:$4 sm:$0xff]  }
  0xdb   :  { %6444 = vmatpush1.bf16.msra.mxu0 %v9138_v37  ;;  %7100 = vmatpush1.bf16.msra.mxu1 %v9141_v38  ;;  %v9233_v37 = vld [vmem:[%s13621_s1 + $0x8a8] ss:$16 sps:$4 sm:$0xff]   ;;  %v9238_v38 = vld [vmem:[%s13621_s1 + $0x8c4] ss:$16 sps:$4 sm:$0xff]  }
  0xdc   :  { %6445 = vmatprep.subr.bf16.mxu0 %v9146_v39  ;;  %7101 = vmatprep.subr.bf16.mxu1 %v9149_v40  ;;  %v9241_v39 = vld [vmem:[%s13621_s1 + $0x8cc] ss:$16 sps:$4 sm:$0xff]   ;;  %v9236_v40 = vld [vmem:[%s13621_s1 + $0x8c0] ss:$16 sps:$4 sm:$0xff]  }
  0xdf   :  { %6446 = vmatpush1.bf16.msra.mxu0 %v9144_v41  ;;  %7102 = vmatpush1.bf16.msra.mxu1 %v9147_v42  ;;  %v9239_v41 = vld [vmem:[%s13621_s1 + $0x8c8] ss:$16 sps:$4 sm:$0xff]   ;;  %v9244_v42 = vld [vmem:[%s13621_s1 + $0x8e4] ss:$16 sps:$4 sm:$0xff]  }
  0xe0   :  { %6447 = vmatprep.subr.bf16.mxu0 %v9152_v43  ;;  %7103 = vmatprep.subr.bf16.mxu1 %v9155_v44  ;;  %v9247_v43 = vld [vmem:[%s13621_s1 + $0x8ec] ss:$16 sps:$4 sm:$0xff]   ;;  %v9242_v44 = vld [vmem:[%s13621_s1 + $0x8e0] ss:$16 sps:$4 sm:$0xff]  }
  0xe3   :  { %6448 = vmatpush1.bf16.msra.mxu0 %v9150_v45  ;;  %7104 = vmatpush1.bf16.msra.mxu1 %v9153_v46  ;;  %v9245_v45 = vld [vmem:[%s13621_s1 + $0x8e8] ss:$16 sps:$4 sm:$0xff]   ;;  %v9250_v46 = vld [vmem:[%s13621_s1 + $0x904] ss:$16 sps:$4 sm:$0xff]  }
  0xe4   :  { %6449 = vmatprep.subr.bf16.mxu0 %v9158_v47  ;;  %7105 = vmatprep.subr.bf16.mxu1 %v9161_v48  ;;  %v9253_v47 = vld [vmem:[%s13621_s1 + $0x90c] ss:$16 sps:$4 sm:$0xff]   ;;  %v9248_v48 = vld [vmem:[%s13621_s1 + $0x900] ss:$16 sps:$4 sm:$0xff]  }
  0xe7   :  { %6450 = vmatpush1.bf16.msra.mxu0 %v9156_v49  ;;  %7106 = vmatpush1.bf16.msra.mxu1 %v9159_v50  ;;  %v9251_v49 = vld [vmem:[%s13621_s1 + $0x908] ss:$16 sps:$4 sm:$0xff]   ;;  %v9256_v50 = vld [vmem:[%s13621_s1 + $0x924] ss:$16 sps:$4 sm:$0xff]  }
  0xe8   :  { %6451 = vmatprep.subr.bf16.mxu0 %v9164_v51  ;;  %7107 = vmatprep.subr.bf16.mxu1 %v9167_v52  ;;  %v9259_v51 = vld [vmem:[%s13621_s1 + $0x92c] ss:$16 sps:$4 sm:$0xff]   ;;  %v9254_v52 = vld [vmem:[%s13621_s1 + $0x920] ss:$16 sps:$4 sm:$0xff]  }
  0xeb   :  { %6452 = vmatpush1.bf16.msra.mxu0 %v9162_v53  ;;  %7108 = vmatpush1.bf16.msra.mxu1 %v9165_v54  ;;  %v9257_v53 = vld [vmem:[%s13621_s1 + $0x928] ss:$16 sps:$4 sm:$0xff]   ;;  %v9262_v54 = vld [vmem:[%s13621_s1 + $0x944] ss:$16 sps:$4 sm:$0xff]  }
  0xec   :  { %6453 = vmatprep.subr.bf16.mxu0 %v9170_v55  ;;  %7109 = vmatprep.subr.bf16.mxu1 %v9173_v56  ;;  %v9265_v55 = vld [vmem:[%s13621_s1 + $0x94c] ss:$16 sps:$4 sm:$0xff]   ;;  %v9260_v56 = vld [vmem:[%s13621_s1 + $0x940] ss:$16 sps:$4 sm:$0xff]  }
  0xef   :  { %6454 = vmatpush1.bf16.msra.mxu0 %v9168_v57  ;;  %7110 = vmatpush1.bf16.msra.mxu1 %v9171_v58  ;;  %v9263_v57 = vld [vmem:[%s13621_s1 + $0x948] ss:$16 sps:$4 sm:$0xff]   ;;  %v9268_v58 = vld [vmem:[%s13621_s1 + $0x964] ss:$16 sps:$4 sm:$0xff]  }
  0xf0   :  { %6455 = vmatprep.subr.bf16.mxu0 %v9176_v59  ;;  %7111 = vmatprep.subr.bf16.mxu1 %v9179_v60  ;;  %v9271_v59 = vld [vmem:[%s13621_s1 + $0x96c] ss:$16 sps:$4 sm:$0xff]   ;;  %v9266_v60 = vld [vmem:[%s13621_s1 + $0x960] ss:$16 sps:$4 sm:$0xff]  }
  0xf3   :  { %6456 = vmatpush1.bf16.msra.mxu0 %v9174_v61  ;;  %7112 = vmatpush1.bf16.msra.mxu1 %v9177_v62  ;;  %v9269_v61 = vld [vmem:[%s13621_s1 + $0x968] ss:$16 sps:$4 sm:$0xff]   ;;  %v9274_v62 = vld [vmem:[%s13621_s1 + $0x984] ss:$16 sps:$4 sm:$0xff]  }
  0xf4   :  { %6457 = vmatprep.subr.bf16.mxu0 %v9182_v63  ;;  %7113 = vmatprep.subr.bf16.mxu1 %v9185_v0  ;;  %v9277_v63 = vld [vmem:[%s13621_s1 + $0x98c] ss:$16 sps:$4 sm:$0xff]   ;;  %v9272_v0 = vld [vmem:[%s13621_s1 + $0x980] ss:$16 sps:$4 sm:$0xff]  }
  0xf7   :  { %6458 = vmatpush1.bf16.msra.mxu0 %v9180_v1  ;;  %7114 = vmatpush1.bf16.msra.mxu1 %v9183_v2  ;;  %v9275_v1 = vld [vmem:[%s13621_s1 + $0x988] ss:$16 sps:$4 sm:$0xff]   ;;  %v9280_v2 = vld [vmem:[%s13621_s1 + $0x9a4] ss:$16 sps:$4 sm:$0xff]  }
  0xf8   :  { %6459 = vmatprep.subr.bf16.mxu0 %v9188_v3  ;;  %7115 = vmatprep.subr.bf16.mxu1 %v9191_v4  ;;  %v9283_v3 = vld [vmem:[%s13621_s1 + $0x9ac] ss:$16 sps:$4 sm:$0xff]   ;;  %v9278_v4 = vld [vmem:[%s13621_s1 + $0x9a0] ss:$16 sps:$4 sm:$0xff]  }
  0xfb   :  { %6460 = vmatpush1.bf16.msra.mxu0 %v9186_v5  ;;  %7116 = vmatpush1.bf16.msra.mxu1 %v9189_v6  ;;  %v9281_v5 = vld [vmem:[%s13621_s1 + $0x9a8] ss:$16 sps:$4 sm:$0xff]   ;;  %v9286_v6 = vld [vmem:[%s13621_s1 + $0x9c4] ss:$16 sps:$4 sm:$0xff]  }
  0xfc   :  { %6461 = vmatprep.subr.bf16.mxu0 %v9194_v7  ;;  %7117 = vmatprep.subr.bf16.mxu1 %v9197_v8  ;;  %v9289_v7 = vld [vmem:[%s13621_s1 + $0x9cc] ss:$16 sps:$4 sm:$0xff]   ;;  %v9284_v8 = vld [vmem:[%s13621_s1 + $0x9c0] ss:$16 sps:$4 sm:$0xff]  }
  0xff   :  { %6462 = vmatpush1.bf16.msra.mxu0 %v9192_v9  ;;  %7118 = vmatpush1.bf16.msra.mxu1 %v9195_v10  ;;  %v9287_v9 = vld [vmem:[%s13621_s1 + $0x9c8] ss:$16 sps:$4 sm:$0xff]   ;;  %v9292_v10 = vld [vmem:[%s13621_s1 + $0x9e4] ss:$16 sps:$4 sm:$0xff]  }
 0x100   :  { %6472 = vmatprep.subr.bf16.mxu0 %v9202_v12  ;;  %7128 = vmatprep.subr.bf16.mxu1 %v9205_v13  ;;  %v9295_v12 = vld [vmem:[%s13621_s1 + $0x9ec] ss:$16 sps:$4 sm:$0xff]   ;;  %v9290_v13 = vld [vmem:[%s13621_s1 + $0x9e0] ss:$16 sps:$4 sm:$0xff]  }
 0x102   :  { %6464 = vmatmul.mubr.bf16.vlgmr.msra.gmra.mrb[0].mxu0 %v7634_v11  ;;  %7120 = vmatmul.mubr.bf16.vlgmr.msra.gmra.mrb[0].mxu1 %v7634_v11  ;;  %v9300_v11 = vld [vmem:[%s13621_s1 + $0xa04] ss:$16 sps:$4 sm:$0xff]  }
 0x103   :  { %6473 = vmatpush1.bf16.msra.mxu0 %v9200_v15  ;;  %7129 = vmatpush1.bf16.msra.mxu1 %v9203_v17  ;;  %v9293_v15 = vld [vmem:[%s13621_s1 + $0x9e8] ss:$16 sps:$4 sm:$0xff]   ;;  %v9303_v17 = vld [vmem:[%s13621_s1 + $0xa0c] ss:$16 sps:$4 sm:$0xff]  }
 0x104   :  { %6474 = vmatprep.subr.bf16.mxu0 %v9208_v18  ;;  %7130 = vmatprep.subr.bf16.mxu1 %v9211_v14  ;;  %v11402_v18 = vld [vmem:[%s13622_s0 + $0x28] sm:$0xff]  ;;  %v7636_v14 = vcombine.low %v11206_v16, %v11206_v16 }
 0x105   :  { %6504 = vmatprep.mubr.bf16.mxu0 %v7637_v19  ;;  %7160 = vmatprep.mubr.bf16.mxu1 %v7637_v19  ;;  %v9298_v19 = vld [vmem:[%s13621_s1 + $0xa00] ss:$16 sps:$4 sm:$0xff]   ;;  %v9309_v16 = vld [vmem:[%s13621_s1 + $0xa2c] ss:$16 sps:$4 sm:$0xff]  }
 0x107   :  { %6475 = vmatpush1.bf16.msra.mxu0 %v9206_v20  ;;  %7131 = vmatpush1.bf16.msra.mxu1 %v9209_v21  ;;  %v9301_v20 = vld [vmem:[%s13621_s1 + $0xa08] ss:$16 sps:$4 sm:$0xff]   ;;  %v9306_v21 = vld [vmem:[%s13621_s1 + $0xa24] ss:$16 sps:$4 sm:$0xff]  }
 0x108   :  { %6476 = vmatprep.subr.bf16.mxu0 %v9214_v22  ;;  %7132 = vmatprep.subr.bf16.mxu1 %v9217_v23  ;;  %v7639_v22 = vcombine.high %v11402_v18, %v11402_v18  ;;  %v9304_v23 = vld [vmem:[%s13621_s1 + $0xa20] ss:$16 sps:$4 sm:$0xff]  }
 0x10b   :  { %6477 = vmatpush1.bf16.msra.mxu0 %v9212_v24  ;;  %7133 = vmatpush1.bf16.msra.mxu1 %v9215_v25  ;;  %v9307_v24 = vld [vmem:[%s13621_s1 + $0xa28] ss:$16 sps:$4 sm:$0xff]   ;;  %v9312_v25 = vld [vmem:[%s13621_s1 + $0xa44] ss:$16 sps:$4 sm:$0xff]  }
 0x10c   :  { %6478 = vmatprep.subr.bf16.mxu0 %v9220_v26  ;;  %7134 = vmatprep.subr.bf16.mxu1 %v9223_v27  ;;  %v9315_v26 = vld [vmem:[%s13621_s1 + $0xa4c] ss:$16 sps:$4 sm:$0xff]   ;;  %v9310_v27 = vld [vmem:[%s13621_s1 + $0xa40] ss:$16 sps:$4 sm:$0xff]  }
 0x10f   :  { %6479 = vmatpush1.bf16.msra.mxu0 %v9218_v28  ;;  %7135 = vmatpush1.bf16.msra.mxu1 %v9221_v29  ;;  %v9313_v28 = vld [vmem:[%s13621_s1 + $0xa48] ss:$16 sps:$4 sm:$0xff]   ;;  %v9318_v29 = vld [vmem:[%s13621_s1 + $0xa64] ss:$16 sps:$4 sm:$0xff]  }
 0x110   :  { %6480 = vmatprep.subr.bf16.mxu0 %v9226_v30  ;;  %7136 = vmatprep.subr.bf16.mxu1 %v9229_v31  ;;  %v9321_v30 = vld [vmem:[%s13621_s1 + $0xa6c] ss:$16 sps:$4 sm:$0xff]   ;;  %v9316_v31 = vld [vmem:[%s13621_s1 + $0xa60] ss:$16 sps:$4 sm:$0xff]  }
 0x113   :  { %6481 = vmatpush1.bf16.msra.mxu0 %v9224_v32  ;;  %7137 = vmatpush1.bf16.msra.mxu1 %v9227_v33  ;;  %v9319_v32 = vld [vmem:[%s13621_s1 + $0xa68] ss:$16 sps:$4 sm:$0xff]   ;;  %v9324_v33 = vld [vmem:[%s13621_s1 + $0xa84] ss:$16 sps:$4 sm:$0xff]  }
 0x114   :  { %6482 = vmatprep.subr.bf16.mxu0 %v9232_v34  ;;  %7138 = vmatprep.subr.bf16.mxu1 %v9235_v35  ;;  %v9327_v34 = vld [vmem:[%s13621_s1 + $0xa8c] ss:$16 sps:$4 sm:$0xff]   ;;  %v9322_v35 = vld [vmem:[%s13621_s1 + $0xa80] ss:$16 sps:$4 sm:$0xff]  }
 0x117   :  { %6483 = vmatpush1.bf16.msra.mxu0 %v9230_v36  ;;  %7139 = vmatpush1.bf16.msra.mxu1 %v9233_v37  ;;  %v9325_v36 = vld [vmem:[%s13621_s1 + $0xa88] ss:$16 sps:$4 sm:$0xff]   ;;  %v9330_v37 = vld [vmem:[%s13621_s1 + $0xaa4] ss:$16 sps:$4 sm:$0xff]  }
 0x118   :  { %6484 = vmatprep.subr.bf16.mxu0 %v9238_v38  ;;  %7140 = vmatprep.subr.bf16.mxu1 %v9241_v39  ;;  %v9333_v38 = vld [vmem:[%s13621_s1 + $0xaac] ss:$16 sps:$4 sm:$0xff]   ;;  %v9328_v39 = vld [vmem:[%s13621_s1 + $0xaa0] ss:$16 sps:$4 sm:$0xff]  }
 0x11b   :  { %6485 = vmatpush1.bf16.msra.mxu0 %v9236_v40  ;;  %7141 = vmatpush1.bf16.msra.mxu1 %v9239_v41  ;;  %v9331_v40 = vld [vmem:[%s13621_s1 + $0xaa8] ss:$16 sps:$4 sm:$0xff]   ;;  %v9336_v41 = vld [vmem:[%s13621_s1 + $0xac4] ss:$16 sps:$4 sm:$0xff]  }
 0x11c   :  { %6486 = vmatprep.subr.bf16.mxu0 %v9244_v42  ;;  %7142 = vmatprep.subr.bf16.mxu1 %v9247_v43  ;;  %v9339_v42 = vld [vmem:[%s13621_s1 + $0xacc] ss:$16 sps:$4 sm:$0xff]   ;;  %v9334_v43 = vld [vmem:[%s13621_s1 + $0xac0] ss:$16 sps:$4 sm:$0xff]  }
 0x11f   :  { %6487 = vmatpush1.bf16.msra.mxu0 %v9242_v44  ;;  %7143 = vmatpush1.bf16.msra.mxu1 %v9245_v45  ;;  %v9337_v44 = vld [vmem:[%s13621_s1 + $0xac8] ss:$16 sps:$4 sm:$0xff]   ;;  %v9342_v45 = vld [vmem:[%s13621_s1 + $0xae4] ss:$16 sps:$4 sm:$0xff]  }
 0x120   :  { %6488 = vmatprep.subr.bf16.mxu0 %v9250_v46  ;;  %7144 = vmatprep.subr.bf16.mxu1 %v9253_v47  ;;  %v9345_v46 = vld [vmem:[%s13621_s1 + $0xaec] ss:$16 sps:$4 sm:$0xff]   ;;  %v9340_v47 = vld [vmem:[%s13621_s1 + $0xae0] ss:$16 sps:$4 sm:$0xff]  }
 0x123   :  { %6489 = vmatpush1.bf16.msra.mxu0 %v9248_v48  ;;  %7145 = vmatpush1.bf16.msra.mxu1 %v9251_v49  ;;  %v9343_v48 = vld [vmem:[%s13621_s1 + $0xae8] ss:$16 sps:$4 sm:$0xff]   ;;  %v9348_v49 = vld [vmem:[%s13621_s1 + $0xb04] ss:$16 sps:$4 sm:$0xff]  }
 0x124   :  { %6490 = vmatprep.subr.bf16.mxu0 %v9256_v50  ;;  %7146 = vmatprep.subr.bf16.mxu1 %v9259_v51  ;;  %v9351_v50 = vld [vmem:[%s13621_s1 + $0xb0c] ss:$16 sps:$4 sm:$0xff]   ;;  %v9346_v51 = vld [vmem:[%s13621_s1 + $0xb00] ss:$16 sps:$4 sm:$0xff]  }
 0x127   :  { %6491 = vmatpush1.bf16.msra.mxu0 %v9254_v52  ;;  %7147 = vmatpush1.bf16.msra.mxu1 %v9257_v53  ;;  %v9349_v52 = vld [vmem:[%s13621_s1 + $0xb08] ss:$16 sps:$4 sm:$0xff]   ;;  %v9354_v53 = vld [vmem:[%s13621_s1 + $0xb24] ss:$16 sps:$4 sm:$0xff]  }
 0x128   :  { %6492 = vmatprep.subr.bf16.mxu0 %v9262_v54  ;;  %7148 = vmatprep.subr.bf16.mxu1 %v9265_v55  ;;  %v9357_v54 = vld [vmem:[%s13621_s1 + $0xb2c] ss:$16 sps:$4 sm:$0xff]   ;;  %v9352_v55 = vld [vmem:[%s13621_s1 + $0xb20] ss:$16 sps:$4 sm:$0xff]  }
 0x12b   :  { %6493 = vmatpush1.bf16.msra.mxu0 %v9260_v56  ;;  %7149 = vmatpush1.bf16.msra.mxu1 %v9263_v57  ;;  %v9355_v56 = vld [vmem:[%s13621_s1 + $0xb28] ss:$16 sps:$4 sm:$0xff]   ;;  %v9360_v57 = vld [vmem:[%s13621_s1 + $0xb44] ss:$16 sps:$4 sm:$0xff]  }
 0x12c   :  { %6494 = vmatprep.subr.bf16.mxu0 %v9268_v58  ;;  %7150 = vmatprep.subr.bf16.mxu1 %v9271_v59  ;;  %v9363_v58 = vld [vmem:[%s13621_s1 + $0xb4c] ss:$16 sps:$4 sm:$0xff]   ;;  %v9358_v59 = vld [vmem:[%s13621_s1 + $0xb40] ss:$16 sps:$4 sm:$0xff]  }
 0x12f   :  { %6495 = vmatpush1.bf16.msra.mxu0 %v9266_v60  ;;  %7151 = vmatpush1.bf16.msra.mxu1 %v9269_v61  ;;  %v9361_v60 = vld [vmem:[%s13621_s1 + $0xb48] ss:$16 sps:$4 sm:$0xff]   ;;  %v9366_v61 = vld [vmem:[%s13621_s1 + $0xb64] ss:$16 sps:$4 sm:$0xff]  }
 0x130   :  { %6496 = vmatprep.subr.bf16.mxu0 %v9274_v62  ;;  %7152 = vmatprep.subr.bf16.mxu1 %v9277_v63  ;;  %v9369_v62 = vld [vmem:[%s13621_s1 + $0xb6c] ss:$16 sps:$4 sm:$0xff]   ;;  %v9364_v63 = vld [vmem:[%s13621_s1 + $0xb60] ss:$16 sps:$4 sm:$0xff]  }
 0x133   :  { %6497 = vmatpush1.bf16.msra.mxu0 %v9272_v0  ;;  %7153 = vmatpush1.bf16.msra.mxu1 %v9275_v1  ;;  %v9367_v0 = vld [vmem:[%s13621_s1 + $0xb68] ss:$16 sps:$4 sm:$0xff]   ;;  %v9372_v1 = vld [vmem:[%s13621_s1 + $0xb84] ss:$16 sps:$4 sm:$0xff]  }
 0x134   :  { %6498 = vmatprep.subr.bf16.mxu0 %v9280_v2  ;;  %7154 = vmatprep.subr.bf16.mxu1 %v9283_v3  ;;  %v9375_v2 = vld [vmem:[%s13621_s1 + $0xb8c] ss:$16 sps:$4 sm:$0xff]   ;;  %v9370_v3 = vld [vmem:[%s13621_s1 + $0xb80] ss:$16 sps:$4 sm:$0xff]  }
 0x137   :  { %6499 = vmatpush1.bf16.msra.mxu0 %v9278_v4  ;;  %7155 = vmatpush1.bf16.msra.mxu1 %v9281_v5  ;;  %v9373_v4 = vld [vmem:[%s13621_s1 + $0xb88] ss:$16 sps:$4 sm:$0xff]   ;;  %v9378_v5 = vld [vmem:[%s13621_s1 + $0xba4] ss:$16 sps:$4 sm:$0xff]  }
 0x138   :  { %6500 = vmatprep.subr.bf16.mxu0 %v9286_v6  ;;  %7156 = vmatprep.subr.bf16.mxu1 %v9289_v7  ;;  %v9381_v6 = vld [vmem:[%s13621_s1 + $0xbac] ss:$16 sps:$4 sm:$0xff]   ;;  %v9376_v7 = vld [vmem:[%s13621_s1 + $0xba0] ss:$16 sps:$4 sm:$0xff]  }
 0x13b   :  { %6501 = vmatpush1.bf16.msra.mxu0 %v9284_v8  ;;  %7157 = vmatpush1.bf16.msra.mxu1 %v9287_v9  ;;  %v9379_v8 = vld [vmem:[%s13621_s1 + $0xba8] ss:$16 sps:$4 sm:$0xff]   ;;  %v9384_v9 = vld [vmem:[%s13621_s1 + $0xbc4] ss:$16 sps:$4 sm:$0xff]  }
 0x13c   :  { %6502 = vmatprep.subr.bf16.mxu0 %v9292_v10  ;;  %7158 = vmatprep.subr.bf16.mxu1 %v9295_v12  ;;  %v9387_v10 = vld [vmem:[%s13621_s1 + $0xbcc] ss:$16 sps:$4 sm:$0xff]   ;;  %v9382_v12 = vld [vmem:[%s13621_s1 + $0xbc0] ss:$16 sps:$4 sm:$0xff]  }
 0x13f   :  { %6503 = vmatpush1.bf16.msra.mxu0 %v9290_v13  ;;  %7159 = vmatpush1.bf16.msra.mxu1 %v9293_v15  ;;  %v9385_v13 = vld [vmem:[%s13621_s1 + $0xbc8] ss:$16 sps:$4 sm:$0xff]   ;;  %v9390_v15 = vld [vmem:[%s13621_s1 + $0xbe4] ss:$16 sps:$4 sm:$0xff]  }
 0x140   :  { %6513 = vmatprep.subr.bf16.mxu0 %v9300_v11  ;;  %7169 = vmatprep.subr.bf16.mxu1 %v9303_v17  ;;  %v9393_v11 = vld [vmem:[%s13621_s1 + $0xbec] ss:$16 sps:$4 sm:$0xff]   ;;  %v9388_v17 = vld [vmem:[%s13621_s1 + $0xbe0] ss:$16 sps:$4 sm:$0xff]  }
 0x142   :  { %6505 = vmatmul.mubr.bf16.vlgmr.msra.gmra.mrb[0].mxu0 %v7636_v14  ;;  %7161 = vmatmul.mubr.bf16.vlgmr.msra.gmra.mrb[0].mxu1 %v7636_v14  ;;  %v9391_v14 = vld [vmem:[%s13621_s1 + $0xbe8] ss:$16 sps:$4 sm:$0xff]  }
 0x143   :  { %6514 = vmatpush1.bf16.msra.mxu0 %v9298_v19  ;;  %7170 = vmatpush1.bf16.msra.mxu1 %v9301_v20  ;;  %v9398_v19 = vld [vmem:[%s13621_s1 + $0xc04] ss:$16 sps:$4 sm:$0xff]   ;;  %v9401_v20 = vld [vmem:[%s13621_s1 + $0xc0c] ss:$16 sps:$4 sm:$0xff]  }
 0x144   :  { %6515 = vmatprep.subr.bf16.mxu0 %v9306_v21  ;;  %7171 = vmatprep.subr.bf16.mxu1 %v9309_v16  ;;  %v11603_v21 = vld [vmem:[%s13622_s0 + $0x30] sm:$0xff]  ;;  %v7638_v16 = vcombine.low %v11402_v18, %v11402_v18  ;;  %v9407_v18 = vld [vmem:[%s13621_s1 + $0xc2c] ss:$16 sps:$4 sm:$0xff]  }
 0x145   :  { %6545 = vmatprep.mubr.bf16.mxu0 %v7639_v22  ;;  %7201 = vmatprep.mubr.bf16.mxu1 %v7639_v22  ;;  %v9396_v22 = vld [vmem:[%s13621_s1 + $0xc00] ss:$16 sps:$4 sm:$0xff]  }
 0x147   :  { %6516 = vmatpush1.bf16.msra.mxu0 %v9304_v23  ;;  %7172 = vmatpush1.bf16.msra.mxu1 %v9307_v24  ;;  %v9399_v23 = vld [vmem:[%s13621_s1 + $0xc08] ss:$16 sps:$4 sm:$0xff]   ;;  %v9404_v24 = vld [vmem:[%s13621_s1 + $0xc24] ss:$16 sps:$4 sm:$0xff]  }
 0x148   :  { %6517 = vmatprep.subr.bf16.mxu0 %v9312_v25  ;;  %7173 = vmatprep.subr.bf16.mxu1 %v9315_v26  ;;  %v7641_v25 = vcombine.high %v11603_v21, %v11603_v21  ;;  %v9402_v26 = vld [vmem:[%s13621_s1 + $0xc20] ss:$16 sps:$4 sm:$0xff]  }
 0x14b   :  { %6518 = vmatpush1.bf16.msra.mxu0 %v9310_v27  ;;  %7174 = vmatpush1.bf16.msra.mxu1 %v9313_v28  ;;  %v9405_v27 = vld [vmem:[%s13621_s1 + $0xc28] ss:$16 sps:$4 sm:$0xff]   ;;  %v9410_v28 = vld [vmem:[%s13621_s1 + $0xc44] ss:$16 sps:$4 sm:$0xff]  }
 0x14c   :  { %6519 = vmatprep.subr.bf16.mxu0 %v9318_v29  ;;  %7175 = vmatprep.subr.bf16.mxu1 %v9321_v30  ;;  %v9413_v29 = vld [vmem:[%s13621_s1 + $0xc4c] ss:$16 sps:$4 sm:$0xff]   ;;  %v9408_v30 = vld [vmem:[%s13621_s1 + $0xc40] ss:$16 sps:$4 sm:$0xff]  }
 0x14f   :  { %6520 = vmatpush1.bf16.msra.mxu0 %v9316_v31  ;;  %7176 = vmatpush1.bf16.msra.mxu1 %v9319_v32  ;;  %v9411_v31 = vld [vmem:[%s13621_s1 + $0xc48] ss:$16 sps:$4 sm:$0xff]   ;;  %v9416_v32 = vld [vmem:[%s13621_s1 + $0xc64] ss:$16 sps:$4 sm:$0xff]  }
 0x150   :  { %6521 = vmatprep.subr.bf16.mxu0 %v9324_v33  ;;  %7177 = vmatprep.subr.bf16.mxu1 %v9327_v34  ;;  %v9419_v33 = vld [vmem:[%s13621_s1 + $0xc6c] ss:$16 sps:$4 sm:$0xff]   ;;  %v9414_v34 = vld [vmem:[%s13621_s1 + $0xc60] ss:$16 sps:$4 sm:$0xff]  }
 0x153   :  { %6522 = vmatpush1.bf16.msra.mxu0 %v9322_v35  ;;  %7178 = vmatpush1.bf16.msra.mxu1 %v9325_v36  ;;  %v9417_v35 = vld [vmem:[%s13621_s1 + $0xc68] ss:$16 sps:$4 sm:$0xff]   ;;  %v9422_v36 = vld [vmem:[%s13621_s1 + $0xc84] ss:$16 sps:$4 sm:$0xff]  }
 0x154   :  { %6523 = vmatprep.subr.bf16.mxu0 %v9330_v37  ;;  %7179 = vmatprep.subr.bf16.mxu1 %v9333_v38  ;;  %v9425_v37 = vld [vmem:[%s13621_s1 + $0xc8c] ss:$16 sps:$4 sm:$0xff]   ;;  %v9420_v38 = vld [vmem:[%s13621_s1 + $0xc80] ss:$16 sps:$4 sm:$0xff]  }
 0x157   :  { %6524 = vmatpush1.bf16.msra.mxu0 %v9328_v39  ;;  %7180 = vmatpush1.bf16.msra.mxu1 %v9331_v40  ;;  %v9423_v39 = vld [vmem:[%s13621_s1 + $0xc88] ss:$16 sps:$4 sm:$0xff]   ;;  %v9428_v40 = vld [vmem:[%s13621_s1 + $0xca4] ss:$16 sps:$4 sm:$0xff]  }
 0x158   :  { %6525 = vmatprep.subr.bf16.mxu0 %v9336_v41  ;;  %7181 = vmatprep.subr.bf16.mxu1 %v9339_v42  ;;  %v9431_v41 = vld [vmem:[%s13621_s1 + $0xcac] ss:$16 sps:$4 sm:$0xff]   ;;  %v9426_v42 = vld [vmem:[%s13621_s1 + $0xca0] ss:$16 sps:$4 sm:$0xff]  }
 0x15b   :  { %6526 = vmatpush1.bf16.msra.mxu0 %v9334_v43  ;;  %7182 = vmatpush1.bf16.msra.mxu1 %v9337_v44  ;;  %v9429_v43 = vld [vmem:[%s13621_s1 + $0xca8] ss:$16 sps:$4 sm:$0xff]   ;;  %v9434_v44 = vld [vmem:[%s13621_s1 + $0xcc4] ss:$16 sps:$4 sm:$0xff]  }
 0x15c   :  { %6527 = vmatprep.subr.bf16.mxu0 %v9342_v45  ;;  %7183 = vmatprep.subr.bf16.mxu1 %v9345_v46  ;;  %v9437_v45 = vld [vmem:[%s13621_s1 + $0xccc] ss:$16 sps:$4 sm:$0xff]   ;;  %v9432_v46 = vld [vmem:[%s13621_s1 + $0xcc0] ss:$16 sps:$4 sm:$0xff]  }
 0x15f   :  { %6528 = vmatpush1.bf16.msra.mxu0 %v9340_v47  ;;  %7184 = vmatpush1.bf16.msra.mxu1 %v9343_v48  ;;  %v9435_v47 = vld [vmem:[%s13621_s1 + $0xcc8] ss:$16 sps:$4 sm:$0xff]   ;;  %v9440_v48 = vld [vmem:[%s13621_s1 + $0xce4] ss:$16 sps:$4 sm:$0xff]  }
 0x160   :  { %6529 = vmatprep.subr.bf16.mxu0 %v9348_v49  ;;  %7185 = vmatprep.subr.bf16.mxu1 %v9351_v50  ;;  %v9443_v49 = vld [vmem:[%s13621_s1 + $0xcec] ss:$16 sps:$4 sm:$0xff]   ;;  %v9438_v50 = vld [vmem:[%s13621_s1 + $0xce0] ss:$16 sps:$4 sm:$0xff]  }
 0x163   :  { %6530 = vmatpush1.bf16.msra.mxu0 %v9346_v51  ;;  %7186 = vmatpush1.bf16.msra.mxu1 %v9349_v52  ;;  %v9441_v51 = vld [vmem:[%s13621_s1 + $0xce8] ss:$16 sps:$4 sm:$0xff]   ;;  %v9446_v52 = vld [vmem:[%s13621_s1 + $0xd04] ss:$16 sps:$4 sm:$0xff]  }
 0x164   :  { %6531 = vmatprep.subr.bf16.mxu0 %v9354_v53  ;;  %7187 = vmatprep.subr.bf16.mxu1 %v9357_v54  ;;  %v9449_v53 = vld [vmem:[%s13621_s1 + $0xd0c] ss:$16 sps:$4 sm:$0xff]   ;;  %v9444_v54 = vld [vmem:[%s13621_s1 + $0xd00] ss:$16 sps:$4 sm:$0xff]  }
 0x167   :  { %6532 = vmatpush1.bf16.msra.mxu0 %v9352_v55  ;;  %7188 = vmatpush1.bf16.msra.mxu1 %v9355_v56  ;;  %v9447_v55 = vld [vmem:[%s13621_s1 + $0xd08] ss:$16 sps:$4 sm:$0xff]   ;;  %v9452_v56 = vld [vmem:[%s13621_s1 + $0xd24] ss:$16 sps:$4 sm:$0xff]  }
 0x168   :  { %6533 = vmatprep.subr.bf16.mxu0 %v9360_v57  ;;  %7189 = vmatprep.subr.bf16.mxu1 %v9363_v58  ;;  %v9455_v57 = vld [vmem:[%s13621_s1 + $0xd2c] ss:$16 sps:$4 sm:$0xff]   ;;  %v9450_v58 = vld [vmem:[%s13621_s1 + $0xd20] ss:$16 sps:$4 sm:$0xff]  }
 0x16b   :  { %6534 = vmatpush1.bf16.msra.mxu0 %v9358_v59  ;;  %7190 = vmatpush1.bf16.msra.mxu1 %v9361_v60  ;;  %v9453_v59 = vld [vmem:[%s13621_s1 + $0xd28] ss:$16 sps:$4 sm:$0xff]   ;;  %v9458_v60 = vld [vmem:[%s13621_s1 + $0xd44] ss:$16 sps:$4 sm:$0xff]  }
 0x16c   :  { %6535 = vmatprep.subr.bf16.mxu0 %v9366_v61  ;;  %7191 = vmatprep.subr.bf16.mxu1 %v9369_v62  ;;  %v9461_v61 = vld [vmem:[%s13621_s1 + $0xd4c] ss:$16 sps:$4 sm:$0xff]   ;;  %v9456_v62 = vld [vmem:[%s13621_s1 + $0xd40] ss:$16 sps:$4 sm:$0xff]  }
 0x16f   :  { %6536 = vmatpush1.bf16.msra.mxu0 %v9364_v63  ;;  %7192 = vmatpush1.bf16.msra.mxu1 %v9367_v0  ;;  %v9459_v63 = vld [vmem:[%s13621_s1 + $0xd48] ss:$16 sps:$4 sm:$0xff]   ;;  %v9464_v0 = vld [vmem:[%s13621_s1 + $0xd64] ss:$16 sps:$4 sm:$0xff]  }
 0x170   :  { %6537 = vmatprep.subr.bf16.mxu0 %v9372_v1  ;;  %7193 = vmatprep.subr.bf16.mxu1 %v9375_v2  ;;  %v9467_v1 = vld [vmem:[%s13621_s1 + $0xd6c] ss:$16 sps:$4 sm:$0xff]   ;;  %v9462_v2 = vld [vmem:[%s13621_s1 + $0xd60] ss:$16 sps:$4 sm:$0xff]  }
 0x173   :  { %6538 = vmatpush1.bf16.msra.mxu0 %v9370_v3  ;;  %7194 = vmatpush1.bf16.msra.mxu1 %v9373_v4  ;;  %v9465_v3 = vld [vmem:[%s13621_s1 + $0xd68] ss:$16 sps:$4 sm:$0xff]   ;;  %v9470_v4 = vld [vmem:[%s13621_s1 + $0xd84] ss:$16 sps:$4 sm:$0xff]  }
 0x174   :  { %6539 = vmatprep.subr.bf16.mxu0 %v9378_v5  ;;  %7195 = vmatprep.subr.bf16.mxu1 %v9381_v6  ;;  %v9473_v5 = vld [vmem:[%s13621_s1 + $0xd8c] ss:$16 sps:$4 sm:$0xff]   ;;  %v9468_v6 = vld [vmem:[%s13621_s1 + $0xd80] ss:$16 sps:$4 sm:$0xff]  }
 0x177   :  { %6540 = vmatpush1.bf16.msra.mxu0 %v9376_v7  ;;  %7196 = vmatpush1.bf16.msra.mxu1 %v9379_v8  ;;  %v9471_v7 = vld [vmem:[%s13621_s1 + $0xd88] ss:$16 sps:$4 sm:$0xff]   ;;  %v9476_v8 = vld [vmem:[%s13621_s1 + $0xda4] ss:$16 sps:$4 sm:$0xff]  }
 0x178   :  { %6541 = vmatprep.subr.bf16.mxu0 %v9384_v9  ;;  %7197 = vmatprep.subr.bf16.mxu1 %v9387_v10  ;;  %v9479_v9 = vld [vmem:[%s13621_s1 + $0xdac] ss:$16 sps:$4 sm:$0xff]   ;;  %v9474_v10 = vld [vmem:[%s13621_s1 + $0xda0] ss:$16 sps:$4 sm:$0xff]  }
 0x17b   :  { %6542 = vmatpush1.bf16.msra.mxu0 %v9382_v12  ;;  %7198 = vmatpush1.bf16.msra.mxu1 %v9385_v13  ;;  %v9477_v12 = vld [vmem:[%s13621_s1 + $0xda8] ss:$16 sps:$4 sm:$0xff]   ;;  %v9482_v13 = vld [vmem:[%s13621_s1 + $0xdc4] ss:$16 sps:$4 sm:$0xff]  }
 0x17c   :  { %6543 = vmatprep.subr.bf16.mxu0 %v9390_v15  ;;  %7199 = vmatprep.subr.bf16.mxu1 %v9393_v11  ;;  %v9485_v15 = vld [vmem:[%s13621_s1 + $0xdcc] ss:$16 sps:$4 sm:$0xff]   ;;  %v9480_v11 = vld [vmem:[%s13621_s1 + $0xdc0] ss:$16 sps:$4 sm:$0xff]  }
 0x17f   :  { %6544 = vmatpush1.bf16.msra.mxu0 %v9388_v17  ;;  %7200 = vmatpush1.bf16.msra.mxu1 %v9391_v14  ;;  %v9483_v17 = vld [vmem:[%s13621_s1 + $0xdc8] ss:$16 sps:$4 sm:$0xff]   ;;  %v9488_v14 = vld [vmem:[%s13621_s1 + $0xde4] ss:$16 sps:$4 sm:$0xff]  }
 0x180   :  { %6554 = vmatprep.subr.bf16.mxu0 %v9398_v19  ;;  %7210 = vmatprep.subr.bf16.mxu1 %v9401_v20  ;;  %v9491_v19 = vld [vmem:[%s13621_s1 + $0xdec] ss:$16 sps:$4 sm:$0xff]   ;;  %v9486_v20 = vld [vmem:[%s13621_s1 + $0xde0] ss:$16 sps:$4 sm:$0xff]  }
 0x182   :  { %6546 = vmatmul.mubr.bf16.vlgmr.msra.gmra.mrb[0].mxu0 %v7638_v16  ;;  %7202 = vmatmul.mubr.bf16.vlgmr.msra.gmra.mrb[0].mxu1 %v7638_v16  ;;  %v9489_v16 = vld [vmem:[%s13621_s1 + $0xde8] ss:$16 sps:$4 sm:$0xff]  }
 0x183   :  { %6555 = vmatpush1.bf16.msra.mxu0 %v9396_v22  ;;  %7211 = vmatpush1.bf16.msra.mxu1 %v9399_v23  ;;  %v9496_v22 = vld [vmem:[%s13621_s1 + $0xe04] ss:$16 sps:$4 sm:$0xff]   ;;  %v9499_v23 = vld [vmem:[%s13621_s1 + $0xe0c] ss:$16 sps:$4 sm:$0xff]  }
 0x184   :  { %6556 = vmatprep.subr.bf16.mxu0 %v9404_v24  ;;  %7212 = vmatprep.subr.bf16.mxu1 %v9407_v18  ;;  %v11804_v24 = vld [vmem:[%s13622_s0 + $0x38] sm:$0xff]  ;;  %v7640_v18 = vcombine.low %v11603_v21, %v11603_v21 }
 0x185   :  { %6586 = vmatprep.mubr.bf16.mxu0 %v7641_v25  ;;  %7242 = vmatprep.mubr.bf16.mxu1 %v7641_v25  ;;  %v9494_v25 = vld [vmem:[%s13621_s1 + $0xe00] ss:$16 sps:$4 sm:$0xff]   ;;  %v9505_v21 = vld [vmem:[%s13621_s1 + $0xe2c] ss:$16 sps:$4 sm:$0xff]  }
 0x187   :  { %6557 = vmatpush1.bf16.msra.mxu0 %v9402_v26  ;;  %7213 = vmatpush1.bf16.msra.mxu1 %v9405_v27  ;;  %v9497_v26 = vld [vmem:[%s13621_s1 + $0xe08] ss:$16 sps:$4 sm:$0xff]   ;;  %v9502_v27 = vld [vmem:[%s13621_s1 + $0xe24] ss:$16 sps:$4 sm:$0xff]  }
 0x188   :  { %6558 = vmatprep.subr.bf16.mxu0 %v9410_v28  ;;  %7214 = vmatprep.subr.bf16.mxu1 %v9413_v29  ;;  %v7643_v28 = vcombine.high %v11804_v24, %v11804_v24  ;;  %v9500_v29 = vld [vmem:[%s13621_s1 + $0xe20] ss:$16 sps:$4 sm:$0xff]  }
 0x18b   :  { %6559 = vmatpush1.bf16.msra.mxu0 %v9408_v30  ;;  %7215 = vmatpush1.bf16.msra.mxu1 %v9411_v31  ;;  %v9503_v30 = vld [vmem:[%s13621_s1 + $0xe28] ss:$16 sps:$4 sm:$0xff]   ;;  %v9508_v31 = vld [vmem:[%s13621_s1 + $0xe44] ss:$16 sps:$4 sm:$0xff]  }
 0x18c   :  { %6560 = vmatprep.subr.bf16.mxu0 %v9416_v32  ;;  %7216 = vmatprep.subr.bf16.mxu1 %v9419_v33  ;;  %v9511_v32 = vld [vmem:[%s13621_s1 + $0xe4c] ss:$16 sps:$4 sm:$0xff]   ;;  %v9506_v33 = vld [vmem:[%s13621_s1 + $0xe40] ss:$16 sps:$4 sm:$0xff]  }
 0x18f   :  { %6561 = vmatpush1.bf16.msra.mxu0 %v9414_v34  ;;  %7217 = vmatpush1.bf16.msra.mxu1 %v9417_v35  ;;  %v9509_v34 = vld [vmem:[%s13621_s1 + $0xe48] ss:$16 sps:$4 sm:$0xff]   ;;  %v9514_v35 = vld [vmem:[%s13621_s1 + $0xe64] ss:$16 sps:$4 sm:$0xff]  }
 0x190   :  { %6562 = vmatprep.subr.bf16.mxu0 %v9422_v36  ;;  %7218 = vmatprep.subr.bf16.mxu1 %v9425_v37  ;;  %v9517_v36 = vld [vmem:[%s13621_s1 + $0xe6c] ss:$16 sps:$4 sm:$0xff]   ;;  %v9512_v37 = vld [vmem:[%s13621_s1 + $0xe60] ss:$16 sps:$4 sm:$0xff]  }
 0x193   :  { %6563 = vmatpush1.bf16.msra.mxu0 %v9420_v38  ;;  %7219 = vmatpush1.bf16.msra.mxu1 %v9423_v39  ;;  %v9515_v38 = vld [vmem:[%s13621_s1 + $0xe68] ss:$16 sps:$4 sm:$0xff]   ;;  %v9520_v39 = vld [vmem:[%s13621_s1 + $0xe84] ss:$16 sps:$4 sm:$0xff]  }
 0x194   :  { %6564 = vmatprep.subr.bf16.mxu0 %v9428_v40  ;;  %7220 = vmatprep.subr.bf16.mxu1 %v9431_v41  ;;  %v9523_v40 = vld [vmem:[%s13621_s1 + $0xe8c] ss:$16 sps:$4 sm:$0xff]   ;;  %v9518_v41 = vld [vmem:[%s13621_s1 + $0xe80] ss:$16 sps:$4 sm:$0xff]  }
 0x197   :  { %6565 = vmatpush1.bf16.msra.mxu0 %v9426_v42  ;;  %7221 = vmatpush1.bf16.msra.mxu1 %v9429_v43  ;;  %v9521_v42 = vld [vmem:[%s13621_s1 + $0xe88] ss:$16 sps:$4 sm:$0xff]   ;;  %v9526_v43 = vld [vmem:[%s13621_s1 + $0xea4] ss:$16 sps:$4 sm:$0xff]  }
 0x198   :  { %6566 = vmatprep.subr.bf16.mxu0 %v9434_v44  ;;  %7222 = vmatprep.subr.bf16.mxu1 %v9437_v45  ;;  %v9529_v44 = vld [vmem:[%s13621_s1 + $0xeac] ss:$16 sps:$4 sm:$0xff]   ;;  %v9524_v45 = vld [vmem:[%s13621_s1 + $0xea0] ss:$16 sps:$4 sm:$0xff]  }
 0x19b   :  { %6567 = vmatpush1.bf16.msra.mxu0 %v9432_v46  ;;  %7223 = vmatpush1.bf16.msra.mxu1 %v9435_v47  ;;  %v9527_v46 = vld [vmem:[%s13621_s1 + $0xea8] ss:$16 sps:$4 sm:$0xff]   ;;  %v9532_v47 = vld [vmem:[%s13621_s1 + $0xec4] ss:$16 sps:$4 sm:$0xff]  }
 0x19c   :  { %6568 = vmatprep.subr.bf16.mxu0 %v9440_v48  ;;  %7224 = vmatprep.subr.bf16.mxu1 %v9443_v49  ;;  %v9535_v48 = vld [vmem:[%s13621_s1 + $0xecc] ss:$16 sps:$4 sm:$0xff]   ;;  %v9530_v49 = vld [vmem:[%s13621_s1 + $0xec0] ss:$16 sps:$4 sm:$0xff]  }
 0x19f   :  { %6569 = vmatpush1.bf16.msra.mxu0 %v9438_v50  ;;  %7225 = vmatpush1.bf16.msra.mxu1 %v9441_v51  ;;  %v9533_v50 = vld [vmem:[%s13621_s1 + $0xec8] ss:$16 sps:$4 sm:$0xff]   ;;  %v9538_v51 = vld [vmem:[%s13621_s1 + $0xee4] ss:$16 sps:$4 sm:$0xff]  }
 0x1a0   :  { %6570 = vmatprep.subr.bf16.mxu0 %v9446_v52  ;;  %7226 = vmatprep.subr.bf16.mxu1 %v9449_v53  ;;  %v9541_v52 = vld [vmem:[%s13621_s1 + $0xeec] ss:$16 sps:$4 sm:$0xff]   ;;  %v9536_v53 = vld [vmem:[%s13621_s1 + $0xee0] ss:$16 sps:$4 sm:$0xff]  }
 0x1a3   :  { %6571 = vmatpush1.bf16.msra.mxu0 %v9444_v54  ;;  %7227 = vmatpush1.bf16.msra.mxu1 %v9447_v55  ;;  %v9539_v54 = vld [vmem:[%s13621_s1 + $0xee8] ss:$16 sps:$4 sm:$0xff]   ;;  %v9544_v55 = vld [vmem:[%s13621_s1 + $0xf04] ss:$16 sps:$4 sm:$0xff]  }
 0x1a4   :  { %6572 = vmatprep.subr.bf16.mxu0 %v9452_v56  ;;  %7228 = vmatprep.subr.bf16.mxu1 %v9455_v57  ;;  %v9547_v56 = vld [vmem:[%s13621_s1 + $0xf0c] ss:$16 sps:$4 sm:$0xff]   ;;  %v9542_v57 = vld [vmem:[%s13621_s1 + $0xf00] ss:$16 sps:$4 sm:$0xff]  }
 0x1a7   :  { %6573 = vmatpush1.bf16.msra.mxu0 %v9450_v58  ;;  %7229 = vmatpush1.bf16.msra.mxu1 %v9453_v59  ;;  %v9545_v58 = vld [vmem:[%s13621_s1 + $0xf08] ss:$16 sps:$4 sm:$0xff]   ;;  %v9550_v59 = vld [vmem:[%s13621_s1 + $0xf24] ss:$16 sps:$4 sm:$0xff]  }
 0x1a8   :  { %6574 = vmatprep.subr.bf16.mxu0 %v9458_v60  ;;  %7230 = vmatprep.subr.bf16.mxu1 %v9461_v61  ;;  %v9553_v60 = vld [vmem:[%s13621_s1 + $0xf2c] ss:$16 sps:$4 sm:$0xff]   ;;  %v9548_v61 = vld [vmem:[%s13621_s1 + $0xf20] ss:$16 sps:$4 sm:$0xff]  }
 0x1ab   :  { %6575 = vmatpush1.bf16.msra.mxu0 %v9456_v62  ;;  %7231 = vmatpush1.bf16.msra.mxu1 %v9459_v63  ;;  %v9551_v62 = vld [vmem:[%s13621_s1 + $0xf28] ss:$16 sps:$4 sm:$0xff]   ;;  %v9556_v63 = vld [vmem:[%s13621_s1 + $0xf44] ss:$16 sps:$4 sm:$0xff]  }
 0x1ac   :  { %6576 = vmatprep.subr.bf16.mxu0 %v9464_v0  ;;  %7232 = vmatprep.subr.bf16.mxu1 %v9467_v1  ;;  %v9559_v0 = vld [vmem:[%s13621_s1 + $0xf4c] ss:$16 sps:$4 sm:$0xff]   ;;  %v9554_v1 = vld [vmem:[%s13621_s1 + $0xf40] ss:$16 sps:$4 sm:$0xff]  }
 0x1af   :  { %6577 = vmatpush1.bf16.msra.mxu0 %v9462_v2  ;;  %7233 = vmatpush1.bf16.msra.mxu1 %v9465_v3  ;;  %v9557_v2 = vld [vmem:[%s13621_s1 + $0xf48] ss:$16 sps:$4 sm:$0xff]   ;;  %v9562_v3 = vld [vmem:[%s13621_s1 + $0xf64] ss:$16 sps:$4 sm:$0xff]  }
 0x1b0   :  { %6578 = vmatprep.subr.bf16.mxu0 %v9470_v4  ;;  %7234 = vmatprep.subr.bf16.mxu1 %v9473_v5  ;;  %v9565_v4 = vld [vmem:[%s13621_s1 + $0xf6c] ss:$16 sps:$4 sm:$0xff]   ;;  %v9560_v5 = vld [vmem:[%s13621_s1 + $0xf60] ss:$16 sps:$4 sm:$0xff]  }
 0x1b3   :  { %6579 = vmatpush1.bf16.msra.mxu0 %v9468_v6  ;;  %7235 = vmatpush1.bf16.msra.mxu1 %v9471_v7  ;;  %v9563_v6 = vld [vmem:[%s13621_s1 + $0xf68] ss:$16 sps:$4 sm:$0xff]   ;;  %v9568_v7 = vld [vmem:[%s13621_s1 + $0xf84] ss:$16 sps:$4 sm:$0xff]  }
 0x1b4   :  { %6580 = vmatprep.subr.bf16.mxu0 %v9476_v8  ;;  %7236 = vmatprep.subr.bf16.mxu1 %v9479_v9  ;;  %v9571_v8 = vld [vmem:[%s13621_s1 + $0xf8c] ss:$16 sps:$4 sm:$0xff]   ;;  %v9566_v9 = vld [vmem:[%s13621_s1 + $0xf80] ss:$16 sps:$4 sm:$0xff]  }
 0x1b7   :  { %6581 = vmatpush1.bf16.msra.mxu0 %v9474_v10  ;;  %7237 = vmatpush1.bf16.msra.mxu1 %v9477_v12  ;;  %v9569_v10 = vld [vmem:[%s13621_s1 + $0xf88] ss:$16 sps:$4 sm:$0xff]   ;;  %v9574_v12 = vld [vmem:[%s13621_s1 + $0xfa4] ss:$16 sps:$4 sm:$0xff]  }
 0x1b8   :  { %6582 = vmatprep.subr.bf16.mxu0 %v9482_v13  ;;  %7238 = vmatprep.subr.bf16.mxu1 %v9485_v15  ;;  %v9577_v13 = vld [vmem:[%s13621_s1 + $0xfac] ss:$16 sps:$4 sm:$0xff]   ;;  %v9572_v15 = vld [vmem:[%s13621_s1 + $0xfa0] ss:$16 sps:$4 sm:$0xff]  }
 0x1bb   :  { %6583 = vmatpush1.bf16.msra.mxu0 %v9480_v11  ;;  %7239 = vmatpush1.bf16.msra.mxu1 %v9483_v17  ;;  %v9575_v11 = vld [vmem:[%s13621_s1 + $0xfa8] ss:$16 sps:$4 sm:$0xff]   ;;  %v9580_v17 = vld [vmem:[%s13621_s1 + $0xfc4] ss:$16 sps:$4 sm:$0xff]  }
 0x1bc   :  { %6584 = vmatprep.subr.bf16.mxu0 %v9488_v14  ;;  %7240 = vmatprep.subr.bf16.mxu1 %v9491_v19  ;;  %v9583_v14 = vld [vmem:[%s13621_s1 + $0xfcc] ss:$16 sps:$4 sm:$0xff]   ;;  %v9578_v19 = vld [vmem:[%s13621_s1 + $0xfc0] ss:$16 sps:$4 sm:$0xff]  }
 0x1bf   :  { %6585 = vmatpush1.bf16.msra.mxu0 %v9486_v20  ;;  %7241 = vmatpush1.bf16.msra.mxu1 %v9489_v16  ;;  %v9581_v20 = vld [vmem:[%s13621_s1 + $0xfc8] ss:$16 sps:$4 sm:$0xff]   ;;  %v9586_v16 = vld [vmem:[%s13621_s1 + $0xfe4] ss:$16 sps:$4 sm:$0xff]  }
 0x1c0   :  { %6595 = vmatprep.subr.bf16.mxu0 %v9496_v22  ;;  %7251 = vmatprep.subr.bf16.mxu1 %v9499_v23  ;;  %v9589_v22 = vld [vmem:[%s13621_s1 + $0xfec] ss:$16 sps:$4 sm:$0xff]   ;;  %v9584_v23 = vld [vmem:[%s13621_s1 + $0xfe0] ss:$16 sps:$4 sm:$0xff]  }
 0x1c2   :  { %6587 = vmatmul.mubr.bf16.vlgmr.msra.gmra.mrb[0].mxu0 %v7640_v18  ;;  %7243 = vmatmul.mubr.bf16.vlgmr.msra.gmra.mrb[0].mxu1 %v7640_v18  ;;  %v9587_v18 = vld [vmem:[%s13621_s1 + $0xfe8] ss:$16 sps:$4 sm:$0xff]  }
 0x1c3   :  { %6596 = vmatpush1.bf16.msra.mxu0 %v9494_v25  ;;  %7252 = vmatpush1.bf16.msra.mxu1 %v9497_v26  ;;  %v9594_v25 = vld [vmem:[%s13621_s1 + $0x1004] ss:$16 sps:$4 sm:$0xff]   ;;  %v9597_v26 = vld [vmem:[%s13621_s1 + $0x100c] ss:$16 sps:$4 sm:$0xff]  }
 0x1c4   :  { %6597 = vmatprep.subr.bf16.mxu0 %v9502_v27  ;;  %7253 = vmatprep.subr.bf16.mxu1 %v9505_v21  ;;  %v12005_v27 = vld [vmem:[%s13622_s0 + $0x40] sm:$0xff]  ;;  %v7642_v21 = vcombine.low %v11804_v24, %v11804_v24  ;;  %v9603_v24 = vld [vmem:[%s13621_s1 + $0x102c] ss:$16 sps:$4 sm:$0xff]  }
 0x1c5   :  { %6627 = vmatprep.mubr.bf16.mxu0 %v7643_v28  ;;  %7283 = vmatprep.mubr.bf16.mxu1 %v7643_v28  ;;  %v9592_v28 = vld [vmem:[%s13621_s1 + $0x1000] ss:$16 sps:$4 sm:$0xff]  }
 0x1c7   :  { %6598 = vmatpush1.bf16.msra.mxu0 %v9500_v29  ;;  %7254 = vmatpush1.bf16.msra.mxu1 %v9503_v30  ;;  %v9595_v29 = vld [vmem:[%s13621_s1 + $0x1008] ss:$16 sps:$4 sm:$0xff]   ;;  %v9600_v30 = vld [vmem:[%s13621_s1 + $0x1024] ss:$16 sps:$4 sm:$0xff]  }
 0x1c8   :  { %6599 = vmatprep.subr.bf16.mxu0 %v9508_v31  ;;  %7255 = vmatprep.subr.bf16.mxu1 %v9511_v32  ;;  %v7645_v31 = vcombine.high %v12005_v27, %v12005_v27  ;;  %v9598_v32 = vld [vmem:[%s13621_s1 + $0x1020] ss:$16 sps:$4 sm:$0xff]  }
 0x1cb   :  { %6600 = vmatpush1.bf16.msra.mxu0 %v9506_v33  ;;  %7256 = vmatpush1.bf16.msra.mxu1 %v9509_v34  ;;  %v9601_v33 = vld [vmem:[%s13621_s1 + $0x1028] ss:$16 sps:$4 sm:$0xff]   ;;  %v9606_v34 = vld [vmem:[%s13621_s1 + $0x1044] ss:$16 sps:$4 sm:$0xff]  }
 0x1cc   :  { %6601 = vmatprep.subr.bf16.mxu0 %v9514_v35  ;;  %7257 = vmatprep.subr.bf16.mxu1 %v9517_v36  ;;  %v9609_v35 = vld [vmem:[%s13621_s1 + $0x104c] ss:$16 sps:$4 sm:$0xff]   ;;  %v9604_v36 = vld [vmem:[%s13621_s1 + $0x1040] ss:$16 sps:$4 sm:$0xff]  }
 0x1cf   :  { %6602 = vmatpush1.bf16.msra.mxu0 %v9512_v37  ;;  %7258 = vmatpush1.bf16.msra.mxu1 %v9515_v38  ;;  %v9607_v37 = vld [vmem:[%s13621_s1 + $0x1048] ss:$16 sps:$4 sm:$0xff]   ;;  %v9612_v38 = vld [vmem:[%s13621_s1 + $0x1064] ss:$16 sps:$4 sm:$0xff]  }
 0x1d0   :  { %6603 = vmatprep.subr.bf16.mxu0 %v9520_v39  ;;  %7259 = vmatprep.subr.bf16.mxu1 %v9523_v40  ;;  %v9615_v39 = vld [vmem:[%s13621_s1 + $0x106c] ss:$16 sps:$4 sm:$0xff]   ;;  %v9610_v40 = vld [vmem:[%s13621_s1 + $0x1060] ss:$16 sps:$4 sm:$0xff]  }
 0x1d3   :  { %6604 = vmatpush1.bf16.msra.mxu0 %v9518_v41  ;;  %7260 = vmatpush1.bf16.msra.mxu1 %v9521_v42  ;;  %v9613_v41 = vld [vmem:[%s13621_s1 + $0x1068] ss:$16 sps:$4 sm:$0xff]   ;;  %v9618_v42 = vld [vmem:[%s13621_s1 + $0x1084] ss:$16 sps:$4 sm:$0xff]  }
 0x1d4   :  { %6605 = vmatprep.subr.bf16.mxu0 %v9526_v43  ;;  %7261 = vmatprep.subr.bf16.mxu1 %v9529_v44  ;;  %v9621_v43 = vld [vmem:[%s13621_s1 + $0x108c] ss:$16 sps:$4 sm:$0xff]   ;;  %v9616_v44 = vld [vmem:[%s13621_s1 + $0x1080] ss:$16 sps:$4 sm:$0xff]  }
 0x1d7   :  { %6606 = vmatpush1.bf16.msra.mxu0 %v9524_v45  ;;  %7262 = vmatpush1.bf16.msra.mxu1 %v9527_v46  ;;  %v9619_v45 = vld [vmem:[%s13621_s1 + $0x1088] ss:$16 sps:$4 sm:$0xff]   ;;  %v9624_v46 = vld [vmem:[%s13621_s1 + $0x10a4] ss:$16 sps:$4 sm:$0xff]  }
 0x1d8   :  { %6607 = vmatprep.subr.bf16.mxu0 %v9532_v47  ;;  %7263 = vmatprep.subr.bf16.mxu1 %v9535_v48  ;;  %v9627_v47 = vld [vmem:[%s13621_s1 + $0x10ac] ss:$16 sps:$4 sm:$0xff]   ;;  %v9622_v48 = vld [vmem:[%s13621_s1 + $0x10a0] ss:$16 sps:$4 sm:$0xff]  }
 0x1db   :  { %6608 = vmatpush1.bf16.msra.mxu0 %v9530_v49  ;;  %7264 = vmatpush1.bf16.msra.mxu1 %v9533_v50  ;;  %v9625_v49 = vld [vmem:[%s13621_s1 + $0x10a8] ss:$16 sps:$4 sm:$0xff]   ;;  %v9630_v50 = vld [vmem:[%s13621_s1 + $0x10c4] ss:$16 sps:$4 sm:$0xff]  }
 0x1dc   :  { %6609 = vmatprep.subr.bf16.mxu0 %v9538_v51  ;;  %7265 = vmatprep.subr.bf16.mxu1 %v9541_v52  ;;  %v9633_v51 = vld [vmem:[%s13621_s1 + $0x10cc] ss:$16 sps:$4 sm:$0xff]   ;;  %v9628_v52 = vld [vmem:[%s13621_s1 + $0x10c0] ss:$16 sps:$4 sm:$0xff]  }
 0x1df   :  { %6610 = vmatpush1.bf16.msra.mxu0 %v9536_v53  ;;  %7266 = vmatpush1.bf16.msra.mxu1 %v9539_v54  ;;  %v9631_v53 = vld [vmem:[%s13621_s1 + $0x10c8] ss:$16 sps:$4 sm:$0xff]   ;;  %v9636_v54 = vld [vmem:[%s13621_s1 + $0x10e4] ss:$16 sps:$4 sm:$0xff]  }
 0x1e0   :  { %6611 = vmatprep.subr.bf16.mxu0 %v9544_v55  ;;  %7267 = vmatprep.subr.bf16.mxu1 %v9547_v56  ;;  %v9639_v55 = vld [vmem:[%s13621_s1 + $0x10ec] ss:$16 sps:$4 sm:$0xff]   ;;  %v9634_v56 = vld [vmem:[%s13621_s1 + $0x10e0] ss:$16 sps:$4 sm:$0xff]  }
 0x1e3   :  { %6612 = vmatpush1.bf16.msra.mxu0 %v9542_v57  ;;  %7268 = vmatpush1.bf16.msra.mxu1 %v9545_v58  ;;  %v9637_v57 = vld [vmem:[%s13621_s1 + $0x10e8] ss:$16 sps:$4 sm:$0xff]   ;;  %v9642_v58 = vld [vmem:[%s13621_s1 + $0x1104] ss:$16 sps:$4 sm:$0xff]  }
 0x1e4   :  { %6613 = vmatprep.subr.bf16.mxu0 %v9550_v59  ;;  %7269 = vmatprep.subr.bf16.mxu1 %v9553_v60  ;;  %v9645_v59 = vld [vmem:[%s13621_s1 + $0x110c] ss:$16 sps:$4 sm:$0xff]   ;;  %v9640_v60 = vld [vmem:[%s13621_s1 + $0x1100] ss:$16 sps:$4 sm:$0xff]  }
 0x1e7   :  { %6614 = vmatpush1.bf16.msra.mxu0 %v9548_v61  ;;  %7270 = vmatpush1.bf16.msra.mxu1 %v9551_v62  ;;  %v9643_v61 = vld [vmem:[%s13621_s1 + $0x1108] ss:$16 sps:$4 sm:$0xff]   ;;  %v9648_v62 = vld [vmem:[%s13621_s1 + $0x1124] ss:$16 sps:$4 sm:$0xff]  }
 0x1e8   :  { %6615 = vmatprep.subr.bf16.mxu0 %v9556_v63  ;;  %7271 = vmatprep.subr.bf16.mxu1 %v9559_v0  ;;  %v9651_v63 = vld [vmem:[%s13621_s1 + $0x112c] ss:$16 sps:$4 sm:$0xff]   ;;  %v9646_v0 = vld [vmem:[%s13621_s1 + $0x1120] ss:$16 sps:$4 sm:$0xff]  }
 0x1eb   :  { %6616 = vmatpush1.bf16.msra.mxu0 %v9554_v1  ;;  %7272 = vmatpush1.bf16.msra.mxu1 %v9557_v2  ;;  %v9649_v1 = vld [vmem:[%s13621_s1 + $0x1128] ss:$16 sps:$4 sm:$0xff]   ;;  %v9654_v2 = vld [vmem:[%s13621_s1 + $0x1144] ss:$16 sps:$4 sm:$0xff]  }
 0x1ec   :  { %6617 = vmatprep.subr.bf16.mxu0 %v9562_v3  ;;  %7273 = vmatprep.subr.bf16.mxu1 %v9565_v4  ;;  %v9657_v3 = vld [vmem:[%s13621_s1 + $0x114c] ss:$16 sps:$4 sm:$0xff]   ;;  %v9652_v4 = vld [vmem:[%s13621_s1 + $0x1140] ss:$16 sps:$4 sm:$0xff]  }
 0x1ef   :  { %6618 = vmatpush1.bf16.msra.mxu0 %v9560_v5  ;;  %7274 = vmatpush1.bf16.msra.mxu1 %v9563_v6  ;;  %v9655_v5 = vld [vmem:[%s13621_s1 + $0x1148] ss:$16 sps:$4 sm:$0xff]   ;;  %v9660_v6 = vld [vmem:[%s13621_s1 + $0x1164] ss:$16 sps:$4 sm:$0xff]  }
 0x1f0   :  { %6619 = vmatprep.subr.bf16.mxu0 %v9568_v7  ;;  %7275 = vmatprep.subr.bf16.mxu1 %v9571_v8  ;;  %v9663_v7 = vld [vmem:[%s13621_s1 + $0x116c] ss:$16 sps:$4 sm:$0xff]   ;;  %v9658_v8 = vld [vmem:[%s13621_s1 + $0x1160] ss:$16 sps:$4 sm:$0xff]  }
 0x1f3   :  { %6620 = vmatpush1.bf16.msra.mxu0 %v9566_v9  ;;  %7276 = vmatpush1.bf16.msra.mxu1 %v9569_v10  ;;  %v9661_v9 = vld [vmem:[%s13621_s1 + $0x1168] ss:$16 sps:$4 sm:$0xff]   ;;  %v9666_v10 = vld [vmem:[%s13621_s1 + $0x1184] ss:$16 sps:$4 sm:$0xff]  }
 0x1f4   :  { %6621 = vmatprep.subr.bf16.mxu0 %v9574_v12  ;;  %7277 = vmatprep.subr.bf16.mxu1 %v9577_v13  ;;  %v9669_v12 = vld [vmem:[%s13621_s1 + $0x118c] ss:$16 sps:$4 sm:$0xff]   ;;  %v9664_v13 = vld [vmem:[%s13621_s1 + $0x1180] ss:$16 sps:$4 sm:$0xff]  }
 0x1f7   :  { %6622 = vmatpush1.bf16.msra.mxu0 %v9572_v15  ;;  %7278 = vmatpush1.bf16.msra.mxu1 %v9575_v11  ;;  %v9667_v15 = vld [vmem:[%s13621_s1 + $0x1188] ss:$16 sps:$4 sm:$0xff]   ;;  %v9672_v11 = vld [vmem:[%s13621_s1 + $0x11a4] ss:$16 sps:$4 sm:$0xff]  }
 0x1f8   :  { %6623 = vmatprep.subr.bf16.mxu0 %v9580_v17  ;;  %7279 = vmatprep.subr.bf16.mxu1 %v9583_v14  ;;  %v9675_v17 = vld [vmem:[%s13621_s1 + $0x11ac] ss:$16 sps:$4 sm:$0xff]   ;;  %v9670_v14 = vld [vmem:[%s13621_s1 + $0x11a0] ss:$16 sps:$4 sm:$0xff]  }
 0x1fb   :  { %6624 = vmatpush1.bf16.msra.mxu0 %v9578_v19  ;;  %7280 = vmatpush1.bf16.msra.mxu1 %v9581_v20  ;;  %v9673_v19 = vld [vmem:[%s13621_s1 + $0x11a8] ss:$16 sps:$4 sm:$0xff]   ;;  %v9678_v20 = vld [vmem:[%s13621_s1 + $0x11c4] ss:$16 sps:$4 sm:$0xff]  }
 0x1fc   :  { %6625 = vmatprep.subr.bf16.mxu0 %v9586_v16  ;;  %7281 = vmatprep.subr.bf16.mxu1 %v9589_v22  ;;  %v9681_v16 = vld [vmem:[%s13621_s1 + $0x11cc] ss:$16 sps:$4 sm:$0xff]   ;;  %v9676_v22 = vld [vmem:[%s13621_s1 + $0x11c0] ss:$16 sps:$4 sm:$0xff]  }
 0x1ff   :  { %6626 = vmatpush1.bf16.msra.mxu0 %v9584_v23  ;;  %7282 = vmatpush1.bf16.msra.mxu1 %v9587_v18  ;;  %v9679_v23 = vld [vmem:[%s13621_s1 + $0x11c8] ss:$16 sps:$4 sm:$0xff]   ;;  %v9684_v18 = vld [vmem:[%s13621_s1 + $0x11e4] ss:$16 sps:$4 sm:$0xff]  }
 0x200   :  { %6636 = vmatprep.subr.bf16.mxu0 %v9594_v25  ;;  %7292 = vmatprep.subr.bf16.mxu1 %v9597_v26  ;;  %v9687_v25 = vld [vmem:[%s13621_s1 + $0x11ec] ss:$16 sps:$4 sm:$0xff]   ;;  %v9682_v26 = vld [vmem:[%s13621_s1 + $0x11e0] ss:$16 sps:$4 sm:$0xff]  }
 0x202   :  { %6628 = vmatmul.mubr.bf16.vlgmr.msra.gmra.mrb[0].mxu0 %v7642_v21  ;;  %7284 = vmatmul.mubr.bf16.vlgmr.msra.gmra.mrb[0].mxu1 %v7642_v21  ;;  %v9685_v21 = vld [vmem:[%s13621_s1 + $0x11e8] ss:$16 sps:$4 sm:$0xff]  }
 0x203   :  { %6637 = vmatpush1.bf16.msra.mxu0 %v9592_v28  ;;  %7293 = vmatpush1.bf16.msra.mxu1 %v9595_v29  ;;  %v9692_v28 = vld [vmem:[%s13621_s1 + $0x1204] ss:$16 sps:$4 sm:$0xff]   ;;  %v9695_v29 = vld [vmem:[%s13621_s1 + $0x120c] ss:$16 sps:$4 sm:$0xff]  }
 0x204   :  { %6638 = vmatprep.subr.bf16.mxu0 %v9600_v30  ;;  %7294 = vmatprep.subr.bf16.mxu1 %v9603_v24  ;;  %v12206_v30 = vld [vmem:[%s13622_s0 + $0x48] sm:$0xff]  ;;  %v7644_v24 = vcombine.low %v12005_v27, %v12005_v27 }
 0x205   :  { %6668 = vmatprep.mubr.bf16.mxu0 %v7645_v31  ;;  %7324 = vmatprep.mubr.bf16.mxu1 %v7645_v31  ;;  %v9690_v31 = vld [vmem:[%s13621_s1 + $0x1200] ss:$16 sps:$4 sm:$0xff]   ;;  %v9701_v27 = vld [vmem:[%s13621_s1 + $0x122c] ss:$16 sps:$4 sm:$0xff]  }
 0x207   :  { %6639 = vmatpush1.bf16.msra.mxu0 %v9598_v32  ;;  %7295 = vmatpush1.bf16.msra.mxu1 %v9601_v33  ;;  %v9693_v32 = vld [vmem:[%s13621_s1 + $0x1208] ss:$16 sps:$4 sm:$0xff]   ;;  %v9698_v33 = vld [vmem:[%s13621_s1 + $0x1224] ss:$16 sps:$4 sm:$0xff]  }
 0x208   :  { %6640 = vmatprep.subr.bf16.mxu0 %v9606_v34  ;;  %7296 = vmatprep.subr.bf16.mxu1 %v9609_v35  ;;  %v7647_v34 = vcombine.high %v12206_v30, %v12206_v30  ;;  %v9696_v35 = vld [vmem:[%s13621_s1 + $0x1220] ss:$16 sps:$4 sm:$0xff]  }
 0x20b   :  { %6641 = vmatpush1.bf16.msra.mxu0 %v9604_v36  ;;  %7297 = vmatpush1.bf16.msra.mxu1 %v9607_v37  ;;  %v9699_v36 = vld [vmem:[%s13621_s1 + $0x1228] ss:$16 sps:$4 sm:$0xff]   ;;  %v9704_v37 = vld [vmem:[%s13621_s1 + $0x1244] ss:$16 sps:$4 sm:$0xff]  }
 0x20c   :  { %6642 = vmatprep.subr.bf16.mxu0 %v9612_v38  ;;  %7298 = vmatprep.subr.bf16.mxu1 %v9615_v39  ;;  %v9707_v38 = vld [vmem:[%s13621_s1 + $0x124c] ss:$16 sps:$4 sm:$0xff]   ;;  %v9702_v39 = vld [vmem:[%s13621_s1 + $0x1240] ss:$16 sps:$4 sm:$0xff]  }
 0x20f   :  { %6643 = vmatpush1.bf16.msra.mxu0 %v9610_v40  ;;  %7299 = vmatpush1.bf16.msra.mxu1 %v9613_v41  ;;  %v9705_v40 = vld [vmem:[%s13621_s1 + $0x1248] ss:$16 sps:$4 sm:$0xff]   ;;  %v9710_v41 = vld [vmem:[%s13621_s1 + $0x1264] ss:$16 sps:$4 sm:$0xff]  }
 0x210   :  { %6644 = vmatprep.subr.bf16.mxu0 %v9618_v42  ;;  %7300 = vmatprep.subr.bf16.mxu1 %v9621_v43  ;;  %v9713_v42 = vld [vmem:[%s13621_s1 + $0x126c] ss:$16 sps:$4 sm:$0xff]   ;;  %v9708_v43 = vld [vmem:[%s13621_s1 + $0x1260] ss:$16 sps:$4 sm:$0xff]  }
 0x213   :  { %6645 = vmatpush1.bf16.msra.mxu0 %v9616_v44  ;;  %7301 = vmatpush1.bf16.msra.mxu1 %v9619_v45  ;;  %v9711_v44 = vld [vmem:[%s13621_s1 + $0x1268] ss:$16 sps:$4 sm:$0xff]   ;;  %v9716_v45 = vld [vmem:[%s13621_s1 + $0x1284] ss:$16 sps:$4 sm:$0xff]  }
 0x214   :  { %6646 = vmatprep.subr.bf16.mxu0 %v9624_v46  ;;  %7302 = vmatprep.subr.bf16.mxu1 %v9627_v47  ;;  %v9719_v46 = vld [vmem:[%s13621_s1 + $0x128c] ss:$16 sps:$4 sm:$0xff]   ;;  %v9714_v47 = vld [vmem:[%s13621_s1 + $0x1280] ss:$16 sps:$4 sm:$0xff]  }
 0x217   :  { %6647 = vmatpush1.bf16.msra.mxu0 %v9622_v48  ;;  %7303 = vmatpush1.bf16.msra.mxu1 %v9625_v49  ;;  %v9717_v48 = vld [vmem:[%s13621_s1 + $0x1288] ss:$16 sps:$4 sm:$0xff]   ;;  %v9722_v49 = vld [vmem:[%s13621_s1 + $0x12a4] ss:$16 sps:$4 sm:$0xff]  }
 0x218   :  { %6648 = vmatprep.subr.bf16.mxu0 %v9630_v50  ;;  %7304 = vmatprep.subr.bf16.mxu1 %v9633_v51  ;;  %v9725_v50 = vld [vmem:[%s13621_s1 + $0x12ac] ss:$16 sps:$4 sm:$0xff]   ;;  %v9720_v51 = vld [vmem:[%s13621_s1 + $0x12a0] ss:$16 sps:$4 sm:$0xff]  }
 0x21b   :  { %6649 = vmatpush1.bf16.msra.mxu0 %v9628_v52  ;;  %7305 = vmatpush1.bf16.msra.mxu1 %v9631_v53  ;;  %v9723_v52 = vld [vmem:[%s13621_s1 + $0x12a8] ss:$16 sps:$4 sm:$0xff]   ;;  %v9728_v53 = vld [vmem:[%s13621_s1 + $0x12c4] ss:$16 sps:$4 sm:$0xff]  }
 0x21c   :  { %6650 = vmatprep.subr.bf16.mxu0 %v9636_v54  ;;  %7306 = vmatprep.subr.bf16.mxu1 %v9639_v55  ;;  %v9731_v54 = vld [vmem:[%s13621_s1 + $0x12cc] ss:$16 sps:$4 sm:$0xff]   ;;  %v9726_v55 = vld [vmem:[%s13621_s1 + $0x12c0] ss:$16 sps:$4 sm:$0xff]  }
 0x21f   :  { %6651 = vmatpush1.bf16.msra.mxu0 %v9634_v56  ;;  %7307 = vmatpush1.bf16.msra.mxu1 %v9637_v57  ;;  %v9729_v56 = vld [vmem:[%s13621_s1 + $0x12c8] ss:$16 sps:$4 sm:$0xff]   ;;  %v9734_v57 = vld [vmem:[%s13621_s1 + $0x12e4] ss:$16 sps:$4 sm:$0xff]  }
 0x220   :  { %6652 = vmatprep.subr.bf16.mxu0 %v9642_v58  ;;  %7308 = vmatprep.subr.bf16.mxu1 %v9645_v59  ;;  %v9737_v58 = vld [vmem:[%s13621_s1 + $0x12ec] ss:$16 sps:$4 sm:$0xff]   ;;  %v9732_v59 = vld [vmem:[%s13621_s1 + $0x12e0] ss:$16 sps:$4 sm:$0xff]  }
 0x223   :  { %6653 = vmatpush1.bf16.msra.mxu0 %v9640_v60  ;;  %7309 = vmatpush1.bf16.msra.mxu1 %v9643_v61  ;;  %v9735_v60 = vld [vmem:[%s13621_s1 + $0x12e8] ss:$16 sps:$4 sm:$0xff]   ;;  %v9740_v61 = vld [vmem:[%s13621_s1 + $0x1304] ss:$16 sps:$4 sm:$0xff]  }
 0x224   :  { %6654 = vmatprep.subr.bf16.mxu0 %v9648_v62  ;;  %7310 = vmatprep.subr.bf16.mxu1 %v9651_v63  ;;  %v9743_v62 = vld [vmem:[%s13621_s1 + $0x130c] ss:$16 sps:$4 sm:$0xff]   ;;  %v9738_v63 = vld [vmem:[%s13621_s1 + $0x1300] ss:$16 sps:$4 sm:$0xff]  }
 0x227   :  { %6655 = vmatpush1.bf16.msra.mxu0 %v9646_v0  ;;  %7311 = vmatpush1.bf16.msra.mxu1 %v9649_v1  ;;  %v9741_v0 = vld [vmem:[%s13621_s1 + $0x1308] ss:$16 sps:$4 sm:$0xff]   ;;  %v9746_v1 = vld [vmem:[%s13621_s1 + $0x1324] ss:$16 sps:$4 sm:$0xff]  }
 0x228   :  { %6656 = vmatprep.subr.bf16.mxu0 %v9654_v2  ;;  %7312 = vmatprep.subr.bf16.mxu1 %v9657_v3  ;;  %v9749_v2 = vld [vmem:[%s13621_s1 + $0x132c] ss:$16 sps:$4 sm:$0xff]   ;;  %v9744_v3 = vld [vmem:[%s13621_s1 + $0x1320] ss:$16 sps:$4 sm:$0xff]  }
 0x22b   :  { %6657 = vmatpush1.bf16.msra.mxu0 %v9652_v4  ;;  %7313 = vmatpush1.bf16.msra.mxu1 %v9655_v5  ;;  %v9747_v4 = vld [vmem:[%s13621_s1 + $0x1328] ss:$16 sps:$4 sm:$0xff]   ;;  %v9752_v5 = vld [vmem:[%s13621_s1 + $0x1344] ss:$16 sps:$4 sm:$0xff]  }
 0x22c   :  { %6658 = vmatprep.subr.bf16.mxu0 %v9660_v6  ;;  %7314 = vmatprep.subr.bf16.mxu1 %v9663_v7  ;;  %v9755_v6 = vld [vmem:[%s13621_s1 + $0x134c] ss:$16 sps:$4 sm:$0xff]   ;;  %v9750_v7 = vld [vmem:[%s13621_s1 + $0x1340] ss:$16 sps:$4 sm:$0xff]  }
 0x22f   :  { %6659 = vmatpush1.bf16.msra.mxu0 %v9658_v8  ;;  %7315 = vmatpush1.bf16.msra.mxu1 %v9661_v9  ;;  %v9753_v8 = vld [vmem:[%s13621_s1 + $0x1348] ss:$16 sps:$4 sm:$0xff]   ;;  %v9758_v9 = vld [vmem:[%s13621_s1 + $0x1364] ss:$16 sps:$4 sm:$0xff]  }
 0x230   :  { %6660 = vmatprep.subr.bf16.mxu0 %v9666_v10  ;;  %7316 = vmatprep.subr.bf16.mxu1 %v9669_v12  ;;  %v9761_v10 = vld [vmem:[%s13621_s1 + $0x136c] ss:$16 sps:$4 sm:$0xff]   ;;  %v9756_v12 = vld [vmem:[%s13621_s1 + $0x1360] ss:$16 sps:$4 sm:$0xff]  }
 0x233   :  { %6661 = vmatpush1.bf16.msra.mxu0 %v9664_v13  ;;  %7317 = vmatpush1.bf16.msra.mxu1 %v9667_v15  ;;  %v9759_v13 = vld [vmem:[%s13621_s1 + $0x1368] ss:$16 sps:$4 sm:$0xff]   ;;  %v9764_v15 = vld [vmem:[%s13621_s1 + $0x1384] ss:$16 sps:$4 sm:$0xff]  }
 0x234   :  { %6662 = vmatprep.subr.bf16.mxu0 %v9672_v11  ;;  %7318 = vmatprep.subr.bf16.mxu1 %v9675_v17  ;;  %v9767_v11 = vld [vmem:[%s13621_s1 + $0x138c] ss:$16 sps:$4 sm:$0xff]   ;;  %v9762_v17 = vld [vmem:[%s13621_s1 + $0x1380] ss:$16 sps:$4 sm:$0xff]  }
 0x237   :  { %6663 = vmatpush1.bf16.msra.mxu0 %v9670_v14  ;;  %7319 = vmatpush1.bf16.msra.mxu1 %v9673_v19  ;;  %v9765_v14 = vld [vmem:[%s13621_s1 + $0x1388] ss:$16 sps:$4 sm:$0xff]   ;;  %v9770_v19 = vld [vmem:[%s13621_s1 + $0x13a4] ss:$16 sps:$4 sm:$0xff]  }
 0x238   :  { %6664 = vmatprep.subr.bf16.mxu0 %v9678_v20  ;;  %7320 = vmatprep.subr.bf16.mxu1 %v9681_v16  ;;  %v9773_v20 = vld [vmem:[%s13621_s1 + $0x13ac] ss:$16 sps:$4 sm:$0xff]   ;;  %v9768_v16 = vld [vmem:[%s13621_s1 + $0x13a0] ss:$16 sps:$4 sm:$0xff]  }
 0x23b   :  { %6665 = vmatpush1.bf16.msra.mxu0 %v9676_v22  ;;  %7321 = vmatpush1.bf16.msra.mxu1 %v9679_v23  ;;  %v9771_v22 = vld [vmem:[%s13621_s1 + $0x13a8] ss:$16 sps:$4 sm:$0xff]   ;;  %v9776_v23 = vld [vmem:[%s13621_s1 + $0x13c4] ss:$16 sps:$4 sm:$0xff]  }
 0x23c   :  { %6666 = vmatprep.subr.bf16.mxu0 %v9684_v18  ;;  %7322 = vmatprep.subr.bf16.mxu1 %v9687_v25  ;;  %v9779_v18 = vld [vmem:[%s13621_s1 + $0x13cc] ss:$16 sps:$4 sm:$0xff]   ;;  %v9774_v25 = vld [vmem:[%s13621_s1 + $0x13c0] ss:$16 sps:$4 sm:$0xff]  }
 0x23f   :  { %6667 = vmatpush1.bf16.msra.mxu0 %v9682_v26  ;;  %7323 = vmatpush1.bf16.msra.mxu1 %v9685_v21  ;;  %v9777_v26 = vld [vmem:[%s13621_s1 + $0x13c8] ss:$16 sps:$4 sm:$0xff]   ;;  %v9782_v21 = vld [vmem:[%s13621_s1 + $0x13e4] ss:$16 sps:$4 sm:$0xff]  }
 0x240   :  { %6677 = vmatprep.subr.bf16.mxu0 %v9692_v28  ;;  %7333 = vmatprep.subr.bf16.mxu1 %v9695_v29  ;;  %v9785_v28 = vld [vmem:[%s13621_s1 + $0x13ec] ss:$16 sps:$4 sm:$0xff]   ;;  %v9780_v29 = vld [vmem:[%s13621_s1 + $0x13e0] ss:$16 sps:$4 sm:$0xff]  }
 0x242   :  { %6669 = vmatmul.mubr.bf16.vlgmr.msra.gmra.mrb[0].mxu0 %v7644_v24  ;;  %7325 = vmatmul.mubr.bf16.vlgmr.msra.gmra.mrb[0].mxu1 %v7644_v24  ;;  %v9783_v24 = vld [vmem:[%s13621_s1 + $0x13e8] ss:$16 sps:$4 sm:$0xff]  }
 0x243   :  { %6678 = vmatpush1.bf16.msra.mxu0 %v9690_v31  ;;  %7334 = vmatpush1.bf16.msra.mxu1 %v9693_v32  ;;  %v9790_v31 = vld [vmem:[%s13621_s1 + $0x1404] ss:$16 sps:$4 sm:$0xff]   ;;  %v9793_v32 = vld [vmem:[%s13621_s1 + $0x140c] ss:$16 sps:$4 sm:$0xff]  }
 0x244   :  { %6679 = vmatprep.subr.bf16.mxu0 %v9698_v33  ;;  %7335 = vmatprep.subr.bf16.mxu1 %v9701_v27  ;;  %v7646_v33 = vcombine.low %v12206_v30, %v12206_v30  ;;  %v12409_v27 = vld [vmem:[%s13622_s0 + $0x50] sm:$0xff] }
 0x245   :  { %6709 = vmatprep.mubr.bf16.mxu0 %v7647_v34  ;;  %7365 = vmatprep.mubr.bf16.mxu1 %v7647_v34  ;;  %v9788_v34 = vld [vmem:[%s13621_s1 + $0x1400] ss:$16 sps:$4 sm:$0xff]   ;;  %v9796_v30 = vld [vmem:[%s13621_s1 + $0x1424] ss:$16 sps:$4 sm:$0xff]  }
 0x247   :  { %6680 = vmatpush1.bf16.msra.mxu0 %v9696_v35  ;;  %7336 = vmatpush1.bf16.msra.mxu1 %v9699_v36  ;;  %v9791_v35 = vld [vmem:[%s13621_s1 + $0x1408] ss:$16 sps:$4 sm:$0xff]   ;;  %v9799_v36 = vld [vmem:[%s13621_s1 + $0x142c] ss:$16 sps:$4 sm:$0xff]  }
 0x248   :  { %6681 = vmatprep.subr.bf16.mxu0 %v9704_v37  ;;  %7337 = vmatprep.subr.bf16.mxu1 %v9707_v38  ;;  %v7649_v37 = vcombine.high %v12409_v27, %v12409_v27  ;;  %v9794_v38 = vld [vmem:[%s13621_s1 + $0x1420] ss:$16 sps:$4 sm:$0xff]  }
 0x24b   :  { %6682 = vmatpush1.bf16.msra.mxu0 %v9702_v39  ;;  %7338 = vmatpush1.bf16.msra.mxu1 %v9705_v40  ;;  %v9797_v39 = vld [vmem:[%s13621_s1 + $0x1428] ss:$16 sps:$4 sm:$0xff]   ;;  %v9802_v40 = vld [vmem:[%s13621_s1 + $0x1444] ss:$16 sps:$4 sm:$0xff]  }
 0x24c   :  { %6683 = vmatprep.subr.bf16.mxu0 %v9710_v41  ;;  %7339 = vmatprep.subr.bf16.mxu1 %v9713_v42  ;;  %v9805_v41 = vld [vmem:[%s13621_s1 + $0x144c] ss:$16 sps:$4 sm:$0xff]   ;;  %v9800_v42 = vld [vmem:[%s13621_s1 + $0x1440] ss:$16 sps:$4 sm:$0xff]  }
 0x24f   :  { %6684 = vmatpush1.bf16.msra.mxu0 %v9708_v43  ;;  %7340 = vmatpush1.bf16.msra.mxu1 %v9711_v44  ;;  %v9803_v43 = vld [vmem:[%s13621_s1 + $0x1448] ss:$16 sps:$4 sm:$0xff]   ;;  %v9808_v44 = vld [vmem:[%s13621_s1 + $0x1464] ss:$16 sps:$4 sm:$0xff]  }
 0x250   :  { %6685 = vmatprep.subr.bf16.mxu0 %v9716_v45  ;;  %7341 = vmatprep.subr.bf16.mxu1 %v9719_v46  ;;  %v9811_v45 = vld [vmem:[%s13621_s1 + $0x146c] ss:$16 sps:$4 sm:$0xff]   ;;  %v9806_v46 = vld [vmem:[%s13621_s1 + $0x1460] ss:$16 sps:$4 sm:$0xff]  }
 0x253   :  { %6686 = vmatpush1.bf16.msra.mxu0 %v9714_v47  ;;  %7342 = vmatpush1.bf16.msra.mxu1 %v9717_v48  ;;  %v9809_v47 = vld [vmem:[%s13621_s1 + $0x1468] ss:$16 sps:$4 sm:$0xff]   ;;  %v9814_v48 = vld [vmem:[%s13621_s1 + $0x1484] ss:$16 sps:$4 sm:$0xff]  }
 0x254   :  { %6687 = vmatprep.subr.bf16.mxu0 %v9722_v49  ;;  %7343 = vmatprep.subr.bf16.mxu1 %v9725_v50  ;;  %v9817_v49 = vld [vmem:[%s13621_s1 + $0x148c] ss:$16 sps:$4 sm:$0xff]   ;;  %v9812_v50 = vld [vmem:[%s13621_s1 + $0x1480] ss:$16 sps:$4 sm:$0xff]  }
 0x257   :  { %6688 = vmatpush1.bf16.msra.mxu0 %v9720_v51  ;;  %7344 = vmatpush1.bf16.msra.mxu1 %v9723_v52  ;;  %v9815_v51 = vld [vmem:[%s13621_s1 + $0x1488] ss:$16 sps:$4 sm:$0xff]   ;;  %v9820_v52 = vld [vmem:[%s13621_s1 + $0x14a4] ss:$16 sps:$4 sm:$0xff]  }
 0x258   :  { %6689 = vmatprep.subr.bf16.mxu0 %v9728_v53  ;;  %7345 = vmatprep.subr.bf16.mxu1 %v9731_v54  ;;  %v9823_v53 = vld [vmem:[%s13621_s1 + $0x14ac] ss:$16 sps:$4 sm:$0xff]   ;;  %v9818_v54 = vld [vmem:[%s13621_s1 + $0x14a0] ss:$16 sps:$4 sm:$0xff]  }
 0x25b   :  { %6690 = vmatpush1.bf16.msra.mxu0 %v9726_v55  ;;  %7346 = vmatpush1.bf16.msra.mxu1 %v9729_v56  ;;  %v9821_v55 = vld [vmem:[%s13621_s1 + $0x14a8] ss:$16 sps:$4 sm:$0xff]   ;;  %v9826_v56 = vld [vmem:[%s13621_s1 + $0x14c4] ss:$16 sps:$4 sm:$0xff]  }
 0x25c   :  { %6691 = vmatprep.subr.bf16.mxu0 %v9734_v57  ;;  %7347 = vmatprep.subr.bf16.mxu1 %v9737_v58  ;;  %v9829_v57 = vld [vmem:[%s13621_s1 + $0x14cc] ss:$16 sps:$4 sm:$0xff]   ;;  %v9824_v58 = vld [vmem:[%s13621_s1 + $0x14c0] ss:$16 sps:$4 sm:$0xff]  }
 0x25f   :  { %6692 = vmatpush1.bf16.msra.mxu0 %v9732_v59  ;;  %7348 = vmatpush1.bf16.msra.mxu1 %v9735_v60  ;;  %v9827_v59 = vld [vmem:[%s13621_s1 + $0x14c8] ss:$16 sps:$4 sm:$0xff]   ;;  %v9832_v60 = vld [vmem:[%s13621_s1 + $0x14e4] ss:$16 sps:$4 sm:$0xff]  }
 0x260   :  { %6693 = vmatprep.subr.bf16.mxu0 %v9740_v61  ;;  %7349 = vmatprep.subr.bf16.mxu1 %v9743_v62  ;;  %v9835_v61 = vld [vmem:[%s13621_s1 + $0x14ec] ss:$16 sps:$4 sm:$0xff]   ;;  %v9830_v62 = vld [vmem:[%s13621_s1 + $0x14e0] ss:$16 sps:$4 sm:$0xff]  }
 0x263   :  { %6694 = vmatpush1.bf16.msra.mxu0 %v9738_v63  ;;  %7350 = vmatpush1.bf16.msra.mxu1 %v9741_v0  ;;  %v9833_v63 = vld [vmem:[%s13621_s1 + $0x14e8] ss:$16 sps:$4 sm:$0xff]   ;;  %v9838_v0 = vld [vmem:[%s13621_s1 + $0x1504] ss:$16 sps:$4 sm:$0xff]  }
 0x264   :  { %6695 = vmatprep.subr.bf16.mxu0 %v9746_v1  ;;  %7351 = vmatprep.subr.bf16.mxu1 %v9749_v2  ;;  %v9841_v1 = vld [vmem:[%s13621_s1 + $0x150c] ss:$16 sps:$4 sm:$0xff]   ;;  %v9836_v2 = vld [vmem:[%s13621_s1 + $0x1500] ss:$16 sps:$4 sm:$0xff]  }
 0x267   :  { %6696 = vmatpush1.bf16.msra.mxu0 %v9744_v3  ;;  %7352 = vmatpush1.bf16.msra.mxu1 %v9747_v4  ;;  %v9839_v3 = vld [vmem:[%s13621_s1 + $0x1508] ss:$16 sps:$4 sm:$0xff]   ;;  %v9844_v4 = vld [vmem:[%s13621_s1 + $0x1524] ss:$16 sps:$4 sm:$0xff]  }
 0x268   :  { %6697 = vmatprep.subr.bf16.mxu0 %v9752_v5  ;;  %7353 = vmatprep.subr.bf16.mxu1 %v9755_v6  ;;  %v9847_v5 = vld [vmem:[%s13621_s1 + $0x152c] ss:$16 sps:$4 sm:$0xff]   ;;  %v9842_v6 = vld [vmem:[%s13621_s1 + $0x1520] ss:$16 sps:$4 sm:$0xff]  }
 0x26b   :  { %6698 = vmatpush1.bf16.msra.mxu0 %v9750_v7  ;;  %7354 = vmatpush1.bf16.msra.mxu1 %v9753_v8  ;;  %v9845_v7 = vld [vmem:[%s13621_s1 + $0x1528] ss:$16 sps:$4 sm:$0xff]   ;;  %v9850_v8 = vld [vmem:[%s13621_s1 + $0x1544] ss:$16 sps:$4 sm:$0xff]  }
 0x26c   :  { %6699 = vmatprep.subr.bf16.mxu0 %v9758_v9  ;;  %7355 = vmatprep.subr.bf16.mxu1 %v9761_v10  ;;  %v9853_v9 = vld [vmem:[%s13621_s1 + $0x154c] ss:$16 sps:$4 sm:$0xff]   ;;  %v9848_v10 = vld [vmem:[%s13621_s1 + $0x1540] ss:$16 sps:$4 sm:$0xff]  }
 0x26f   :  { %6700 = vmatpush1.bf16.msra.mxu0 %v9756_v12  ;;  %7356 = vmatpush1.bf16.msra.mxu1 %v9759_v13  ;;  %v9851_v12 = vld [vmem:[%s13621_s1 + $0x1548] ss:$16 sps:$4 sm:$0xff]   ;;  %v9856_v13 = vld [vmem:[%s13621_s1 + $0x1564] ss:$16 sps:$4 sm:$0xff]  }
 0x270   :  { %6701 = vmatprep.subr.bf16.mxu0 %v9764_v15  ;;  %7357 = vmatprep.subr.bf16.mxu1 %v9767_v11  ;;  %v9859_v15 = vld [vmem:[%s13621_s1 + $0x156c] ss:$16 sps:$4 sm:$0xff]   ;;  %v9854_v11 = vld [vmem:[%s13621_s1 + $0x1560] ss:$16 sps:$4 sm:$0xff]  }
 0x273   :  { %6702 = vmatpush1.bf16.msra.mxu0 %v9762_v17  ;;  %7358 = vmatpush1.bf16.msra.mxu1 %v9765_v14  ;;  %v9857_v17 = vld [vmem:[%s13621_s1 + $0x1568] ss:$16 sps:$4 sm:$0xff]   ;;  %v9862_v14 = vld [vmem:[%s13621_s1 + $0x1584] ss:$16 sps:$4 sm:$0xff]  }
 0x274   :  { %6703 = vmatprep.subr.bf16.mxu0 %v9770_v19  ;;  %7359 = vmatprep.subr.bf16.mxu1 %v9773_v20  ;;  %v9865_v19 = vld [vmem:[%s13621_s1 + $0x158c] ss:$16 sps:$4 sm:$0xff]   ;;  %v9860_v20 = vld [vmem:[%s13621_s1 + $0x1580] ss:$16 sps:$4 sm:$0xff]  }
 0x277   :  { %6704 = vmatpush1.bf16.msra.mxu0 %v9768_v16  ;;  %7360 = vmatpush1.bf16.msra.mxu1 %v9771_v22  ;;  %v9863_v16 = vld [vmem:[%s13621_s1 + $0x1588] ss:$16 sps:$4 sm:$0xff]   ;;  %v9868_v22 = vld [vmem:[%s13621_s1 + $0x15a4] ss:$16 sps:$4 sm:$0xff]  }
 0x278   :  { %6705 = vmatprep.subr.bf16.mxu0 %v9776_v23  ;;  %7361 = vmatprep.subr.bf16.mxu1 %v9779_v18  ;;  %v9871_v23 = vld [vmem:[%s13621_s1 + $0x15ac] ss:$16 sps:$4 sm:$0xff]   ;;  %v9866_v18 = vld [vmem:[%s13621_s1 + $0x15a0] ss:$16 sps:$4 sm:$0xff]  }
 0x27b   :  { %6706 = vmatpush1.bf16.msra.mxu0 %v9774_v25  ;;  %7362 = vmatpush1.bf16.msra.mxu1 %v9777_v26  ;;  %v9869_v25 = vld [vmem:[%s13621_s1 + $0x15a8] ss:$16 sps:$4 sm:$0xff]   ;;  %v9874_v26 = vld [vmem:[%s13621_s1 + $0x15c4] ss:$16 sps:$4 sm:$0xff]  }
 0x27c   :  { %6707 = vmatprep.subr.bf16.mxu0 %v9782_v21  ;;  %7363 = vmatprep.subr.bf16.mxu1 %v9785_v28  ;;  %v9877_v21 = vld [vmem:[%s13621_s1 + $0x15cc] ss:$16 sps:$4 sm:$0xff]   ;;  %v9872_v28 = vld [vmem:[%s13621_s1 + $0x15c0] ss:$16 sps:$4 sm:$0xff]  }
 0x27f   :  { %6708 = vmatpush1.bf16.msra.mxu0 %v9780_v29  ;;  %7364 = vmatpush1.bf16.msra.mxu1 %v9783_v24  ;;  %v9875_v29 = vld [vmem:[%s13621_s1 + $0x15c8] ss:$16 sps:$4 sm:$0xff]   ;;  %v9880_v24 = vld [vmem:[%s13621_s1 + $0x15e4] ss:$16 sps:$4 sm:$0xff]  }
 0x280   :  { %6718 = vmatprep.subr.bf16.mxu0 %v9790_v31  ;;  %7374 = vmatprep.subr.bf16.mxu1 %v9793_v32  ;;  %v9883_v31 = vld [vmem:[%s13621_s1 + $0x15ec] ss:$16 sps:$4 sm:$0xff]   ;;  %v9878_v32 = vld [vmem:[%s13621_s1 + $0x15e0] ss:$16 sps:$4 sm:$0xff]  }
 0x282   :  { %6710 = vmatmul.mubr.bf16.vlgmr.msra.gmra.mrb[0].mxu0 %v7646_v33  ;;  %7366 = vmatmul.mubr.bf16.vlgmr.msra.gmra.mrb[0].mxu1 %v7646_v33  ;;  %v9881_v33 = vld [vmem:[%s13621_s1 + $0x15e8] ss:$16 sps:$4 sm:$0xff]  }
 0x283   :  { %6719 = vmatpush1.bf16.msra.mxu0 %v9788_v34  ;;  %7375 = vmatpush1.bf16.msra.mxu1 %v9791_v35  ;;  %v9888_v34 = vld [vmem:[%s13621_s1 + $0x1604] ss:$16 sps:$4 sm:$0xff]   ;;  %v9891_v35 = vld [vmem:[%s13621_s1 + $0x160c] ss:$16 sps:$4 sm:$0xff]  }
 0x284   :  { %6720 = vmatprep.subr.bf16.mxu0 %v9796_v30  ;;  %7376 = vmatprep.subr.bf16.mxu1 %v9799_v36  ;;  %v7648_v30 = vcombine.low %v12409_v27, %v12409_v27  ;;  %v12610_v36 = vld [vmem:[%s13622_s0 + $0x58] sm:$0xff]  ;;  %v9894_v27 = vld [vmem:[%s13621_s1 + $0x1624] ss:$16 sps:$4 sm:$0xff]  }
 0x285   :  { %6750 = vmatprep.mubr.bf16.mxu0 %v7649_v37  ;;  %7406 = vmatprep.mubr.bf16.mxu1 %v7649_v37  ;;  %v9886_v37 = vld [vmem:[%s13621_s1 + $0x1600] ss:$16 sps:$4 sm:$0xff]  }
 0x287   :  { %6721 = vmatpush1.bf16.msra.mxu0 %v9794_v38  ;;  %7377 = vmatpush1.bf16.msra.mxu1 %v9797_v39  ;;  %v9889_v38 = vld [vmem:[%s13621_s1 + $0x1608] ss:$16 sps:$4 sm:$0xff]   ;;  %v9897_v39 = vld [vmem:[%s13621_s1 + $0x162c] ss:$16 sps:$4 sm:$0xff]  }
 0x288   :  { %6722 = vmatprep.subr.bf16.mxu0 %v9802_v40  ;;  %7378 = vmatprep.subr.bf16.mxu1 %v9805_v41  ;;  %v7651_v40 = vcombine.high %v12610_v36, %v12610_v36  ;;  %v9892_v41 = vld [vmem:[%s13621_s1 + $0x1620] ss:$16 sps:$4 sm:$0xff]  }
 0x28b   :  { %6723 = vmatpush1.bf16.msra.mxu0 %v9800_v42  ;;  %7379 = vmatpush1.bf16.msra.mxu1 %v9803_v43  ;;  %v9895_v42 = vld [vmem:[%s13621_s1 + $0x1628] ss:$16 sps:$4 sm:$0xff]   ;;  %v9900_v43 = vld [vmem:[%s13621_s1 + $0x1644] ss:$16 sps:$4 sm:$0xff]  }
 0x28c   :  { %6724 = vmatprep.subr.bf16.mxu0 %v9808_v44  ;;  %7380 = vmatprep.subr.bf16.mxu1 %v9811_v45  ;;  %v9903_v44 = vld [vmem:[%s13621_s1 + $0x164c] ss:$16 sps:$4 sm:$0xff]   ;;  %v9898_v45 = vld [vmem:[%s13621_s1 + $0x1640] ss:$16 sps:$4 sm:$0xff]  }
 0x28f   :  { %6725 = vmatpush1.bf16.msra.mxu0 %v9806_v46  ;;  %7381 = vmatpush1.bf16.msra.mxu1 %v9809_v47  ;;  %v9901_v46 = vld [vmem:[%s13621_s1 + $0x1648] ss:$16 sps:$4 sm:$0xff]   ;;  %v9906_v47 = vld [vmem:[%s13621_s1 + $0x1664] ss:$16 sps:$4 sm:$0xff]  }
 0x290   :  { %6726 = vmatprep.subr.bf16.mxu0 %v9814_v48  ;;  %7382 = vmatprep.subr.bf16.mxu1 %v9817_v49  ;;  %v9909_v48 = vld [vmem:[%s13621_s1 + $0x166c] ss:$16 sps:$4 sm:$0xff]   ;;  %v9904_v49 = vld [vmem:[%s13621_s1 + $0x1660] ss:$16 sps:$4 sm:$0xff]  }
 0x293   :  { %6727 = vmatpush1.bf16.msra.mxu0 %v9812_v50  ;;  %7383 = vmatpush1.bf16.msra.mxu1 %v9815_v51  ;;  %v9907_v50 = vld [vmem:[%s13621_s1 + $0x1668] ss:$16 sps:$4 sm:$0xff]   ;;  %v9912_v51 = vld [vmem:[%s13621_s1 + $0x1684] ss:$16 sps:$4 sm:$0xff]  }
 0x294   :  { %6728 = vmatprep.subr.bf16.mxu0 %v9820_v52  ;;  %7384 = vmatprep.subr.bf16.mxu1 %v9823_v53  ;;  %v9915_v52 = vld [vmem:[%s13621_s1 + $0x168c] ss:$16 sps:$4 sm:$0xff]   ;;  %v9910_v53 = vld [vmem:[%s13621_s1 + $0x1680] ss:$16 sps:$4 sm:$0xff]  }
 0x297   :  { %6729 = vmatpush1.bf16.msra.mxu0 %v9818_v54  ;;  %7385 = vmatpush1.bf16.msra.mxu1 %v9821_v55  ;;  %v9913_v54 = vld [vmem:[%s13621_s1 + $0x1688] ss:$16 sps:$4 sm:$0xff]   ;;  %v9918_v55 = vld [vmem:[%s13621_s1 + $0x16a4] ss:$16 sps:$4 sm:$0xff]  }
 0x298   :  { %6730 = vmatprep.subr.bf16.mxu0 %v9826_v56  ;;  %7386 = vmatprep.subr.bf16.mxu1 %v9829_v57  ;;  %v9921_v56 = vld [vmem:[%s13621_s1 + $0x16ac] ss:$16 sps:$4 sm:$0xff]   ;;  %v9916_v57 = vld [vmem:[%s13621_s1 + $0x16a0] ss:$16 sps:$4 sm:$0xff]  }
 0x29b   :  { %6731 = vmatpush1.bf16.msra.mxu0 %v9824_v58  ;;  %7387 = vmatpush1.bf16.msra.mxu1 %v9827_v59  ;;  %v9919_v58 = vld [vmem:[%s13621_s1 + $0x16a8] ss:$16 sps:$4 sm:$0xff]   ;;  %v9924_v59 = vld [vmem:[%s13621_s1 + $0x16c4] ss:$16 sps:$4 sm:$0xff]  }
 0x29c   :  { %6732 = vmatprep.subr.bf16.mxu0 %v9832_v60  ;;  %7388 = vmatprep.subr.bf16.mxu1 %v9835_v61  ;;  %v9927_v60 = vld [vmem:[%s13621_s1 + $0x16cc] ss:$16 sps:$4 sm:$0xff]   ;;  %v9922_v61 = vld [vmem:[%s13621_s1 + $0x16c0] ss:$16 sps:$4 sm:$0xff]  }
 0x29f   :  { %6733 = vmatpush1.bf16.msra.mxu0 %v9830_v62  ;;  %7389 = vmatpush1.bf16.msra.mxu1 %v9833_v63  ;;  %v9925_v62 = vld [vmem:[%s13621_s1 + $0x16c8] ss:$16 sps:$4 sm:$0xff]   ;;  %v9930_v63 = vld [vmem:[%s13621_s1 + $0x16e4] ss:$16 sps:$4 sm:$0xff]  }
 0x2a0   :  { %6734 = vmatprep.subr.bf16.mxu0 %v9838_v0  ;;  %7390 = vmatprep.subr.bf16.mxu1 %v9841_v1  ;;  %v9933_v0 = vld [vmem:[%s13621_s1 + $0x16ec] ss:$16 sps:$4 sm:$0xff]   ;;  %v9928_v1 = vld [vmem:[%s13621_s1 + $0x16e0] ss:$16 sps:$4 sm:$0xff]  }
 0x2a3   :  { %6735 = vmatpush1.bf16.msra.mxu0 %v9836_v2  ;;  %7391 = vmatpush1.bf16.msra.mxu1 %v9839_v3  ;;  %v9931_v2 = vld [vmem:[%s13621_s1 + $0x16e8] ss:$16 sps:$4 sm:$0xff]   ;;  %v9936_v3 = vld [vmem:[%s13621_s1 + $0x1704] ss:$16 sps:$4 sm:$0xff]  }
 0x2a4   :  { %6736 = vmatprep.subr.bf16.mxu0 %v9844_v4  ;;  %7392 = vmatprep.subr.bf16.mxu1 %v9847_v5  ;;  %v9939_v4 = vld [vmem:[%s13621_s1 + $0x170c] ss:$16 sps:$4 sm:$0xff]   ;;  %v9934_v5 = vld [vmem:[%s13621_s1 + $0x1700] ss:$16 sps:$4 sm:$0xff]  }
 0x2a7   :  { %6737 = vmatpush1.bf16.msra.mxu0 %v9842_v6  ;;  %7393 = vmatpush1.bf16.msra.mxu1 %v9845_v7  ;;  %v9937_v6 = vld [vmem:[%s13621_s1 + $0x1708] ss:$16 sps:$4 sm:$0xff]   ;;  %v9942_v7 = vld [vmem:[%s13621_s1 + $0x1724] ss:$16 sps:$4 sm:$0xff]  }
 0x2a8   :  { %6738 = vmatprep.subr.bf16.mxu0 %v9850_v8  ;;  %7394 = vmatprep.subr.bf16.mxu1 %v9853_v9  ;;  %v9945_v8 = vld [vmem:[%s13621_s1 + $0x172c] ss:$16 sps:$4 sm:$0xff]   ;;  %v9940_v9 = vld [vmem:[%s13621_s1 + $0x1720] ss:$16 sps:$4 sm:$0xff]  }
 0x2ab   :  { %6739 = vmatpush1.bf16.msra.mxu0 %v9848_v10  ;;  %7395 = vmatpush1.bf16.msra.mxu1 %v9851_v12  ;;  %v9943_v10 = vld [vmem:[%s13621_s1 + $0x1728] ss:$16 sps:$4 sm:$0xff]   ;;  %v9948_v12 = vld [vmem:[%s13621_s1 + $0x1744] ss:$16 sps:$4 sm:$0xff]  }
 0x2ac   :  { %6740 = vmatprep.subr.bf16.mxu0 %v9856_v13  ;;  %7396 = vmatprep.subr.bf16.mxu1 %v9859_v15  ;;  %v9951_v13 = vld [vmem:[%s13621_s1 + $0x174c] ss:$16 sps:$4 sm:$0xff]   ;;  %v9946_v15 = vld [vmem:[%s13621_s1 + $0x1740] ss:$16 sps:$4 sm:$0xff]  }
 0x2af   :  { %6741 = vmatpush1.bf16.msra.mxu0 %v9854_v11  ;;  %7397 = vmatpush1.bf16.msra.mxu1 %v9857_v17  ;;  %v9949_v11 = vld [vmem:[%s13621_s1 + $0x1748] ss:$16 sps:$4 sm:$0xff]   ;;  %v9954_v17 = vld [vmem:[%s13621_s1 + $0x1764] ss:$16 sps:$4 sm:$0xff]  }
 0x2b0   :  { %6742 = vmatprep.subr.bf16.mxu0 %v9862_v14  ;;  %7398 = vmatprep.subr.bf16.mxu1 %v9865_v19  ;;  %v9957_v14 = vld [vmem:[%s13621_s1 + $0x176c] ss:$16 sps:$4 sm:$0xff]   ;;  %v9952_v19 = vld [vmem:[%s13621_s1 + $0x1760] ss:$16 sps:$4 sm:$0xff]  }
 0x2b3   :  { %6743 = vmatpush1.bf16.msra.mxu0 %v9860_v20  ;;  %7399 = vmatpush1.bf16.msra.mxu1 %v9863_v16  ;;  %v9955_v20 = vld [vmem:[%s13621_s1 + $0x1768] ss:$16 sps:$4 sm:$0xff]   ;;  %v9960_v16 = vld [vmem:[%s13621_s1 + $0x1784] ss:$16 sps:$4 sm:$0xff]  }
 0x2b4   :  { %6744 = vmatprep.subr.bf16.mxu0 %v9868_v22  ;;  %7400 = vmatprep.subr.bf16.mxu1 %v9871_v23  ;;  %v9963_v22 = vld [vmem:[%s13621_s1 + $0x178c] ss:$16 sps:$4 sm:$0xff]   ;;  %v9958_v23 = vld [vmem:[%s13621_s1 + $0x1780] ss:$16 sps:$4 sm:$0xff]  }
 0x2b7   :  { %6745 = vmatpush1.bf16.msra.mxu0 %v9866_v18  ;;  %7401 = vmatpush1.bf16.msra.mxu1 %v9869_v25  ;;  %v9961_v18 = vld [vmem:[%s13621_s1 + $0x1788] ss:$16 sps:$4 sm:$0xff]   ;;  %v9966_v25 = vld [vmem:[%s13621_s1 + $0x17a4] ss:$16 sps:$4 sm:$0xff]  }
 0x2b8   :  { %6746 = vmatprep.subr.bf16.mxu0 %v9874_v26  ;;  %7402 = vmatprep.subr.bf16.mxu1 %v9877_v21  ;;  %v9969_v26 = vld [vmem:[%s13621_s1 + $0x17ac] ss:$16 sps:$4 sm:$0xff]   ;;  %v9964_v21 = vld [vmem:[%s13621_s1 + $0x17a0] ss:$16 sps:$4 sm:$0xff]  }
 0x2bb   :  { %6747 = vmatpush1.bf16.msra.mxu0 %v9872_v28  ;;  %7403 = vmatpush1.bf16.msra.mxu1 %v9875_v29  ;;  %v9967_v28 = vld [vmem:[%s13621_s1 + $0x17a8] ss:$16 sps:$4 sm:$0xff]   ;;  %v9972_v29 = vld [vmem:[%s13621_s1 + $0x17c4] ss:$16 sps:$4 sm:$0xff]  }
 0x2bc   :  { %6748 = vmatprep.subr.bf16.mxu0 %v9880_v24  ;;  %7404 = vmatprep.subr.bf16.mxu1 %v9883_v31  ;;  %v9975_v24 = vld [vmem:[%s13621_s1 + $0x17cc] ss:$16 sps:$4 sm:$0xff]   ;;  %v9970_v31 = vld [vmem:[%s13621_s1 + $0x17c0] ss:$16 sps:$4 sm:$0xff]  }
 0x2bf   :  { %6749 = vmatpush1.bf16.msra.mxu0 %v9878_v32  ;;  %7405 = vmatpush1.bf16.msra.mxu1 %v9881_v33  ;;  %v9973_v32 = vld [vmem:[%s13621_s1 + $0x17c8] ss:$16 sps:$4 sm:$0xff]   ;;  %v9978_v33 = vld [vmem:[%s13621_s1 + $0x17e4] ss:$16 sps:$4 sm:$0xff]  }
 0x2c0   :  { %6759 = vmatprep.subr.bf16.mxu0 %v9888_v34  ;;  %7415 = vmatprep.subr.bf16.mxu1 %v9891_v35  ;;  %v9981_v34 = vld [vmem:[%s13621_s1 + $0x17ec] ss:$16 sps:$4 sm:$0xff]   ;;  %v9976_v35 = vld [vmem:[%s13621_s1 + $0x17e0] ss:$16 sps:$4 sm:$0xff]  }
 0x2c2   :  { %6751 = vmatmul.mubr.bf16.vlgmr.msra.gmra.mrb[0].mxu0 %v7648_v30  ;;  %7407 = vmatmul.mubr.bf16.vlgmr.msra.gmra.mrb[0].mxu1 %v7648_v30  ;;  %v9979_v30 = vld [vmem:[%s13621_s1 + $0x17e8] ss:$16 sps:$4 sm:$0xff]  }
 0x2c3   :  { %6760 = vmatpush1.bf16.msra.mxu0 %v9886_v37  ;;  %7416 = vmatpush1.bf16.msra.mxu1 %v9889_v38  ;;  %v9986_v37 = vld [vmem:[%s13621_s1 + $0x1804] ss:$16 sps:$4 sm:$0xff]   ;;  %v9989_v38 = vld [vmem:[%s13621_s1 + $0x180c] ss:$16 sps:$4 sm:$0xff]  }
 0x2c4   :  { %6761 = vmatprep.subr.bf16.mxu0 %v9894_v27  ;;  %7417 = vmatprep.subr.bf16.mxu1 %v9897_v39  ;;  %v7650_v27 = vcombine.low %v12610_v36, %v12610_v36  ;;  %v12811_v39 = vld [vmem:[%s13622_s0 + $0x60] sm:$0xff] }
 0x2c5   :  { %6791 = vmatprep.mubr.bf16.mxu0 %v7651_v40  ;;  %7447 = vmatprep.mubr.bf16.mxu1 %v7651_v40  ;;  %v9984_v40 = vld [vmem:[%s13621_s1 + $0x1800] ss:$16 sps:$4 sm:$0xff]   ;;  %v9992_v36 = vld [vmem:[%s13621_s1 + $0x1824] ss:$16 sps:$4 sm:$0xff]  }
 0x2c7   :  { %6762 = vmatpush1.bf16.msra.mxu0 %v9892_v41  ;;  %7418 = vmatpush1.bf16.msra.mxu1 %v9895_v42  ;;  %v9987_v41 = vld [vmem:[%s13621_s1 + $0x1808] ss:$16 sps:$4 sm:$0xff]   ;;  %v9995_v42 = vld [vmem:[%s13621_s1 + $0x182c] ss:$16 sps:$4 sm:$0xff]  }
 0x2c8   :  { %6763 = vmatprep.subr.bf16.mxu0 %v9900_v43  ;;  %7419 = vmatprep.subr.bf16.mxu1 %v9903_v44  ;;  %v7653_v43 = vcombine.high %v12811_v39, %v12811_v39  ;;  %v9990_v44 = vld [vmem:[%s13621_s1 + $0x1820] ss:$16 sps:$4 sm:$0xff]  }
 0x2cb   :  { %6764 = vmatpush1.bf16.msra.mxu0 %v9898_v45  ;;  %7420 = vmatpush1.bf16.msra.mxu1 %v9901_v46  ;;  %v9993_v45 = vld [vmem:[%s13621_s1 + $0x1828] ss:$16 sps:$4 sm:$0xff]   ;;  %v9998_v46 = vld [vmem:[%s13621_s1 + $0x1844] ss:$16 sps:$4 sm:$0xff]  }
 0x2cc   :  { %6765 = vmatprep.subr.bf16.mxu0 %v9906_v47  ;;  %7421 = vmatprep.subr.bf16.mxu1 %v9909_v48  ;;  %v10001_v47 = vld [vmem:[%s13621_s1 + $0x184c] ss:$16 sps:$4 sm:$0xff]   ;;  %v9996_v48 = vld [vmem:[%s13621_s1 + $0x1840] ss:$16 sps:$4 sm:$0xff]  }
 0x2cf   :  { %6766 = vmatpush1.bf16.msra.mxu0 %v9904_v49  ;;  %7422 = vmatpush1.bf16.msra.mxu1 %v9907_v50  ;;  %v9999_v49 = vld [vmem:[%s13621_s1 + $0x1848] ss:$16 sps:$4 sm:$0xff]   ;;  %v10004_v50 = vld [vmem:[%s13621_s1 + $0x1864] ss:$16 sps:$4 sm:$0xff]  }
 0x2d0   :  { %6767 = vmatprep.subr.bf16.mxu0 %v9912_v51  ;;  %7423 = vmatprep.subr.bf16.mxu1 %v9915_v52  ;;  %v10007_v51 = vld [vmem:[%s13621_s1 + $0x186c] ss:$16 sps:$4 sm:$0xff]   ;;  %v10002_v52 = vld [vmem:[%s13621_s1 + $0x1860] ss:$16 sps:$4 sm:$0xff]  }
 0x2d3   :  { %6768 = vmatpush1.bf16.msra.mxu0 %v9910_v53  ;;  %7424 = vmatpush1.bf16.msra.mxu1 %v9913_v54  ;;  %v10005_v53 = vld [vmem:[%s13621_s1 + $0x1868] ss:$16 sps:$4 sm:$0xff]   ;;  %v10010_v54 = vld [vmem:[%s13621_s1 + $0x1884] ss:$16 sps:$4 sm:$0xff]  }
 0x2d4   :  { %6769 = vmatprep.subr.bf16.mxu0 %v9918_v55  ;;  %7425 = vmatprep.subr.bf16.mxu1 %v9921_v56  ;;  %v10013_v55 = vld [vmem:[%s13621_s1 + $0x188c] ss:$16 sps:$4 sm:$0xff]   ;;  %v10008_v56 = vld [vmem:[%s13621_s1 + $0x1880] ss:$16 sps:$4 sm:$0xff]  }
 0x2d7   :  { %6770 = vmatpush1.bf16.msra.mxu0 %v9916_v57  ;;  %7426 = vmatpush1.bf16.msra.mxu1 %v9919_v58  ;;  %v10011_v57 = vld [vmem:[%s13621_s1 + $0x1888] ss:$16 sps:$4 sm:$0xff]   ;;  %v10016_v58 = vld [vmem:[%s13621_s1 + $0x18a4] ss:$16 sps:$4 sm:$0xff]  }
 0x2d8   :  { %6771 = vmatprep.subr.bf16.mxu0 %v9924_v59  ;;  %7427 = vmatprep.subr.bf16.mxu1 %v9927_v60  ;;  %v10019_v59 = vld [vmem:[%s13621_s1 + $0x18ac] ss:$16 sps:$4 sm:$0xff]   ;;  %v10014_v60 = vld [vmem:[%s13621_s1 + $0x18a0] ss:$16 sps:$4 sm:$0xff]  }
 0x2db   :  { %6772 = vmatpush1.bf16.msra.mxu0 %v9922_v61  ;;  %7428 = vmatpush1.bf16.msra.mxu1 %v9925_v62  ;;  %v10017_v61 = vld [vmem:[%s13621_s1 + $0x18a8] ss:$16 sps:$4 sm:$0xff]   ;;  %v10022_v62 = vld [vmem:[%s13621_s1 + $0x18c4] ss:$16 sps:$4 sm:$0xff]  }
 0x2dc   :  { %6773 = vmatprep.subr.bf16.mxu0 %v9930_v63  ;;  %7429 = vmatprep.subr.bf16.mxu1 %v9933_v0  ;;  %v10025_v63 = vld [vmem:[%s13621_s1 + $0x18cc] ss:$16 sps:$4 sm:$0xff]   ;;  %v10020_v0 = vld [vmem:[%s13621_s1 + $0x18c0] ss:$16 sps:$4 sm:$0xff]  }
 0x2df   :  { %6774 = vmatpush1.bf16.msra.mxu0 %v9928_v1  ;;  %7430 = vmatpush1.bf16.msra.mxu1 %v9931_v2  ;;  %v10023_v1 = vld [vmem:[%s13621_s1 + $0x18c8] ss:$16 sps:$4 sm:$0xff]   ;;  %v10028_v2 = vld [vmem:[%s13621_s1 + $0x18e4] ss:$16 sps:$4 sm:$0xff]  }
 0x2e0   :  { %6775 = vmatprep.subr.bf16.mxu0 %v9936_v3  ;;  %7431 = vmatprep.subr.bf16.mxu1 %v9939_v4  ;;  %v10031_v3 = vld [vmem:[%s13621_s1 + $0x18ec] ss:$16 sps:$4 sm:$0xff]   ;;  %v10026_v4 = vld [vmem:[%s13621_s1 + $0x18e0] ss:$16 sps:$4 sm:$0xff]  }
 0x2e3   :  { %6776 = vmatpush1.bf16.msra.mxu0 %v9934_v5  ;;  %7432 = vmatpush1.bf16.msra.mxu1 %v9937_v6  ;;  %v10029_v5 = vld [vmem:[%s13621_s1 + $0x18e8] ss:$16 sps:$4 sm:$0xff]   ;;  %v10034_v6 = vld [vmem:[%s13621_s1 + $0x1904] ss:$16 sps:$4 sm:$0xff]  }
 0x2e4   :  { %6777 = vmatprep.subr.bf16.mxu0 %v9942_v7  ;;  %7433 = vmatprep.subr.bf16.mxu1 %v9945_v8  ;;  %v10037_v7 = vld [vmem:[%s13621_s1 + $0x190c] ss:$16 sps:$4 sm:$0xff]   ;;  %v10032_v8 = vld [vmem:[%s13621_s1 + $0x1900] ss:$16 sps:$4 sm:$0xff]  }
 0x2e7   :  { %6778 = vmatpush1.bf16.msra.mxu0 %v9940_v9  ;;  %7434 = vmatpush1.bf16.msra.mxu1 %v9943_v10  ;;  %v10035_v9 = vld [vmem:[%s13621_s1 + $0x1908] ss:$16 sps:$4 sm:$0xff]   ;;  %v10040_v10 = vld [vmem:[%s13621_s1 + $0x1924] ss:$16 sps:$4 sm:$0xff]  }
 0x2e8   :  { %6779 = vmatprep.subr.bf16.mxu0 %v9948_v12  ;;  %7435 = vmatprep.subr.bf16.mxu1 %v9951_v13  ;;  %v10043_v12 = vld [vmem:[%s13621_s1 + $0x192c] ss:$16 sps:$4 sm:$0xff]   ;;  %v10038_v13 = vld [vmem:[%s13621_s1 + $0x1920] ss:$16 sps:$4 sm:$0xff]  }
 0x2eb   :  { %6780 = vmatpush1.bf16.msra.mxu0 %v9946_v15  ;;  %7436 = vmatpush1.bf16.msra.mxu1 %v9949_v11  ;;  %v10041_v15 = vld [vmem:[%s13621_s1 + $0x1928] ss:$16 sps:$4 sm:$0xff]   ;;  %v10046_v11 = vld [vmem:[%s13621_s1 + $0x1944] ss:$16 sps:$4 sm:$0xff]  }
 0x2ec   :  { %6781 = vmatprep.subr.bf16.mxu0 %v9954_v17  ;;  %7437 = vmatprep.subr.bf16.mxu1 %v9957_v14  ;;  %v10049_v17 = vld [vmem:[%s13621_s1 + $0x194c] ss:$16 sps:$4 sm:$0xff]   ;;  %v10044_v14 = vld [vmem:[%s13621_s1 + $0x1940] ss:$16 sps:$4 sm:$0xff]  }
 0x2ef   :  { %6782 = vmatpush1.bf16.msra.mxu0 %v9952_v19  ;;  %7438 = vmatpush1.bf16.msra.mxu1 %v9955_v20  ;;  %v10047_v19 = vld [vmem:[%s13621_s1 + $0x1948] ss:$16 sps:$4 sm:$0xff]   ;;  %v10052_v20 = vld [vmem:[%s13621_s1 + $0x1964] ss:$16 sps:$4 sm:$0xff]  }
 0x2f0   :  { %6783 = vmatprep.subr.bf16.mxu0 %v9960_v16  ;;  %7439 = vmatprep.subr.bf16.mxu1 %v9963_v22  ;;  %v10055_v16 = vld [vmem:[%s13621_s1 + $0x196c] ss:$16 sps:$4 sm:$0xff]   ;;  %v10050_v22 = vld [vmem:[%s13621_s1 + $0x1960] ss:$16 sps:$4 sm:$0xff]  }
 0x2f3   :  { %6784 = vmatpush1.bf16.msra.mxu0 %v9958_v23  ;;  %7440 = vmatpush1.bf16.msra.mxu1 %v9961_v18  ;;  %v10053_v23 = vld [vmem:[%s13621_s1 + $0x1968] ss:$16 sps:$4 sm:$0xff]   ;;  %v10058_v18 = vld [vmem:[%s13621_s1 + $0x1984] ss:$16 sps:$4 sm:$0xff]  }
 0x2f4   :  { %6785 = vmatprep.subr.bf16.mxu0 %v9966_v25  ;;  %7441 = vmatprep.subr.bf16.mxu1 %v9969_v26  ;;  %v10061_v25 = vld [vmem:[%s13621_s1 + $0x198c] ss:$16 sps:$4 sm:$0xff]   ;;  %v10056_v26 = vld [vmem:[%s13621_s1 + $0x1980] ss:$16 sps:$4 sm:$0xff]  }
 0x2f7   :  { %6786 = vmatpush1.bf16.msra.mxu0 %v9964_v21  ;;  %7442 = vmatpush1.bf16.msra.mxu1 %v9967_v28  ;;  %v10059_v21 = vld [vmem:[%s13621_s1 + $0x1988] ss:$16 sps:$4 sm:$0xff]   ;;  %v10064_v28 = vld [vmem:[%s13621_s1 + $0x19a4] ss:$16 sps:$4 sm:$0xff]  }
 0x2f8   :  { %6787 = vmatprep.subr.bf16.mxu0 %v9972_v29  ;;  %7443 = vmatprep.subr.bf16.mxu1 %v9975_v24  ;;  %v10067_v29 = vld [vmem:[%s13621_s1 + $0x19ac] ss:$16 sps:$4 sm:$0xff]   ;;  %v10062_v24 = vld [vmem:[%s13621_s1 + $0x19a0] ss:$16 sps:$4 sm:$0xff]  }
 0x2fb   :  { %6788 = vmatpush1.bf16.msra.mxu0 %v9970_v31  ;;  %7444 = vmatpush1.bf16.msra.mxu1 %v9973_v32  ;;  %v10065_v31 = vld [vmem:[%s13621_s1 + $0x19a8] ss:$16 sps:$4 sm:$0xff]   ;;  %v10070_v32 = vld [vmem:[%s13621_s1 + $0x19c4] ss:$16 sps:$4 sm:$0xff]  }
 0x2fc   :  { %6789 = vmatprep.subr.bf16.mxu0 %v9978_v33  ;;  %7445 = vmatprep.subr.bf16.mxu1 %v9981_v34  ;;  %v10073_v33 = vld [vmem:[%s13621_s1 + $0x19cc] ss:$16 sps:$4 sm:$0xff]   ;;  %v10068_v34 = vld [vmem:[%s13621_s1 + $0x19c0] ss:$16 sps:$4 sm:$0xff]  }
 0x2ff   :  { %6790 = vmatpush1.bf16.msra.mxu0 %v9976_v35  ;;  %7446 = vmatpush1.bf16.msra.mxu1 %v9979_v30  ;;  %v10071_v35 = vld [vmem:[%s13621_s1 + $0x19c8] ss:$16 sps:$4 sm:$0xff]   ;;  %v10076_v30 = vld [vmem:[%s13621_s1 + $0x19e4] ss:$16 sps:$4 sm:$0xff]  }
 0x300   :  { %6800 = vmatprep.subr.bf16.mxu0 %v9986_v37  ;;  %7456 = vmatprep.subr.bf16.mxu1 %v9989_v38  ;;  %v10079_v37 = vld [vmem:[%s13621_s1 + $0x19ec] ss:$16 sps:$4 sm:$0xff]   ;;  %v10074_v38 = vld [vmem:[%s13621_s1 + $0x19e0] ss:$16 sps:$4 sm:$0xff]  }
 0x302   :  { %6792 = vmatmul.mubr.bf16.vlgmr.msra.gmra.mrb[0].mxu0 %v7650_v27  ;;  %7448 = vmatmul.mubr.bf16.vlgmr.msra.gmra.mrb[0].mxu1 %v7650_v27  ;;  %v10077_v27 = vld [vmem:[%s13621_s1 + $0x19e8] ss:$16 sps:$4 sm:$0xff]  }
 0x303   :  { %6801 = vmatpush1.bf16.msra.mxu0 %v9984_v40  ;;  %7457 = vmatpush1.bf16.msra.mxu1 %v9987_v41  ;;  %v10084_v40 = vld [vmem:[%s13621_s1 + $0x1a04] ss:$16 sps:$4 sm:$0xff]   ;;  %v10087_v41 = vld [vmem:[%s13621_s1 + $0x1a0c] ss:$16 sps:$4 sm:$0xff]  }
 0x304   :  { %6802 = vmatprep.subr.bf16.mxu0 %v9992_v36  ;;  %7458 = vmatprep.subr.bf16.mxu1 %v9995_v42  ;;  %v7652_v36 = vcombine.low %v12811_v39, %v12811_v39  ;;  %v13012_v42 = vld [vmem:[%s13622_s0 + $0x68] sm:$0xff]  ;;  %v10090_v39 = vld [vmem:[%s13621_s1 + $0x1a24] ss:$16 sps:$4 sm:$0xff]  }
 0x305   :  { %6832 = vmatprep.mubr.bf16.mxu0 %v7653_v43  ;;  %7488 = vmatprep.mubr.bf16.mxu1 %v7653_v43  ;;  %v10082_v43 = vld [vmem:[%s13621_s1 + $0x1a00] ss:$16 sps:$4 sm:$0xff]  }
 0x307   :  { %6803 = vmatpush1.bf16.msra.mxu0 %v9990_v44  ;;  %7459 = vmatpush1.bf16.msra.mxu1 %v9993_v45  ;;  %v10085_v44 = vld [vmem:[%s13621_s1 + $0x1a08] ss:$16 sps:$4 sm:$0xff]   ;;  %v10093_v45 = vld [vmem:[%s13621_s1 + $0x1a2c] ss:$16 sps:$4 sm:$0xff]  }
 0x308   :  { %6804 = vmatprep.subr.bf16.mxu0 %v9998_v46  ;;  %7460 = vmatprep.subr.bf16.mxu1 %v10001_v47  ;;  %v7655_v46 = vcombine.high %v13012_v42, %v13012_v42  ;;  %v10088_v47 = vld [vmem:[%s13621_s1 + $0x1a20] ss:$16 sps:$4 sm:$0xff]  }
 0x30b   :  { %6805 = vmatpush1.bf16.msra.mxu0 %v9996_v48  ;;  %7461 = vmatpush1.bf16.msra.mxu1 %v9999_v49  ;;  %v10091_v48 = vld [vmem:[%s13621_s1 + $0x1a28] ss:$16 sps:$4 sm:$0xff]   ;;  %v10096_v49 = vld [vmem:[%s13621_s1 + $0x1a44] ss:$16 sps:$4 sm:$0xff]  }
 0x30c   :  { %6806 = vmatprep.subr.bf16.mxu0 %v10004_v50  ;;  %7462 = vmatprep.subr.bf16.mxu1 %v10007_v51  ;;  %v10099_v50 = vld [vmem:[%s13621_s1 + $0x1a4c] ss:$16 sps:$4 sm:$0xff]   ;;  %v10094_v51 = vld [vmem:[%s13621_s1 + $0x1a40] ss:$16 sps:$4 sm:$0xff]  }
 0x30f   :  { %6807 = vmatpush1.bf16.msra.mxu0 %v10002_v52  ;;  %7463 = vmatpush1.bf16.msra.mxu1 %v10005_v53  ;;  %v10097_v52 = vld [vmem:[%s13621_s1 + $0x1a48] ss:$16 sps:$4 sm:$0xff]   ;;  %v10102_v53 = vld [vmem:[%s13621_s1 + $0x1a64] ss:$16 sps:$4 sm:$0xff]  }
 0x310   :  { %6808 = vmatprep.subr.bf16.mxu0 %v10010_v54  ;;  %7464 = vmatprep.subr.bf16.mxu1 %v10013_v55  ;;  %v10105_v54 = vld [vmem:[%s13621_s1 + $0x1a6c] ss:$16 sps:$4 sm:$0xff]   ;;  %v10100_v55 = vld [vmem:[%s13621_s1 + $0x1a60] ss:$16 sps:$4 sm:$0xff]  }
 0x313   :  { %6809 = vmatpush1.bf16.msra.mxu0 %v10008_v56  ;;  %7465 = vmatpush1.bf16.msra.mxu1 %v10011_v57  ;;  %v10103_v56 = vld [vmem:[%s13621_s1 + $0x1a68] ss:$16 sps:$4 sm:$0xff]   ;;  %v10108_v57 = vld [vmem:[%s13621_s1 + $0x1a84] ss:$16 sps:$4 sm:$0xff]  }
 0x314   :  { %6810 = vmatprep.subr.bf16.mxu0 %v10016_v58  ;;  %7466 = vmatprep.subr.bf16.mxu1 %v10019_v59  ;;  %v10111_v58 = vld [vmem:[%s13621_s1 + $0x1a8c] ss:$16 sps:$4 sm:$0xff]   ;;  %v10106_v59 = vld [vmem:[%s13621_s1 + $0x1a80] ss:$16 sps:$4 sm:$0xff]  }
 0x317   :  { %6811 = vmatpush1.bf16.msra.mxu0 %v10014_v60  ;;  %7467 = vmatpush1.bf16.msra.mxu1 %v10017_v61  ;;  %v10109_v60 = vld [vmem:[%s13621_s1 + $0x1a88] ss:$16 sps:$4 sm:$0xff]   ;;  %v10114_v61 = vld [vmem:[%s13621_s1 + $0x1aa4] ss:$16 sps:$4 sm:$0xff]  }
 0x318   :  { %6812 = vmatprep.subr.bf16.mxu0 %v10022_v62  ;;  %7468 = vmatprep.subr.bf16.mxu1 %v10025_v63  ;;  %v10117_v62 = vld [vmem:[%s13621_s1 + $0x1aac] ss:$16 sps:$4 sm:$0xff]   ;;  %v10112_v63 = vld [vmem:[%s13621_s1 + $0x1aa0] ss:$16 sps:$4 sm:$0xff]  }
 0x31b   :  { %6813 = vmatpush1.bf16.msra.mxu0 %v10020_v0  ;;  %7469 = vmatpush1.bf16.msra.mxu1 %v10023_v1  ;;  %v10115_v0 = vld [vmem:[%s13621_s1 + $0x1aa8] ss:$16 sps:$4 sm:$0xff]   ;;  %v10120_v1 = vld [vmem:[%s13621_s1 + $0x1ac4] ss:$16 sps:$4 sm:$0xff]  }
 0x31c   :  { %6814 = vmatprep.subr.bf16.mxu0 %v10028_v2  ;;  %7470 = vmatprep.subr.bf16.mxu1 %v10031_v3  ;;  %v10123_v2 = vld [vmem:[%s13621_s1 + $0x1acc] ss:$16 sps:$4 sm:$0xff]   ;;  %v10118_v3 = vld [vmem:[%s13621_s1 + $0x1ac0] ss:$16 sps:$4 sm:$0xff]  }
 0x31f   :  { %6815 = vmatpush1.bf16.msra.mxu0 %v10026_v4  ;;  %7471 = vmatpush1.bf16.msra.mxu1 %v10029_v5  ;;  %v10121_v4 = vld [vmem:[%s13621_s1 + $0x1ac8] ss:$16 sps:$4 sm:$0xff]   ;;  %v10126_v5 = vld [vmem:[%s13621_s1 + $0x1ae4] ss:$16 sps:$4 sm:$0xff]  }
 0x320   :  { %6816 = vmatprep.subr.bf16.mxu0 %v10034_v6  ;;  %7472 = vmatprep.subr.bf16.mxu1 %v10037_v7  ;;  %v10129_v6 = vld [vmem:[%s13621_s1 + $0x1aec] ss:$16 sps:$4 sm:$0xff]   ;;  %v10124_v7 = vld [vmem:[%s13621_s1 + $0x1ae0] ss:$16 sps:$4 sm:$0xff]  }
 0x323   :  { %6817 = vmatpush1.bf16.msra.mxu0 %v10032_v8  ;;  %7473 = vmatpush1.bf16.msra.mxu1 %v10035_v9  ;;  %v10127_v8 = vld [vmem:[%s13621_s1 + $0x1ae8] ss:$16 sps:$4 sm:$0xff]   ;;  %v10132_v9 = vld [vmem:[%s13621_s1 + $0x1b04] ss:$16 sps:$4 sm:$0xff]  }
 0x324   :  { %6818 = vmatprep.subr.bf16.mxu0 %v10040_v10  ;;  %7474 = vmatprep.subr.bf16.mxu1 %v10043_v12  ;;  %v10135_v10 = vld [vmem:[%s13621_s1 + $0x1b0c] ss:$16 sps:$4 sm:$0xff]   ;;  %v10130_v12 = vld [vmem:[%s13621_s1 + $0x1b00] ss:$16 sps:$4 sm:$0xff]  }
 0x327   :  { %6819 = vmatpush1.bf16.msra.mxu0 %v10038_v13  ;;  %7475 = vmatpush1.bf16.msra.mxu1 %v10041_v15  ;;  %v10133_v13 = vld [vmem:[%s13621_s1 + $0x1b08] ss:$16 sps:$4 sm:$0xff]   ;;  %v10138_v15 = vld [vmem:[%s13621_s1 + $0x1b24] ss:$16 sps:$4 sm:$0xff]  }
 0x328   :  { %6820 = vmatprep.subr.bf16.mxu0 %v10046_v11  ;;  %7476 = vmatprep.subr.bf16.mxu1 %v10049_v17  ;;  %v10141_v11 = vld [vmem:[%s13621_s1 + $0x1b2c] ss:$16 sps:$4 sm:$0xff]   ;;  %v10136_v17 = vld [vmem:[%s13621_s1 + $0x1b20] ss:$16 sps:$4 sm:$0xff]  }
 0x32b   :  { %6821 = vmatpush1.bf16.msra.mxu0 %v10044_v14  ;;  %7477 = vmatpush1.bf16.msra.mxu1 %v10047_v19  ;;  %v10139_v14 = vld [vmem:[%s13621_s1 + $0x1b28] ss:$16 sps:$4 sm:$0xff]   ;;  %v10144_v19 = vld [vmem:[%s13621_s1 + $0x1b44] ss:$16 sps:$4 sm:$0xff]  }
 0x32c   :  { %6822 = vmatprep.subr.bf16.mxu0 %v10052_v20  ;;  %7478 = vmatprep.subr.bf16.mxu1 %v10055_v16  ;;  %v10147_v20 = vld [vmem:[%s13621_s1 + $0x1b4c] ss:$16 sps:$4 sm:$0xff]   ;;  %v10142_v16 = vld [vmem:[%s13621_s1 + $0x1b40] ss:$16 sps:$4 sm:$0xff]  }
 0x32f   :  { %6823 = vmatpush1.bf16.msra.mxu0 %v10050_v22  ;;  %7479 = vmatpush1.bf16.msra.mxu1 %v10053_v23  ;;  %v10145_v22 = vld [vmem:[%s13621_s1 + $0x1b48] ss:$16 sps:$4 sm:$0xff]   ;;  %v10150_v23 = vld [vmem:[%s13621_s1 + $0x1b64] ss:$16 sps:$4 sm:$0xff]  }
 0x330   :  { %6824 = vmatprep.subr.bf16.mxu0 %v10058_v18  ;;  %7480 = vmatprep.subr.bf16.mxu1 %v10061_v25  ;;  %v10153_v18 = vld [vmem:[%s13621_s1 + $0x1b6c] ss:$16 sps:$4 sm:$0xff]   ;;  %v10148_v25 = vld [vmem:[%s13621_s1 + $0x1b60] ss:$16 sps:$4 sm:$0xff]  }
 0x333   :  { %6825 = vmatpush1.bf16.msra.mxu0 %v10056_v26  ;;  %7481 = vmatpush1.bf16.msra.mxu1 %v10059_v21  ;;  %v10151_v26 = vld [vmem:[%s13621_s1 + $0x1b68] ss:$16 sps:$4 sm:$0xff]   ;;  %v10156_v21 = vld [vmem:[%s13621_s1 + $0x1b84] ss:$16 sps:$4 sm:$0xff]  }
 0x334   :  { %6826 = vmatprep.subr.bf16.mxu0 %v10064_v28  ;;  %7482 = vmatprep.subr.bf16.mxu1 %v10067_v29  ;;  %v10159_v28 = vld [vmem:[%s13621_s1 + $0x1b8c] ss:$16 sps:$4 sm:$0xff]   ;;  %v10154_v29 = vld [vmem:[%s13621_s1 + $0x1b80] ss:$16 sps:$4 sm:$0xff]  }
 0x337   :  { %6827 = vmatpush1.bf16.msra.mxu0 %v10062_v24  ;;  %7483 = vmatpush1.bf16.msra.mxu1 %v10065_v31  ;;  %v10157_v24 = vld [vmem:[%s13621_s1 + $0x1b88] ss:$16 sps:$4 sm:$0xff]   ;;  %v10162_v31 = vld [vmem:[%s13621_s1 + $0x1ba4] ss:$16 sps:$4 sm:$0xff]  }
 0x338   :  { %6828 = vmatprep.subr.bf16.mxu0 %v10070_v32  ;;  %7484 = vmatprep.subr.bf16.mxu1 %v10073_v33  ;;  %v10165_v32 = vld [vmem:[%s13621_s1 + $0x1bac] ss:$16 sps:$4 sm:$0xff]   ;;  %v10160_v33 = vld [vmem:[%s13621_s1 + $0x1ba0] ss:$16 sps:$4 sm:$0xff]  }
 0x33b   :  { %6829 = vmatpush1.bf16.msra.mxu0 %v10068_v34  ;;  %7485 = vmatpush1.bf16.msra.mxu1 %v10071_v35  ;;  %v10163_v34 = vld [vmem:[%s13621_s1 + $0x1ba8] ss:$16 sps:$4 sm:$0xff]   ;;  %v10168_v35 = vld [vmem:[%s13621_s1 + $0x1bc4] ss:$16 sps:$4 sm:$0xff]  }
 0x33c   :  { %6830 = vmatprep.subr.bf16.mxu0 %v10076_v30  ;;  %7486 = vmatprep.subr.bf16.mxu1 %v10079_v37  ;;  %v10171_v30 = vld [vmem:[%s13621_s1 + $0x1bcc] ss:$16 sps:$4 sm:$0xff]   ;;  %v10166_v37 = vld [vmem:[%s13621_s1 + $0x1bc0] ss:$16 sps:$4 sm:$0xff]  }
 0x33f   :  { %6831 = vmatpush1.bf16.msra.mxu0 %v10074_v38  ;;  %7487 = vmatpush1.bf16.msra.mxu1 %v10077_v27  ;;  %v10169_v38 = vld [vmem:[%s13621_s1 + $0x1bc8] ss:$16 sps:$4 sm:$0xff]   ;;  %v10174_v27 = vld [vmem:[%s13621_s1 + $0x1be4] ss:$16 sps:$4 sm:$0xff]  }
 0x340   :  { %6841 = vmatprep.subr.bf16.mxu0 %v10084_v40  ;;  %7497 = vmatprep.subr.bf16.mxu1 %v10087_v41  ;;  %v10177_v40 = vld [vmem:[%s13621_s1 + $0x1bec] ss:$16 sps:$4 sm:$0xff]   ;;  %v10172_v41 = vld [vmem:[%s13621_s1 + $0x1be0] ss:$16 sps:$4 sm:$0xff]  }
 0x342   :  { %6833 = vmatmul.mubr.bf16.vlgmr.msra.gmra.mrb[0].mxu0 %v7652_v36  ;;  %7489 = vmatmul.mubr.bf16.vlgmr.msra.gmra.mrb[0].mxu1 %v7652_v36  ;;  %v10175_v36 = vld [vmem:[%s13621_s1 + $0x1be8] ss:$16 sps:$4 sm:$0xff]  }
 0x343   :  { %6842 = vmatpush1.bf16.msra.mxu0 %v10082_v43  ;;  %7498 = vmatpush1.bf16.msra.mxu1 %v10085_v44  ;;  %v10182_v43 = vld [vmem:[%s13621_s1 + $0x1c04] ss:$16 sps:$4 sm:$0xff]   ;;  %v10185_v44 = vld [vmem:[%s13621_s1 + $0x1c0c] ss:$16 sps:$4 sm:$0xff]  }
 0x344   :  { %6843 = vmatprep.subr.bf16.mxu0 %v10090_v39  ;;  %7499 = vmatprep.subr.bf16.mxu1 %v10093_v45  ;;  %v7654_v39 = vcombine.low %v13012_v42, %v13012_v42  ;;  %v13213_v45 = vld [vmem:[%s13622_s0 + $0x70] sm:$0xff] }
 0x345   :  { %6873 = vmatprep.mubr.bf16.mxu0 %v7655_v46  ;;  %7529 = vmatprep.mubr.bf16.mxu1 %v7655_v46  ;;  %v10180_v46 = vld [vmem:[%s13621_s1 + $0x1c00] ss:$16 sps:$4 sm:$0xff]   ;;  %v10188_v42 = vld [vmem:[%s13621_s1 + $0x1c24] ss:$16 sps:$4 sm:$0xff]  }
 0x347   :  { %6844 = vmatpush1.bf16.msra.mxu0 %v10088_v47  ;;  %7500 = vmatpush1.bf16.msra.mxu1 %v10091_v48  ;;  %v10183_v47 = vld [vmem:[%s13621_s1 + $0x1c08] ss:$16 sps:$4 sm:$0xff]   ;;  %v10191_v48 = vld [vmem:[%s13621_s1 + $0x1c2c] ss:$16 sps:$4 sm:$0xff]  }
 0x348   :  { %6845 = vmatprep.subr.bf16.mxu0 %v10096_v49  ;;  %7501 = vmatprep.subr.bf16.mxu1 %v10099_v50  ;;  %v7657_v49 = vcombine.high %v13213_v45, %v13213_v45  ;;  %v10186_v50 = vld [vmem:[%s13621_s1 + $0x1c20] ss:$16 sps:$4 sm:$0xff]  }
 0x34b   :  { %6846 = vmatpush1.bf16.msra.mxu0 %v10094_v51  ;;  %7502 = vmatpush1.bf16.msra.mxu1 %v10097_v52  ;;  %v10189_v51 = vld [vmem:[%s13621_s1 + $0x1c28] ss:$16 sps:$4 sm:$0xff]   ;;  %v10194_v52 = vld [vmem:[%s13621_s1 + $0x1c44] ss:$16 sps:$4 sm:$0xff]  }
 0x34c   :  { %6847 = vmatprep.subr.bf16.mxu0 %v10102_v53  ;;  %7503 = vmatprep.subr.bf16.mxu1 %v10105_v54  ;;  %v10197_v53 = vld [vmem:[%s13621_s1 + $0x1c4c] ss:$16 sps:$4 sm:$0xff]   ;;  %v10192_v54 = vld [vmem:[%s13621_s1 + $0x1c40] ss:$16 sps:$4 sm:$0xff]  }
 0x34f   :  { %6848 = vmatpush1.bf16.msra.mxu0 %v10100_v55  ;;  %7504 = vmatpush1.bf16.msra.mxu1 %v10103_v56  ;;  %v10195_v55 = vld [vmem:[%s13621_s1 + $0x1c48] ss:$16 sps:$4 sm:$0xff]   ;;  %v10200_v56 = vld [vmem:[%s13621_s1 + $0x1c64] ss:$16 sps:$4 sm:$0xff]  }
 0x350   :  { %6849 = vmatprep.subr.bf16.mxu0 %v10108_v57  ;;  %7505 = vmatprep.subr.bf16.mxu1 %v10111_v58  ;;  %v10203_v57 = vld [vmem:[%s13621_s1 + $0x1c6c] ss:$16 sps:$4 sm:$0xff]   ;;  %v10198_v58 = vld [vmem:[%s13621_s1 + $0x1c60] ss:$16 sps:$4 sm:$0xff]  }
 0x353   :  { %6850 = vmatpush1.bf16.msra.mxu0 %v10106_v59  ;;  %7506 = vmatpush1.bf16.msra.mxu1 %v10109_v60  ;;  %v10201_v59 = vld [vmem:[%s13621_s1 + $0x1c68] ss:$16 sps:$4 sm:$0xff]   ;;  %v10206_v60 = vld [vmem:[%s13621_s1 + $0x1c84] ss:$16 sps:$4 sm:$0xff]  }
 0x354   :  { %6851 = vmatprep.subr.bf16.mxu0 %v10114_v61  ;;  %7507 = vmatprep.subr.bf16.mxu1 %v10117_v62  ;;  %v10209_v61 = vld [vmem:[%s13621_s1 + $0x1c8c] ss:$16 sps:$4 sm:$0xff]   ;;  %v10204_v62 = vld [vmem:[%s13621_s1 + $0x1c80] ss:$16 sps:$4 sm:$0xff]  }
 0x357   :  { %6852 = vmatpush1.bf16.msra.mxu0 %v10112_v63  ;;  %7508 = vmatpush1.bf16.msra.mxu1 %v10115_v0  ;;  %v10207_v63 = vld [vmem:[%s13621_s1 + $0x1c88] ss:$16 sps:$4 sm:$0xff]   ;;  %v10212_v0 = vld [vmem:[%s13621_s1 + $0x1ca4] ss:$16 sps:$4 sm:$0xff]  }
 0x358   :  { %6853 = vmatprep.subr.bf16.mxu0 %v10120_v1  ;;  %7509 = vmatprep.subr.bf16.mxu1 %v10123_v2  ;;  %v10215_v1 = vld [vmem:[%s13621_s1 + $0x1cac] ss:$16 sps:$4 sm:$0xff]   ;;  %v10210_v2 = vld [vmem:[%s13621_s1 + $0x1ca0] ss:$16 sps:$4 sm:$0xff]  }
 0x35b   :  { %6854 = vmatpush1.bf16.msra.mxu0 %v10118_v3  ;;  %7510 = vmatpush1.bf16.msra.mxu1 %v10121_v4  ;;  %v10213_v3 = vld [vmem:[%s13621_s1 + $0x1ca8] ss:$16 sps:$4 sm:$0xff]   ;;  %v10218_v4 = vld [vmem:[%s13621_s1 + $0x1cc4] ss:$16 sps:$4 sm:$0xff]  }
 0x35c   :  { %6855 = vmatprep.subr.bf16.mxu0 %v10126_v5  ;;  %7511 = vmatprep.subr.bf16.mxu1 %v10129_v6  ;;  %v10221_v5 = vld [vmem:[%s13621_s1 + $0x1ccc] ss:$16 sps:$4 sm:$0xff]   ;;  %v10216_v6 = vld [vmem:[%s13621_s1 + $0x1cc0] ss:$16 sps:$4 sm:$0xff]  }
 0x35f   :  { %6856 = vmatpush1.bf16.msra.mxu0 %v10124_v7  ;;  %7512 = vmatpush1.bf16.msra.mxu1 %v10127_v8  ;;  %v10219_v7 = vld [vmem:[%s13621_s1 + $0x1cc8] ss:$16 sps:$4 sm:$0xff]   ;;  %v10224_v8 = vld [vmem:[%s13621_s1 + $0x1ce4] ss:$16 sps:$4 sm:$0xff]  }
 0x360   :  { %6857 = vmatprep.subr.bf16.mxu0 %v10132_v9  ;;  %7513 = vmatprep.subr.bf16.mxu1 %v10135_v10  ;;  %v10227_v9 = vld [vmem:[%s13621_s1 + $0x1cec] ss:$16 sps:$4 sm:$0xff]   ;;  %v10222_v10 = vld [vmem:[%s13621_s1 + $0x1ce0] ss:$16 sps:$4 sm:$0xff]  }
 0x363   :  { %6858 = vmatpush1.bf16.msra.mxu0 %v10130_v12  ;;  %7514 = vmatpush1.bf16.msra.mxu1 %v10133_v13  ;;  %v10225_v12 = vld [vmem:[%s13621_s1 + $0x1ce8] ss:$16 sps:$4 sm:$0xff]   ;;  %v10230_v13 = vld [vmem:[%s13621_s1 + $0x1d04] ss:$16 sps:$4 sm:$0xff]  }
 0x364   :  { %6859 = vmatprep.subr.bf16.mxu0 %v10138_v15  ;;  %7515 = vmatprep.subr.bf16.mxu1 %v10141_v11  ;;  %v10233_v15 = vld [vmem:[%s13621_s1 + $0x1d0c] ss:$16 sps:$4 sm:$0xff]   ;;  %v10228_v11 = vld [vmem:[%s13621_s1 + $0x1d00] ss:$16 sps:$4 sm:$0xff]  }
 0x367   :  { %6860 = vmatpush1.bf16.msra.mxu0 %v10136_v17  ;;  %7516 = vmatpush1.bf16.msra.mxu1 %v10139_v14  ;;  %v10231_v17 = vld [vmem:[%s13621_s1 + $0x1d08] ss:$16 sps:$4 sm:$0xff]   ;;  %v10236_v14 = vld [vmem:[%s13621_s1 + $0x1d24] ss:$16 sps:$4 sm:$0xff]  }
 0x368   :  { %6861 = vmatprep.subr.bf16.mxu0 %v10144_v19  ;;  %7517 = vmatprep.subr.bf16.mxu1 %v10147_v20  ;;  %v10239_v19 = vld [vmem:[%s13621_s1 + $0x1d2c] ss:$16 sps:$4 sm:$0xff]   ;;  %v10234_v20 = vld [vmem:[%s13621_s1 + $0x1d20] ss:$16 sps:$4 sm:$0xff]  }
 0x36b   :  { %6862 = vmatpush1.bf16.msra.mxu0 %v10142_v16  ;;  %7518 = vmatpush1.bf16.msra.mxu1 %v10145_v22  ;;  %v10237_v16 = vld [vmem:[%s13621_s1 + $0x1d28] ss:$16 sps:$4 sm:$0xff]   ;;  %v10242_v22 = vld [vmem:[%s13621_s1 + $0x1d44] ss:$16 sps:$4 sm:$0xff]  }
 0x36c   :  { %6863 = vmatprep.subr.bf16.mxu0 %v10150_v23  ;;  %7519 = vmatprep.subr.bf16.mxu1 %v10153_v18  ;;  %v10245_v23 = vld [vmem:[%s13621_s1 + $0x1d4c] ss:$16 sps:$4 sm:$0xff]   ;;  %v10240_v18 = vld [vmem:[%s13621_s1 + $0x1d40] ss:$16 sps:$4 sm:$0xff]  }
 0x36f   :  { %6864 = vmatpush1.bf16.msra.mxu0 %v10148_v25  ;;  %7520 = vmatpush1.bf16.msra.mxu1 %v10151_v26  ;;  %v10243_v25 = vld [vmem:[%s13621_s1 + $0x1d48] ss:$16 sps:$4 sm:$0xff]   ;;  %v10248_v26 = vld [vmem:[%s13621_s1 + $0x1d64] ss:$16 sps:$4 sm:$0xff]  }
 0x370   :  { %6865 = vmatprep.subr.bf16.mxu0 %v10156_v21  ;;  %7521 = vmatprep.subr.bf16.mxu1 %v10159_v28  ;;  %v10251_v21 = vld [vmem:[%s13621_s1 + $0x1d6c] ss:$16 sps:$4 sm:$0xff]   ;;  %v10246_v28 = vld [vmem:[%s13621_s1 + $0x1d60] ss:$16 sps:$4 sm:$0xff]  }
 0x373   :  { %6866 = vmatpush1.bf16.msra.mxu0 %v10154_v29  ;;  %7522 = vmatpush1.bf16.msra.mxu1 %v10157_v24  ;;  %v10249_v29 = vld [vmem:[%s13621_s1 + $0x1d68] ss:$16 sps:$4 sm:$0xff]   ;;  %v10254_v24 = vld [vmem:[%s13621_s1 + $0x1d84] ss:$16 sps:$4 sm:$0xff]  }
 0x374   :  { %6867 = vmatprep.subr.bf16.mxu0 %v10162_v31  ;;  %7523 = vmatprep.subr.bf16.mxu1 %v10165_v32  ;;  %v10257_v31 = vld [vmem:[%s13621_s1 + $0x1d8c] ss:$16 sps:$4 sm:$0xff]   ;;  %v10252_v32 = vld [vmem:[%s13621_s1 + $0x1d80] ss:$16 sps:$4 sm:$0xff]  }
 0x377   :  { %6868 = vmatpush1.bf16.msra.mxu0 %v10160_v33  ;;  %7524 = vmatpush1.bf16.msra.mxu1 %v10163_v34  ;;  %v10255_v33 = vld [vmem:[%s13621_s1 + $0x1d88] ss:$16 sps:$4 sm:$0xff]   ;;  %v10260_v34 = vld [vmem:[%s13621_s1 + $0x1da4] ss:$16 sps:$4 sm:$0xff]  }
 0x378   :  { %6869 = vmatprep.subr.bf16.mxu0 %v10168_v35  ;;  %7525 = vmatprep.subr.bf16.mxu1 %v10171_v30  ;;  %v10263_v35 = vld [vmem:[%s13621_s1 + $0x1dac] ss:$16 sps:$4 sm:$0xff]   ;;  %v10258_v30 = vld [vmem:[%s13621_s1 + $0x1da0] ss:$16 sps:$4 sm:$0xff]  }
 0x37b   :  { %6870 = vmatpush1.bf16.msra.mxu0 %v10166_v37  ;;  %7526 = vmatpush1.bf16.msra.mxu1 %v10169_v38  ;;  %v10261_v37 = vld [vmem:[%s13621_s1 + $0x1da8] ss:$16 sps:$4 sm:$0xff]   ;;  %v10266_v38 = vld [vmem:[%s13621_s1 + $0x1dc4] ss:$16 sps:$4 sm:$0xff]  }
 0x37c   :  { %6871 = vmatprep.subr.bf16.mxu0 %v10174_v27  ;;  %7527 = vmatprep.subr.bf16.mxu1 %v10177_v40  ;;  %v10269_v27 = vld [vmem:[%s13621_s1 + $0x1dcc] ss:$16 sps:$4 sm:$0xff]   ;;  %v10264_v40 = vld [vmem:[%s13621_s1 + $0x1dc0] ss:$16 sps:$4 sm:$0xff]  }
 0x37f   :  { %6872 = vmatpush1.bf16.msra.mxu0 %v10172_v41  ;;  %7528 = vmatpush1.bf16.msra.mxu1 %v10175_v36  ;;  %v10267_v41 = vld [vmem:[%s13621_s1 + $0x1dc8] ss:$16 sps:$4 sm:$0xff]   ;;  %v10272_v36 = vld [vmem:[%s13621_s1 + $0x1de4] ss:$16 sps:$4 sm:$0xff]  }
 0x380   :  { %6882 = vmatprep.subr.bf16.mxu0 %v10182_v43  ;;  %7538 = vmatprep.subr.bf16.mxu1 %v10185_v44  ;;  %v10275_v43 = vld [vmem:[%s13621_s1 + $0x1dec] ss:$16 sps:$4 sm:$0xff]   ;;  %v10270_v44 = vld [vmem:[%s13621_s1 + $0x1de0] ss:$16 sps:$4 sm:$0xff]  }
 0x382   :  { %6874 = vmatmul.mubr.bf16.vlgmr.msra.gmra.mrb[0].mxu0 %v7654_v39  ;;  %7530 = vmatmul.mubr.bf16.vlgmr.msra.gmra.mrb[0].mxu1 %v7654_v39  ;;  %v10273_v39 = vld [vmem:[%s13621_s1 + $0x1de8] ss:$16 sps:$4 sm:$0xff]  }
 0x383   :  { %6883 = vmatpush1.bf16.msra.mxu0 %v10180_v46  ;;  %7539 = vmatpush1.bf16.msra.mxu1 %v10183_v47  ;;  %v10280_v46 = vld [vmem:[%s13621_s1 + $0x1e04] ss:$16 sps:$4 sm:$0xff]   ;;  %v10283_v47 = vld [vmem:[%s13621_s1 + $0x1e0c] ss:$16 sps:$4 sm:$0xff]  }
 0x384   :  { %6884 = vmatprep.subr.bf16.mxu0 %v10188_v42  ;;  %7540 = vmatprep.subr.bf16.mxu1 %v10191_v48  ;;  %v7656_v42 = vcombine.low %v13213_v45, %v13213_v45  ;;  %v13414_v48 = vld [vmem:[%s13622_s0 + $0x78] sm:$0xff]  ;;  %v10286_v45 = vld [vmem:[%s13621_s1 + $0x1e24] ss:$16 sps:$4 sm:$0xff]  }
 0x385   :  { %6914 = vmatprep.mubr.bf16.mxu0 %v7657_v49  ;;  %7570 = vmatprep.mubr.bf16.mxu1 %v7657_v49  ;;  %v10278_v49 = vld [vmem:[%s13621_s1 + $0x1e00] ss:$16 sps:$4 sm:$0xff]  }
 0x387   :  { %6885 = vmatpush1.bf16.msra.mxu0 %v10186_v50  ;;  %7541 = vmatpush1.bf16.msra.mxu1 %v10189_v51  ;;  %v10281_v50 = vld [vmem:[%s13621_s1 + $0x1e08] ss:$16 sps:$4 sm:$0xff]   ;;  %v10289_v51 = vld [vmem:[%s13621_s1 + $0x1e2c] ss:$16 sps:$4 sm:$0xff]  }
 0x388   :  { %6886 = vmatprep.subr.bf16.mxu0 %v10194_v52  ;;  %7542 = vmatprep.subr.bf16.mxu1 %v10197_v53  ;;  %v7659_v52 = vcombine.high %v13414_v48, %v13414_v48  ;;  %v10284_v53 = vld [vmem:[%s13621_s1 + $0x1e20] ss:$16 sps:$4 sm:$0xff]  }
 0x38b   :  { %6887 = vmatpush1.bf16.msra.mxu0 %v10192_v54  ;;  %7543 = vmatpush1.bf16.msra.mxu1 %v10195_v55  ;;  %v10287_v54 = vld [vmem:[%s13621_s1 + $0x1e28] ss:$16 sps:$4 sm:$0xff]   ;;  %v10292_v55 = vld [vmem:[%s13621_s1 + $0x1e44] ss:$16 sps:$4 sm:$0xff]  }
 0x38c   :  { %6888 = vmatprep.subr.bf16.mxu0 %v10200_v56  ;;  %7544 = vmatprep.subr.bf16.mxu1 %v10203_v57  ;;  %v10295_v56 = vld [vmem:[%s13621_s1 + $0x1e4c] ss:$16 sps:$4 sm:$0xff]   ;;  %v10290_v57 = vld [vmem:[%s13621_s1 + $0x1e40] ss:$16 sps:$4 sm:$0xff]  }
 0x38f   :  { %6889 = vmatpush1.bf16.msra.mxu0 %v10198_v58  ;;  %7545 = vmatpush1.bf16.msra.mxu1 %v10201_v59  ;;  %v10293_v58 = vld [vmem:[%s13621_s1 + $0x1e48] ss:$16 sps:$4 sm:$0xff]   ;;  %v10298_v59 = vld [vmem:[%s13621_s1 + $0x1e64] ss:$16 sps:$4 sm:$0xff]  }
 0x390   :  { %6890 = vmatprep.subr.bf16.mxu0 %v10206_v60  ;;  %7546 = vmatprep.subr.bf16.mxu1 %v10209_v61  ;;  %v10301_v60 = vld [vmem:[%s13621_s1 + $0x1e6c] ss:$16 sps:$4 sm:$0xff]   ;;  %v10296_v61 = vld [vmem:[%s13621_s1 + $0x1e60] ss:$16 sps:$4 sm:$0xff]  }
 0x393   :  { %6891 = vmatpush1.bf16.msra.mxu0 %v10204_v62  ;;  %7547 = vmatpush1.bf16.msra.mxu1 %v10207_v63  ;;  %v10299_v62 = vld [vmem:[%s13621_s1 + $0x1e68] ss:$16 sps:$4 sm:$0xff]   ;;  %v10304_v63 = vld [vmem:[%s13621_s1 + $0x1e84] ss:$16 sps:$4 sm:$0xff]  }
 0x394   :  { %6892 = vmatprep.subr.bf16.mxu0 %v10212_v0  ;;  %7548 = vmatprep.subr.bf16.mxu1 %v10215_v1  ;;  %v10307_v0 = vld [vmem:[%s13621_s1 + $0x1e8c] ss:$16 sps:$4 sm:$0xff]   ;;  %v10302_v1 = vld [vmem:[%s13621_s1 + $0x1e80] ss:$16 sps:$4 sm:$0xff]  }
 0x397   :  { %6893 = vmatpush1.bf16.msra.mxu0 %v10210_v2  ;;  %7549 = vmatpush1.bf16.msra.mxu1 %v10213_v3  ;;  %v10305_v2 = vld [vmem:[%s13621_s1 + $0x1e88] ss:$16 sps:$4 sm:$0xff]   ;;  %v10310_v3 = vld [vmem:[%s13621_s1 + $0x1ea4] ss:$16 sps:$4 sm:$0xff]  }
 0x398   :  { %6894 = vmatprep.subr.bf16.mxu0 %v10218_v4  ;;  %7550 = vmatprep.subr.bf16.mxu1 %v10221_v5  ;;  %v10313_v4 = vld [vmem:[%s13621_s1 + $0x1eac] ss:$16 sps:$4 sm:$0xff]   ;;  %v10308_v5 = vld [vmem:[%s13621_s1 + $0x1ea0] ss:$16 sps:$4 sm:$0xff]  }
 0x39b   :  { %6895 = vmatpush1.bf16.msra.mxu0 %v10216_v6  ;;  %7551 = vmatpush1.bf16.msra.mxu1 %v10219_v7  ;;  %v10311_v6 = vld [vmem:[%s13621_s1 + $0x1ea8] ss:$16 sps:$4 sm:$0xff]   ;;  %v10316_v7 = vld [vmem:[%s13621_s1 + $0x1ec4] ss:$16 sps:$4 sm:$0xff]  }
 0x39c   :  { %6896 = vmatprep.subr.bf16.mxu0 %v10224_v8  ;;  %7552 = vmatprep.subr.bf16.mxu1 %v10227_v9  ;;  %v10319_v8 = vld [vmem:[%s13621_s1 + $0x1ecc] ss:$16 sps:$4 sm:$0xff]   ;;  %v10314_v9 = vld [vmem:[%s13621_s1 + $0x1ec0] ss:$16 sps:$4 sm:$0xff]  }
 0x39f   :  { %6897 = vmatpush1.bf16.msra.mxu0 %v10222_v10  ;;  %7553 = vmatpush1.bf16.msra.mxu1 %v10225_v12  ;;  %v10317_v10 = vld [vmem:[%s13621_s1 + $0x1ec8] ss:$16 sps:$4 sm:$0xff]   ;;  %v10322_v12 = vld [vmem:[%s13621_s1 + $0x1ee4] ss:$16 sps:$4 sm:$0xff]  }
 0x3a0   :  { %6898 = vmatprep.subr.bf16.mxu0 %v10230_v13  ;;  %7554 = vmatprep.subr.bf16.mxu1 %v10233_v15  ;;  %v10325_v13 = vld [vmem:[%s13621_s1 + $0x1eec] ss:$16 sps:$4 sm:$0xff]   ;;  %v10320_v15 = vld [vmem:[%s13621_s1 + $0x1ee0] ss:$16 sps:$4 sm:$0xff]  }
 0x3a3   :  { %6899 = vmatpush1.bf16.msra.mxu0 %v10228_v11  ;;  %7555 = vmatpush1.bf16.msra.mxu1 %v10231_v17  ;;  %v10323_v11 = vld [vmem:[%s13621_s1 + $0x1ee8] ss:$16 sps:$4 sm:$0xff]   ;;  %v10328_v17 = vld [vmem:[%s13621_s1 + $0x1f04] ss:$16 sps:$4 sm:$0xff]  }
 0x3a4   :  { %6900 = vmatprep.subr.bf16.mxu0 %v10236_v14  ;;  %7556 = vmatprep.subr.bf16.mxu1 %v10239_v19  ;;  %v10331_v14 = vld [vmem:[%s13621_s1 + $0x1f0c] ss:$16 sps:$4 sm:$0xff]   ;;  %v10326_v19 = vld [vmem:[%s13621_s1 + $0x1f00] ss:$16 sps:$4 sm:$0xff]  }
 0x3a7   :  { %6901 = vmatpush1.bf16.msra.mxu0 %v10234_v20  ;;  %7557 = vmatpush1.bf16.msra.mxu1 %v10237_v16  ;;  %v10329_v20 = vld [vmem:[%s13621_s1 + $0x1f08] ss:$16 sps:$4 sm:$0xff]   ;;  %v10334_v16 = vld [vmem:[%s13621_s1 + $0x1f24] ss:$16 sps:$4 sm:$0xff]  }
 0x3a8   :  { %6902 = vmatprep.subr.bf16.mxu0 %v10242_v22  ;;  %7558 = vmatprep.subr.bf16.mxu1 %v10245_v23  ;;  %v10337_v22 = vld [vmem:[%s13621_s1 + $0x1f2c] ss:$16 sps:$4 sm:$0xff]   ;;  %v10332_v23 = vld [vmem:[%s13621_s1 + $0x1f20] ss:$16 sps:$4 sm:$0xff]  }
 0x3ab   :  { %6903 = vmatpush1.bf16.msra.mxu0 %v10240_v18  ;;  %7559 = vmatpush1.bf16.msra.mxu1 %v10243_v25  ;;  %v10335_v18 = vld [vmem:[%s13621_s1 + $0x1f28] ss:$16 sps:$4 sm:$0xff]   ;;  %v10340_v25 = vld [vmem:[%s13621_s1 + $0x1f44] ss:$16 sps:$4 sm:$0xff]  }
 0x3ac   :  { %6904 = vmatprep.subr.bf16.mxu0 %v10248_v26  ;;  %7560 = vmatprep.subr.bf16.mxu1 %v10251_v21  ;;  %v10343_v26 = vld [vmem:[%s13621_s1 + $0x1f4c] ss:$16 sps:$4 sm:$0xff]   ;;  %v10338_v21 = vld [vmem:[%s13621_s1 + $0x1f40] ss:$16 sps:$4 sm:$0xff]  }
 0x3af   :  { %6905 = vmatpush1.bf16.msra.mxu0 %v10246_v28  ;;  %7561 = vmatpush1.bf16.msra.mxu1 %v10249_v29  ;;  %v10341_v28 = vld [vmem:[%s13621_s1 + $0x1f48] ss:$16 sps:$4 sm:$0xff]   ;;  %v10346_v29 = vld [vmem:[%s13621_s1 + $0x1f64] ss:$16 sps:$4 sm:$0xff]  }
 0x3b0   :  { %6906 = vmatprep.subr.bf16.mxu0 %v10254_v24  ;;  %7562 = vmatprep.subr.bf16.mxu1 %v10257_v31  ;;  %v10349_v24 = vld [vmem:[%s13621_s1 + $0x1f6c] ss:$16 sps:$4 sm:$0xff]   ;;  %v10344_v31 = vld [vmem:[%s13621_s1 + $0x1f60] ss:$16 sps:$4 sm:$0xff]  }
 0x3b3   :  { %6907 = vmatpush1.bf16.msra.mxu0 %v10252_v32  ;;  %7563 = vmatpush1.bf16.msra.mxu1 %v10255_v33  ;;  %v10347_v32 = vld [vmem:[%s13621_s1 + $0x1f68] ss:$16 sps:$4 sm:$0xff]   ;;  %v10352_v33 = vld [vmem:[%s13621_s1 + $0x1f84] ss:$16 sps:$4 sm:$0xff]  }
 0x3b4   :  { %6908 = vmatprep.subr.bf16.mxu0 %v10260_v34  ;;  %7564 = vmatprep.subr.bf16.mxu1 %v10263_v35  ;;  %v10355_v34 = vld [vmem:[%s13621_s1 + $0x1f8c] ss:$16 sps:$4 sm:$0xff]   ;;  %v10350_v35 = vld [vmem:[%s13621_s1 + $0x1f80] ss:$16 sps:$4 sm:$0xff]  }
 0x3b7   :  { %6909 = vmatpush1.bf16.msra.mxu0 %v10258_v30  ;;  %7565 = vmatpush1.bf16.msra.mxu1 %v10261_v37  ;;  %v10353_v30 = vld [vmem:[%s13621_s1 + $0x1f88] ss:$16 sps:$4 sm:$0xff]   ;;  %v10358_v37 = vld [vmem:[%s13621_s1 + $0x1fa4] ss:$16 sps:$4 sm:$0xff]  }
 0x3b8   :  { %6910 = vmatprep.subr.bf16.mxu0 %v10266_v38  ;;  %7566 = vmatprep.subr.bf16.mxu1 %v10269_v27  ;;  %v10361_v38 = vld [vmem:[%s13621_s1 + $0x1fac] ss:$16 sps:$4 sm:$0xff]   ;;  %v10356_v27 = vld [vmem:[%s13621_s1 + $0x1fa0] ss:$16 sps:$4 sm:$0xff]  }
 0x3bb   :  { %6911 = vmatpush1.bf16.msra.mxu0 %v10264_v40  ;;  %7567 = vmatpush1.bf16.msra.mxu1 %v10267_v41  ;;  %v10359_v40 = vld [vmem:[%s13621_s1 + $0x1fa8] ss:$16 sps:$4 sm:$0xff]   ;;  %v10364_v41 = vld [vmem:[%s13621_s1 + $0x1fc4] ss:$16 sps:$4 sm:$0xff]  }
 0x3bc   :  { %6912 = vmatprep.subr.bf16.mxu0 %v10272_v36  ;;  %7568 = vmatprep.subr.bf16.mxu1 %v10275_v43  ;;  %v10367_v36 = vld [vmem:[%s13621_s1 + $0x1fcc] ss:$16 sps:$4 sm:$0xff]   ;;  %v10362_v43 = vld [vmem:[%s13621_s1 + $0x1fc0] ss:$16 sps:$4 sm:$0xff]  }
 0x3bf   :  { %6913 = vmatpush1.bf16.msra.mxu0 %v10270_v44  ;;  %7569 = vmatpush1.bf16.msra.mxu1 %v10273_v39  ;;  %v10365_v44 = vld [vmem:[%s13621_s1 + $0x1fc8] ss:$16 sps:$4 sm:$0xff]   ;;  %v10370_v39 = vld [vmem:[%s13621_s1 + $0x1fe4] ss:$16 sps:$4 sm:$0xff]  }
 0x3c0   :  { %6923 = vmatprep.subr.bf16.mxu0 %v10280_v46  ;;  %7579 = vmatprep.subr.bf16.mxu1 %v10283_v47  ;;  %v10373_v46 = vld [vmem:[%s13621_s1 + $0x1fec] ss:$16 sps:$4 sm:$0xff]   ;;  %v10368_v47 = vld [vmem:[%s13621_s1 + $0x1fe0] ss:$16 sps:$4 sm:$0xff]  }
 0x3c2   :  { %6915 = vmatmul.mubr.bf16.vlgmr.msra.gmra.mrb[0].mxu0 %v7656_v42  ;;  %7571 = vmatmul.mubr.bf16.vlgmr.msra.gmra.mrb[0].mxu1 %v7656_v42  ;;  %v10371_v42 = vld [vmem:[%s13621_s1 + $0x1fe8] ss:$16 sps:$4 sm:$0xff]  }
 0x3c3   :  { %6924 = vmatpush1.bf16.msra.mxu0 %v10278_v49  ;;  %7580 = vmatpush1.bf16.msra.mxu1 %v10281_v50  ;;  %v7658_v49 = vcombine.low %v13414_v48, %v13414_v48  ;;  %v1056_v50 = vlaneseq }
 0x3c4   :  { %6925 = vmatprep.subr.bf16.mxu0 %v10286_v45  ;;  %7581 = vmatprep.subr.bf16.mxu1 %v10289_v51 }
 0x3c5   :  { %6955 = vmatprep.mubr.bf16.mxu0 %v7659_v52  ;;  %7611 = vmatprep.mubr.bf16.mxu1 %v7659_v52  ;;  %v1057_v45 = vshrl.u32 %v1056_v50, 7 }
 0x3c7   :  { %6926 = vmatpush1.bf16.msra.mxu0 %v10284_v53  ;;  %7582 = vmatpush1.bf16.msra.mxu1 %v10287_v54  ;;  %v1058_v51 = vsub.s32 0, %v1057_v45  ;;  %v1066_v52 = vsub.s32 2, %v1057_v45  ;;  %v1054_v53 = vld [vmem:[%s13623_s2] sm:$0xf]  ;;  %v1062_v54 = vsub.s32 1, %v1057_v45 }
 0x3c8   :  { %6927 = vmatprep.subr.bf16.mxu0 %v10292_v55  ;;  %7583 = vmatprep.subr.bf16.mxu1 %v10295_v56  ;;  %v1070_v55 = vsub.s32 3, %v1057_v45 }
 0x3c9   :  { %v1059_v56 = vrot.slane %v1054_v53, %v1058_v51 }
 0x3cb   :  { %6928 = vmatpush1.bf16.msra.mxu0 %v10290_v57  ;;  %7584 = vmatpush1.bf16.msra.mxu1 %v10293_v58  ;;  %v1067_v57 = vrot.slane %v1054_v53, %v1066_v52  ;;  %v1063_v58 = vrot.slane %v1054_v53, %v1062_v54 }
 0x3cc   :  { %6929 = vmatprep.subr.bf16.mxu0 %v10298_v59  ;;  %7585 = vmatprep.subr.bf16.mxu1 %v10301_v60  ;;  %v1071_v59 = vrot.slane %v1054_v53, %v1070_v55 }
 0x3cf   :  { %6930 = vmatpush1.bf16.msra.mxu0 %v10296_v61  ;;  %7586 = vmatpush1.bf16.msra.mxu1 %v10299_v62 }
 0x3d0   :  { %6931 = vmatprep.subr.bf16.mxu0 %v10304_v63  ;;  %7587 = vmatprep.subr.bf16.mxu1 %v10307_v0 }
 0x3d3   :  { %6932 = vmatpush1.bf16.msra.mxu0 %v10302_v1  ;;  %7588 = vmatpush1.bf16.msra.mxu1 %v10305_v2 }
 0x3d4   :  { %6933 = vmatprep.subr.bf16.mxu0 %v10310_v3  ;;  %7589 = vmatprep.subr.bf16.mxu1 %v10313_v4 }
 0x3d7   :  { %6934 = vmatpush1.bf16.msra.mxu0 %v10308_v5  ;;  %7590 = vmatpush1.bf16.msra.mxu1 %v10311_v6 }
 0x3d8   :  { %6935 = vmatprep.subr.bf16.mxu0 %v10316_v7  ;;  %7591 = vmatprep.subr.bf16.mxu1 %v10319_v8 }
 0x3db   :  { %6936 = vmatpush1.bf16.msra.mxu0 %v10314_v9  ;;  %7592 = vmatpush1.bf16.msra.mxu1 %v10317_v10 }
 0x3dc   :  { %6937 = vmatprep.subr.bf16.mxu0 %v10322_v12  ;;  %7593 = vmatprep.subr.bf16.mxu1 %v10325_v13 }
 0x3df   :  { %6938 = vmatpush1.bf16.msra.mxu0 %v10320_v15  ;;  %7594 = vmatpush1.bf16.msra.mxu1 %v10323_v11 }
 0x3e0   :  { %6939 = vmatprep.subr.bf16.mxu0 %v10328_v17  ;;  %7595 = vmatprep.subr.bf16.mxu1 %v10331_v14 }
 0x3e3   :  { %6940 = vmatpush1.bf16.msra.mxu0 %v10326_v19  ;;  %7596 = vmatpush1.bf16.msra.mxu1 %v10329_v20 }
 0x3e4   :  { %6941 = vmatprep.subr.bf16.mxu0 %v10334_v16  ;;  %7597 = vmatprep.subr.bf16.mxu1 %v10337_v22 }
 0x3e7   :  { %6942 = vmatpush1.bf16.msra.mxu0 %v10332_v23  ;;  %7598 = vmatpush1.bf16.msra.mxu1 %v10335_v18 }
 0x3e8   :  { %6943 = vmatprep.subr.bf16.mxu0 %v10340_v25  ;;  %7599 = vmatprep.subr.bf16.mxu1 %v10343_v26 }
 0x3eb   :  { %6944 = vmatpush1.bf16.msra.mxu0 %v10338_v21  ;;  %7600 = vmatpush1.bf16.msra.mxu1 %v10341_v28 }
 0x3ec   :  { %6945 = vmatprep.subr.bf16.mxu0 %v10346_v29  ;;  %7601 = vmatprep.subr.bf16.mxu1 %v10349_v24 }
 0x3ef   :  { %6946 = vmatpush1.bf16.msra.mxu0 %v10344_v31  ;;  %7602 = vmatpush1.bf16.msra.mxu1 %v10347_v32 }
 0x3f0   :  { %6947 = vmatprep.subr.bf16.mxu0 %v10352_v33  ;;  %7603 = vmatprep.subr.bf16.mxu1 %v10355_v34 }
 0x3f3   :  { %6948 = vmatpush1.bf16.msra.mxu0 %v10350_v35  ;;  %7604 = vmatpush1.bf16.msra.mxu1 %v10353_v30 }
 0x3f4   :  { %6949 = vmatprep.subr.bf16.mxu0 %v10358_v37  ;;  %7605 = vmatprep.subr.bf16.mxu1 %v10361_v38 }
 0x3f7   :  { %6950 = vmatpush1.bf16.msra.mxu0 %v10356_v27  ;;  %7606 = vmatpush1.bf16.msra.mxu1 %v10359_v40 }
 0x3f8   :  { %6951 = vmatprep.subr.bf16.mxu0 %v10364_v41  ;;  %7607 = vmatprep.subr.bf16.mxu1 %v10367_v36 }
 0x3fb   :  { %6952 = vmatpush1.bf16.msra.mxu0 %v10362_v43  ;;  %7608 = vmatpush1.bf16.msra.mxu1 %v10365_v44 }
 0x3fc   :  { %6953 = vmatprep.subr.bf16.mxu0 %v10370_v39  ;;  %7609 = vmatprep.subr.bf16.mxu1 %v10373_v46 }
 0x3ff   :  { %6954 = vmatpush1.bf16.msra.mxu0 %v10368_v47  ;;  %7610 = vmatpush1.bf16.msra.mxu1 %v10371_v42 }
 0x402   :  { %6956 = vmatmul.mubr.bf16.vlgmr.msra.gmra.mrb[0].mxu0 %v7658_v49  ;;  %7612 = vmatmul.mubr.bf16.vlgmr.msra.gmra.mrb[0].mxu1 %v7658_v49 }
 0x4d5   :  { %v6957_v60 = vpop.f32.mrb[0].mxu0  ;;  %v7613_v48 = vpop.f32.mrb[0].mxu1 }
 0x4d6   :  { %v8684_v61 = vadd.f32 %v6957_v60, %v1059_v56  ;;  %v8686_v62 = vadd.f32 %v7613_v48, %v1067_v57  ;;  %v6959_v63 = vpop.f32.mrb[1].mxu0  ;;  %v7615_v0 = vpop.f32.mrb[1].mxu1 }
 0x4d7   :  { %v8685_v1 = vadd.f32 %v6959_v63, %v1063_v58  ;;  %v8687_v2 = vadd.f32 %v7615_v0, %v1071_v59  ;;  %v6961_v3 = vpop.f32.mrb[2].mxu0  ;;  %v7617_v4 = vpop.f32.mrb[2].mxu1 }
 0x4d8   :  { %7620 = vst [vmem:[%s13624_s3] sm:$0xff] %v8684_v61  ;;  %7622 = vst [vmem:[%s13624_s3 + $0x10] sm:$0xff] %v8686_v62  ;;  %v6962_v5 = vpop.f32.mrb[3].mxu0  ;;  %v7618_v6 = vpop.f32.mrb[3].mxu1 }
 0x4d9   :  { %7621 = vst [vmem:[%s13624_s3 + $0x8] sm:$0xff] %v8685_v1  ;;  %7623 = vst [vmem:[%s13624_s3 + $0x18] sm:$0xff] %v8687_v2 }

// kernel: discriminator_forward.15
= control target key start
LH: loop header
LB: loop body
LE: loop exit
PB: predicated region body
PF: predicated region fallthrough
CT: control target
= control target key end

     0   :  { %s9198_s1 = inlined_call_operand.vmem [shape: bf16[8192,128], index: 1, kind: input, shape index: {}]   ;;  %s9199_s0 = inlined_call_operand.vmem [shape: bf16[8,8192], index: 0, kind: input, shape index: {}]   ;;  %s9200_s2 = inlined_call_operand.vmem [shape: f32[1,128], index: 2, kind: input, shape index: {}]   ;;  %s9201_s3 = inlined_call_operand.vmem [shape: f32[8,128], index: 3, kind: output, shape index: {}]  }
   0x1   :  { %v6940_v0 = vld [vmem:[%s9198_s1 + $0x40] sm:$0xff]   ;;  %v6944_v4 = vld [vmem:[%s9198_s1 + $0x48] sm:$0xff]   ;;  %v6948_v8 = vld [vmem:[%s9198_s1 + $0x50] sm:$0xff]  }
   0x2   :  { %v6941_v1 = vld [vmem:[%s9198_s1 + $0xc0] sm:$0xff]   ;;  %6236 = vmatprep.subr.bf16.mxu0 %v6940_v0  ;;  %v6945_v5 = vld [vmem:[%s9198_s1 + $0xc8] sm:$0xff]   ;;  %v6949_v9 = vld [vmem:[%s9198_s1 + $0xd0] sm:$0xff]  }
   0x3   :  { %v6942_v2 = vld [vmem:[%s9198_s1] sm:$0xff]   ;;  %6258 = vmatprep.subr.bf16.mxu1 %v6941_v1  ;;  %v6946_v6 = vld [vmem:[%s9198_s1 + $0x8] sm:$0xff]   ;;  %v6950_v10 = vld [vmem:[%s9198_s1 + $0x10] sm:$0xff]  }
   0x4   :  { %v6943_v3 = vld [vmem:[%s9198_s1 + $0x80] sm:$0xff]   ;;  %6237 = vmatpush3.bf16.msra.mxu0 %v6942_v2  ;;  %v6947_v7 = vld [vmem:[%s9198_s1 + $0x88] sm:$0xff]   ;;  %v6951_v11 = vld [vmem:[%s9198_s1 + $0x90] sm:$0xff]  }
   0x5   :  { %6259 = vmatpush3.bf16.msra.mxu1 %v6943_v3  ;;  %6238 = vmatprep.subr.bf16.mxu0 %v6944_v4  ;;  %v6952_v12 = vld [vmem:[%s9198_s1 + $0x58] sm:$0xff]   ;;  %v6956_v16 = vld [vmem:[%s9198_s1 + $0x60] sm:$0xff]   ;;  %v6960_v20 = vld [vmem:[%s9198_s1 + $0x68] sm:$0xff]  }
   0x6   :  { %6260 = vmatprep.subr.bf16.mxu1 %v6945_v5  ;;  %v6953_v13 = vld [vmem:[%s9198_s1 + $0xd8] sm:$0xff]   ;;  %v6957_v17 = vld [vmem:[%s9198_s1 + $0xe0] sm:$0xff]   ;;  %v6961_v21 = vld [vmem:[%s9198_s1 + $0xe8] sm:$0xff]  }
   0x7   :  { %v6954_v14 = vld [vmem:[%s9198_s1 + $0x18] sm:$0xff]   ;;  %v6958_v18 = vld [vmem:[%s9198_s1 + $0x20] sm:$0xff]   ;;  %v6962_v22 = vld [vmem:[%s9198_s1 + $0x28] sm:$0xff]  }
   0x8   :  { %6239 = vmatpush3.bf16.msra.mxu0 %v6946_v6  ;;  %v6955_v15 = vld [vmem:[%s9198_s1 + $0x98] sm:$0xff]   ;;  %v6959_v19 = vld [vmem:[%s9198_s1 + $0xa0] sm:$0xff]   ;;  %v6963_v23 = vld [vmem:[%s9198_s1 + $0xa8] sm:$0xff]  }
   0x9   :  { %6261 = vmatpush3.bf16.msra.mxu1 %v6947_v7  ;;  %6240 = vmatprep.subr.bf16.mxu0 %v6948_v8  ;;  %v6964_v24 = vld [vmem:[%s9198_s1 + $0x70] sm:$0xff]   ;;  %v6968_v28 = vld [vmem:[%s9198_s1 + $0x78] sm:$0xff]   ;;  %v15_v32 = vld [vmem:[%s9199_s0] sm:$0xff] }
   0xa   :  { %6262 = vmatprep.subr.bf16.mxu1 %v6949_v9  ;;  %v6965_v25 = vld [vmem:[%s9198_s1 + $0xf0] sm:$0xff]   ;;  %v6969_v29 = vld [vmem:[%s9198_s1 + $0xf8] sm:$0xff]   ;;  %v16_v33 = vld [vmem:[%s9199_s0 + $0x8] sm:$0xff]  ;;  %v5660_v34 = vcombine.low %v15_v32, %v15_v32  ;;  %v5661_v35 = vcombine.high %v15_v32, %v15_v32 }
   0xb   :  { %v6966_v26 = vld [vmem:[%s9198_s1 + $0x30] sm:$0xff]   ;;  %v6970_v30 = vld [vmem:[%s9198_s1 + $0x38] sm:$0xff]   ;;  %v5662_v36 = vcombine.low %v16_v33, %v16_v33  ;;  %v5663_v37 = vcombine.high %v16_v33, %v16_v33  ;;  %v6976_v38 = vld [vmem:[%s9198_s1 + $0x140] sm:$0xff]  }
   0xc   :  { %6241 = vmatpush3.bf16.msra.mxu0 %v6950_v10  ;;  %v6967_v27 = vld [vmem:[%s9198_s1 + $0xb0] sm:$0xff]   ;;  %v6971_v31 = vld [vmem:[%s9198_s1 + $0xb8] sm:$0xff]   ;;  %v6977_v39 = vld [vmem:[%s9198_s1 + $0x1c0] sm:$0xff]   ;;  %4406 = vmatprep.mubr.bf16.mxu0 %v5661_v35 }
   0xd   :  { %6263 = vmatpush3.bf16.msra.mxu1 %v6951_v11  ;;  %6242 = vmatprep.subr.bf16.mxu0 %v6952_v12  ;;  %v6978_v40 = vld [vmem:[%s9198_s1 + $0x100] sm:$0xff]   ;;  %v6980_v42 = vld [vmem:[%s9198_s1 + $0x148] sm:$0xff]   ;;  %v6984_v46 = vld [vmem:[%s9198_s1 + $0x150] sm:$0xff]  }
   0xe   :  { %6264 = vmatprep.subr.bf16.mxu1 %v6953_v13  ;;  %4446 = vmatprep.mubr.bf16.mxu1 %v5663_v37  ;;  %v6979_v41 = vld [vmem:[%s9198_s1 + $0x180] sm:$0xff]   ;;  %v6981_v43 = vld [vmem:[%s9198_s1 + $0x1c8] sm:$0xff]   ;;  %v6985_v47 = vld [vmem:[%s9198_s1 + $0x1d0] sm:$0xff]  }
   0xf   :  { %v6982_v44 = vld [vmem:[%s9198_s1 + $0x108] sm:$0xff]   ;;  %v6986_v48 = vld [vmem:[%s9198_s1 + $0x110] sm:$0xff]   ;;  %v6988_v50 = vld [vmem:[%s9198_s1 + $0x158] sm:$0xff]  }
  0x10   :  { %6243 = vmatpush3.bf16.msra.mxu0 %v6954_v14  ;;  %v6983_v45 = vld [vmem:[%s9198_s1 + $0x188] sm:$0xff]   ;;  %v6987_v49 = vld [vmem:[%s9198_s1 + $0x190] sm:$0xff]   ;;  %v6989_v51 = vld [vmem:[%s9198_s1 + $0x1d8] sm:$0xff]  }
  0x11   :  { %6265 = vmatpush3.bf16.msra.mxu1 %v6955_v15  ;;  %6244 = vmatprep.subr.bf16.mxu0 %v6956_v16  ;;  %v6990_v52 = vld [vmem:[%s9198_s1 + $0x118] sm:$0xff]   ;;  %v6992_v54 = vld [vmem:[%s9198_s1 + $0x160] sm:$0xff]   ;;  %v6996_v58 = vld [vmem:[%s9198_s1 + $0x168] sm:$0xff]  }
  0x12   :  { %6266 = vmatprep.subr.bf16.mxu1 %v6957_v17  ;;  %v6991_v53 = vld [vmem:[%s9198_s1 + $0x198] sm:$0xff]   ;;  %v6993_v55 = vld [vmem:[%s9198_s1 + $0x1e0] sm:$0xff]   ;;  %v6997_v59 = vld [vmem:[%s9198_s1 + $0x1e8] sm:$0xff]  }
  0x13   :  { %v6994_v56 = vld [vmem:[%s9198_s1 + $0x120] sm:$0xff]   ;;  %v6998_v60 = vld [vmem:[%s9198_s1 + $0x128] sm:$0xff]   ;;  %v7000_v62 = vld [vmem:[%s9198_s1 + $0x170] sm:$0xff]  }
  0x14   :  { %6245 = vmatpush3.bf16.msra.mxu0 %v6958_v18  ;;  %v6995_v57 = vld [vmem:[%s9198_s1 + $0x1a0] sm:$0xff]   ;;  %v6999_v61 = vld [vmem:[%s9198_s1 + $0x1a8] sm:$0xff]   ;;  %v7001_v63 = vld [vmem:[%s9198_s1 + $0x1f0] sm:$0xff]  }
  0x15   :  { %6267 = vmatpush3.bf16.msra.mxu1 %v6959_v19  ;;  %6246 = vmatprep.subr.bf16.mxu0 %v6960_v20  ;;  %v7002_v0 = vld [vmem:[%s9198_s1 + $0x130] sm:$0xff]   ;;  %v7004_v2 = vld [vmem:[%s9198_s1 + $0x178] sm:$0xff]   ;;  %v7012_v12 = vld [vmem:[%s9198_s1 + $0x240] sm:$0xff]  }
  0x16   :  { %6268 = vmatprep.subr.bf16.mxu1 %v6961_v21  ;;  %v7003_v1 = vld [vmem:[%s9198_s1 + $0x1b0] sm:$0xff]   ;;  %v7005_v3 = vld [vmem:[%s9198_s1 + $0x1f8] sm:$0xff]   ;;  %v7013_v13 = vld [vmem:[%s9198_s1 + $0x2c0] sm:$0xff]  }
  0x17   :  { %v7006_v4 = vld [vmem:[%s9198_s1 + $0x138] sm:$0xff]   ;;  %v17_v6 = vld [vmem:[%s9199_s0 + $0x10] sm:$0xff]  ;;  %v7014_v14 = vld [vmem:[%s9198_s1 + $0x200] sm:$0xff]  }
  0x18   :  { %6247 = vmatpush3.bf16.msra.mxu0 %v6962_v22  ;;  %v7007_v5 = vld [vmem:[%s9198_s1 + $0x1b8] sm:$0xff]   ;;  %v5664_v7 = vcombine.low %v17_v6, %v17_v6  ;;  %v5665_v8 = vcombine.high %v17_v6, %v17_v6  ;;  %v7015_v15 = vld [vmem:[%s9198_s1 + $0x280] sm:$0xff]   ;;  %v7016_v16 = vld [vmem:[%s9198_s1 + $0x248] sm:$0xff]  }
  0x19   :  { %6269 = vmatpush3.bf16.msra.mxu1 %v6963_v23  ;;  %6248 = vmatprep.subr.bf16.mxu0 %v6964_v24  ;;  %v18_v9 = vld [vmem:[%s9199_s0 + $0x18] sm:$0xff]  ;;  %v7017_v17 = vld [vmem:[%s9198_s1 + $0x2c8] sm:$0xff]   ;;  %v7020_v20 = vld [vmem:[%s9198_s1 + $0x250] sm:$0xff]  }
  0x1a   :  { %6270 = vmatprep.subr.bf16.mxu1 %v6965_v25  ;;  %v5666_v10 = vcombine.low %v18_v9, %v18_v9  ;;  %v5667_v11 = vcombine.high %v18_v9, %v18_v9  ;;  %v7018_v18 = vld [vmem:[%s9198_s1 + $0x208] sm:$0xff]   ;;  %v7021_v21 = vld [vmem:[%s9198_s1 + $0x2d0] sm:$0xff]   ;;  %v7024_v24 = vld [vmem:[%s9198_s1 + $0x258] sm:$0xff]  }
  0x1b   :  { %v7019_v19 = vld [vmem:[%s9198_s1 + $0x288] sm:$0xff]   ;;  %v7022_v22 = vld [vmem:[%s9198_s1 + $0x210] sm:$0xff]   ;;  %v7025_v25 = vld [vmem:[%s9198_s1 + $0x2d8] sm:$0xff]  }
  0x1c   :  { %6249 = vmatpush3.bf16.msra.mxu0 %v6966_v26  ;;  %v7023_v23 = vld [vmem:[%s9198_s1 + $0x290] sm:$0xff]   ;;  %v7026_v26 = vld [vmem:[%s9198_s1 + $0x218] sm:$0xff]   ;;  %v7032_v32 = vld [vmem:[%s9198_s1 + $0x268] sm:$0xff]  }
  0x1d   :  { %6271 = vmatpush3.bf16.msra.mxu1 %v6967_v27  ;;  %6250 = vmatprep.subr.bf16.mxu0 %v6968_v28  ;;  %v7027_v27 = vld [vmem:[%s9198_s1 + $0x298] sm:$0xff]   ;;  %v7028_v28 = vld [vmem:[%s9198_s1 + $0x260] sm:$0xff]   ;;  %v7033_v33 = vld [vmem:[%s9198_s1 + $0x2e8] sm:$0xff]  }
  0x1e   :  { %6272 = vmatprep.subr.bf16.mxu1 %v6969_v29  ;;  %v7029_v29 = vld [vmem:[%s9198_s1 + $0x2e0] sm:$0xff]   ;;  %v7035_v35 = vld [vmem:[%s9198_s1 + $0x2a8] sm:$0xff]   ;;  %v7037_v37 = vld [vmem:[%s9198_s1 + $0x2f0] sm:$0xff]  }
  0x1f   :  { %v7068_v6 = vld [vmem:[%s9198_s1 + $0x368] sm:$0xff]  }
  0x20   :  { %6251 = vmatpush3.bf16.msra.mxu0 %v6970_v30  ;;  %v7030_v30 = vld [vmem:[%s9198_s1 + $0x220] sm:$0xff]   ;;  %v7071_v9 = vld [vmem:[%s9198_s1 + $0x3a8] sm:$0xff]  }
  0x21   :  { %6273 = vmatpush3.bf16.msra.mxu1 %v6971_v31  ;;  %6280 = vmatprep.subr.bf16.mxu0 %v6976_v38  ;;  %v7031_v31 = vld [vmem:[%s9198_s1 + $0x2a0] sm:$0xff]   ;;  %v7038_v38 = vld [vmem:[%s9198_s1 + $0x230] sm:$0xff]  }
  0x22   :  { %6302 = vmatprep.subr.bf16.mxu1 %v6977_v39  ;;  %v7039_v39 = vld [vmem:[%s9198_s1 + $0x2b0] sm:$0xff]  }
  0x23   :  { %4407 = vmatmul.mubr.bf16.vlgmr.msra.gmra.mrb[0].mxu0 %v5660_v34  ;;  %v7034_v34 = vld [vmem:[%s9198_s1 + $0x228] sm:$0xff]  }
  0x24   :  { %4447 = vmatmul.mubr.bf16.vlgmr.msra.gmra.mrb[0].mxu1 %v5662_v36  ;;  %6281 = vmatpush3.bf16.msra.mxu0 %v6978_v40  ;;  %v7036_v36 = vld [vmem:[%s9198_s1 + $0x270] sm:$0xff]   ;;  %v7040_v40 = vld [vmem:[%s9198_s1 + $0x278] sm:$0xff]  }
  0x25   :  { %6303 = vmatpush3.bf16.msra.mxu1 %v6979_v41  ;;  %6282 = vmatprep.subr.bf16.mxu0 %v6980_v42  ;;  %v7041_v41 = vld [vmem:[%s9198_s1 + $0x2f8] sm:$0xff]  }
  0x26   :  { %6304 = vmatprep.subr.bf16.mxu1 %v6981_v43  ;;  %4486 = vmatprep.mubr.bf16.mxu0 %v5665_v8  ;;  %v7042_v42 = vld [vmem:[%s9198_s1 + $0x238] sm:$0xff]   ;;  %v7070_v8 = vld [vmem:[%s9198_s1 + $0x328] sm:$0xff]  }
  0x27   :  { %4526 = vmatprep.mubr.bf16.mxu1 %v5667_v11  ;;  %v7043_v43 = vld [vmem:[%s9198_s1 + $0x2b8] sm:$0xff]   ;;  %v7073_v11 = vld [vmem:[%s9198_s1 + $0x3f0] sm:$0xff]  }
  0x28   :  { %6283 = vmatpush3.bf16.msra.mxu0 %v6982_v44  ;;  %v19_v44 = vld [vmem:[%s9199_s0 + $0x20] sm:$0xff] }
  0x29   :  { %6305 = vmatpush3.bf16.msra.mxu1 %v6983_v45  ;;  %6284 = vmatprep.subr.bf16.mxu0 %v6984_v46  ;;  %v20_v45 = vld [vmem:[%s9199_s0 + $0x28] sm:$0xff]  ;;  %v5668_v46 = vcombine.low %v19_v44, %v19_v44 }
  0x2a   :  { %6306 = vmatprep.subr.bf16.mxu1 %v6985_v47  ;;  %v5669_v47 = vcombine.high %v19_v44, %v19_v44  ;;  %v7104_v44 = vld [vmem:[%s9198_s1 + $0x468] sm:$0xff]  }
  0x2c   :  { %6285 = vmatpush3.bf16.msra.mxu0 %v6986_v48  ;;  %v5670_v48 = vcombine.low %v20_v45, %v20_v45 }
  0x2d   :  { %6307 = vmatpush3.bf16.msra.mxu1 %v6987_v49  ;;  %6286 = vmatprep.subr.bf16.mxu0 %v6988_v50  ;;  %v5671_v49 = vcombine.high %v20_v45, %v20_v45  ;;  %v7048_v50 = vld [vmem:[%s9198_s1 + $0x340] sm:$0xff]   ;;  %v7105_v45 = vld [vmem:[%s9198_s1 + $0x4e8] sm:$0xff]  }
  0x2e   :  { %6308 = vmatprep.subr.bf16.mxu1 %v6989_v51  ;;  %v7049_v51 = vld [vmem:[%s9198_s1 + $0x3c0] sm:$0xff]  }
  0x30   :  { %6287 = vmatpush3.bf16.msra.mxu0 %v6990_v52  ;;  %v7050_v52 = vld [vmem:[%s9198_s1 + $0x300] sm:$0xff]  }
  0x31   :  { %6309 = vmatpush3.bf16.msra.mxu1 %v6991_v53  ;;  %6288 = vmatprep.subr.bf16.mxu0 %v6992_v54  ;;  %v7051_v53 = vld [vmem:[%s9198_s1 + $0x380] sm:$0xff]   ;;  %v7052_v54 = vld [vmem:[%s9198_s1 + $0x348] sm:$0xff]  }
  0x32   :  { %6310 = vmatprep.subr.bf16.mxu1 %v6993_v55  ;;  %v7053_v55 = vld [vmem:[%s9198_s1 + $0x3c8] sm:$0xff]  }
  0x34   :  { %6289 = vmatpush3.bf16.msra.mxu0 %v6994_v56  ;;  %v7054_v56 = vld [vmem:[%s9198_s1 + $0x308] sm:$0xff]  }
  0x35   :  { %6311 = vmatpush3.bf16.msra.mxu1 %v6995_v57  ;;  %6290 = vmatprep.subr.bf16.mxu0 %v6996_v58  ;;  %v7055_v57 = vld [vmem:[%s9198_s1 + $0x388] sm:$0xff]   ;;  %v7056_v58 = vld [vmem:[%s9198_s1 + $0x350] sm:$0xff]  }
  0x36   :  { %6312 = vmatprep.subr.bf16.mxu1 %v6997_v59  ;;  %v7057_v59 = vld [vmem:[%s9198_s1 + $0x3d0] sm:$0xff]  }
  0x38   :  { %6291 = vmatpush3.bf16.msra.mxu0 %v6998_v60  ;;  %v7058_v60 = vld [vmem:[%s9198_s1 + $0x310] sm:$0xff]  }
  0x39   :  { %6313 = vmatpush3.bf16.msra.mxu1 %v6999_v61  ;;  %6292 = vmatprep.subr.bf16.mxu0 %v7000_v62  ;;  %v7059_v61 = vld [vmem:[%s9198_s1 + $0x390] sm:$0xff]   ;;  %v7060_v62 = vld [vmem:[%s9198_s1 + $0x358] sm:$0xff]  }
  0x3a   :  { %6314 = vmatprep.subr.bf16.mxu1 %v7001_v63  ;;  %v7061_v63 = vld [vmem:[%s9198_s1 + $0x3d8] sm:$0xff]  }
  0x3c   :  { %6293 = vmatpush3.bf16.msra.mxu0 %v7002_v0  ;;  %v7062_v0 = vld [vmem:[%s9198_s1 + $0x318] sm:$0xff]  }
  0x3d   :  { %6315 = vmatpush3.bf16.msra.mxu1 %v7003_v1  ;;  %6294 = vmatprep.subr.bf16.mxu0 %v7004_v2  ;;  %v7063_v1 = vld [vmem:[%s9198_s1 + $0x398] sm:$0xff]   ;;  %v7064_v2 = vld [vmem:[%s9198_s1 + $0x360] sm:$0xff]  }
  0x3e   :  { %6316 = vmatprep.subr.bf16.mxu1 %v7005_v3  ;;  %v7065_v3 = vld [vmem:[%s9198_s1 + $0x3e0] sm:$0xff]  }
  0x40   :  { %6295 = vmatpush3.bf16.msra.mxu0 %v7006_v4  ;;  %v7066_v4 = vld [vmem:[%s9198_s1 + $0x320] sm:$0xff]  }
  0x41   :  { %6317 = vmatpush3.bf16.msra.mxu1 %v7007_v5  ;;  %6324 = vmatprep.subr.bf16.mxu0 %v7012_v12  ;;  %v7067_v5 = vld [vmem:[%s9198_s1 + $0x3a0] sm:$0xff]   ;;  %v7074_v12 = vld [vmem:[%s9198_s1 + $0x330] sm:$0xff]  }
  0x42   :  { %6346 = vmatprep.subr.bf16.mxu1 %v7013_v13  ;;  %v7075_v13 = vld [vmem:[%s9198_s1 + $0x3b0] sm:$0xff]  }
  0x43   :  { %4487 = vmatmul.mubr.bf16.vlgmr.msra.gmra.mrb[4].mxu0 %v5664_v7  ;;  %v7069_v7 = vld [vmem:[%s9198_s1 + $0x3e8] sm:$0xff]  }
  0x44   :  { %4527 = vmatmul.mubr.bf16.vlgmr.msra.gmra.mrb[4].mxu1 %v5666_v10  ;;  %6325 = vmatpush3.bf16.msra.mxu0 %v7014_v14  ;;  %v7072_v10 = vld [vmem:[%s9198_s1 + $0x370] sm:$0xff]   ;;  %v7076_v14 = vld [vmem:[%s9198_s1 + $0x378] sm:$0xff]  }
  0x45   :  { %6347 = vmatpush3.bf16.msra.mxu1 %v7015_v15  ;;  %6326 = vmatprep.subr.bf16.mxu0 %v7016_v16  ;;  %v7077_v15 = vld [vmem:[%s9198_s1 + $0x3f8] sm:$0xff]  }
  0x46   :  { %6348 = vmatprep.subr.bf16.mxu1 %v7017_v17  ;;  %4566 = vmatprep.mubr.bf16.mxu0 %v5669_v47  ;;  %v7078_v16 = vld [vmem:[%s9198_s1 + $0x338] sm:$0xff]   ;;  %v7107_v47 = vld [vmem:[%s9198_s1 + $0x4a8] sm:$0xff]  }
  0x47   :  { %4606 = vmatprep.mubr.bf16.mxu1 %v5671_v49  ;;  %v7079_v17 = vld [vmem:[%s9198_s1 + $0x3b8] sm:$0xff]   ;;  %v7109_v49 = vld [vmem:[%s9198_s1 + $0x4f0] sm:$0xff]  }
  0x48   :  { %6327 = vmatpush3.bf16.msra.mxu0 %v7018_v18  ;;  %v21_v18 = vld [vmem:[%s9199_s0 + $0x30] sm:$0xff] }
  0x49   :  { %6349 = vmatpush3.bf16.msra.mxu1 %v7019_v19  ;;  %6328 = vmatprep.subr.bf16.mxu0 %v7020_v20  ;;  %v22_v19 = vld [vmem:[%s9199_s0 + $0x38] sm:$0xff]  ;;  %v5672_v20 = vcombine.low %v21_v18, %v21_v18 }
  0x4a   :  { %6350 = vmatprep.subr.bf16.mxu1 %v7021_v21  ;;  %v5673_v21 = vcombine.high %v21_v18, %v21_v18  ;;  %v7140_v18 = vld [vmem:[%s9198_s1 + $0x568] sm:$0xff]  }
  0x4c   :  { %6329 = vmatpush3.bf16.msra.mxu0 %v7022_v22  ;;  %v5674_v22 = vcombine.low %v22_v19, %v22_v19 }
  0x4d   :  { %6351 = vmatpush3.bf16.msra.mxu1 %v7023_v23  ;;  %6330 = vmatprep.subr.bf16.mxu0 %v7024_v24  ;;  %v7084_v23 = vld [vmem:[%s9198_s1 + $0x440] sm:$0xff]   ;;  %v5675_v24 = vcombine.high %v22_v19, %v22_v19  ;;  %v7141_v19 = vld [vmem:[%s9198_s1 + $0x5e8] sm:$0xff]  }
  0x4e   :  { %6352 = vmatprep.subr.bf16.mxu1 %v7025_v25  ;;  %v7085_v25 = vld [vmem:[%s9198_s1 + $0x4c0] sm:$0xff]  }
  0x50   :  { %6331 = vmatpush3.bf16.msra.mxu0 %v7026_v26  ;;  %v7086_v26 = vld [vmem:[%s9198_s1 + $0x400] sm:$0xff]  }
  0x51   :  { %6353 = vmatpush3.bf16.msra.mxu1 %v7027_v27  ;;  %6332 = vmatprep.subr.bf16.mxu0 %v7028_v28  ;;  %v7087_v27 = vld [vmem:[%s9198_s1 + $0x480] sm:$0xff]   ;;  %v7088_v28 = vld [vmem:[%s9198_s1 + $0x448] sm:$0xff]  }
  0x52   :  { %6354 = vmatprep.subr.bf16.mxu1 %v7029_v29  ;;  %v7089_v29 = vld [vmem:[%s9198_s1 + $0x4c8] sm:$0xff]  }
  0x54   :  { %6333 = vmatpush3.bf16.msra.mxu0 %v7030_v30  ;;  %v7090_v30 = vld [vmem:[%s9198_s1 + $0x408] sm:$0xff]  }
  0x55   :  { %6355 = vmatpush3.bf16.msra.mxu1 %v7031_v31  ;;  %6334 = vmatprep.subr.bf16.mxu0 %v7032_v32  ;;  %v7091_v31 = vld [vmem:[%s9198_s1 + $0x488] sm:$0xff]   ;;  %v7092_v32 = vld [vmem:[%s9198_s1 + $0x450] sm:$0xff]  }
  0x56   :  { %6356 = vmatprep.subr.bf16.mxu1 %v7033_v33  ;;  %v7093_v33 = vld [vmem:[%s9198_s1 + $0x4d0] sm:$0xff]  }
  0x58   :  { %6335 = vmatpush3.bf16.msra.mxu0 %v7034_v34  ;;  %v7094_v34 = vld [vmem:[%s9198_s1 + $0x410] sm:$0xff]  }
  0x59   :  { %6357 = vmatpush3.bf16.msra.mxu1 %v7035_v35  ;;  %6336 = vmatprep.subr.bf16.mxu0 %v7036_v36  ;;  %v7095_v35 = vld [vmem:[%s9198_s1 + $0x490] sm:$0xff]   ;;  %v7096_v36 = vld [vmem:[%s9198_s1 + $0x458] sm:$0xff]  }
  0x5a   :  { %6358 = vmatprep.subr.bf16.mxu1 %v7037_v37  ;;  %v7097_v37 = vld [vmem:[%s9198_s1 + $0x4d8] sm:$0xff]  }
  0x5c   :  { %6337 = vmatpush3.bf16.msra.mxu0 %v7038_v38  ;;  %v7098_v38 = vld [vmem:[%s9198_s1 + $0x418] sm:$0xff]  }
  0x5d   :  { %6359 = vmatpush3.bf16.msra.mxu1 %v7039_v39  ;;  %6338 = vmatprep.subr.bf16.mxu0 %v7040_v40  ;;  %v7099_v39 = vld [vmem:[%s9198_s1 + $0x498] sm:$0xff]   ;;  %v7100_v40 = vld [vmem:[%s9198_s1 + $0x460] sm:$0xff]  }
  0x5e   :  { %6360 = vmatprep.subr.bf16.mxu1 %v7041_v41  ;;  %v7101_v41 = vld [vmem:[%s9198_s1 + $0x4e0] sm:$0xff]  }
  0x60   :  { %6339 = vmatpush3.bf16.msra.mxu0 %v7042_v42  ;;  %v7102_v42 = vld [vmem:[%s9198_s1 + $0x420] sm:$0xff]  }
  0x61   :  { %6361 = vmatpush3.bf16.msra.mxu1 %v7043_v43  ;;  %6368 = vmatprep.subr.bf16.mxu0 %v7048_v50  ;;  %v7103_v43 = vld [vmem:[%s9198_s1 + $0x4a0] sm:$0xff]   ;;  %v7110_v50 = vld [vmem:[%s9198_s1 + $0x430] sm:$0xff]  }
  0x62   :  { %6390 = vmatprep.subr.bf16.mxu1 %v7049_v51  ;;  %v7111_v51 = vld [vmem:[%s9198_s1 + $0x4b0] sm:$0xff]  }
  0x63   :  { %4567 = vmatmul.mubr.bf16.vlgmr.msra.gmra.mrb[8].mxu0 %v5668_v46  ;;  %v7106_v46 = vld [vmem:[%s9198_s1 + $0x428] sm:$0xff]  }
  0x64   :  { %4607 = vmatmul.mubr.bf16.vlgmr.msra.gmra.mrb[8].mxu1 %v5670_v48  ;;  %6369 = vmatpush3.bf16.msra.mxu0 %v7050_v52  ;;  %v7108_v48 = vld [vmem:[%s9198_s1 + $0x470] sm:$0xff]   ;;  %v7112_v52 = vld [vmem:[%s9198_s1 + $0x478] sm:$0xff]  }
  0x65   :  { %6391 = vmatpush3.bf16.msra.mxu1 %v7051_v53  ;;  %6370 = vmatprep.subr.bf16.mxu0 %v7052_v54  ;;  %v7113_v53 = vld [vmem:[%s9198_s1 + $0x4f8] sm:$0xff]  }
  0x66   :  { %6392 = vmatprep.subr.bf16.mxu1 %v7053_v55  ;;  %4646 = vmatprep.mubr.bf16.mxu0 %v5673_v21  ;;  %v7114_v54 = vld [vmem:[%s9198_s1 + $0x438] sm:$0xff]   ;;  %v7143_v21 = vld [vmem:[%s9198_s1 + $0x5a8] sm:$0xff]  }
  0x67   :  { %4686 = vmatprep.mubr.bf16.mxu1 %v5675_v24  ;;  %v7115_v55 = vld [vmem:[%s9198_s1 + $0x4b8] sm:$0xff]   ;;  %v7146_v24 = vld [vmem:[%s9198_s1 + $0x530] sm:$0xff]  }
  0x68   :  { %6371 = vmatpush3.bf16.msra.mxu0 %v7054_v56  ;;  %v23_v56 = vld [vmem:[%s9199_s0 + $0x40] sm:$0xff] }
  0x69   :  { %6393 = vmatpush3.bf16.msra.mxu1 %v7055_v57  ;;  %6372 = vmatprep.subr.bf16.mxu0 %v7056_v58  ;;  %v5676_v57 = vcombine.low %v23_v56, %v23_v56  ;;  %v5677_v58 = vcombine.high %v23_v56, %v23_v56  ;;  %v7176_v56 = vld [vmem:[%s9198_s1 + $0x668] sm:$0xff]  }
  0x6a   :  { %6394 = vmatprep.subr.bf16.mxu1 %v7057_v59  ;;  %v24_v59 = vld [vmem:[%s9199_s0 + $0x48] sm:$0xff] }
  0x6c   :  { %6373 = vmatpush3.bf16.msra.mxu0 %v7058_v60  ;;  %v5678_v60 = vcombine.low %v24_v59, %v24_v59 }
  0x6d   :  { %6395 = vmatpush3.bf16.msra.mxu1 %v7059_v61  ;;  %6374 = vmatprep.subr.bf16.mxu0 %v7060_v62  ;;  %v5679_v61 = vcombine.high %v24_v59, %v24_v59  ;;  %v7120_v62 = vld [vmem:[%s9198_s1 + $0x540] sm:$0xff]   ;;  %v7179_v59 = vld [vmem:[%s9198_s1 + $0x6a8] sm:$0xff]  }
  0x6e   :  { %6396 = vmatprep.subr.bf16.mxu1 %v7061_v63  ;;  %v7121_v63 = vld [vmem:[%s9198_s1 + $0x5c0] sm:$0xff]  }
  0x70   :  { %6375 = vmatpush3.bf16.msra.mxu0 %v7062_v0  ;;  %v7122_v0 = vld [vmem:[%s9198_s1 + $0x500] sm:$0xff]  }
  0x71   :  { %6397 = vmatpush3.bf16.msra.mxu1 %v7063_v1  ;;  %6376 = vmatprep.subr.bf16.mxu0 %v7064_v2  ;;  %v7123_v1 = vld [vmem:[%s9198_s1 + $0x580] sm:$0xff]   ;;  %v7124_v2 = vld [vmem:[%s9198_s1 + $0x548] sm:$0xff]  }
  0x72   :  { %6398 = vmatprep.subr.bf16.mxu1 %v7065_v3  ;;  %v7125_v3 = vld [vmem:[%s9198_s1 + $0x5c8] sm:$0xff]  }
  0x74   :  { %6377 = vmatpush3.bf16.msra.mxu0 %v7066_v4  ;;  %v7126_v4 = vld [vmem:[%s9198_s1 + $0x508] sm:$0xff]  }
  0x75   :  { %6399 = vmatpush3.bf16.msra.mxu1 %v7067_v5  ;;  %6378 = vmatprep.subr.bf16.mxu0 %v7068_v6  ;;  %v7127_v5 = vld [vmem:[%s9198_s1 + $0x588] sm:$0xff]   ;;  %v7128_v6 = vld [vmem:[%s9198_s1 + $0x550] sm:$0xff]  }
  0x76   :  { %6400 = vmatprep.subr.bf16.mxu1 %v7069_v7  ;;  %v7129_v7 = vld [vmem:[%s9198_s1 + $0x5d0] sm:$0xff]  }
  0x78   :  { %6379 = vmatpush3.bf16.msra.mxu0 %v7070_v8  ;;  %v7130_v8 = vld [vmem:[%s9198_s1 + $0x510] sm:$0xff]  }
  0x79   :  { %6401 = vmatpush3.bf16.msra.mxu1 %v7071_v9  ;;  %6380 = vmatprep.subr.bf16.mxu0 %v7072_v10  ;;  %v7131_v9 = vld [vmem:[%s9198_s1 + $0x590] sm:$0xff]   ;;  %v7132_v10 = vld [vmem:[%s9198_s1 + $0x558] sm:$0xff]  }
  0x7a   :  { %6402 = vmatprep.subr.bf16.mxu1 %v7073_v11  ;;  %v7133_v11 = vld [vmem:[%s9198_s1 + $0x5d8] sm:$0xff]  }
  0x7c   :  { %6381 = vmatpush3.bf16.msra.mxu0 %v7074_v12  ;;  %v7134_v12 = vld [vmem:[%s9198_s1 + $0x518] sm:$0xff]  }
  0x7d   :  { %6403 = vmatpush3.bf16.msra.mxu1 %v7075_v13  ;;  %6382 = vmatprep.subr.bf16.mxu0 %v7076_v14  ;;  %v7135_v13 = vld [vmem:[%s9198_s1 + $0x598] sm:$0xff]   ;;  %v7136_v14 = vld [vmem:[%s9198_s1 + $0x560] sm:$0xff]  }
  0x7e   :  { %6404 = vmatprep.subr.bf16.mxu1 %v7077_v15  ;;  %v7137_v15 = vld [vmem:[%s9198_s1 + $0x5e0] sm:$0xff]  }
  0x80   :  { %6383 = vmatpush3.bf16.msra.mxu0 %v7078_v16  ;;  %v7138_v16 = vld [vmem:[%s9198_s1 + $0x520] sm:$0xff]  }
  0x81   :  { %6405 = vmatpush3.bf16.msra.mxu1 %v7079_v17  ;;  %6412 = vmatprep.subr.bf16.mxu0 %v7084_v23  ;;  %v7139_v17 = vld [vmem:[%s9198_s1 + $0x5a0] sm:$0xff]   ;;  %v7145_v23 = vld [vmem:[%s9198_s1 + $0x5f0] sm:$0xff]  }
  0x82   :  { %6434 = vmatprep.subr.bf16.mxu1 %v7085_v25  ;;  %v7147_v25 = vld [vmem:[%s9198_s1 + $0x5b0] sm:$0xff]  }
  0x83   :  { %4647 = vmatmul.mubr.bf16.vlgmr.msra.gmra.mrb[12].mxu0 %v5672_v20  ;;  %v7142_v20 = vld [vmem:[%s9198_s1 + $0x528] sm:$0xff]  }
  0x84   :  { %4687 = vmatmul.mubr.bf16.vlgmr.msra.gmra.mrb[12].mxu1 %v5674_v22  ;;  %6413 = vmatpush3.bf16.msra.mxu0 %v7086_v26  ;;  %v7144_v22 = vld [vmem:[%s9198_s1 + $0x570] sm:$0xff]   ;;  %v7148_v26 = vld [vmem:[%s9198_s1 + $0x578] sm:$0xff]  }
  0x85   :  { %6435 = vmatpush3.bf16.msra.mxu1 %v7087_v27  ;;  %6414 = vmatprep.subr.bf16.mxu0 %v7088_v28  ;;  %v7149_v27 = vld [vmem:[%s9198_s1 + $0x5f8] sm:$0xff]  }
  0x86   :  { %6436 = vmatprep.subr.bf16.mxu1 %v7089_v29  ;;  %4726 = vmatprep.mubr.bf16.mxu0 %v5677_v58  ;;  %v7150_v28 = vld [vmem:[%s9198_s1 + $0x538] sm:$0xff]   ;;  %v7178_v58 = vld [vmem:[%s9198_s1 + $0x628] sm:$0xff]  }
  0x87   :  { %4766 = vmatprep.mubr.bf16.mxu1 %v5679_v61  ;;  %v7151_v29 = vld [vmem:[%s9198_s1 + $0x5b8] sm:$0xff]   ;;  %v7181_v61 = vld [vmem:[%s9198_s1 + $0x6f0] sm:$0xff]  }
  0x88   :  { %6415 = vmatpush3.bf16.msra.mxu0 %v7090_v30  ;;  %v25_v30 = vld [vmem:[%s9199_s0 + $0x50] sm:$0xff] }
  0x89   :  { %6437 = vmatpush3.bf16.msra.mxu1 %v7091_v31  ;;  %6416 = vmatprep.subr.bf16.mxu0 %v7092_v32  ;;  %v26_v31 = vld [vmem:[%s9199_s0 + $0x58] sm:$0xff]  ;;  %v5680_v32 = vcombine.low %v25_v30, %v25_v30 }
  0x8a   :  { %6438 = vmatprep.subr.bf16.mxu1 %v7093_v33  ;;  %v5681_v33 = vcombine.high %v25_v30, %v25_v30  ;;  %v7211_v30 = vld [vmem:[%s9198_s1 + $0x7a0] sm:$0xff]  }
  0x8c   :  { %6417 = vmatpush3.bf16.msra.mxu0 %v7094_v34  ;;  %v5682_v34 = vcombine.low %v26_v31, %v26_v31 }
  0x8d   :  { %6439 = vmatpush3.bf16.msra.mxu1 %v7095_v35  ;;  %6418 = vmatprep.subr.bf16.mxu0 %v7096_v36  ;;  %v5683_v35 = vcombine.high %v26_v31, %v26_v31  ;;  %v7156_v36 = vld [vmem:[%s9198_s1 + $0x640] sm:$0xff]  }
  0x8e   :  { %6440 = vmatprep.subr.bf16.mxu1 %v7097_v37  ;;  %v7157_v37 = vld [vmem:[%s9198_s1 + $0x6c0] sm:$0xff]  }
  0x90   :  { %6419 = vmatpush3.bf16.msra.mxu0 %v7098_v38  ;;  %v7158_v38 = vld [vmem:[%s9198_s1 + $0x600] sm:$0xff]  }
  0x91   :  { %6441 = vmatpush3.bf16.msra.mxu1 %v7099_v39  ;;  %6420 = vmatprep.subr.bf16.mxu0 %v7100_v40  ;;  %v7159_v39 = vld [vmem:[%s9198_s1 + $0x680] sm:$0xff]   ;;  %v7160_v40 = vld [vmem:[%s9198_s1 + $0x648] sm:$0xff]  }
  0x92   :  { %6442 = vmatprep.subr.bf16.mxu1 %v7101_v41  ;;  %v7161_v41 = vld [vmem:[%s9198_s1 + $0x6c8] sm:$0xff]  }
  0x94   :  { %6421 = vmatpush3.bf16.msra.mxu0 %v7102_v42  ;;  %v7162_v42 = vld [vmem:[%s9198_s1 + $0x608] sm:$0xff]  }
  0x95   :  { %6443 = vmatpush3.bf16.msra.mxu1 %v7103_v43  ;;  %6422 = vmatprep.subr.bf16.mxu0 %v7104_v44  ;;  %v7163_v43 = vld [vmem:[%s9198_s1 + $0x688] sm:$0xff]   ;;  %v7164_v44 = vld [vmem:[%s9198_s1 + $0x650] sm:$0xff]  }
  0x96   :  { %6444 = vmatprep.subr.bf16.mxu1 %v7105_v45  ;;  %v7165_v45 = vld [vmem:[%s9198_s1 + $0x6d0] sm:$0xff]  }
  0x98   :  { %6423 = vmatpush3.bf16.msra.mxu0 %v7106_v46  ;;  %v7166_v46 = vld [vmem:[%s9198_s1 + $0x610] sm:$0xff]  }
  0x99   :  { %6445 = vmatpush3.bf16.msra.mxu1 %v7107_v47  ;;  %6424 = vmatprep.subr.bf16.mxu0 %v7108_v48  ;;  %v7167_v47 = vld [vmem:[%s9198_s1 + $0x690] sm:$0xff]   ;;  %v7168_v48 = vld [vmem:[%s9198_s1 + $0x658] sm:$0xff]  }
  0x9a   :  { %6446 = vmatprep.subr.bf16.mxu1 %v7109_v49  ;;  %v7169_v49 = vld [vmem:[%s9198_s1 + $0x6d8] sm:$0xff]  }
  0x9c   :  { %6425 = vmatpush3.bf16.msra.mxu0 %v7110_v50  ;;  %v7170_v50 = vld [vmem:[%s9198_s1 + $0x618] sm:$0xff]  }
  0x9d   :  { %6447 = vmatpush3.bf16.msra.mxu1 %v7111_v51  ;;  %6426 = vmatprep.subr.bf16.mxu0 %v7112_v52  ;;  %v7171_v51 = vld [vmem:[%s9198_s1 + $0x698] sm:$0xff]   ;;  %v7172_v52 = vld [vmem:[%s9198_s1 + $0x660] sm:$0xff]  }
  0x9e   :  { %6448 = vmatprep.subr.bf16.mxu1 %v7113_v53  ;;  %v7173_v53 = vld [vmem:[%s9198_s1 + $0x6e0] sm:$0xff]  }
  0xa0   :  { %6427 = vmatpush3.bf16.msra.mxu0 %v7114_v54  ;;  %v7174_v54 = vld [vmem:[%s9198_s1 + $0x620] sm:$0xff]  }
  0xa1   :  { %6449 = vmatpush3.bf16.msra.mxu1 %v7115_v55  ;;  %6456 = vmatprep.subr.bf16.mxu0 %v7120_v62  ;;  %v7175_v55 = vld [vmem:[%s9198_s1 + $0x6a0] sm:$0xff]   ;;  %v7182_v62 = vld [vmem:[%s9198_s1 + $0x630] sm:$0xff]  }
  0xa2   :  { %6478 = vmatprep.subr.bf16.mxu1 %v7121_v63  ;;  %v7183_v63 = vld [vmem:[%s9198_s1 + $0x6b0] sm:$0xff]  }
  0xa3   :  { %4727 = vmatmul.mubr.bf16.vlgmr.msra.gmra.mrb[16].mxu0 %v5676_v57  ;;  %v7177_v57 = vld [vmem:[%s9198_s1 + $0x6e8] sm:$0xff]  }
  0xa4   :  { %4767 = vmatmul.mubr.bf16.vlgmr.msra.gmra.mrb[16].mxu1 %v5678_v60  ;;  %6457 = vmatpush3.bf16.msra.mxu0 %v7122_v0  ;;  %v7180_v60 = vld [vmem:[%s9198_s1 + $0x670] sm:$0xff]   ;;  %v7184_v0 = vld [vmem:[%s9198_s1 + $0x678] sm:$0xff]  }
  0xa5   :  { %6479 = vmatpush3.bf16.msra.mxu1 %v7123_v1  ;;  %6458 = vmatprep.subr.bf16.mxu0 %v7124_v2  ;;  %v7185_v1 = vld [vmem:[%s9198_s1 + $0x6f8] sm:$0xff]  }
  0xa6   :  { %6480 = vmatprep.subr.bf16.mxu1 %v7125_v3  ;;  %4806 = vmatprep.mubr.bf16.mxu0 %v5681_v33  ;;  %v7186_v2 = vld [vmem:[%s9198_s1 + $0x638] sm:$0xff]  }
  0xa7   :  { %4846 = vmatprep.mubr.bf16.mxu1 %v5683_v35  ;;  %v7187_v3 = vld [vmem:[%s9198_s1 + $0x6b8] sm:$0xff]  }
  0xa8   :  { %6459 = vmatpush3.bf16.msra.mxu0 %v7126_v4  ;;  %v27_v4 = vld [vmem:[%s9199_s0 + $0x60] sm:$0xff] }
  0xa9   :  { %6481 = vmatpush3.bf16.msra.mxu1 %v7127_v5  ;;  %6460 = vmatprep.subr.bf16.mxu0 %v7128_v6  ;;  %v28_v5 = vld [vmem:[%s9199_s0 + $0x68] sm:$0xff]  ;;  %v5684_v6 = vcombine.low %v27_v4, %v27_v4 }
  0xaa   :  { %6482 = vmatprep.subr.bf16.mxu1 %v7129_v7  ;;  %v5685_v7 = vcombine.high %v27_v4, %v27_v4  ;;  %v7235_v4 = vld [vmem:[%s9198_s1 + $0x888] sm:$0xff]  }
  0xac   :  { %6461 = vmatpush3.bf16.msra.mxu0 %v7130_v8  ;;  %v5686_v8 = vcombine.low %v28_v5, %v28_v5 }
  0xad   :  { %6483 = vmatpush3.bf16.msra.mxu1 %v7131_v9  ;;  %6462 = vmatprep.subr.bf16.mxu0 %v7132_v10  ;;  %v7192_v9 = vld [vmem:[%s9198_s1 + $0x740] sm:$0xff]   ;;  %v5687_v10 = vcombine.high %v28_v5, %v28_v5  ;;  %v7236_v5 = vld [vmem:[%s9198_s1 + $0x850] sm:$0xff]  }
  0xae   :  { %6484 = vmatprep.subr.bf16.mxu1 %v7133_v11  ;;  %v7193_v11 = vld [vmem:[%s9198_s1 + $0x7c0] sm:$0xff]  }
  0xb0   :  { %6463 = vmatpush3.bf16.msra.mxu0 %v7134_v12  ;;  %v7194_v12 = vld [vmem:[%s9198_s1 + $0x700] sm:$0xff]  }
  0xb1   :  { %6485 = vmatpush3.bf16.msra.mxu1 %v7135_v13  ;;  %6464 = vmatprep.subr.bf16.mxu0 %v7136_v14  ;;  %v7195_v13 = vld [vmem:[%s9198_s1 + $0x780] sm:$0xff]   ;;  %v7196_v14 = vld [vmem:[%s9198_s1 + $0x748] sm:$0xff]  }
  0xb2   :  { %6486 = vmatprep.subr.bf16.mxu1 %v7137_v15  ;;  %v7197_v15 = vld [vmem:[%s9198_s1 + $0x7c8] sm:$0xff]  }
  0xb4   :  { %6465 = vmatpush3.bf16.msra.mxu0 %v7138_v16  ;;  %v7198_v16 = vld [vmem:[%s9198_s1 + $0x708] sm:$0xff]  }
  0xb5   :  { %6487 = vmatpush3.bf16.msra.mxu1 %v7139_v17  ;;  %6466 = vmatprep.subr.bf16.mxu0 %v7140_v18  ;;  %v7199_v17 = vld [vmem:[%s9198_s1 + $0x788] sm:$0xff]   ;;  %v7200_v18 = vld [vmem:[%s9198_s1 + $0x750] sm:$0xff]  }
  0xb6   :  { %6488 = vmatprep.subr.bf16.mxu1 %v7141_v19  ;;  %v7201_v19 = vld [vmem:[%s9198_s1 + $0x7d0] sm:$0xff]  }
  0xb8   :  { %6467 = vmatpush3.bf16.msra.mxu0 %v7142_v20  ;;  %v7202_v20 = vld [vmem:[%s9198_s1 + $0x710] sm:$0xff]  }
  0xb9   :  { %6489 = vmatpush3.bf16.msra.mxu1 %v7143_v21  ;;  %6468 = vmatprep.subr.bf16.mxu0 %v7144_v22  ;;  %v7203_v21 = vld [vmem:[%s9198_s1 + $0x790] sm:$0xff]   ;;  %v7204_v22 = vld [vmem:[%s9198_s1 + $0x758] sm:$0xff]  }
  0xba   :  { %6490 = vmatprep.subr.bf16.mxu1 %v7145_v23  ;;  %v7205_v23 = vld [vmem:[%s9198_s1 + $0x7d8] sm:$0xff]  }
  0xbc   :  { %6469 = vmatpush3.bf16.msra.mxu0 %v7146_v24  ;;  %v7206_v24 = vld [vmem:[%s9198_s1 + $0x718] sm:$0xff]  }
  0xbd   :  { %6491 = vmatpush3.bf16.msra.mxu1 %v7147_v25  ;;  %6470 = vmatprep.subr.bf16.mxu0 %v7148_v26  ;;  %v7207_v25 = vld [vmem:[%s9198_s1 + $0x798] sm:$0xff]   ;;  %v7208_v26 = vld [vmem:[%s9198_s1 + $0x760] sm:$0xff]  }
  0xbe   :  { %6492 = vmatprep.subr.bf16.mxu1 %v7149_v27  ;;  %v7209_v27 = vld [vmem:[%s9198_s1 + $0x7e0] sm:$0xff]  }
  0xc0   :  { %6471 = vmatpush3.bf16.msra.mxu0 %v7150_v28  ;;  %v7210_v28 = vld [vmem:[%s9198_s1 + $0x720] sm:$0xff]  }
  0xc1   :  { %6493 = vmatpush3.bf16.msra.mxu1 %v7151_v29  ;;  %6500 = vmatprep.subr.bf16.mxu0 %v7156_v36 }
  0xc2   :  { %6522 = vmatprep.subr.bf16.mxu1 %v7157_v37  ;;  %v7212_v37 = vld [vmem:[%s9198_s1 + $0x768] sm:$0xff]  }
  0xc3   :  { %4807 = vmatmul.mubr.bf16.vlgmr.msra.gmra.mrb[20].mxu0 %v5680_v32  ;;  %v5659_v32 = vld [vmem:[%s9200_s2] ss:$0 sm:$0xff] }
  0xc4   :  { %4847 = vmatmul.mubr.bf16.vlgmr.msra.gmra.mrb[20].mxu1 %v5682_v34  ;;  %6501 = vmatpush3.bf16.msra.mxu0 %v7158_v38 }
  0xc5   :  { %6523 = vmatpush3.bf16.msra.mxu1 %v7159_v39  ;;  %6502 = vmatprep.subr.bf16.mxu0 %v7160_v40  ;;  %v7213_v39 = vld [vmem:[%s9198_s1 + $0x7e8] sm:$0xff]  }
  0xc6   :  { %6524 = vmatprep.subr.bf16.mxu1 %v7161_v41  ;;  %4886 = vmatprep.mubr.bf16.mxu0 %v5685_v7  ;;  %v7238_v7 = vld [vmem:[%s9198_s1 + $0x810] sm:$0xff]  }
  0xc7   :  { %4926 = vmatprep.mubr.bf16.mxu1 %v5687_v10  ;;  %v7241_v10 = vld [vmem:[%s9198_s1 + $0x8d8] sm:$0xff]  }
  0xc8   :  { %6503 = vmatpush3.bf16.msra.mxu0 %v7162_v42  ;;  %v7214_v42 = vld [vmem:[%s9198_s1 + $0x728] sm:$0xff]  }
  0xc9   :  { %6525 = vmatpush3.bf16.msra.mxu1 %v7163_v43  ;;  %6504 = vmatprep.subr.bf16.mxu0 %v7164_v44  ;;  %v7215_v44 = vld [vmem:[%s9198_s1 + $0x7a8] sm:$0xff]  }
  0xca   :  { %6526 = vmatprep.subr.bf16.mxu1 %v7165_v45 }
  0xcc   :  { %6505 = vmatpush3.bf16.msra.mxu0 %v7166_v46 }
  0xcd   :  { %6527 = vmatpush3.bf16.msra.mxu1 %v7167_v47  ;;  %6506 = vmatprep.subr.bf16.mxu0 %v7168_v48  ;;  %v7216_v47 = vld [vmem:[%s9198_s1 + $0x770] sm:$0xff]  }
  0xce   :  { %6528 = vmatprep.subr.bf16.mxu1 %v7169_v49  ;;  %v7217_v48 = vld [vmem:[%s9198_s1 + $0x7f0] sm:$0xff]  }
  0xcf   :  { %v7218_v49 = vld [vmem:[%s9198_s1 + $0x730] sm:$0xff]  }
  0xd0   :  { %6507 = vmatpush3.bf16.msra.mxu0 %v7170_v50  ;;  %v7219_v50 = vld [vmem:[%s9198_s1 + $0x7b0] sm:$0xff]  }
  0xd1   :  { %6529 = vmatpush3.bf16.msra.mxu1 %v7171_v51  ;;  %6508 = vmatprep.subr.bf16.mxu0 %v7172_v52  ;;  %v7220_v51 = vld [vmem:[%s9198_s1 + $0x778] sm:$0xff]  }
  0xd2   :  { %6530 = vmatprep.subr.bf16.mxu1 %v7173_v53  ;;  %v7221_v52 = vld [vmem:[%s9198_s1 + $0x7f8] sm:$0xff]  }
  0xd3   :  { %v7222_v53 = vld [vmem:[%s9198_s1 + $0x738] sm:$0xff]  }
  0xd4   :  { %6509 = vmatpush3.bf16.msra.mxu0 %v7174_v54  ;;  %v7223_v54 = vld [vmem:[%s9198_s1 + $0x7b8] sm:$0xff]  }
  0xd5   :  { %6531 = vmatpush3.bf16.msra.mxu1 %v7175_v55  ;;  %6510 = vmatprep.subr.bf16.mxu0 %v7176_v56  ;;  %v29_v55 = vld [vmem:[%s9199_s0 + $0x70] sm:$0xff]  ;;  %v30_v56 = vld [vmem:[%s9199_s0 + $0x78] sm:$0xff] }
  0xd6   :  { %6532 = vmatprep.subr.bf16.mxu1 %v7177_v57  ;;  %v5688_v57 = vcombine.low %v29_v55, %v29_v55 }
  0xd8   :  { %6511 = vmatpush3.bf16.msra.mxu0 %v7178_v58  ;;  %v5689_v58 = vcombine.high %v29_v55, %v29_v55  ;;  %v7272_v55 = vld [vmem:[%s9198_s1 + $0x950] sm:$0xff]  }
  0xd9   :  { %6533 = vmatpush3.bf16.msra.mxu1 %v7179_v59  ;;  %6512 = vmatprep.subr.bf16.mxu0 %v7180_v60  ;;  %v5690_v59 = vcombine.low %v30_v56, %v30_v56  ;;  %v5691_v60 = vcombine.high %v30_v56, %v30_v56  ;;  %v7273_v56 = vld [vmem:[%s9198_s1 + $0x9d0] sm:$0xff]  }
  0xda   :  { %6534 = vmatprep.subr.bf16.mxu1 %v7181_v61  ;;  %v7228_v61 = vld [vmem:[%s9198_s1 + $0x840] sm:$0xff]  }
  0xdc   :  { %6513 = vmatpush3.bf16.msra.mxu0 %v7182_v62  ;;  %v7229_v62 = vld [vmem:[%s9198_s1 + $0x8c0] sm:$0xff]  }
  0xdd   :  { %6535 = vmatpush3.bf16.msra.mxu1 %v7183_v63  ;;  %6514 = vmatprep.subr.bf16.mxu0 %v7184_v0  ;;  %v7230_v63 = vld [vmem:[%s9198_s1 + $0x800] sm:$0xff]  }
  0xde   :  { %6536 = vmatprep.subr.bf16.mxu1 %v7185_v1  ;;  %v7231_v0 = vld [vmem:[%s9198_s1 + $0x880] sm:$0xff]   ;;  %v7232_v1 = vld [vmem:[%s9198_s1 + $0x848] sm:$0xff]  }
  0xe0   :  { %6515 = vmatpush3.bf16.msra.mxu0 %v7186_v2  ;;  %v7233_v2 = vld [vmem:[%s9198_s1 + $0x8c8] sm:$0xff]  }
  0xe1   :  { %6537 = vmatpush3.bf16.msra.mxu1 %v7187_v3  ;;  %6544 = vmatprep.subr.bf16.mxu0 %v7192_v9  ;;  %v7234_v3 = vld [vmem:[%s9198_s1 + $0x808] sm:$0xff]   ;;  %v7240_v9 = vld [vmem:[%s9198_s1 + $0x858] sm:$0xff]  }
  0xe2   :  { %6566 = vmatprep.subr.bf16.mxu1 %v7193_v11  ;;  %v7242_v11 = vld [vmem:[%s9198_s1 + $0x818] sm:$0xff]  }
  0xe3   :  { %4887 = vmatmul.mubr.bf16.vlgmr.msra.gmra.mrb[24].mxu0 %v5684_v6  ;;  %v7237_v6 = vld [vmem:[%s9198_s1 + $0x8d0] sm:$0xff]  }
  0xe4   :  { %4927 = vmatmul.mubr.bf16.vlgmr.msra.gmra.mrb[24].mxu1 %v5686_v8  ;;  %6545 = vmatpush3.bf16.msra.mxu0 %v7194_v12  ;;  %v7239_v8 = vld [vmem:[%s9198_s1 + $0x890] sm:$0xff]   ;;  %v7243_v12 = vld [vmem:[%s9198_s1 + $0x898] sm:$0xff]  }
  0xe5   :  { %6567 = vmatpush3.bf16.msra.mxu1 %v7195_v13  ;;  %6546 = vmatprep.subr.bf16.mxu0 %v7196_v14  ;;  %v7244_v13 = vld [vmem:[%s9198_s1 + $0x860] sm:$0xff]  }
  0xe6   :  { %6568 = vmatprep.subr.bf16.mxu1 %v7197_v15  ;;  %4966 = vmatprep.mubr.bf16.mxu0 %v5689_v58  ;;  %v7245_v14 = vld [vmem:[%s9198_s1 + $0x8e0] sm:$0xff]   ;;  %v7275_v58 = vld [vmem:[%s9198_s1 + $0x990] sm:$0xff]  }
  0xe7   :  { %5006 = vmatprep.mubr.bf16.mxu1 %v5691_v60  ;;  %v7246_v15 = vld [vmem:[%s9198_s1 + $0x820] sm:$0xff]   ;;  %v7277_v60 = vld [vmem:[%s9198_s1 + $0x9d8] sm:$0xff]  }
  0xe8   :  { %6547 = vmatpush3.bf16.msra.mxu0 %v7198_v16 }
  0xe9   :  { %6569 = vmatpush3.bf16.msra.mxu1 %v7199_v17  ;;  %6548 = vmatprep.subr.bf16.mxu0 %v7200_v18  ;;  %v7247_v17 = vld [vmem:[%s9198_s1 + $0x8a0] sm:$0xff]  }
  0xea   :  { %6570 = vmatprep.subr.bf16.mxu1 %v7201_v19 }
  0xec   :  { %6549 = vmatpush3.bf16.msra.mxu0 %v7202_v20 }
  0xed   :  { %6571 = vmatpush3.bf16.msra.mxu1 %v7203_v21  ;;  %6550 = vmatprep.subr.bf16.mxu0 %v7204_v22 }
  0xee   :  { %6572 = vmatprep.subr.bf16.mxu1 %v7205_v23  ;;  %v7248_v23 = vld [vmem:[%s9198_s1 + $0x868] sm:$0xff]  }
  0xf0   :  { %6551 = vmatpush3.bf16.msra.mxu0 %v7206_v24 }
  0xf1   :  { %6573 = vmatpush3.bf16.msra.mxu1 %v7207_v25  ;;  %6552 = vmatprep.subr.bf16.mxu0 %v7208_v26  ;;  %v7249_v25 = vld [vmem:[%s9198_s1 + $0x8e8] sm:$0xff]  }
  0xf2   :  { %6574 = vmatprep.subr.bf16.mxu1 %v7209_v27 }
  0xf4   :  { %6553 = vmatpush3.bf16.msra.mxu0 %v7210_v28  ;;  %v7250_v28 = vld [vmem:[%s9198_s1 + $0x828] sm:$0xff]  }
  0xf5   :  { %6575 = vmatpush3.bf16.msra.mxu1 %v7211_v30  ;;  %6554 = vmatprep.subr.bf16.mxu0 %v7212_v37  ;;  %v7251_v30 = vld [vmem:[%s9198_s1 + $0x8a8] sm:$0xff]   ;;  %v7256_v37 = vld [vmem:[%s9198_s1 + $0x878] sm:$0xff]  }
  0xf6   :  { %v6252_v29 = vpop.f32.mrb[0].mxu0  ;;  %6576 = vmatprep.subr.bf16.mxu1 %v7213_v39  ;;  %v7258_v39 = vld [vmem:[%s9198_s1 + $0x838] sm:$0xff]  }
  0xf7   :  { %v6274_v31 = vpop.f32.mrb[0].mxu1  ;;  %v6253_v33 = vpop.f32.mrb[1].mxu0 }
  0xf8   :  { %v6275_v34 = vpop.f32.mrb[1].mxu1  ;;  %v6254_v35 = vadd.f32 %v6253_v33, %v6252_v29  ;;  %v6255_v38 = vpop.f32.mrb[2].mxu0  ;;  %6555 = vmatpush3.bf16.msra.mxu0 %v7214_v42  ;;  %v7252_v33 = vld [vmem:[%s9198_s1 + $0x870] sm:$0xff]   ;;  %v32_v42 = vld [vmem:[%s9199_s0 + $0x88] sm:$0xff] }
  0xf9   :  { %v6276_v36 = vadd.f32 %v6275_v34, %v6274_v31  ;;  %v6277_v40 = vpop.f32.mrb[2].mxu1  ;;  %v6256_v43 = vpop.f32.mrb[3].mxu0  ;;  %6577 = vmatpush3.bf16.msra.mxu1 %v7215_v44  ;;  %6556 = vmatprep.subr.bf16.mxu0 %v7216_v47  ;;  %v7253_v34 = vld [vmem:[%s9198_s1 + $0x8f0] sm:$0xff]   ;;  %v7257_v38 = vld [vmem:[%s9198_s1 + $0x8f8] sm:$0xff]   ;;  %v7264_v47 = vld [vmem:[%s9198_s1 + $0x940] sm:$0xff]  }
  0xfa   :  { %v4409_v41 = vadd.f32 %v6254_v35, %v5659_v32  ;;  %v6278_v45 = vpop.f32.mrb[3].mxu1  ;;  %6578 = vmatprep.subr.bf16.mxu1 %v7217_v48  ;;  %v7254_v35 = vld [vmem:[%s9198_s1 + $0x830] sm:$0xff]   ;;  %v7259_v40 = vld [vmem:[%s9198_s1 + $0x8b8] sm:$0xff]   ;;  %v7265_v48 = vld [vmem:[%s9198_s1 + $0x9c0] sm:$0xff]  }
  0xfb   :  { %v5694_v45 = vcombine.low %v32_v42, %v32_v42 }
  0xfc   :  { %v8325_v46 = vadd.f32 %v6276_v36, %v4409_v41  ;;  %6557 = vmatpush3.bf16.msra.mxu0 %v7218_v49  ;;  %v7255_v36 = vld [vmem:[%s9198_s1 + $0x8b0] sm:$0xff]   ;;  %v31_v41 = vld [vmem:[%s9199_s0 + $0x80] sm:$0xff] }
  0xfd   :  { %6579 = vmatpush3.bf16.msra.mxu1 %v7219_v50  ;;  %6558 = vmatprep.subr.bf16.mxu0 %v7220_v51  ;;  %v5692_v43 = vcombine.low %v31_v41, %v31_v41  ;;  %v5693_v44 = vcombine.high %v31_v41, %v31_v41  ;;  %v7266_v49 = vld [vmem:[%s9198_s1 + $0x900] sm:$0xff]   ;;  %v7268_v51 = vld [vmem:[%s9198_s1 + $0x948] sm:$0xff]   ;;  %v7308_v41 = vld [vmem:[%s9198_s1 + $0xa50] sm:$0xff]  }
  0xfe   :  { %6580 = vmatprep.subr.bf16.mxu1 %v7221_v52  ;;  %v7267_v50 = vld [vmem:[%s9198_s1 + $0x980] sm:$0xff]   ;;  %v7269_v52 = vld [vmem:[%s9198_s1 + $0x9c8] sm:$0xff]  }
 0x100   :  { %6559 = vmatpush3.bf16.msra.mxu0 %v7222_v53  ;;  %v7270_v53 = vld [vmem:[%s9198_s1 + $0x908] sm:$0xff]  }
 0x101   :  { %6581 = vmatpush3.bf16.msra.mxu1 %v7223_v54  ;;  %6588 = vmatprep.subr.bf16.mxu0 %v7228_v61  ;;  %v7271_v54 = vld [vmem:[%s9198_s1 + $0x988] sm:$0xff]   ;;  %v7278_v61 = vld [vmem:[%s9198_s1 + $0x918] sm:$0xff]  }
 0x102   :  { %6610 = vmatprep.subr.bf16.mxu1 %v7229_v62  ;;  %v7279_v62 = vld [vmem:[%s9198_s1 + $0x998] sm:$0xff]  }
 0x103   :  { %4967 = vmatmul.mubr.bf16.vlgmr.msra.gmra.mrb[28].mxu0 %v5688_v57  ;;  %v7274_v57 = vld [vmem:[%s9198_s1 + $0x910] sm:$0xff]  }
 0x104   :  { %5007 = vmatmul.mubr.bf16.vlgmr.msra.gmra.mrb[28].mxu1 %v5690_v59  ;;  %6589 = vmatpush3.bf16.msra.mxu0 %v7230_v63  ;;  %v7276_v59 = vld [vmem:[%s9198_s1 + $0x958] sm:$0xff]   ;;  %v7280_v63 = vld [vmem:[%s9198_s1 + $0x960] sm:$0xff]  }
 0x105   :  { %6611 = vmatpush3.bf16.msra.mxu1 %v7231_v0  ;;  %6590 = vmatprep.subr.bf16.mxu0 %v7232_v1  ;;  %v7281_v0 = vld [vmem:[%s9198_s1 + $0x9e0] sm:$0xff]  }
 0x106   :  { %6612 = vmatprep.subr.bf16.mxu1 %v7233_v2  ;;  %5046 = vmatprep.mubr.bf16.mxu0 %v5693_v44  ;;  %v7282_v2 = vld [vmem:[%s9198_s1 + $0x920] sm:$0xff]   ;;  %v7311_v44 = vld [vmem:[%s9198_s1 + $0xa90] sm:$0xff]  }
 0x108   :  { %6591 = vmatpush3.bf16.msra.mxu0 %v7234_v3 }
 0x109   :  { %6613 = vmatpush3.bf16.msra.mxu1 %v7235_v4  ;;  %6592 = vmatprep.subr.bf16.mxu0 %v7236_v5  ;;  %v7283_v4 = vld [vmem:[%s9198_s1 + $0x9a0] sm:$0xff]  }
 0x10a   :  { %6614 = vmatprep.subr.bf16.mxu1 %v7237_v6 }
 0x10c   :  { %6593 = vmatpush3.bf16.msra.mxu0 %v7238_v7 }
 0x10d   :  { %6615 = vmatpush3.bf16.msra.mxu1 %v7239_v8  ;;  %6594 = vmatprep.subr.bf16.mxu0 %v7240_v9  ;;  %v7284_v8 = vld [vmem:[%s9198_s1 + $0x968] sm:$0xff]  }
 0x10e   :  { %6616 = vmatprep.subr.bf16.mxu1 %v7241_v10  ;;  %v7285_v10 = vld [vmem:[%s9198_s1 + $0x9e8] sm:$0xff]  }
 0x110   :  { %6595 = vmatpush3.bf16.msra.mxu0 %v7242_v11 }
 0x111   :  { %6617 = vmatpush3.bf16.msra.mxu1 %v7243_v12  ;;  %6596 = vmatprep.subr.bf16.mxu0 %v7244_v13 }
 0x112   :  { %6618 = vmatprep.subr.bf16.mxu1 %v7245_v14  ;;  %v7286_v14 = vld [vmem:[%s9198_s1 + $0x928] sm:$0xff]  }
 0x114   :  { %6597 = vmatpush3.bf16.msra.mxu0 %v7246_v15  ;;  %v7287_v15 = vld [vmem:[%s9198_s1 + $0x9a8] sm:$0xff]  }
 0x115   :  { %6619 = vmatpush3.bf16.msra.mxu1 %v7247_v17  ;;  %6598 = vmatprep.subr.bf16.mxu0 %v7248_v23  ;;  %v7292_v23 = vld [vmem:[%s9198_s1 + $0x978] sm:$0xff]  }
 0x116   :  { %v6296_v16 = vpop.f32.mrb[4].mxu0  ;;  %6620 = vmatprep.subr.bf16.mxu1 %v7249_v25  ;;  %v7294_v25 = vld [vmem:[%s9198_s1 + $0x938] sm:$0xff]  }
 0x117   :  { %v6318_v18 = vpop.f32.mrb[4].mxu1  ;;  %v6297_v19 = vpop.f32.mrb[5].mxu0 }
 0x118   :  { %v6319_v20 = vpop.f32.mrb[5].mxu1  ;;  %v6298_v21 = vadd.f32 %v6297_v19, %v6296_v16  ;;  %v6299_v24 = vpop.f32.mrb[6].mxu0  ;;  %6599 = vmatpush3.bf16.msra.mxu0 %v7250_v28  ;;  %v7288_v19 = vld [vmem:[%s9198_s1 + $0x970] sm:$0xff]   ;;  %v34_v28 = vld [vmem:[%s9199_s0 + $0x98] sm:$0xff] }
 0x119   :  { %v6320_v22 = vadd.f32 %v6319_v20, %v6318_v18  ;;  %v6321_v26 = vpop.f32.mrb[6].mxu1  ;;  %v6300_v29 = vpop.f32.mrb[7].mxu0  ;;  %6621 = vmatpush3.bf16.msra.mxu1 %v7251_v30  ;;  %6600 = vmatprep.subr.bf16.mxu0 %v7252_v33  ;;  %v7289_v20 = vld [vmem:[%s9198_s1 + $0x9f0] sm:$0xff]   ;;  %v7293_v24 = vld [vmem:[%s9198_s1 + $0x9f8] sm:$0xff]   ;;  %v5699_v33 = vcombine.high %v34_v28, %v34_v28 }
 0x11a   :  { %v4489_v27 = vadd.f32 %v6298_v21, %v8325_v46  ;;  %v6322_v31 = vpop.f32.mrb[7].mxu1  ;;  %6622 = vmatprep.subr.bf16.mxu1 %v7253_v34  ;;  %v5695_v46 = vcombine.high %v32_v42, %v32_v42  ;;  %v7290_v21 = vld [vmem:[%s9198_s1 + $0x930] sm:$0xff]   ;;  %v7295_v26 = vld [vmem:[%s9198_s1 + $0x9b8] sm:$0xff]   ;;  %v7301_v34 = vld [vmem:[%s9198_s1 + $0xac0] sm:$0xff]  }
 0x11b   :  { %v5698_v31 = vcombine.low %v34_v28, %v34_v28  ;;  %v7309_v42 = vld [vmem:[%s9198_s1 + $0xad0] sm:$0xff]  }
 0x11c   :  { %v8430_v32 = vadd.f32 %v6320_v22, %v4489_v27  ;;  %6601 = vmatpush3.bf16.msra.mxu0 %v7254_v35  ;;  %5086 = vmatprep.mubr.bf16.mxu1 %v5695_v46  ;;  %v7291_v22 = vld [vmem:[%s9198_s1 + $0x9b0] sm:$0xff]   ;;  %v7302_v35 = vld [vmem:[%s9198_s1 + $0xa00] sm:$0xff]   ;;  %v7313_v46 = vld [vmem:[%s9198_s1 + $0xad8] sm:$0xff]  }
 0x11d   :  { %6623 = vmatpush3.bf16.msra.mxu1 %v7255_v36  ;;  %6602 = vmatprep.subr.bf16.mxu0 %v7256_v37  ;;  %v33_v27 = vld [vmem:[%s9199_s0 + $0x90] sm:$0xff]  ;;  %v7303_v36 = vld [vmem:[%s9198_s1 + $0xa80] sm:$0xff]   ;;  %v7304_v37 = vld [vmem:[%s9198_s1 + $0xa48] sm:$0xff]  }
 0x11e   :  { %6624 = vmatprep.subr.bf16.mxu1 %v7257_v38  ;;  %v5696_v29 = vcombine.low %v33_v27, %v33_v27  ;;  %v5697_v30 = vcombine.high %v33_v27, %v33_v27  ;;  %v7305_v38 = vld [vmem:[%s9198_s1 + $0xac8] sm:$0xff]   ;;  %v7344_v27 = vld [vmem:[%s9198_s1 + $0xb50] sm:$0xff]  }
 0x11f   :  { %v7345_v28 = vld [vmem:[%s9198_s1 + $0xbd0] sm:$0xff]  }
 0x120   :  { %6603 = vmatpush3.bf16.msra.mxu0 %v7258_v39  ;;  %v7306_v39 = vld [vmem:[%s9198_s1 + $0xa08] sm:$0xff]  }
 0x121   :  { %6625 = vmatpush3.bf16.msra.mxu1 %v7259_v40  ;;  %6632 = vmatprep.subr.bf16.mxu0 %v7264_v47  ;;  %v7307_v40 = vld [vmem:[%s9198_s1 + $0xa88] sm:$0xff]   ;;  %v7314_v47 = vld [vmem:[%s9198_s1 + $0xa18] sm:$0xff]  }
 0x122   :  { %6654 = vmatprep.subr.bf16.mxu1 %v7265_v48  ;;  %v7315_v48 = vld [vmem:[%s9198_s1 + $0xa98] sm:$0xff]  }
 0x123   :  { %5047 = vmatmul.mubr.bf16.vlgmr.msra.gmra.mrb[32].mxu0 %v5692_v43  ;;  %v7310_v43 = vld [vmem:[%s9198_s1 + $0xa10] sm:$0xff]  }
 0x124   :  { %5087 = vmatmul.mubr.bf16.vlgmr.msra.gmra.mrb[32].mxu1 %v5694_v45  ;;  %6633 = vmatpush3.bf16.msra.mxu0 %v7266_v49  ;;  %v7312_v45 = vld [vmem:[%s9198_s1 + $0xa58] sm:$0xff]   ;;  %v7316_v49 = vld [vmem:[%s9198_s1 + $0xa60] sm:$0xff]  }
 0x125   :  { %6655 = vmatpush3.bf16.msra.mxu1 %v7267_v50  ;;  %6634 = vmatprep.subr.bf16.mxu0 %v7268_v51  ;;  %v7317_v50 = vld [vmem:[%s9198_s1 + $0xae0] sm:$0xff]  }
 0x126   :  { %6656 = vmatprep.subr.bf16.mxu1 %v7269_v52  ;;  %5126 = vmatprep.mubr.bf16.mxu0 %v5697_v30  ;;  %v7318_v52 = vld [vmem:[%s9198_s1 + $0xa20] sm:$0xff]   ;;  %v7347_v30 = vld [vmem:[%s9198_s1 + $0xb90] sm:$0xff]  }
 0x127   :  { %5166 = vmatprep.mubr.bf16.mxu1 %v5699_v33  ;;  %v7350_v33 = vld [vmem:[%s9198_s1 + $0xb18] sm:$0xff]  }
 0x128   :  { %6635 = vmatpush3.bf16.msra.mxu0 %v7270_v53 }
 0x129   :  { %6657 = vmatpush3.bf16.msra.mxu1 %v7271_v54  ;;  %6636 = vmatprep.subr.bf16.mxu0 %v7272_v55  ;;  %v7319_v54 = vld [vmem:[%s9198_s1 + $0xaa0] sm:$0xff]  }
 0x12a   :  { %6658 = vmatprep.subr.bf16.mxu1 %v7273_v56 }
 0x12c   :  { %6637 = vmatpush3.bf16.msra.mxu0 %v7274_v57  ;;  %v7320_v57 = vld [vmem:[%s9198_s1 + $0xa68] sm:$0xff]  }
 0x12d   :  { %6659 = vmatpush3.bf16.msra.mxu1 %v7275_v58  ;;  %6638 = vmatprep.subr.bf16.mxu0 %v7276_v59 }
 0x12e   :  { %6660 = vmatprep.subr.bf16.mxu1 %v7277_v60  ;;  %v7321_v60 = vld [vmem:[%s9198_s1 + $0xae8] sm:$0xff]  }
 0x130   :  { %6639 = vmatpush3.bf16.msra.mxu0 %v7278_v61 }
 0x131   :  { %6661 = vmatpush3.bf16.msra.mxu1 %v7279_v62  ;;  %6640 = vmatprep.subr.bf16.mxu0 %v7280_v63  ;;  %v7322_v63 = vld [vmem:[%s9198_s1 + $0xa28] sm:$0xff]  }
 0x132   :  { %6662 = vmatprep.subr.bf16.mxu1 %v7281_v0 }
 0x134   :  { %6641 = vmatpush3.bf16.msra.mxu0 %v7282_v2 }
 0x135   :  { %6663 = vmatpush3.bf16.msra.mxu1 %v7283_v4  ;;  %6642 = vmatprep.subr.bf16.mxu0 %v7284_v8  ;;  %v7324_v4 = vld [vmem:[%s9198_s1 + $0xa70] sm:$0xff]  }
 0x136   :  { %v6340_v1 = vpop.f32.mrb[8].mxu0  ;;  %6664 = vmatprep.subr.bf16.mxu1 %v7285_v10  ;;  %v7327_v8 = vld [vmem:[%s9198_s1 + $0xab0] sm:$0xff]   ;;  %v7329_v10 = vld [vmem:[%s9198_s1 + $0xaf8] sm:$0xff]  }
 0x137   :  { %v6362_v3 = vpop.f32.mrb[8].mxu1  ;;  %v6341_v5 = vpop.f32.mrb[9].mxu0 }
 0x138   :  { %v6342_v6 = vadd.f32 %v6341_v5, %v6340_v1  ;;  %v6363_v7 = vpop.f32.mrb[9].mxu1  ;;  %v6343_v11 = vpop.f32.mrb[10].mxu0  ;;  %6643 = vmatpush3.bf16.msra.mxu0 %v7286_v14  ;;  %v7323_v1 = vld [vmem:[%s9198_s1 + $0xaa8] sm:$0xff]  }
 0x139   :  { %v6364_v9 = vadd.f32 %v6363_v7, %v6362_v3  ;;  %v6365_v13 = vpop.f32.mrb[10].mxu1  ;;  %v6344_v16 = vpop.f32.mrb[11].mxu0  ;;  %6665 = vmatpush3.bf16.msra.mxu1 %v7287_v15  ;;  %6644 = vmatprep.subr.bf16.mxu0 %v7288_v19  ;;  %v7326_v7 = vld [vmem:[%s9198_s1 + $0xa30] sm:$0xff]   ;;  %v7330_v11 = vld [vmem:[%s9198_s1 + $0xa38] sm:$0xff]   ;;  %v7336_v19 = vld [vmem:[%s9198_s1 + $0xb40] sm:$0xff]  }
 0x13a   :  { %v4569_v12 = vadd.f32 %v6342_v6, %v8430_v32  ;;  %v6366_v18 = vpop.f32.mrb[11].mxu1  ;;  %6666 = vmatprep.subr.bf16.mxu1 %v7289_v20  ;;  %v7300_v32 = vld [vmem:[%s9198_s1 + $0xa40] sm:$0xff]   ;;  %v7325_v6 = vld [vmem:[%s9198_s1 + $0xaf0] sm:$0xff]   ;;  %v36_v16 = vld [vmem:[%s9199_s0 + $0xa8] sm:$0xff] }
 0x13b   :  { %v35_v13 = vld [vmem:[%s9199_s0 + $0xa0] sm:$0xff]  ;;  %v5703_v18 = vcombine.high %v36_v16, %v36_v16 }
 0x13c   :  { %v8535_v17 = vadd.f32 %v6364_v9, %v4569_v12  ;;  %6645 = vmatpush3.bf16.msra.mxu0 %v7290_v21  ;;  %v7328_v9 = vld [vmem:[%s9198_s1 + $0xa78] sm:$0xff]   ;;  %v5700_v14 = vcombine.low %v35_v13, %v35_v13  ;;  %v5701_v15 = vcombine.high %v35_v13, %v35_v13  ;;  %v7337_v20 = vld [vmem:[%s9198_s1 + $0xbc0] sm:$0xff]   ;;  %v7380_v13 = vld [vmem:[%s9198_s1 + $0xc50] sm:$0xff]  }
 0x13d   :  { %6667 = vmatpush3.bf16.msra.mxu1 %v7291_v22  ;;  %6646 = vmatprep.subr.bf16.mxu0 %v7292_v23  ;;  %v7331_v12 = vld [vmem:[%s9198_s1 + $0xab8] sm:$0xff]   ;;  %v7338_v21 = vld [vmem:[%s9198_s1 + $0xb00] sm:$0xff]   ;;  %v7340_v23 = vld [vmem:[%s9198_s1 + $0xb48] sm:$0xff]  }
 0x13e   :  { %6668 = vmatprep.subr.bf16.mxu1 %v7293_v24  ;;  %v7339_v22 = vld [vmem:[%s9198_s1 + $0xb80] sm:$0xff]   ;;  %v7341_v24 = vld [vmem:[%s9198_s1 + $0xbc8] sm:$0xff]  }
 0x140   :  { %6647 = vmatpush3.bf16.msra.mxu0 %v7294_v25  ;;  %v7342_v25 = vld [vmem:[%s9198_s1 + $0xb08] sm:$0xff]  }
 0x141   :  { %6669 = vmatpush3.bf16.msra.mxu1 %v7295_v26  ;;  %6676 = vmatprep.subr.bf16.mxu0 %v7300_v32  ;;  %v7343_v26 = vld [vmem:[%s9198_s1 + $0xb88] sm:$0xff]   ;;  %v7349_v32 = vld [vmem:[%s9198_s1 + $0xbd8] sm:$0xff]  }
 0x142   :  { %6698 = vmatprep.subr.bf16.mxu1 %v7301_v34  ;;  %v7351_v34 = vld [vmem:[%s9198_s1 + $0xb98] sm:$0xff]  }
 0x143   :  { %5127 = vmatmul.mubr.bf16.vlgmr.msra.gmra.mrb[36].mxu0 %v5696_v29  ;;  %v7346_v29 = vld [vmem:[%s9198_s1 + $0xb10] sm:$0xff]  }
 0x144   :  { %5167 = vmatmul.mubr.bf16.vlgmr.msra.gmra.mrb[36].mxu1 %v5698_v31  ;;  %6677 = vmatpush3.bf16.msra.mxu0 %v7302_v35  ;;  %v7348_v31 = vld [vmem:[%s9198_s1 + $0xb58] sm:$0xff]   ;;  %v7352_v35 = vld [vmem:[%s9198_s1 + $0xb60] sm:$0xff]  }
 0x145   :  { %6699 = vmatpush3.bf16.msra.mxu1 %v7303_v36  ;;  %6678 = vmatprep.subr.bf16.mxu0 %v7304_v37  ;;  %v7353_v36 = vld [vmem:[%s9198_s1 + $0xbe0] sm:$0xff]  }
 0x146   :  { %6700 = vmatprep.subr.bf16.mxu1 %v7305_v38  ;;  %5206 = vmatprep.mubr.bf16.mxu0 %v5701_v15  ;;  %v7354_v38 = vld [vmem:[%s9198_s1 + $0xb20] sm:$0xff]   ;;  %v7382_v15 = vld [vmem:[%s9198_s1 + $0xc10] sm:$0xff]  }
 0x147   :  { %5246 = vmatprep.mubr.bf16.mxu1 %v5703_v18  ;;  %v7385_v18 = vld [vmem:[%s9198_s1 + $0xcd8] sm:$0xff]  }
 0x148   :  { %6679 = vmatpush3.bf16.msra.mxu0 %v7306_v39 }
 0x149   :  { %6701 = vmatpush3.bf16.msra.mxu1 %v7307_v40  ;;  %6680 = vmatprep.subr.bf16.mxu0 %v7308_v41  ;;  %v7355_v40 = vld [vmem:[%s9198_s1 + $0xba0] sm:$0xff]  }
 0x14a   :  { %6702 = vmatprep.subr.bf16.mxu1 %v7309_v42 }
 0x14c   :  { %6681 = vmatpush3.bf16.msra.mxu0 %v7310_v43  ;;  %v7356_v43 = vld [vmem:[%s9198_s1 + $0xb68] sm:$0xff]  }
 0x14d   :  { %6703 = vmatpush3.bf16.msra.mxu1 %v7311_v44  ;;  %6682 = vmatprep.subr.bf16.mxu0 %v7312_v45 }
 0x14e   :  { %6704 = vmatprep.subr.bf16.mxu1 %v7313_v46  ;;  %v7357_v46 = vld [vmem:[%s9198_s1 + $0xbe8] sm:$0xff]  }
 0x150   :  { %6683 = vmatpush3.bf16.msra.mxu0 %v7314_v47 }
 0x151   :  { %6705 = vmatpush3.bf16.msra.mxu1 %v7315_v48  ;;  %6684 = vmatprep.subr.bf16.mxu0 %v7316_v49  ;;  %v7358_v49 = vld [vmem:[%s9198_s1 + $0xb28] sm:$0xff]  }
 0x152   :  { %6706 = vmatprep.subr.bf16.mxu1 %v7317_v50 }
 0x154   :  { %6685 = vmatpush3.bf16.msra.mxu0 %v7318_v52 }
 0x155   :  { %6707 = vmatpush3.bf16.msra.mxu1 %v7319_v54  ;;  %6686 = vmatprep.subr.bf16.mxu0 %v7320_v57  ;;  %v7360_v54 = vld [vmem:[%s9198_s1 + $0xb70] sm:$0xff]  }
 0x156   :  { %v6384_v51 = vpop.f32.mrb[12].mxu0  ;;  %6708 = vmatprep.subr.bf16.mxu1 %v7321_v60  ;;  %v7362_v57 = vld [vmem:[%s9198_s1 + $0xb30] sm:$0xff]   ;;  %v7365_v60 = vld [vmem:[%s9198_s1 + $0xbf8] sm:$0xff]  }
 0x157   :  { %v6406_v53 = vpop.f32.mrb[12].mxu1  ;;  %v6385_v55 = vpop.f32.mrb[13].mxu0 }
 0x158   :  { %v6407_v56 = vpop.f32.mrb[13].mxu1  ;;  %v6386_v58 = vadd.f32 %v6385_v55, %v6384_v51  ;;  %v6387_v61 = vpop.f32.mrb[14].mxu0  ;;  %6687 = vmatpush3.bf16.msra.mxu0 %v7322_v63  ;;  %v7359_v51 = vld [vmem:[%s9198_s1 + $0xba8] sm:$0xff]   ;;  %v37_v63 = vld [vmem:[%s9199_s0 + $0xb0] sm:$0xff] }
 0x159   :  { %v6408_v59 = vadd.f32 %v6407_v56, %v6406_v53  ;;  %v6409_v62 = vpop.f32.mrb[14].mxu1  ;;  %v6388_v2 = vpop.f32.mrb[15].mxu0  ;;  %6709 = vmatpush3.bf16.msra.mxu1 %v7323_v1  ;;  %6688 = vmatprep.subr.bf16.mxu0 %v7324_v4  ;;  %v7361_v56 = vld [vmem:[%s9198_s1 + $0xbf0] sm:$0xff]   ;;  %v7366_v61 = vld [vmem:[%s9198_s1 + $0xb38] sm:$0xff]   ;;  %v5704_v1 = vcombine.low %v37_v63, %v37_v63 }
 0x15a   :  { %v4649_v0 = vadd.f32 %v6386_v58, %v8535_v17  ;;  %v6410_v3 = vpop.f32.mrb[15].mxu1  ;;  %6710 = vmatprep.subr.bf16.mxu1 %v7325_v6  ;;  %v5702_v17 = vcombine.low %v36_v16, %v36_v16  ;;  %v7363_v58 = vld [vmem:[%s9198_s1 + $0xbb0] sm:$0xff]   ;;  %v7367_v62 = vld [vmem:[%s9198_s1 + $0xbb8] sm:$0xff]   ;;  %v5705_v2 = vcombine.high %v37_v63, %v37_v63  ;;  %v7373_v6 = vld [vmem:[%s9198_s1 + $0xcc0] sm:$0xff]  }
 0x15b   :  { %v7383_v16 = vld [vmem:[%s9198_s1 + $0xc90] sm:$0xff]  }
 0x15c   :  { %v8643_v5 = vadd.f32 %v6408_v59, %v4649_v0  ;;  %6689 = vmatpush3.bf16.msra.mxu0 %v7326_v7  ;;  %v7364_v59 = vld [vmem:[%s9198_s1 + $0xb78] sm:$0xff]   ;;  %v7374_v7 = vld [vmem:[%s9198_s1 + $0xc00] sm:$0xff]   ;;  %v7416_v63 = vld [vmem:[%s9198_s1 + $0xd50] sm:$0xff]  }
 0x15d   :  { %6711 = vmatpush3.bf16.msra.mxu1 %v7327_v8  ;;  %6690 = vmatprep.subr.bf16.mxu0 %v7328_v9  ;;  %v38_v0 = vld [vmem:[%s9199_s0 + $0xb8] sm:$0xff]  ;;  %v7375_v8 = vld [vmem:[%s9198_s1 + $0xc80] sm:$0xff]   ;;  %v7376_v9 = vld [vmem:[%s9198_s1 + $0xc48] sm:$0xff]  }
 0x15e   :  { %6712 = vmatprep.subr.bf16.mxu1 %v7329_v10  ;;  %v5706_v3 = vcombine.low %v38_v0, %v38_v0  ;;  %v5707_v4 = vcombine.high %v38_v0, %v38_v0  ;;  %v7377_v10 = vld [vmem:[%s9198_s1 + $0xcc8] sm:$0xff]   ;;  %v7417_v0 = vld [vmem:[%s9198_s1 + $0xdd0] sm:$0xff]  }
 0x160   :  { %6691 = vmatpush3.bf16.msra.mxu0 %v7330_v11  ;;  %v7378_v11 = vld [vmem:[%s9198_s1 + $0xc08] sm:$0xff]  }
 0x161   :  { %6713 = vmatpush3.bf16.msra.mxu1 %v7331_v12  ;;  %6720 = vmatprep.subr.bf16.mxu0 %v7336_v19  ;;  %v7379_v12 = vld [vmem:[%s9198_s1 + $0xc88] sm:$0xff]   ;;  %v7386_v19 = vld [vmem:[%s9198_s1 + $0xc18] sm:$0xff]  }
 0x162   :  { %6742 = vmatprep.subr.bf16.mxu1 %v7337_v20  ;;  %v7387_v20 = vld [vmem:[%s9198_s1 + $0xc98] sm:$0xff]  }
 0x163   :  { %5207 = vmatmul.mubr.bf16.vlgmr.msra.gmra.mrb[40].mxu0 %v5700_v14  ;;  %v7381_v14 = vld [vmem:[%s9198_s1 + $0xcd0] sm:$0xff]  }
 0x164   :  { %5247 = vmatmul.mubr.bf16.vlgmr.msra.gmra.mrb[40].mxu1 %v5702_v17  ;;  %6721 = vmatpush3.bf16.msra.mxu0 %v7338_v21  ;;  %v7384_v17 = vld [vmem:[%s9198_s1 + $0xc58] sm:$0xff]   ;;  %v7388_v21 = vld [vmem:[%s9198_s1 + $0xc60] sm:$0xff]  }
 0x165   :  { %6743 = vmatpush3.bf16.msra.mxu1 %v7339_v22  ;;  %6722 = vmatprep.subr.bf16.mxu0 %v7340_v23  ;;  %v7389_v22 = vld [vmem:[%s9198_s1 + $0xce0] sm:$0xff]  }
 0x166   :  { %6744 = vmatprep.subr.bf16.mxu1 %v7341_v24  ;;  %5286 = vmatprep.mubr.bf16.mxu0 %v5705_v2  ;;  %v7390_v24 = vld [vmem:[%s9198_s1 + $0xc20] sm:$0xff]   ;;  %v7419_v2 = vld [vmem:[%s9198_s1 + $0xd90] sm:$0xff]  }
 0x167   :  { %5326 = vmatprep.mubr.bf16.mxu1 %v5707_v4  ;;  %v7421_v4 = vld [vmem:[%s9198_s1 + $0xdd8] sm:$0xff]  }
 0x168   :  { %6723 = vmatpush3.bf16.msra.mxu0 %v7342_v25 }
 0x169   :  { %6745 = vmatpush3.bf16.msra.mxu1 %v7343_v26  ;;  %6724 = vmatprep.subr.bf16.mxu0 %v7344_v27  ;;  %v7391_v26 = vld [vmem:[%s9198_s1 + $0xca0] sm:$0xff]  }
 0x16a   :  { %6746 = vmatprep.subr.bf16.mxu1 %v7345_v28 }
 0x16c   :  { %6725 = vmatpush3.bf16.msra.mxu0 %v7346_v29 }
 0x16d   :  { %6747 = vmatpush3.bf16.msra.mxu1 %v7347_v30  ;;  %6726 = vmatprep.subr.bf16.mxu0 %v7348_v31  ;;  %v7392_v30 = vld [vmem:[%s9198_s1 + $0xc68] sm:$0xff]  }
 0x16e   :  { %6748 = vmatprep.subr.bf16.mxu1 %v7349_v32  ;;  %v7393_v32 = vld [vmem:[%s9198_s1 + $0xce8] sm:$0xff]  }
 0x170   :  { %6727 = vmatpush3.bf16.msra.mxu0 %v7350_v33 }
 0x171   :  { %6749 = vmatpush3.bf16.msra.mxu1 %v7351_v34  ;;  %6728 = vmatprep.subr.bf16.mxu0 %v7352_v35 }
 0x172   :  { %6750 = vmatprep.subr.bf16.mxu1 %v7353_v36  ;;  %v7394_v36 = vld [vmem:[%s9198_s1 + $0xc28] sm:$0xff]  }
 0x174   :  { %6729 = vmatpush3.bf16.msra.mxu0 %v7354_v38 }
 0x175   :  { %6751 = vmatpush3.bf16.msra.mxu1 %v7355_v40  ;;  %6730 = vmatprep.subr.bf16.mxu0 %v7356_v43  ;;  %v7398_v43 = vld [vmem:[%s9198_s1 + $0xc30] sm:$0xff]  }
 0x176   :  { %v6428_v37 = vpop.f32.mrb[16].mxu0  ;;  %6752 = vmatprep.subr.bf16.mxu1 %v7357_v46  ;;  %v7401_v46 = vld [vmem:[%s9198_s1 + $0xcf8] sm:$0xff]  }
 0x177   :  { %v6450_v39 = vpop.f32.mrb[16].mxu1  ;;  %v6429_v41 = vpop.f32.mrb[17].mxu0 }
 0x178   :  { %v6451_v42 = vpop.f32.mrb[17].mxu1  ;;  %v6430_v44 = vadd.f32 %v6429_v41, %v6428_v37  ;;  %v6431_v47 = vpop.f32.mrb[18].mxu0  ;;  %6731 = vmatpush3.bf16.msra.mxu0 %v7358_v49  ;;  %v7395_v37 = vld [vmem:[%s9198_s1 + $0xca8] sm:$0xff]   ;;  %v7396_v41 = vld [vmem:[%s9198_s1 + $0xc70] sm:$0xff]   ;;  %v39_v49 = vld [vmem:[%s9199_s0 + $0xc0] sm:$0xff] }
 0x179   :  { %v6452_v45 = vadd.f32 %v6451_v42, %v6450_v39  ;;  %v6453_v48 = vpop.f32.mrb[18].mxu1  ;;  %v6432_v52 = vpop.f32.mrb[19].mxu0  ;;  %6753 = vmatpush3.bf16.msra.mxu1 %v7359_v51  ;;  %6732 = vmatprep.subr.bf16.mxu0 %v7360_v54  ;;  %v7397_v42 = vld [vmem:[%s9198_s1 + $0xcf0] sm:$0xff]   ;;  %v7402_v47 = vld [vmem:[%s9198_s1 + $0xc38] sm:$0xff]   ;;  %v5708_v51 = vcombine.low %v39_v49, %v39_v49  ;;  %v7408_v54 = vld [vmem:[%s9198_s1 + $0xd40] sm:$0xff]  }
 0x17a   :  { %v4729_v50 = vadd.f32 %v6430_v44, %v8643_v5  ;;  %v6454_v53 = vpop.f32.mrb[19].mxu1  ;;  %6754 = vmatprep.subr.bf16.mxu1 %v7361_v56  ;;  %v7372_v5 = vld [vmem:[%s9198_s1 + $0xc40] sm:$0xff]   ;;  %v7399_v44 = vld [vmem:[%s9198_s1 + $0xcb0] sm:$0xff]   ;;  %v7403_v48 = vld [vmem:[%s9198_s1 + $0xcb8] sm:$0xff]   ;;  %v5709_v52 = vcombine.high %v39_v49, %v39_v49 }
 0x17b   :  { %v7409_v56 = vld [vmem:[%s9198_s1 + $0xdc0] sm:$0xff]   ;;  %v7452_v49 = vld [vmem:[%s9198_s1 + $0xe50] sm:$0xff]  }
 0x17c   :  { %v8748_v55 = vadd.f32 %v6452_v45, %v4729_v50  ;;  %6733 = vmatpush3.bf16.msra.mxu0 %v7362_v57  ;;  %v7400_v45 = vld [vmem:[%s9198_s1 + $0xc78] sm:$0xff]   ;;  %v40_v50 = vld [vmem:[%s9199_s0 + $0xc8] sm:$0xff]  ;;  %v7410_v57 = vld [vmem:[%s9198_s1 + $0xd00] sm:$0xff]  }
 0x17d   :  { %6755 = vmatpush3.bf16.msra.mxu1 %v7363_v58  ;;  %6734 = vmatprep.subr.bf16.mxu0 %v7364_v59  ;;  %v5710_v53 = vcombine.low %v40_v50, %v40_v50  ;;  %v7411_v58 = vld [vmem:[%s9198_s1 + $0xd80] sm:$0xff]   ;;  %v7412_v59 = vld [vmem:[%s9198_s1 + $0xd48] sm:$0xff]  }
 0x17e   :  { %6756 = vmatprep.subr.bf16.mxu1 %v7365_v60  ;;  %v7413_v60 = vld [vmem:[%s9198_s1 + $0xdc8] sm:$0xff]  }
 0x180   :  { %6735 = vmatpush3.bf16.msra.mxu0 %v7366_v61  ;;  %v7414_v61 = vld [vmem:[%s9198_s1 + $0xd08] sm:$0xff]  }
 0x181   :  { %6757 = vmatpush3.bf16.msra.mxu1 %v7367_v62  ;;  %6764 = vmatprep.subr.bf16.mxu0 %v7372_v5  ;;  %v7415_v62 = vld [vmem:[%s9198_s1 + $0xd88] sm:$0xff]   ;;  %v7422_v5 = vld [vmem:[%s9198_s1 + $0xd18] sm:$0xff]  }
 0x182   :  { %6786 = vmatprep.subr.bf16.mxu1 %v7373_v6  ;;  %v7423_v6 = vld [vmem:[%s9198_s1 + $0xd98] sm:$0xff]  }
 0x183   :  { %5287 = vmatmul.mubr.bf16.vlgmr.msra.gmra.mrb[44].mxu0 %v5704_v1  ;;  %v7418_v1 = vld [vmem:[%s9198_s1 + $0xd10] sm:$0xff]  }
 0x184   :  { %5327 = vmatmul.mubr.bf16.vlgmr.msra.gmra.mrb[44].mxu1 %v5706_v3  ;;  %6765 = vmatpush3.bf16.msra.mxu0 %v7374_v7  ;;  %v7420_v3 = vld [vmem:[%s9198_s1 + $0xd58] sm:$0xff]   ;;  %v7424_v7 = vld [vmem:[%s9198_s1 + $0xd60] sm:$0xff]  }
 0x185   :  { %6787 = vmatpush3.bf16.msra.mxu1 %v7375_v8  ;;  %6766 = vmatprep.subr.bf16.mxu0 %v7376_v9  ;;  %v7425_v8 = vld [vmem:[%s9198_s1 + $0xde0] sm:$0xff]  }
 0x186   :  { %6788 = vmatprep.subr.bf16.mxu1 %v7377_v10  ;;  %5366 = vmatprep.mubr.bf16.mxu0 %v5709_v52  ;;  %v7426_v10 = vld [vmem:[%s9198_s1 + $0xd20] sm:$0xff]   ;;  %v7455_v52 = vld [vmem:[%s9198_s1 + $0xe90] sm:$0xff]  }
 0x188   :  { %6767 = vmatpush3.bf16.msra.mxu0 %v7378_v11 }
 0x189   :  { %6789 = vmatpush3.bf16.msra.mxu1 %v7379_v12  ;;  %6768 = vmatprep.subr.bf16.mxu0 %v7380_v13  ;;  %v7427_v12 = vld [vmem:[%s9198_s1 + $0xda0] sm:$0xff]  }
 0x18a   :  { %6790 = vmatprep.subr.bf16.mxu1 %v7381_v14 }
 0x18c   :  { %6769 = vmatpush3.bf16.msra.mxu0 %v7382_v15  ;;  %v7428_v15 = vld [vmem:[%s9198_s1 + $0xd68] sm:$0xff]  }
 0x18d   :  { %6791 = vmatpush3.bf16.msra.mxu1 %v7383_v16  ;;  %6770 = vmatprep.subr.bf16.mxu0 %v7384_v17 }
 0x18e   :  { %6792 = vmatprep.subr.bf16.mxu1 %v7385_v18  ;;  %v7429_v18 = vld [vmem:[%s9198_s1 + $0xde8] sm:$0xff]  }
 0x190   :  { %6771 = vmatpush3.bf16.msra.mxu0 %v7386_v19 }
 0x191   :  { %6793 = vmatpush3.bf16.msra.mxu1 %v7387_v20  ;;  %6772 = vmatprep.subr.bf16.mxu0 %v7388_v21  ;;  %v7430_v21 = vld [vmem:[%s9198_s1 + $0xd28] sm:$0xff]  }
 0x192   :  { %6794 = vmatprep.subr.bf16.mxu1 %v7389_v22 }
 0x194   :  { %6773 = vmatpush3.bf16.msra.mxu0 %v7390_v24 }
 0x195   :  { %6795 = vmatpush3.bf16.msra.mxu1 %v7391_v26  ;;  %6774 = vmatprep.subr.bf16.mxu0 %v7392_v30  ;;  %v7432_v26 = vld [vmem:[%s9198_s1 + $0xd70] sm:$0xff]  }
 0x196   :  { %v6472_v23 = vpop.f32.mrb[20].mxu0  ;;  %6796 = vmatprep.subr.bf16.mxu1 %v7393_v32  ;;  %v7435_v30 = vld [vmem:[%s9198_s1 + $0xdb0] sm:$0xff]   ;;  %v7437_v32 = vld [vmem:[%s9198_s1 + $0xdf8] sm:$0xff]  }
 0x197   :  { %v6494_v25 = vpop.f32.mrb[20].mxu1  ;;  %v6473_v27 = vpop.f32.mrb[21].mxu0 }
 0x198   :  { %v6474_v28 = vadd.f32 %v6473_v27, %v6472_v23  ;;  %v6495_v29 = vpop.f32.mrb[21].mxu1  ;;  %v6475_v33 = vpop.f32.mrb[22].mxu0  ;;  %6775 = vmatpush3.bf16.msra.mxu0 %v7394_v36  ;;  %v7431_v23 = vld [vmem:[%s9198_s1 + $0xda8] sm:$0xff]  }
 0x199   :  { %v6496_v31 = vadd.f32 %v6495_v29, %v6494_v25  ;;  %v6497_v35 = vpop.f32.mrb[22].mxu1  ;;  %v6476_v38 = vpop.f32.mrb[23].mxu0  ;;  %6797 = vmatpush3.bf16.msra.mxu1 %v7395_v37  ;;  %6776 = vmatprep.subr.bf16.mxu0 %v7396_v41  ;;  %v7434_v29 = vld [vmem:[%s9198_s1 + $0xd30] sm:$0xff]   ;;  %v7438_v33 = vld [vmem:[%s9198_s1 + $0xd38] sm:$0xff]   ;;  %v7444_v41 = vld [vmem:[%s9198_s1 + $0xe40] sm:$0xff]  }
 0x19a   :  { %v4809_v34 = vadd.f32 %v6474_v28, %v8748_v55  ;;  %v6498_v40 = vpop.f32.mrb[23].mxu1  ;;  %6798 = vmatprep.subr.bf16.mxu1 %v7397_v42  ;;  %v5711_v55 = vcombine.high %v40_v50, %v40_v50  ;;  %v7433_v28 = vld [vmem:[%s9198_s1 + $0xdf0] sm:$0xff]   ;;  %v42_v38 = vld [vmem:[%s9199_s0 + $0xd8] sm:$0xff]  ;;  %v7445_v42 = vld [vmem:[%s9198_s1 + $0xec0] sm:$0xff]  }
 0x19b   :  { %v41_v35 = vld [vmem:[%s9199_s0 + $0xd0] sm:$0xff]  ;;  %v5715_v40 = vcombine.high %v42_v38, %v42_v38 }
 0x19c   :  { %v8850_v39 = vadd.f32 %v6496_v31, %v4809_v34  ;;  %6777 = vmatpush3.bf16.msra.mxu0 %v7398_v43  ;;  %5406 = vmatprep.mubr.bf16.mxu1 %v5711_v55  ;;  %v7436_v31 = vld [vmem:[%s9198_s1 + $0xd78] sm:$0xff]   ;;  %v5712_v36 = vcombine.low %v41_v35, %v41_v35  ;;  %v5713_v37 = vcombine.high %v41_v35, %v41_v35  ;;  %v7446_v43 = vld [vmem:[%s9198_s1 + $0xe00] sm:$0xff]   ;;  %v7453_v50 = vld [vmem:[%s9198_s1 + $0xed0] sm:$0xff]  }
 0x19d   :  { %6799 = vmatpush3.bf16.msra.mxu1 %v7399_v44  ;;  %6778 = vmatprep.subr.bf16.mxu0 %v7400_v45  ;;  %v7439_v34 = vld [vmem:[%s9198_s1 + $0xdb8] sm:$0xff]   ;;  %v7447_v44 = vld [vmem:[%s9198_s1 + $0xe80] sm:$0xff]   ;;  %v7448_v45 = vld [vmem:[%s9198_s1 + $0xe48] sm:$0xff]  }
 0x19e   :  { %6800 = vmatprep.subr.bf16.mxu1 %v7401_v46  ;;  %v7449_v46 = vld [vmem:[%s9198_s1 + $0xec8] sm:$0xff]   ;;  %v7458_v55 = vld [vmem:[%s9198_s1 + $0xe18] sm:$0xff]   ;;  %v7488_v35 = vld [vmem:[%s9198_s1 + $0xf50] sm:$0xff]  }
 0x1a0   :  { %6779 = vmatpush3.bf16.msra.mxu0 %v7402_v47  ;;  %v7450_v47 = vld [vmem:[%s9198_s1 + $0xe08] sm:$0xff]  }
 0x1a1   :  { %6801 = vmatpush3.bf16.msra.mxu1 %v7403_v48  ;;  %6808 = vmatprep.subr.bf16.mxu0 %v7408_v54  ;;  %v7451_v48 = vld [vmem:[%s9198_s1 + $0xe88] sm:$0xff]   ;;  %v7457_v54 = vld [vmem:[%s9198_s1 + $0xed8] sm:$0xff]  }
 0x1a2   :  { %6830 = vmatprep.subr.bf16.mxu1 %v7409_v56  ;;  %v7459_v56 = vld [vmem:[%s9198_s1 + $0xe98] sm:$0xff]  }
 0x1a3   :  { %5367 = vmatmul.mubr.bf16.vlgmr.msra.gmra.mrb[48].mxu0 %v5708_v51  ;;  %v7454_v51 = vld [vmem:[%s9198_s1 + $0xe10] sm:$0xff]  }
 0x1a4   :  { %5407 = vmatmul.mubr.bf16.vlgmr.msra.gmra.mrb[48].mxu1 %v5710_v53  ;;  %6809 = vmatpush3.bf16.msra.mxu0 %v7410_v57  ;;  %v7456_v53 = vld [vmem:[%s9198_s1 + $0xe58] sm:$0xff]   ;;  %v7460_v57 = vld [vmem:[%s9198_s1 + $0xe60] sm:$0xff]  }
 0x1a5   :  { %6831 = vmatpush3.bf16.msra.mxu1 %v7411_v58  ;;  %6810 = vmatprep.subr.bf16.mxu0 %v7412_v59  ;;  %v7461_v58 = vld [vmem:[%s9198_s1 + $0xee0] sm:$0xff]  }
 0x1a6   :  { %6832 = vmatprep.subr.bf16.mxu1 %v7413_v60  ;;  %5446 = vmatprep.mubr.bf16.mxu0 %v5713_v37  ;;  %v7462_v60 = vld [vmem:[%s9198_s1 + $0xe20] sm:$0xff]   ;;  %v7490_v37 = vld [vmem:[%s9198_s1 + $0xf10] sm:$0xff]  }
 0x1a7   :  { %5486 = vmatprep.mubr.bf16.mxu1 %v5715_v40  ;;  %v7493_v40 = vld [vmem:[%s9198_s1 + $0xfd8] sm:$0xff]  }
 0x1a8   :  { %6811 = vmatpush3.bf16.msra.mxu0 %v7414_v61 }
 0x1a9   :  { %6833 = vmatpush3.bf16.msra.mxu1 %v7415_v62  ;;  %6812 = vmatprep.subr.bf16.mxu0 %v7416_v63  ;;  %v7463_v62 = vld [vmem:[%s9198_s1 + $0xea0] sm:$0xff]  }
 0x1aa   :  { %6834 = vmatprep.subr.bf16.mxu1 %v7417_v0 }
 0x1ac   :  { %6813 = vmatpush3.bf16.msra.mxu0 %v7418_v1  ;;  %v7464_v1 = vld [vmem:[%s9198_s1 + $0xe68] sm:$0xff]  }
 0x1ad   :  { %6835 = vmatpush3.bf16.msra.mxu1 %v7419_v2  ;;  %6814 = vmatprep.subr.bf16.mxu0 %v7420_v3 }
 0x1ae   :  { %6836 = vmatprep.subr.bf16.mxu1 %v7421_v4  ;;  %v7465_v4 = vld [vmem:[%s9198_s1 + $0xee8] sm:$0xff]  }
 0x1b0   :  { %6815 = vmatpush3.bf16.msra.mxu0 %v7422_v5 }
 0x1b1   :  { %6837 = vmatpush3.bf16.msra.mxu1 %v7423_v6  ;;  %6816 = vmatprep.subr.bf16.mxu0 %v7424_v7  ;;  %v7466_v7 = vld [vmem:[%s9198_s1 + $0xe28] sm:$0xff]  }
 0x1b2   :  { %6838 = vmatprep.subr.bf16.mxu1 %v7425_v8 }
 0x1b4   :  { %6817 = vmatpush3.bf16.msra.mxu0 %v7426_v10 }
 0x1b5   :  { %6839 = vmatpush3.bf16.msra.mxu1 %v7427_v12  ;;  %6818 = vmatprep.subr.bf16.mxu0 %v7428_v15  ;;  %v7468_v12 = vld [vmem:[%s9198_s1 + $0xe70] sm:$0xff]  }
 0x1b6   :  { %v6516_v9 = vpop.f32.mrb[24].mxu0  ;;  %6840 = vmatprep.subr.bf16.mxu1 %v7429_v18  ;;  %v7470_v15 = vld [vmem:[%s9198_s1 + $0xe30] sm:$0xff]   ;;  %v7473_v18 = vld [vmem:[%s9198_s1 + $0xef8] sm:$0xff]  }
 0x1b7   :  { %v6538_v11 = vpop.f32.mrb[24].mxu1  ;;  %v6517_v13 = vpop.f32.mrb[25].mxu0 }
 0x1b8   :  { %v6539_v14 = vpop.f32.mrb[25].mxu1  ;;  %v6518_v16 = vadd.f32 %v6517_v13, %v6516_v9  ;;  %v6519_v19 = vpop.f32.mrb[26].mxu0  ;;  %6819 = vmatpush3.bf16.msra.mxu0 %v7430_v21  ;;  %v7467_v9 = vld [vmem:[%s9198_s1 + $0xea8] sm:$0xff]   ;;  %v43_v21 = vld [vmem:[%s9199_s0 + $0xe0] sm:$0xff] }
 0x1b9   :  { %v6540_v17 = vadd.f32 %v6539_v14, %v6538_v11  ;;  %v6541_v20 = vpop.f32.mrb[26].mxu1  ;;  %v6520_v24 = vpop.f32.mrb[27].mxu0  ;;  %6841 = vmatpush3.bf16.msra.mxu1 %v7431_v23  ;;  %6820 = vmatprep.subr.bf16.mxu0 %v7432_v26  ;;  %v7469_v14 = vld [vmem:[%s9198_s1 + $0xef0] sm:$0xff]   ;;  %v7474_v19 = vld [vmem:[%s9198_s1 + $0xe38] sm:$0xff]   ;;  %v5716_v23 = vcombine.low %v43_v21, %v43_v21 }
 0x1ba   :  { %v4889_v22 = vadd.f32 %v6518_v16, %v8850_v39  ;;  %v6542_v25 = vpop.f32.mrb[27].mxu1  ;;  %6842 = vmatprep.subr.bf16.mxu1 %v7433_v28  ;;  %v5714_v39 = vcombine.low %v42_v38, %v42_v38  ;;  %v7471_v16 = vld [vmem:[%s9198_s1 + $0xeb0] sm:$0xff]   ;;  %v7475_v20 = vld [vmem:[%s9198_s1 + $0xeb8] sm:$0xff]   ;;  %v5717_v24 = vcombine.high %v43_v21, %v43_v21  ;;  %v7481_v28 = vld [vmem:[%s9198_s1 + $0xfc0] sm:$0xff]  }
 0x1bb   :  { %v7491_v38 = vld [vmem:[%s9198_s1 + $0xf90] sm:$0xff]  }
 0x1bc   :  { %v8958_v27 = vadd.f32 %v6540_v17, %v4889_v22  ;;  %6821 = vmatpush3.bf16.msra.mxu0 %v7434_v29  ;;  %v7472_v17 = vld [vmem:[%s9198_s1 + $0xe78] sm:$0xff]   ;;  %v44_v22 = vld [vmem:[%s9199_s0 + $0xe8] sm:$0xff]  ;;  %v7482_v29 = vld [vmem:[%s9198_s1 + $0xf00] sm:$0xff]  }
 0x1bd   :  { %6843 = vmatpush3.bf16.msra.mxu1 %v7435_v30  ;;  %6822 = vmatprep.subr.bf16.mxu0 %v7436_v31  ;;  %v5718_v25 = vcombine.low %v44_v22, %v44_v22  ;;  %v5719_v26 = vcombine.high %v44_v22, %v44_v22  ;;  %v7483_v30 = vld [vmem:[%s9198_s1 + $0xf80] sm:$0xff]   ;;  %v7484_v31 = vld [vmem:[%s9198_s1 + $0xf48] sm:$0xff]  }
 0x1be   :  { %6844 = vmatprep.subr.bf16.mxu1 %v7437_v32  ;;  %v7485_v32 = vld [vmem:[%s9198_s1 + $0xfc8] sm:$0xff]  }
 0x1c0   :  { %6823 = vmatpush3.bf16.msra.mxu0 %v7438_v33  ;;  %v7486_v33 = vld [vmem:[%s9198_s1 + $0xf08] sm:$0xff]  }
 0x1c1   :  { %6845 = vmatpush3.bf16.msra.mxu1 %v7439_v34  ;;  %6852 = vmatprep.subr.bf16.mxu0 %v7444_v41  ;;  %v7487_v34 = vld [vmem:[%s9198_s1 + $0xf88] sm:$0xff]   ;;  %v7494_v41 = vld [vmem:[%s9198_s1 + $0xf18] sm:$0xff]  }
 0x1c2   :  { %6874 = vmatprep.subr.bf16.mxu1 %v7445_v42  ;;  %v7495_v42 = vld [vmem:[%s9198_s1 + $0xf98] sm:$0xff]  }
 0x1c3   :  { %5447 = vmatmul.mubr.bf16.vlgmr.msra.gmra.mrb[52].mxu0 %v5712_v36  ;;  %v7489_v36 = vld [vmem:[%s9198_s1 + $0xfd0] sm:$0xff]  }
 0x1c4   :  { %5487 = vmatmul.mubr.bf16.vlgmr.msra.gmra.mrb[52].mxu1 %v5714_v39  ;;  %6853 = vmatpush3.bf16.msra.mxu0 %v7446_v43  ;;  %v7492_v39 = vld [vmem:[%s9198_s1 + $0xf58] sm:$0xff]   ;;  %v7496_v43 = vld [vmem:[%s9198_s1 + $0xf60] sm:$0xff]  }
 0x1c5   :  { %6875 = vmatpush3.bf16.msra.mxu1 %v7447_v44  ;;  %6854 = vmatprep.subr.bf16.mxu0 %v7448_v45  ;;  %v7497_v44 = vld [vmem:[%s9198_s1 + $0xfe0] sm:$0xff]  }
 0x1c6   :  { %6876 = vmatprep.subr.bf16.mxu1 %v7449_v46  ;;  %5526 = vmatprep.mubr.bf16.mxu0 %v5717_v24  ;;  %v7498_v45 = vld [vmem:[%s9198_s1 + $0xf20] sm:$0xff]  }
 0x1c7   :  { %5566 = vmatprep.mubr.bf16.mxu1 %v5719_v26 }
 0x1c8   :  { %6855 = vmatpush3.bf16.msra.mxu0 %v7450_v47  ;;  %v7499_v47 = vld [vmem:[%s9198_s1 + $0xfa0] sm:$0xff]  }
 0x1c9   :  { %6877 = vmatpush3.bf16.msra.mxu1 %v7451_v48  ;;  %6856 = vmatprep.subr.bf16.mxu0 %v7452_v49 }
 0x1ca   :  { %6878 = vmatprep.subr.bf16.mxu1 %v7453_v50 }
 0x1cc   :  { %6857 = vmatpush3.bf16.msra.mxu0 %v7454_v51 }
 0x1cd   :  { %6879 = vmatpush3.bf16.msra.mxu1 %v7455_v52  ;;  %6858 = vmatprep.subr.bf16.mxu0 %v7456_v53  ;;  %v7500_v53 = vld [vmem:[%s9198_s1 + $0xf68] sm:$0xff]  }
 0x1ce   :  { %6880 = vmatprep.subr.bf16.mxu1 %v7457_v54 }
 0x1d0   :  { %6859 = vmatpush3.bf16.msra.mxu0 %v7458_v55  ;;  %v7501_v55 = vld [vmem:[%s9198_s1 + $0xfe8] sm:$0xff]  }
 0x1d1   :  { %6881 = vmatpush3.bf16.msra.mxu1 %v7459_v56  ;;  %6860 = vmatprep.subr.bf16.mxu0 %v7460_v57 }
 0x1d2   :  { %6882 = vmatprep.subr.bf16.mxu1 %v7461_v58  ;;  %v7502_v58 = vld [vmem:[%s9198_s1 + $0xf28] sm:$0xff]  }
 0x1d4   :  { %6861 = vmatpush3.bf16.msra.mxu0 %v7462_v60  ;;  %v7503_v60 = vld [vmem:[%s9198_s1 + $0xfa8] sm:$0xff]  }
 0x1d5   :  { %6883 = vmatpush3.bf16.msra.mxu1 %v7463_v62  ;;  %6862 = vmatprep.subr.bf16.mxu0 %v7464_v1  ;;  %v7506_v1 = vld [vmem:[%s9198_s1 + $0xf30] sm:$0xff]  }
 0x1d6   :  { %v6560_v59 = vpop.f32.mrb[28].mxu0  ;;  %6884 = vmatprep.subr.bf16.mxu1 %v7465_v4  ;;  %v7509_v4 = vld [vmem:[%s9198_s1 + $0xff8] sm:$0xff]  }
 0x1d7   :  { %v6582_v61 = vpop.f32.mrb[28].mxu1  ;;  %v6561_v63 = vpop.f32.mrb[29].mxu0 }
 0x1d8   :  { %v6583_v0 = vpop.f32.mrb[29].mxu1  ;;  %v6562_v2 = vadd.f32 %v6561_v63, %v6560_v59  ;;  %v6563_v5 = vpop.f32.mrb[30].mxu0  ;;  %6863 = vmatpush3.bf16.msra.mxu0 %v7466_v7  ;;  %v7504_v63 = vld [vmem:[%s9198_s1 + $0xf70] sm:$0xff]  }
 0x1d9   :  { %v6584_v3 = vadd.f32 %v6583_v0, %v6582_v61  ;;  %v6585_v6 = vpop.f32.mrb[30].mxu1  ;;  %v6564_v10 = vpop.f32.mrb[31].mxu0  ;;  %6885 = vmatpush3.bf16.msra.mxu1 %v7467_v9  ;;  %6864 = vmatprep.subr.bf16.mxu0 %v7468_v12  ;;  %v7505_v0 = vld [vmem:[%s9198_s1 + $0xff0] sm:$0xff]   ;;  %v7510_v5 = vld [vmem:[%s9198_s1 + $0xf38] sm:$0xff]  }
 0x1da   :  { %v4969_v8 = vadd.f32 %v6562_v2, %v8958_v27  ;;  %v6586_v11 = vpop.f32.mrb[31].mxu1  ;;  %6886 = vmatprep.subr.bf16.mxu1 %v7469_v14  ;;  %v7480_v27 = vld [vmem:[%s9198_s1 + $0xf40] sm:$0xff]   ;;  %v7507_v2 = vld [vmem:[%s9198_s1 + $0xfb0] sm:$0xff]   ;;  %v7511_v6 = vld [vmem:[%s9198_s1 + $0xfb8] sm:$0xff]  }
 0x1db   :  { %v45_v7 = vld [vmem:[%s9199_s0 + $0xf0] sm:$0xff] }
 0x1dc   :  { %v9063_v13 = vadd.f32 %v6584_v3, %v4969_v8  ;;  %6865 = vmatpush3.bf16.msra.mxu0 %v7470_v15  ;;  %v7508_v3 = vld [vmem:[%s9198_s1 + $0xf78] sm:$0xff]   ;;  %v5720_v9 = vcombine.low %v45_v7, %v45_v7  ;;  %v5721_v10 = vcombine.high %v45_v7, %v45_v7 }
 0x1dd   :  { %6887 = vmatpush3.bf16.msra.mxu1 %v7471_v16  ;;  %6866 = vmatprep.subr.bf16.mxu0 %v7472_v17  ;;  %v46_v8 = vld [vmem:[%s9199_s0 + $0xf8] sm:$0xff] }
 0x1de   :  { %6888 = vmatprep.subr.bf16.mxu1 %v7473_v18  ;;  %v5722_v11 = vcombine.low %v46_v8, %v46_v8  ;;  %v5723_v12 = vcombine.high %v46_v8, %v46_v8 }
 0x1e0   :  { %6867 = vmatpush3.bf16.msra.mxu0 %v7474_v19 }
 0x1e1   :  { %6889 = vmatpush3.bf16.msra.mxu1 %v7475_v20  ;;  %6896 = vmatprep.subr.bf16.mxu0 %v7480_v27 }
 0x1e2   :  { %6918 = vmatprep.subr.bf16.mxu1 %v7481_v28 }
 0x1e3   :  { %5527 = vmatmul.mubr.bf16.vlgmr.msra.gmra.mrb[56].mxu0 %v5716_v23 }
 0x1e4   :  { %5567 = vmatmul.mubr.bf16.vlgmr.msra.gmra.mrb[56].mxu1 %v5718_v25  ;;  %6897 = vmatpush3.bf16.msra.mxu0 %v7482_v29 }
 0x1e5   :  { %6919 = vmatpush3.bf16.msra.mxu1 %v7483_v30  ;;  %6898 = vmatprep.subr.bf16.mxu0 %v7484_v31 }
 0x1e6   :  { %6920 = vmatprep.subr.bf16.mxu1 %v7485_v32  ;;  %5606 = vmatprep.mubr.bf16.mxu0 %v5721_v10 }
 0x1e7   :  { %5646 = vmatprep.mubr.bf16.mxu1 %v5723_v12 }
 0x1e8   :  { %6899 = vmatpush3.bf16.msra.mxu0 %v7486_v33 }
 0x1e9   :  { %6921 = vmatpush3.bf16.msra.mxu1 %v7487_v34  ;;  %6900 = vmatprep.subr.bf16.mxu0 %v7488_v35 }
 0x1ea   :  { %6922 = vmatprep.subr.bf16.mxu1 %v7489_v36 }
 0x1ec   :  { %6901 = vmatpush3.bf16.msra.mxu0 %v7490_v37 }
 0x1ed   :  { %6923 = vmatpush3.bf16.msra.mxu1 %v7491_v38  ;;  %6902 = vmatprep.subr.bf16.mxu0 %v7492_v39 }
 0x1ee   :  { %6924 = vmatprep.subr.bf16.mxu1 %v7493_v40 }
 0x1f0   :  { %6903 = vmatpush3.bf16.msra.mxu0 %v7494_v41 }
 0x1f1   :  { %6925 = vmatpush3.bf16.msra.mxu1 %v7495_v42  ;;  %6904 = vmatprep.subr.bf16.mxu0 %v7496_v43 }
 0x1f2   :  { %6926 = vmatprep.subr.bf16.mxu1 %v7497_v44 }
 0x1f4   :  { %6905 = vmatpush3.bf16.msra.mxu0 %v7498_v45 }
 0x1f5   :  { %6927 = vmatpush3.bf16.msra.mxu1 %v7499_v47  ;;  %6906 = vmatprep.subr.bf16.mxu0 %v7500_v53 }
 0x1f6   :  { %v6604_v46 = vpop.f32.mrb[32].mxu0  ;;  %6928 = vmatprep.subr.bf16.mxu1 %v7501_v55 }
 0x1f7   :  { %v6626_v48 = vpop.f32.mrb[32].mxu1  ;;  %v6605_v49 = vpop.f32.mrb[33].mxu0 }
 0x1f8   :  { %v6627_v50 = vpop.f32.mrb[33].mxu1  ;;  %v6606_v51 = vadd.f32 %v6605_v49, %v6604_v46  ;;  %v6607_v54 = vpop.f32.mrb[34].mxu0  ;;  %6907 = vmatpush3.bf16.msra.mxu0 %v7502_v58 }
 0x1f9   :  { %v6628_v52 = vadd.f32 %v6627_v50, %v6626_v48  ;;  %v6629_v56 = vpop.f32.mrb[34].mxu1  ;;  %v6608_v59 = vpop.f32.mrb[35].mxu0  ;;  %6929 = vmatpush3.bf16.msra.mxu1 %v7503_v60  ;;  %6908 = vmatprep.subr.bf16.mxu0 %v7504_v63 }
 0x1fa   :  { %v5049_v57 = vadd.f32 %v6606_v51, %v9063_v13  ;;  %v6630_v61 = vpop.f32.mrb[35].mxu1  ;;  %6930 = vmatprep.subr.bf16.mxu1 %v7505_v0 }
 0x1fc   :  { %v5089_v62 = vadd.f32 %v6628_v52, %v5049_v57  ;;  %6909 = vmatpush3.bf16.msra.mxu0 %v7506_v1 }
 0x1fd   :  { %6931 = vmatpush3.bf16.msra.mxu1 %v7507_v2  ;;  %6910 = vmatprep.subr.bf16.mxu0 %v7508_v3 }
 0x1fe   :  { %6932 = vmatprep.subr.bf16.mxu1 %v7509_v4 }
 0x200   :  { %6911 = vmatpush3.bf16.msra.mxu0 %v7510_v5 }
 0x201   :  { %6933 = vmatpush3.bf16.msra.mxu1 %v7511_v6 }
 0x203   :  { %5607 = vmatmul.mubr.bf16.vlgmr.msra.gmra.mrb[60].mxu0 %v5720_v9 }
 0x204   :  { %5647 = vmatmul.mubr.bf16.vlgmr.msra.gmra.mrb[60].mxu1 %v5722_v11 }
 0x216   :  { %v6648_v13 = vpop.f32.mrb[36].mxu0 }
 0x217   :  { %v6670_v14 = vpop.f32.mrb[36].mxu1  ;;  %v6649_v15 = vpop.f32.mrb[37].mxu0 }
 0x218   :  { %v6650_v16 = vadd.f32 %v6649_v15, %v6648_v13  ;;  %v6671_v17 = vpop.f32.mrb[37].mxu1  ;;  %v6651_v18 = vpop.f32.mrb[38].mxu0 }
 0x219   :  { %v6672_v19 = vadd.f32 %v6671_v17, %v6670_v14  ;;  %v6673_v20 = vpop.f32.mrb[38].mxu1  ;;  %v6652_v21 = vpop.f32.mrb[39].mxu0 }
 0x21a   :  { %v5129_v22 = vadd.f32 %v6650_v16, %v5089_v62  ;;  %v6674_v23 = vpop.f32.mrb[39].mxu1 }
 0x21c   :  { %v5169_v24 = vadd.f32 %v6672_v19, %v5129_v22 }
 0x236   :  { %v6692_v25 = vpop.f32.mrb[40].mxu0 }
 0x237   :  { %v6714_v26 = vpop.f32.mrb[40].mxu1  ;;  %v6693_v27 = vpop.f32.mrb[41].mxu0 }
 0x238   :  { %v6715_v28 = vpop.f32.mrb[41].mxu1  ;;  %v6694_v29 = vadd.f32 %v6693_v27, %v6692_v25  ;;  %v6695_v31 = vpop.f32.mrb[42].mxu0 }
 0x239   :  { %v6716_v30 = vadd.f32 %v6715_v28, %v6714_v26  ;;  %v6717_v32 = vpop.f32.mrb[42].mxu1  ;;  %v6696_v33 = vpop.f32.mrb[43].mxu0 }
 0x23a   :  { %v6718_v34 = vpop.f32.mrb[43].mxu1  ;;  %v5209_v35 = vadd.f32 %v6694_v29, %v5169_v24 }
 0x23c   :  { %v5249_v36 = vadd.f32 %v6716_v30, %v5209_v35 }
 0x256   :  { %v6736_v37 = vpop.f32.mrb[44].mxu0 }
 0x257   :  { %v6758_v38 = vpop.f32.mrb[44].mxu1  ;;  %v6737_v39 = vpop.f32.mrb[45].mxu0 }
 0x258   :  { %v6738_v40 = vadd.f32 %v6737_v39, %v6736_v37  ;;  %v6759_v41 = vpop.f32.mrb[45].mxu1  ;;  %v6739_v42 = vpop.f32.mrb[46].mxu0 }
 0x259   :  { %v6760_v43 = vadd.f32 %v6759_v41, %v6758_v38  ;;  %v6761_v44 = vpop.f32.mrb[46].mxu1  ;;  %v6740_v45 = vpop.f32.mrb[47].mxu0 }
 0x25a   :  { %v5289_v46 = vadd.f32 %v6738_v40, %v5249_v36  ;;  %v6762_v47 = vpop.f32.mrb[47].mxu1 }
 0x25c   :  { %v5329_v48 = vadd.f32 %v6760_v43, %v5289_v46 }
 0x276   :  { %v6780_v49 = vpop.f32.mrb[48].mxu0 }
 0x277   :  { %v6802_v50 = vpop.f32.mrb[48].mxu1  ;;  %v6781_v51 = vpop.f32.mrb[49].mxu0 }
 0x278   :  { %v6782_v52 = vadd.f32 %v6781_v51, %v6780_v49  ;;  %v6803_v53 = vpop.f32.mrb[49].mxu1  ;;  %v6783_v54 = vpop.f32.mrb[50].mxu0 }
 0x279   :  { %v6804_v55 = vadd.f32 %v6803_v53, %v6802_v50  ;;  %v6805_v56 = vpop.f32.mrb[50].mxu1  ;;  %v6784_v57 = vpop.f32.mrb[51].mxu0 }
 0x27a   :  { %v5369_v58 = vadd.f32 %v6782_v52, %v5329_v48  ;;  %v6806_v59 = vpop.f32.mrb[51].mxu1 }
 0x27c   :  { %v5409_v60 = vadd.f32 %v6804_v55, %v5369_v58 }
 0x296   :  { %v6824_v61 = vpop.f32.mrb[52].mxu0 }
 0x297   :  { %v6846_v62 = vpop.f32.mrb[52].mxu1  ;;  %v6825_v63 = vpop.f32.mrb[53].mxu0 }
 0x298   :  { %v6847_v0 = vpop.f32.mrb[53].mxu1  ;;  %v6826_v1 = vadd.f32 %v6825_v63, %v6824_v61  ;;  %v6827_v3 = vpop.f32.mrb[54].mxu0 }
 0x299   :  { %v6848_v2 = vadd.f32 %v6847_v0, %v6846_v62  ;;  %v6849_v4 = vpop.f32.mrb[54].mxu1  ;;  %v6828_v5 = vpop.f32.mrb[55].mxu0 }
 0x29a   :  { %v6850_v6 = vpop.f32.mrb[55].mxu1  ;;  %v5449_v7 = vadd.f32 %v6826_v1, %v5409_v60 }
 0x29c   :  { %v5489_v8 = vadd.f32 %v6848_v2, %v5449_v7 }
 0x2b6   :  { %v6868_v9 = vpop.f32.mrb[56].mxu0 }
 0x2b7   :  { %v6890_v10 = vpop.f32.mrb[56].mxu1  ;;  %v6869_v11 = vpop.f32.mrb[57].mxu0 }
 0x2b8   :  { %v6870_v12 = vadd.f32 %v6869_v11, %v6868_v9  ;;  %v6891_v13 = vpop.f32.mrb[57].mxu1  ;;  %v6871_v14 = vpop.f32.mrb[58].mxu0 }
 0x2b9   :  { %v6892_v15 = vadd.f32 %v6891_v13, %v6890_v10  ;;  %v6893_v16 = vpop.f32.mrb[58].mxu1  ;;  %v6872_v17 = vpop.f32.mrb[59].mxu0 }
 0x2ba   :  { %v5529_v18 = vadd.f32 %v6870_v12, %v5489_v8  ;;  %v6894_v19 = vpop.f32.mrb[59].mxu1 }
 0x2bc   :  { %v5569_v20 = vadd.f32 %v6892_v15, %v5529_v18 }
 0x2d6   :  { %v6912_v21 = vpop.f32.mrb[60].mxu0 }
 0x2d7   :  { %v6934_v22 = vpop.f32.mrb[60].mxu1  ;;  %v6913_v23 = vpop.f32.mrb[61].mxu0 }
 0x2d8   :  { %v6914_v24 = vadd.f32 %v6913_v23, %v6912_v21  ;;  %v6935_v25 = vpop.f32.mrb[61].mxu1  ;;  %v6915_v26 = vpop.f32.mrb[62].mxu0 }
 0x2d9   :  { %v6936_v27 = vadd.f32 %v6935_v25, %v6934_v22  ;;  %v6937_v28 = vpop.f32.mrb[62].mxu1  ;;  %v6916_v29 = vpop.f32.mrb[63].mxu0 }
 0x2da   :  { %v5609_v30 = vadd.f32 %v6914_v24, %v5569_v20  ;;  %v6938_v31 = vpop.f32.mrb[63].mxu1 }
 0x2dc   :  { %v5649_v32 = vadd.f32 %v6936_v27, %v5609_v30 }
 0x2de   :  { %5654 = vst [vmem:[%s9201_s3] sm:$0xff] %v5649_v32 }

</bundles_post_ra>
